<compile_context>
chip_gen: v6e
topology: v6e:2x2x1
jax: 0.10.0
libtpu: 0.0.40
codegen_flags: <defaults>
</compile_context>

<pallas_src>
import jax
import jax.numpy as jnp
from jax import lax
from jax.experimental import pallas as pl
from jax.experimental.pallas import tpu as pltpu

# -------------------- configuration (small shapes) --------------------
BATCH = 2
IN_CH = 4
IN_HW = 16
HWSQ = IN_HW * IN_HW                      # 256 = per-channel spatial size
IN_FEAT = IN_CH * HWSQ                    # 1024 = flattened input (C,H,W)
C1, HW1 = 8, 8                            # after conv1 (k3,s2,p1): 16x16 -> 8x8
F1 = C1 * HW1 * HW1                       # 512
C2, HW2 = 16, 8                           # after conv2 (k3,s1,p1): 8x8 -> 8x8
F2 = C2 * HW2 * HW2                       # 1024
POOL_HW = 5                               # AvgPool(k4,s1): 8x8 -> 5x5
LATENT = C2 * POOL_HW * POOL_HW           # 400
LATP = 512                                # latent padded to a multiple of 128


# -------------------- the single fused Pallas kernel --------------------
def _fused_vae_kernel(x_ref, eps_ref, wa_ref, wb_ref, wh_ref, bh_ref,
                      mean_ref, lv_ref, h_ref, xo_ref, xn_ref):
    f32 = jnp.float32
    bf16 = jnp.bfloat16

    x = x_ref[...]                                                     # (NT, 1024) f32

    # ---- InstanceNorm2d: per-(n,c) stats via lane reductions (XLU) + rsqrt (EUP) ----
    # Channel c occupies the tile-aligned lane range [c*256, (c+1)*256).
    for c in range(IN_CH):
        lo, hi = c * HWSQ, (c + 1) * HWSQ
        xc = x[:, lo:hi]                                               # (NT, 256)
        mu = jnp.mean(xc, axis=-1, keepdims=True)                      # (NT, 1)
        d = xc - mu
        var = jnp.mean(d * d, axis=-1, keepdims=True)                  # biased variance
        xn_ref[:, lo:hi] = (d * lax.rsqrt(var + 1e-5)).astype(bf16)

    xn = xn_ref[...]                                                   # (NT, 1024) bf16

    # ---- coalesced weight slabs ----
    m1 = wa_ref[0]                                                     # (1024, 512) conv1
    md2 = wa_ref[1]                                                    # (1024, 512) deconv2
    m2 = wb_ref[0]                                                     # (512, 1024) conv2
    md1 = wb_ref[1]                                                    # (512, 1024) deconv1
    md3 = wb_ref[2]                                                    # (512, 1024) deconv3

    # ---- encoder convs as lane-dense MXU matmuls (bf16 operands, f32 acc) + ReLU ----
    c1 = jnp.maximum(jnp.dot(xn, m1, preferred_element_type=f32), 0.0)          # (NT, 512)
    c2 = jnp.maximum(jnp.dot(c1.astype(bf16), m2, preferred_element_type=f32), 0.0)  # (NT,1024)

    # ---- avg-pool folded into fused (mean | logvar) head, + reparameterization ----
    head = jnp.dot(c2.astype(bf16), wh_ref[...],
                   preferred_element_type=f32) + bh_ref[...]                    # (NT, 1024)
    mean_p = head[:, :LATP]                                                     # (NT, 512)
    lv_p = head[:, LATP:]                                                       # (NT, 512)
    h_p = mean_p + jnp.exp(lv_p * 0.5) * eps_ref[...]                           # mean + std*eps

    # ---- decoder deconvs as lane-dense MXU matmuls + ReLU ----
    d1 = jnp.maximum(jnp.dot(h_p.astype(bf16), md1, preferred_element_type=f32), 0.0)  # (NT,1024)
    d2 = jnp.maximum(jnp.dot(d1.astype(bf16), md2, preferred_element_type=f32), 0.0)   # (NT, 512)
    d3 = jnp.maximum(jnp.dot(d2.astype(bf16), md3, preferred_element_type=f32), 0.0)   # (NT,1024)

    # ---- lane-dense output stores (unmasked vst) ----
    mean_ref[...] = mean_p
    lv_ref[...] = lv_p
    h_ref[...] = h_p
    xo_ref[...] = d3


# -------------------- one-time weight packing (outside the jitted forward) --------------------
def _conv_dense(w_oihw, h, w, stride, padding):
    """Exact dense matrix of a Conv2d: maps (Cin*h*w) -> (Cout*Ho*Wo), both CHW-flattened."""
    cout, cin, k, _ = w_oihw.shape
    din = cin * h * w
    eye = jnp.eye(din, dtype=jnp.float32).reshape(din, cin, h, w)
    out = lax.conv_general_dilated(
        eye, w_oihw.astype(jnp.float32), (stride, stride),
        [(padding, padding), (padding, padding)],
        dimension_numbers=("NCHW", "OIHW", "NCHW"))
    return out.reshape(din, -1)


def _deconv_dense(w_iohw, h, w, stride, padding, output_padding):
    """Exact dense matrix of a ConvTranspose2d (PyTorch semantics)."""
    cin, cout, k, _ = w_iohw.shape
    din = cin * h * w
    eye = jnp.eye(din, dtype=jnp.float32).reshape(din, cin, h, w)
    w_eq = jnp.transpose(w_iohw[:, :, ::-1, ::-1], (1, 0, 2, 3)).astype(jnp.float32)
    lo = k - 1 - padding
    hi = k - 1 - padding + output_padding
    out = lax.conv_general_dilated(
        eye, w_eq, (1, 1), [(lo, hi), (lo, hi)], lhs_dilation=(stride, stride),
        dimension_numbers=("NCHW", "OIHW", "NCHW"))
    return out.reshape(din, -1)


def _avgpool_dense(c, h, w, k, stride):
    """Exact dense matrix of AvgPool2d(k, stride) applied per channel."""
    din = c * h * w
    eye = jnp.eye(din, dtype=jnp.float32).reshape(din, c, h, w)
    wp = jnp.ones((c, 1, k, k), jnp.float32) / float(k * k)
    out = lax.conv_general_dilated(
        eye, wp, (stride, stride), "VALID", feature_group_count=c,
        dimension_numbers=("NCHW", "OIHW", "NCHW"))
    return out.reshape(din, -1)


def prepare_params(params):
    """Pre-pack all weights into coalesced, lane-dense bf16 slabs. Called once."""
    f32, bf16 = jnp.float32, jnp.bfloat16

    M1 = _conv_dense(params["conv1_w"], IN_HW, IN_HW, 2, 1)              # (1024, 512)
    M2 = _conv_dense(params["conv2_w"], HW1, HW1, 1, 1)                  # (512, 1024)
    Mp = _avgpool_dense(C2, HW2, HW2, 4, 1)                              # (1024, 400)

    # Fused (mean | logvar) head, pre-transposed and padded to LATP, with avg-pool folded in.
    Wm = jnp.pad(params["mean_w"].T, ((0, 0), (0, LATP - LATENT)))       # (400, 512)
    Wv = jnp.pad(params["var_w"].T, ((0, 0), (0, LATP - LATENT)))        # (400, 512)
    Wh = jnp.concatenate([Wm, Wv], axis=1)                               # (400, 1024)
    MpWh = Mp @ Wh                                                       # (1024, 1024) exact fold
    bm = jnp.pad(params["mean_b"], (0, LATP - LATENT))
    bv = jnp.pad(params["var_b"], (0, LATP - LATENT))
    bh = jnp.concatenate([bm, bv]).reshape(1, 2 * LATP).astype(f32)      # (1, 1024)

    Md1 = _deconv_dense(params["deconv1_w"], POOL_HW, POOL_HW, 1, 0, 0)  # (400, 1024)
    Md1 = jnp.pad(Md1, ((0, LATP - LATENT), (0, 0)))                     # (512, 1024)
    Md2 = _deconv_dense(params["deconv2_w"], HW2, HW2, 1, 1, 0)          # (1024, 512)
    Md3 = _deconv_dense(params["deconv3_w"], HW1, HW1, 2, 1, 1)          # (512, 1024)

    # Coalesce same-shaped slabs to cut per-DMA descriptor overhead (12 -> 6 kernel inputs).
    wA = jnp.stack([M1, Md2]).astype(bf16)                               # (2, 1024, 512)
    wB = jnp.stack([M2, Md1, Md3]).astype(bf16)                          # (3, 512, 1024)
    return {"wA": wA, "wB": wB, "wH": MpWh.astype(bf16), "bh": bh}


def _choose_batch_tile(n_padded):
    """Largest tile in {256,...,8} dividing the (sublane-padded) batch."""
    for t in (256, 128, 64, 32, 16, 8):
        if n_padded % t == 0:
            return t
    return n_padded


# -------------------- forward --------------------
@jax.jit
def var_vis_autoencoder_forward(packed, x_nchw, eps):
    n = x_nchw.shape[0]
    n_pad = ((n + 7) // 8) * 8                                           # full-sublane batch
    nt = _choose_batch_tile(n_pad)
    grid = (n_pad // nt,)

    x2 = x_nchw.astype(jnp.float32).reshape(n, IN_FEAT)                  # free (C,H,W) flatten
    x2 = jnp.pad(x2, ((0, n_pad - n), (0, 0)))
    eps_p = jnp.pad(eps.astype(jnp.float32),
                    ((0, n_pad - n), (0, LATP - LATENT)))

    out_shape = (
        jax.ShapeDtypeStruct((n_pad, LATP), jnp.float32),                # mean (lane-dense)
        jax.ShapeDtypeStruct((n_pad, LATP), jnp.float32),                # log_variance
        jax.ShapeDtypeStruct((n_pad, LATP), jnp.float32),                # h
        jax.ShapeDtypeStruct((n_pad, IN_FEAT), jnp.float32),             # x_out (flat CHW)
    )

    batch_spec = lambda shape: pl.BlockSpec(shape, lambda i: (i, 0))
    const2 = lambda shape: pl.BlockSpec(shape, lambda i: (0, 0))
    const3 = lambda shape: pl.BlockSpec(shape, lambda i: (0, 0, 0))

    mean_p, lv_p, h_p, xo_flat = pl.pallas_call(
        _fused_vae_kernel,
        out_shape=out_shape,
        grid=grid,
        in_specs=[
            batch_spec((nt, IN_FEAT)),                                   # x
            batch_spec((nt, LATP)),                                      # eps
            const3((2, IN_FEAT, F1)),                                    # wA  (conv1 | deconv2)
            const3((3, F1, F2)),                                         # wB  (conv2 | deconv1 | deconv3)
            const2((F2, 2 * LATP)),                                      # wH  (pool @ [mean|var])
            const2((1, 2 * LATP)),                                       # bh
        ],
        out_specs=(
            batch_spec((nt, LATP)),
            batch_spec((nt, LATP)),
            batch_spec((nt, LATP)),
            batch_spec((nt, IN_FEAT)),
        ),
        scratch_shapes=[pltpu.VMEM((nt, IN_FEAT), jnp.bfloat16)],        # normalized input
        compiler_params=pltpu.CompilerParams(
            dimension_semantics=("parallel",),
            vmem_limit_bytes=32 * 1024 * 1024),
    )(x2, eps_p, packed["wA"], packed["wB"], packed["wH"], packed["bh"])

    # Free XLA slices back to the module's shapes (400-wide latent, original batch).
    mean = mean_p[:n, :LATENT]
    log_variance = lv_p[:n, :LATENT]
    h = h_p[:n, :LATENT]
    x_out = xo_flat[:n].reshape(n, IN_CH, IN_HW, IN_HW)
    return x_nchw, mean, log_variance, h, x_out


def init_params(key):
    ks = jax.random.split(key, 9)
    s = 0.05
    return {
        # encoder Conv2d weights: (Cout, Cin, k, k), bias=False
        "conv1_w": s * jax.random.normal(ks[0], (C1, IN_CH, 3, 3), jnp.float32),
        "conv2_w": s * jax.random.normal(ks[1], (C2, C1, 3, 3), jnp.float32),
        # VAE linear heads: PyTorch Linear weight (out, in), bias (out,)
        "mean_w": s * jax.random.normal(ks[2], (LATENT, LATENT), jnp.float32),
        "mean_b": s * jax.random.normal(ks[3], (LATENT,), jnp.float32),
        "var_w": s * jax.random.normal(ks[4], (LATENT, LATENT), jnp.float32),
        "var_b": s * jax.random.normal(ks[5], (LATENT,), jnp.float32),
        # decoder ConvTranspose2d weights: (Cin, Cout, k, k), bias=False
        "deconv1_w": s * jax.random.normal(ks[6], (C2, C2, 4, 4), jnp.float32),
        "deconv2_w": s * jax.random.normal(ks[7], (C2, C1, 3, 3), jnp.float32),
        "deconv3_w": s * jax.random.normal(ks[8], (C1, IN_CH, 3, 3), jnp.float32),
    }


if __name__ == "__main__":
    root = jax.random.PRNGKey(0)
    k_param, k_x, k_eps = jax.random.split(root, 3)

    params = init_params(k_param)
    packed = prepare_params(params)          # one-time weight packing, outside the hot path

    x = jax.random.normal(k_x, (BATCH, IN_CH, IN_HW, IN_HW), jnp.float32)
    eps = jax.random.normal(k_eps, (BATCH, LATENT), jnp.float32)   # Normal.rsample noise

    x_in, mean, log_variance, h_lat, x_out = var_vis_autoencoder_forward(packed, x, eps)
    jax.block_until_ready((x_in, mean, log_variance, h_lat, x_out))

    assert x_in.shape == (BATCH, IN_CH, IN_HW, IN_HW)
    assert mean.shape == (BATCH, LATENT)
    assert log_variance.shape == (BATCH, LATENT)
    assert h_lat.shape == (BATCH, LATENT)
    assert x_out.shape == (BATCH, IN_CH, IN_HW, IN_HW)
    assert bool(jnp.isfinite(mean).all())
    assert bool(jnp.isfinite(log_variance).all())
    assert bool(jnp.isfinite(h_lat).all())
    assert bool(jnp.isfinite(x_out).all())

    print("KERNEL_OK")
</pallas_src>

<mosaic_0001>
module attributes {stable_mosaic.version = 11 : i64} {
  func.func @_fused_vae_kernel(%arg0: i32, %arg1: memref<8x1024xf32, #tpu.memory_space<vmem>>, %arg2: memref<8x512xf32, #tpu.memory_space<vmem>>, %arg3: memref<2x1024x512xbf16, #tpu.memory_space<vmem>>, %arg4: memref<3x512x1024xbf16, #tpu.memory_space<vmem>>, %arg5: memref<1024x1024xbf16, #tpu.memory_space<vmem>>, %arg6: memref<1x1024xf32, #tpu.memory_space<vmem>>, %arg7: memref<8x512xf32, #tpu.memory_space<vmem>>, %arg8: memref<8x512xf32, #tpu.memory_space<vmem>>, %arg9: memref<8x512xf32, #tpu.memory_space<vmem>>, %arg10: memref<8x1024xf32, #tpu.memory_space<vmem>>, %arg11: memref<8x1024xbf16, #tpu.memory_space<vmem>>) attributes {dimension_semantics = [#tpu.dimension_semantics<parallel>], iteration_bounds = array<i64: 1>, scalar_prefetch = 0 : i64, scratch_operands = 1 : i64, tpu.core_type = #tpu.core_type<tc>, window_params = [{transform_indices = @transform_0, window_bounds = array<i64: 8, 1024>}, {transform_indices = @transform_1, window_bounds = array<i64: 8, 512>}, {pipeline_mode = #tpu.pipeline_mode<synchronous>, transform_indices = @transform_2, window_bounds = array<i64: 2, 1024, 512>}, {pipeline_mode = #tpu.pipeline_mode<synchronous>, transform_indices = @transform_3, window_bounds = array<i64: 3, 512, 1024>}, {pipeline_mode = #tpu.pipeline_mode<synchronous>, transform_indices = @transform_4, window_bounds = array<i64: 1024, 1024>}, {pipeline_mode = #tpu.pipeline_mode<synchronous>, transform_indices = @transform_5, window_bounds = array<i64: 1, 1024>}, {transform_indices = @transform_6, window_bounds = array<i64: 8, 512>}, {transform_indices = @transform_7, window_bounds = array<i64: 8, 512>}, {transform_indices = @transform_8, window_bounds = array<i64: 8, 512>}, {transform_indices = @transform_9, window_bounds = array<i64: 8, 1024>}]} {
    %c0 = arith.constant 0 : index
    %c0_0 = arith.constant 0 : index
    %0 = vector.load %arg1[%c0, %c0_0] : memref<8x1024xf32, #tpu.memory_space<vmem>>, vector<8x1024xf32>
    %1 = vector.extract_strided_slice %0 {offsets = [0, 0], sizes = [8, 256], strides = [1, 1]} : vector<8x1024xf32> to vector<8x256xf32>
    %cst = arith.constant dense<0.000000e+00> : vector<8xf32>
    %2 = vector.multi_reduction <add>, %1, %cst [1] : vector<8x256xf32> to vector<8xf32>
    %3 = vector.shape_cast %2 : vector<8xf32> to vector<8x1xf32>
    %cst_1 = arith.constant 2.560000e+02 : f32
    %4 = vector.broadcast %cst_1 : f32 to vector<8x1xf32>
    %5 = arith.divf %3, %4 : vector<8x1xf32>
    %6 = vector.broadcast %5 : vector<8x1xf32> to vector<8x256xf32>
    %7 = arith.subf %1, %6 : vector<8x256xf32>
    %8 = arith.mulf %7, %7 : vector<8x256xf32>
    %cst_2 = arith.constant dense<0.000000e+00> : vector<8xf32>
    %9 = vector.multi_reduction <add>, %8, %cst_2 [1] : vector<8x256xf32> to vector<8xf32>
    %10 = vector.shape_cast %9 : vector<8xf32> to vector<8x1xf32>
    %cst_3 = arith.constant 2.560000e+02 : f32
    %11 = vector.broadcast %cst_3 : f32 to vector<8x1xf32>
    %12 = arith.divf %10, %11 : vector<8x1xf32>
    %cst_4 = arith.constant 9.99999974E-6 : f32
    %13 = vector.broadcast %cst_4 : f32 to vector<8x1xf32>
    %14 = arith.addf %12, %13 : vector<8x1xf32>
    %15 = math.rsqrt %14 : vector<8x1xf32>
    %16 = vector.broadcast %15 : vector<8x1xf32> to vector<8x256xf32>
    %17 = arith.mulf %7, %16 : vector<8x256xf32>
    %18 = arith.truncf %17 : vector<8x256xf32> to vector<8x256xbf16>
    %c0_5 = arith.constant 0 : index
    %c0_6 = arith.constant 0 : index
    %19 = vector.load %arg11[%c0_5, %c0_6] : memref<8x1024xbf16, #tpu.memory_space<vmem>>, vector<8x256xbf16>
    tpu.vector_store %arg11[%c0_5, %c0_6], %18 {strides = array<i32>} : memref<8x1024xbf16, #tpu.memory_space<vmem>>, vector<8x256xbf16>,
    %20 = vector.extract_strided_slice %0 {offsets = [0, 256], sizes = [8, 256], strides = [1, 1]} : vector<8x1024xf32> to vector<8x256xf32>
    %cst_7 = arith.constant dense<0.000000e+00> : vector<8xf32>
    %21 = vector.multi_reduction <add>, %20, %cst_7 [1] : vector<8x256xf32> to vector<8xf32>
    %22 = vector.shape_cast %21 : vector<8xf32> to vector<8x1xf32>
    %cst_8 = arith.constant 2.560000e+02 : f32
    %23 = vector.broadcast %cst_8 : f32 to vector<8x1xf32>
    %24 = arith.divf %22, %23 : vector<8x1xf32>
    %25 = vector.broadcast %24 : vector<8x1xf32> to vector<8x256xf32>
    %26 = arith.subf %20, %25 : vector<8x256xf32>
    %27 = arith.mulf %26, %26 : vector<8x256xf32>
    %cst_9 = arith.constant dense<0.000000e+00> : vector<8xf32>
    %28 = vector.multi_reduction <add>, %27, %cst_9 [1] : vector<8x256xf32> to vector<8xf32>
    %29 = vector.shape_cast %28 : vector<8xf32> to vector<8x1xf32>
    %cst_10 = arith.constant 2.560000e+02 : f32
    %30 = vector.broadcast %cst_10 : f32 to vector<8x1xf32>
    %31 = arith.divf %29, %30 : vector<8x1xf32>
    %cst_11 = arith.constant 9.99999974E-6 : f32
    %32 = vector.broadcast %cst_11 : f32 to vector<8x1xf32>
    %33 = arith.addf %31, %32 : vector<8x1xf32>
    %34 = math.rsqrt %33 : vector<8x1xf32>
    %35 = vector.broadcast %34 : vector<8x1xf32> to vector<8x256xf32>
    %36 = arith.mulf %26, %35 : vector<8x256xf32>
    %37 = arith.truncf %36 : vector<8x256xf32> to vector<8x256xbf16>
    %c0_12 = arith.constant 0 : index
    %c256 = arith.constant 256 : index
    %38 = vector.load %arg11[%c0_12, %c256] : memref<8x1024xbf16, #tpu.memory_space<vmem>>, vector<8x256xbf16>
    tpu.vector_store %arg11[%c0_12, %c256], %37 {strides = array<i32>} : memref<8x1024xbf16, #tpu.memory_space<vmem>>, vector<8x256xbf16>,
    %39 = vector.extract_strided_slice %0 {offsets = [0, 512], sizes = [8, 256], strides = [1, 1]} : vector<8x1024xf32> to vector<8x256xf32>
    %cst_13 = arith.constant dense<0.000000e+00> : vector<8xf32>
    %40 = vector.multi_reduction <add>, %39, %cst_13 [1] : vector<8x256xf32> to vector<8xf32>
    %41 = vector.shape_cast %40 : vector<8xf32> to vector<8x1xf32>
    %cst_14 = arith.constant 2.560000e+02 : f32
    %42 = vector.broadcast %cst_14 : f32 to vector<8x1xf32>
    %43 = arith.divf %41, %42 : vector<8x1xf32>
    %44 = vector.broadcast %43 : vector<8x1xf32> to vector<8x256xf32>
    %45 = arith.subf %39, %44 : vector<8x256xf32>
    %46 = arith.mulf %45, %45 : vector<8x256xf32>
    %cst_15 = arith.constant dense<0.000000e+00> : vector<8xf32>
    %47 = vector.multi_reduction <add>, %46, %cst_15 [1] : vector<8x256xf32> to vector<8xf32>
    %48 = vector.shape_cast %47 : vector<8xf32> to vector<8x1xf32>
    %cst_16 = arith.constant 2.560000e+02 : f32
    %49 = vector.broadcast %cst_16 : f32 to vector<8x1xf32>
    %50 = arith.divf %48, %49 : vector<8x1xf32>
    %cst_17 = arith.constant 9.99999974E-6 : f32
    %51 = vector.broadcast %cst_17 : f32 to vector<8x1xf32>
    %52 = arith.addf %50, %51 : vector<8x1xf32>
    %53 = math.rsqrt %52 : vector<8x1xf32>
    %54 = vector.broadcast %53 : vector<8x1xf32> to vector<8x256xf32>
    %55 = arith.mulf %45, %54 : vector<8x256xf32>
    %56 = arith.truncf %55 : vector<8x256xf32> to vector<8x256xbf16>
    %c0_18 = arith.constant 0 : index
    %c512 = arith.constant 512 : index
    %57 = vector.load %arg11[%c0_18, %c512] : memref<8x1024xbf16, #tpu.memory_space<vmem>>, vector<8x256xbf16>
    tpu.vector_store %arg11[%c0_18, %c512], %56 {strides = array<i32>} : memref<8x1024xbf16, #tpu.memory_space<vmem>>, vector<8x256xbf16>,
    %58 = vector.extract_strided_slice %0 {offsets = [0, 768], sizes = [8, 256], strides = [1, 1]} : vector<8x1024xf32> to vector<8x256xf32>
    %cst_19 = arith.constant dense<0.000000e+00> : vector<8xf32>
    %59 = vector.multi_reduction <add>, %58, %cst_19 [1] : vector<8x256xf32> to vector<8xf32>
    %60 = vector.shape_cast %59 : vector<8xf32> to vector<8x1xf32>
    %cst_20 = arith.constant 2.560000e+02 : f32
    %61 = vector.broadcast %cst_20 : f32 to vector<8x1xf32>
    %62 = arith.divf %60, %61 : vector<8x1xf32>
    %63 = vector.broadcast %62 : vector<8x1xf32> to vector<8x256xf32>
    %64 = arith.subf %58, %63 : vector<8x256xf32>
    %65 = arith.mulf %64, %64 : vector<8x256xf32>
    %cst_21 = arith.constant dense<0.000000e+00> : vector<8xf32>
    %66 = vector.multi_reduction <add>, %65, %cst_21 [1] : vector<8x256xf32> to vector<8xf32>
    %67 = vector.shape_cast %66 : vector<8xf32> to vector<8x1xf32>
    %cst_22 = arith.constant 2.560000e+02 : f32
    %68 = vector.broadcast %cst_22 : f32 to vector<8x1xf32>
    %69 = arith.divf %67, %68 : vector<8x1xf32>
    %cst_23 = arith.constant 9.99999974E-6 : f32
    %70 = vector.broadcast %cst_23 : f32 to vector<8x1xf32>
    %71 = arith.addf %69, %70 : vector<8x1xf32>
    %72 = math.rsqrt %71 : vector<8x1xf32>
    %73 = vector.broadcast %72 : vector<8x1xf32> to vector<8x256xf32>
    %74 = arith.mulf %64, %73 : vector<8x256xf32>
    %75 = arith.truncf %74 : vector<8x256xf32> to vector<8x256xbf16>
    %c0_24 = arith.constant 0 : index
    %c768 = arith.constant 768 : index
    %76 = vector.load %arg11[%c0_24, %c768] : memref<8x1024xbf16, #tpu.memory_space<vmem>>, vector<8x256xbf16>
    tpu.vector_store %arg11[%c0_24, %c768], %75 {strides = array<i32>} : memref<8x1024xbf16, #tpu.memory_space<vmem>>, vector<8x256xbf16>,
    %c0_25 = arith.constant 0 : index
    %c0_26 = arith.constant 0 : index
    %77 = vector.load %arg11[%c0_25, %c0_26] : memref<8x1024xbf16, #tpu.memory_space<vmem>>, vector<8x1024xbf16>
    %c0_27 = arith.constant 0 : index
    %c0_28 = arith.constant 0 : index
    %c0_29 = arith.constant 0 : index
    %78 = vector.load %arg3[%c0_27, %c0_28, %c0_29] : memref<2x1024x512xbf16, #tpu.memory_space<vmem>>, vector<1x1024x512xbf16>
    %79 = vector.shape_cast %78 : vector<1x1024x512xbf16> to vector<1024x512xbf16>
    %c1 = arith.constant 1 : index
    %c0_30 = arith.constant 0 : index
    %c0_31 = arith.constant 0 : index
    %80 = vector.load %arg3[%c1, %c0_30, %c0_31] : memref<2x1024x512xbf16, #tpu.memory_space<vmem>>, vector<1x1024x512xbf16>
    %81 = vector.shape_cast %80 : vector<1x1024x512xbf16> to vector<1024x512xbf16>
    %c0_32 = arith.constant 0 : index
    %c0_33 = arith.constant 0 : index
    %c0_34 = arith.constant 0 : index
    %82 = vector.load %arg4[%c0_32, %c0_33, %c0_34] : memref<3x512x1024xbf16, #tpu.memory_space<vmem>>, vector<1x512x1024xbf16>
    %83 = vector.shape_cast %82 : vector<1x512x1024xbf16> to vector<512x1024xbf16>
    %c1_35 = arith.constant 1 : index
    %c0_36 = arith.constant 0 : index
    %c0_37 = arith.constant 0 : index
    %84 = vector.load %arg4[%c1_35, %c0_36, %c0_37] : memref<3x512x1024xbf16, #tpu.memory_space<vmem>>, vector<1x512x1024xbf16>
    %85 = vector.shape_cast %84 : vector<1x512x1024xbf16> to vector<512x1024xbf16>
    %c2 = arith.constant 2 : index
    %c0_38 = arith.constant 0 : index
    %c0_39 = arith.constant 0 : index
    %86 = vector.load %arg4[%c2, %c0_38, %c0_39] : memref<3x512x1024xbf16, #tpu.memory_space<vmem>>, vector<1x512x1024xbf16>
    %87 = vector.shape_cast %86 : vector<1x512x1024xbf16> to vector<512x1024xbf16>
    %cst_40 = arith.constant dense<0.000000e+00> : vector<8x512xf32>
    %88 = tpu.matmul %77, %79, %cst_40 {dimension_numbers = #tpu.dot_dimension_numbers<[1], [0], [0], [1], [0, 0, 1, 1], [], []>} : vector<8x1024xbf16>, vector<1024x512xbf16>, vector<8x512xf32> -> vector<8x512xf32>
    %cst_41 = arith.constant 0.000000e+00 : f32
    %89 = vector.broadcast %cst_41 : f32 to vector<8x512xf32>
    %90 = arith.maximumf %88, %89 : vector<8x512xf32>
    %91 = arith.truncf %90 : vector<8x512xf32> to vector<8x512xbf16>
    %cst_42 = arith.constant dense<0.000000e+00> : vector<8x1024xf32>
    %92 = tpu.matmul %91, %83, %cst_42 {dimension_numbers = #tpu.dot_dimension_numbers<[1], [0], [0], [1], [0, 0, 1, 1], [], []>} : vector<8x512xbf16>, vector<512x1024xbf16>, vector<8x1024xf32> -> vector<8x1024xf32>
    %cst_43 = arith.constant 0.000000e+00 : f32
    %93 = vector.broadcast %cst_43 : f32 to vector<8x1024xf32>
    %94 = arith.maximumf %92, %93 : vector<8x1024xf32>
    %95 = arith.truncf %94 : vector<8x1024xf32> to vector<8x1024xbf16>
    %c0_44 = arith.constant 0 : index
    %c0_45 = arith.constant 0 : index
    %96 = vector.load %arg5[%c0_44, %c0_45] : memref<1024x1024xbf16, #tpu.memory_space<vmem>>, vector<1024x1024xbf16>
    %cst_46 = arith.constant dense<0.000000e+00> : vector<8x1024xf32>
    %97 = tpu.matmul %95, %96, %cst_46 {dimension_numbers = #tpu.dot_dimension_numbers<[1], [0], [0], [1], [0, 0, 1, 1], [], []>} : vector<8x1024xbf16>, vector<1024x1024xbf16>, vector<8x1024xf32> -> vector<8x1024xf32>
    %c0_47 = arith.constant 0 : index
    %c0_48 = arith.constant 0 : index
    %98 = vector.load %arg6[%c0_47, %c0_48] : memref<1x1024xf32, #tpu.memory_space<vmem>>, vector<1x1024xf32>
    %99 = vector.broadcast %98 : vector<1x1024xf32> to vector<8x1024xf32>
    %100 = arith.addf %97, %99 : vector<8x1024xf32>
    %101 = vector.extract_strided_slice %100 {offsets = [0, 0], sizes = [8, 512], strides = [1, 1]} : vector<8x1024xf32> to vector<8x512xf32>
    %102 = vector.extract_strided_slice %100 {offsets = [0, 512], sizes = [8, 512], strides = [1, 1]} : vector<8x1024xf32> to vector<8x512xf32>
    %cst_49 = arith.constant 5.000000e-01 : f32
    %103 = vector.broadcast %cst_49 : f32 to vector<8x512xf32>
    %104 = arith.mulf %102, %103 : vector<8x512xf32>
    %105 = math.exp %104 : vector<8x512xf32>
    %c0_50 = arith.constant 0 : index
    %c0_51 = arith.constant 0 : index
    %106 = vector.load %arg2[%c0_50, %c0_51] : memref<8x512xf32, #tpu.memory_space<vmem>>, vector<8x512xf32>
    %107 = arith.mulf %105, %106 : vector<8x512xf32>
    %108 = arith.addf %101, %107 : vector<8x512xf32>
    %109 = arith.truncf %108 : vector<8x512xf32> to vector<8x512xbf16>
    %cst_52 = arith.constant dense<0.000000e+00> : vector<8x1024xf32>
    %110 = tpu.matmul %109, %85, %cst_52 {dimension_numbers = #tpu.dot_dimension_numbers<[1], [0], [0], [1], [0, 0, 1, 1], [], []>} : vector<8x512xbf16>, vector<512x1024xbf16>, vector<8x1024xf32> -> vector<8x1024xf32>
    %cst_53 = arith.constant 0.000000e+00 : f32
    %111 = vector.broadcast %cst_53 : f32 to vector<8x1024xf32>
    %112 = arith.maximumf %110, %111 : vector<8x1024xf32>
    %113 = arith.truncf %112 : vector<8x1024xf32> to vector<8x1024xbf16>
    %cst_54 = arith.constant dense<0.000000e+00> : vector<8x512xf32>
    %114 = tpu.matmul %113, %81, %cst_54 {dimension_numbers = #tpu.dot_dimension_numbers<[1], [0], [0], [1], [0, 0, 1, 1], [], []>} : vector<8x1024xbf16>, vector<1024x512xbf16>, vector<8x512xf32> -> vector<8x512xf32>
    %cst_55 = arith.constant 0.000000e+00 : f32
    %115 = vector.broadcast %cst_55 : f32 to vector<8x512xf32>
    %116 = arith.maximumf %114, %115 : vector<8x512xf32>
    %117 = arith.truncf %116 : vector<8x512xf32> to vector<8x512xbf16>
    %cst_56 = arith.constant dense<0.000000e+00> : vector<8x1024xf32>
    %118 = tpu.matmul %117, %87, %cst_56 {dimension_numbers = #tpu.dot_dimension_numbers<[1], [0], [0], [1], [0, 0, 1, 1], [], []>} : vector<8x512xbf16>, vector<512x1024xbf16>, vector<8x1024xf32> -> vector<8x1024xf32>
    %cst_57 = arith.constant 0.000000e+00 : f32
    %119 = vector.broadcast %cst_57 : f32 to vector<8x1024xf32>
    %120 = arith.maximumf %118, %119 : vector<8x1024xf32>
    %c0_58 = arith.constant 0 : index
    %c0_59 = arith.constant 0 : index
    %121 = vector.load %arg7[%c0_58, %c0_59] : memref<8x512xf32, #tpu.memory_space<vmem>>, vector<8x512xf32>
    tpu.vector_store %arg7[%c0_58, %c0_59], %101 {strides = array<i32>} : memref<8x512xf32, #tpu.memory_space<vmem>>, vector<8x512xf32>,
    %c0_60 = arith.constant 0 : index
    %c0_61 = arith.constant 0 : index
    %122 = vector.load %arg8[%c0_60, %c0_61] : memref<8x512xf32, #tpu.memory_space<vmem>>, vector<8x512xf32>
    tpu.vector_store %arg8[%c0_60, %c0_61], %102 {strides = array<i32>} : memref<8x512xf32, #tpu.memory_space<vmem>>, vector<8x512xf32>,
    %c0_62 = arith.constant 0 : index
    %c0_63 = arith.constant 0 : index
    %123 = vector.load %arg9[%c0_62, %c0_63] : memref<8x512xf32, #tpu.memory_space<vmem>>, vector<8x512xf32>
    tpu.vector_store %arg9[%c0_62, %c0_63], %108 {strides = array<i32>} : memref<8x512xf32, #tpu.memory_space<vmem>>, vector<8x512xf32>,
    %c0_64 = arith.constant 0 : index
    %c0_65 = arith.constant 0 : index
    %124 = vector.load %arg10[%c0_64, %c0_65] : memref<8x1024xf32, #tpu.memory_space<vmem>>, vector<8x1024xf32>
    tpu.vector_store %arg10[%c0_64, %c0_65], %120 {strides = array<i32>} : memref<8x1024xf32, #tpu.memory_space<vmem>>, vector<8x1024xf32>,
    return
  }
  func.func @transform_0(%arg0: i32) -> (i32, i32) {
    %c0_i32 = arith.constant 0 : i32
    %c0_i32_0 = arith.constant 0 : i32
    return %arg0, %c0_i32 : i32, i32
  }
  func.func @transform_1(%arg0: i32) -> (i32, i32) {
    %c0_i32 = arith.constant 0 : i32
    %c0_i32_0 = arith.constant 0 : i32
    return %arg0, %c0_i32 : i32, i32
  }
  func.func @transform_2(%arg0: i32) -> (i32, i32, i32) {
    %c0_i32 = arith.constant 0 : i32
    %c0_i32_0 = arith.constant 0 : i32
    %c0_i32_1 = arith.constant 0 : i32
    %c0_i32_2 = arith.constant 0 : i32
    return %c0_i32, %c0_i32_0, %c0_i32_1 : i32, i32, i32
  }
  func.func @transform_3(%arg0: i32) -> (i32, i32, i32) {
    %c0_i32 = arith.constant 0 : i32
    %c0_i32_0 = arith.constant 0 : i32
    %c0_i32_1 = arith.constant 0 : i32
    %c0_i32_2 = arith.constant 0 : i32
    return %c0_i32, %c0_i32_0, %c0_i32_1 : i32, i32, i32
  }
  func.func @transform_4(%arg0: i32) -> (i32, i32) {
    %c0_i32 = arith.constant 0 : i32
    %c0_i32_0 = arith.constant 0 : i32
    %c0_i32_1 = arith.constant 0 : i32
    return %c0_i32, %c0_i32_0 : i32, i32
  }
  func.func @transform_5(%arg0: i32) -> (i32, i32) {
    %c0_i32 = arith.constant 0 : i32
    %c0_i32_0 = arith.constant 0 : i32
    %c0_i32_1 = arith.constant 0 : i32
    return %c0_i32, %c0_i32_0 : i32, i32
  }
  func.func @transform_6(%arg0: i32) -> (i32, i32) {
    %c0_i32 = arith.constant 0 : i32
    %c0_i32_0 = arith.constant 0 : i32
    return %arg0, %c0_i32 : i32, i32
  }
  func.func @transform_7(%arg0: i32) -> (i32, i32) {
    %c0_i32 = arith.constant 0 : i32
    %c0_i32_0 = arith.constant 0 : i32
    return %arg0, %c0_i32 : i32, i32
  }
  func.func @transform_8(%arg0: i32) -> (i32, i32) {
    %c0_i32 = arith.constant 0 : i32
    %c0_i32_0 = arith.constant 0 : i32
    return %arg0, %c0_i32 : i32, i32
  }
  func.func @transform_9(%arg0: i32) -> (i32, i32) {
    %c0_i32 = arith.constant 0 : i32
    %c0_i32_0 = arith.constant 0 : i32
    return %arg0, %c0_i32 : i32, i32
  }
}

</mosaic_0001>

<bundles_post_ra>
// kernel: var_vis_autoencoder_forward.1
= control target key start
LH: loop header
LB: loop body
LE: loop exit
PB: predicated region body
PF: predicated region fallthrough
CT: control target
= control target key end

     0   :  { %15 = vsyncpa [#allocation4], 0  ;;  %s16886_s0 = inlined_call_operand.vmem [shape: f32[8,1024], index: 0, kind: input, shape index: {}]   ;;  %s16887_s1 = inlined_call_operand.vmem [shape: f32[8,512], index: 1, kind: input, shape index: {}]   ;;  %s16888_s2 = inlined_call_operand.hbm [shape: bf16[2,1024,512], index: 2, kind: input, shape index: {}]   ;;  %s16889_s3 = inlined_call_operand.hbm [shape: bf16[3,512,1024], index: 3, kind: input, shape index: {}]   ;;  %s16890_s4 = inlined_call_operand.hbm [shape: bf16[1024,1024], index: 4, kind: input, shape index: {}]   ;;  %s16891_s5 = inlined_call_operand.hbm [shape: f32[1,1024], index: 5, kind: input, shape index: {}]   ;;  %s16892_s6 = inlined_call_operand.vmem [shape: f32[8,512], index: 6, kind: output, shape index: {0}]   ;;  %s16893_s7 = inlined_call_operand.vmem [shape: f32[8,512], index: 7, kind: output, shape index: {1}]   ;;  %s16894_s8 = inlined_call_operand.vmem [shape: f32[8,512], index: 8, kind: output, shape index: {2}]   ;;  %s16895_s9 = inlined_call_operand.vmem [shape: f32[8,1024], index: 9, kind: output, shape index: {3}]  }
   0x1   :  { %16 = vsyncpa [#allocation6], 0 }
   0x2   :  { %17 = vsyncpa [#allocation9], 0  ;;  %s16137_s30 = smov [#allocation5]  }
   0x3   :  { %s39_s10 = sshll.u32 %s16137_s30, 4  ;;  %s40_s10 = int_to_ptr.vmem [resolvable:$true] %s39_s10 }
   0x4   :  { %s16059_s11 = scalar_lea.vmem %s40_s10, 98304  ;;  %p16064_p1 = scmp.lt.s32.totalorder %s40_s10, %s40_s10 }
   0x5   :  { %p16060_p0 = scmp.ne.s32.totalorder %s40_s10, %s16059_s11  ;;  %p16065_p2 = scmp.lt.s32.totalorder %s16059_s11, %s16059_s11 }
   0x7   :  { %p16066_p3 = por %p16065_p2, %p16064_p1 }
   0x9   :  { %p16067_p4 = pnand %p16066_p3, %p16060_p0 }
   0xb   :  { %16070 = shalt.err (!%p16067_p4)
}
   0xc   :  { %s16138_s12 = smov 512   ;;  %s16139_s13 = smov 32  }
   0xd   :  { %45 = dma.hbm_to_vmem [thread:$0]  %s16889_s3, 98304, %s40_s10, [#allocation6], %s16138_s12, %s16138_s12, %s16139_s13  }
   0xe   :  { %s16140_s16 = smov [#allocation3]  }
   0xf   :  { %s27_s17 = sshll.u32 %s16140_s16, 4  ;;  %s28_s17 = int_to_ptr.vmem [resolvable:$true] %s27_s17 }
  0x10   :  { %s16079_s18 = scalar_lea.vmem %s28_s17, 65536  ;;  %p16084_p6 = scmp.lt.s32.totalorder %s28_s17, %s28_s17 }
  0x11   :  { %p16080_p5 = scmp.ne.s32.totalorder %s28_s17, %s16079_s18  ;;  %p16085_p7 = scmp.lt.s32.totalorder %s16079_s18, %s16079_s18 }
  0x13   :  { %p16086_p8 = por %p16085_p7, %p16084_p6 }
  0x15   :  { %p16087_p9 = pnand %p16086_p8, %p16080_p5 }
  0x17   :  { %16090 = shalt.err (!%p16087_p9)
}
  0x18   :  { %s16141_s19 = smov 256   ;;  %s16142_s20 = smov 16  }
  0x19   :  { %33 = dma.hbm_to_vmem [thread:$0]  %s16888_s2, 65536, %s28_s17, [#allocation4], %s16141_s19, %s16141_s19, %s16142_s20  }
  0x1a   :  { %s16143_s23 = smov [#allocation7]   ;;  %s16144_s25 = smov [#allocation8]  }
  0x1b   :  { %s51_s24 = sshll.u32 %s16143_s23, 4  ;;  %s64_s3 = sshll.u32 %s16144_s25, 4  ;;  %s52_s24 = int_to_ptr.vmem [resolvable:$true] %s51_s24  ;;  %s65_s3 = int_to_ptr.vmem [resolvable:$true] %s64_s3 }
  0x1c   :  { %s16099_s26 = scalar_lea.vmem %s52_s24, 65536  ;;  %p16104_p11 = scmp.lt.s32.totalorder %s52_s24, %s52_s24 }
  0x1d   :  { %p16100_p10 = scmp.ne.s32.totalorder %s52_s24, %s16099_s26  ;;  %p16105_p12 = scmp.lt.s32.totalorder %s16099_s26, %s16099_s26 }
  0x1f   :  { %p16106_p13 = por %p16105_p12, %p16104_p11 }
  0x21   :  { %p16107_p0 = pnand %p16106_p13, %p16100_p10 }
  0x23   :  { %16110 = shalt.err (!%p16107_p0)
}
  0x24   :  { %57 = dma.hbm_to_vmem [thread:$0]  %s16890_s4, 65536, %s52_s24, [#allocation6], %s16138_s12, %s16138_s12, %s16139_s13  }
  0x25   :  { %s16119_s2 = scalar_lea.vmem %s65_s3, 128  ;;  %p16124_p2 = scmp.lt.s32.totalorder %s65_s3, %s65_s3 }
  0x26   :  { %p16120_p1 = scmp.ne.s32.totalorder %s65_s3, %s16119_s2  ;;  %p16125_p3 = scmp.lt.s32.totalorder %s16119_s2, %s16119_s2 }
  0x28   :  { %p16126_p4 = por %p16125_p3, %p16124_p2 }
  0x2a   :  { %p16127_p5 = pnand %p16126_p4, %p16120_p1 }
  0x2c   :  { %16130 = shalt.err (!%p16127_p5)
}
  0x2d   :  { %67 = dma.hbm_to_vmem [thread:$0]  %s16891_s5, 128, %s65_s3, [#allocation9]  }
  0x2e   :  { %16131 = dma.done.wait [#allocation4], 65536  }
  0x2f   :  { %16132 = vsyncadd [#allocation4], 4294901760 }
  0x30   :  { %16133 = dma.done.wait [#allocation6], 163840  }
  0x31   :  { %16134 = vsyncadd [#allocation6], 4294803456 }
  0x32   :  { %16135 = dma.done.wait [#allocation9], 128  }
  0x33   :  { %16136 = vsyncadd [#allocation9], 4294967168  ;;  %v16216_v0 = vld [vmem:[%s16886_s0] sm:$0xff]  ;;  %v16221_v1 = vld [vmem:[%s16886_s0 + $0x8] sm:$0xff] }
  0x34   :  { %v16226_v2 = vld [vmem:[%s16886_s0 + $0x20] sm:$0xff]  ;;  %v88_v3 = vadd.f32 %v16221_v1, %v16216_v0  ;;  %v16233_v4 = vld [vmem:[%s16886_s0 + $0x28] sm:$0xff]  ;;  %v16238_v5 = vld [vmem:[%s16886_s0 + $0x10] sm:$0xff] }
  0x35   :  { %v16243_v6 = vld [vmem:[%s16886_s0 + $0x18] sm:$0xff]  ;;  %v139_v7 = vadd.f32 %v16233_v4, %v16226_v2  ;;  %v16250_v8 = vld [vmem:[%s16886_s0 + $0x30] sm:$0xff] }
  0x36   :  { %v16255_v9 = vld [vmem:[%s16886_s0 + $0x38] sm:$0xff]  ;;  %89 = vadd.xlane.f32.xlu0 %v88_v3  ;;  %v114_v10 = vadd.f32 %v16243_v6, %v16238_v5  ;;  %v15261_v12 = vld [vmem:[#allocation3 + $0xe4] ss:$16 sps:$4 sm:$0xff]   ;;  %v15263_v13 = vld [vmem:[#allocation3 + $0xe0] ss:$16 sps:$4 sm:$0xff]  }
  0x37   :  { %140 = vadd.xlane.f32.xlu1 %v139_v7  ;;  %v164_v11 = vadd.f32 %v16255_v9, %v16250_v8  ;;  %v15264_v14 = vld [vmem:[#allocation3 + $0xc4] ss:$16 sps:$4 sm:$0xff]   ;;  %v15269_v16 = vld [vmem:[#allocation3 + $0x2e0] ss:$16 sps:$4 sm:$0xff]   ;;  %2784 = vmatprep.subr.bf16.mxu0 %v15261_v12 }
  0x38   :  { %v15266_v15 = vld [vmem:[#allocation3 + $0x2e4] ss:$16 sps:$4 sm:$0xff]   ;;  %2785 = vmatpush1.bf16.msra.mxu0 %v15263_v13  ;;  %v15268_v18 = vld [vmem:[#allocation3 + $0xc0] ss:$16 sps:$4 sm:$0xff]  }
  0x39   :  { %v15272_v17 = vld [vmem:[#allocation3 + $0x2c4] ss:$16 sps:$4 sm:$0xff]   ;;  %2825 = vmatprep.subr.bf16.mxu1 %v15266_v15  ;;  %2786 = vmatprep.subr.bf16.mxu0 %v15264_v14  ;;  %v15275_v20 = vld [vmem:[#allocation3 + $0x2c0] ss:$16 sps:$4 sm:$0xff]  }
  0x3a   :  { %115 = vadd.xlane.f32.xlu0 %v114_v10  ;;  %2826 = vmatpush1.bf16.msra.mxu1 %v15269_v16  ;;  %v15270_v19 = vld [vmem:[#allocation3 + $0xa4] ss:$16 sps:$4 sm:$0xff]   ;;  %v15274_v22 = vld [vmem:[#allocation3 + $0xa0] ss:$16 sps:$4 sm:$0xff]  }
  0x3b   :  { %165 = vadd.xlane.f32.xlu1 %v164_v11  ;;  %2827 = vmatprep.subr.bf16.mxu1 %v15272_v17  ;;  %v15278_v21 = vld [vmem:[#allocation3 + $0x2a4] ss:$16 sps:$4 sm:$0xff]   ;;  %v15281_v24 = vld [vmem:[#allocation3 + $0x2a0] ss:$16 sps:$4 sm:$0xff]  }
  0x3c   :  { %2787 = vmatpush1.bf16.msra.mxu0 %v15268_v18  ;;  %v15276_v23 = vld [vmem:[#allocation3 + $0x84] ss:$16 sps:$4 sm:$0xff]   ;;  %v15280_v26 = vld [vmem:[#allocation3 + $0x80] ss:$16 sps:$4 sm:$0xff]  }
  0x3d   :  { %2788 = vmatprep.subr.bf16.mxu0 %v15270_v19  ;;  %v15284_v25 = vld [vmem:[#allocation3 + $0x284] ss:$16 sps:$4 sm:$0xff]   ;;  %v15287_v28 = vld [vmem:[#allocation3 + $0x280] ss:$16 sps:$4 sm:$0xff]  }
  0x3e   :  { %2828 = vmatpush1.bf16.msra.mxu1 %v15275_v20  ;;  %v15282_v27 = vld [vmem:[#allocation3 + $0x64] ss:$16 sps:$4 sm:$0xff]   ;;  %v15286_v29 = vld [vmem:[#allocation3 + $0x60] ss:$16 sps:$4 sm:$0xff]  }
  0x3f   :  { %2829 = vmatprep.subr.bf16.mxu1 %v15278_v21  ;;  %v15290_v30 = vld [vmem:[#allocation3 + $0x264] ss:$16 sps:$4 sm:$0xff]   ;;  %v15293_v32 = vld [vmem:[#allocation3 + $0x260] ss:$16 sps:$4 sm:$0xff]  }
  0x40   :  { %2789 = vmatpush1.bf16.msra.mxu0 %v15274_v22  ;;  %v15288_v31 = vld [vmem:[#allocation3 + $0x44] ss:$16 sps:$4 sm:$0xff]   ;;  %v15292_v34 = vld [vmem:[#allocation3 + $0x40] ss:$16 sps:$4 sm:$0xff]  }
  0x41   :  { %2790 = vmatprep.subr.bf16.mxu0 %v15276_v23  ;;  %v15296_v33 = vld [vmem:[#allocation3 + $0x244] ss:$16 sps:$4 sm:$0xff]   ;;  %v15299_v36 = vld [vmem:[#allocation3 + $0x240] ss:$16 sps:$4 sm:$0xff]  }
  0x42   :  { %2830 = vmatpush1.bf16.msra.mxu1 %v15281_v24  ;;  %v15294_v35 = vld [vmem:[#allocation3 + $0x24] ss:$16 sps:$4 sm:$0xff]   ;;  %v15298_v38 = vld [vmem:[#allocation3 + $0x20] ss:$16 sps:$4 sm:$0xff]  }
  0x43   :  { %2831 = vmatprep.subr.bf16.mxu1 %v15284_v25  ;;  %v15302_v37 = vld [vmem:[#allocation3 + $0x224] ss:$16 sps:$4 sm:$0xff]   ;;  %v15305_v40 = vld [vmem:[#allocation3 + $0x220] ss:$16 sps:$4 sm:$0xff]  }
  0x44   :  { %2791 = vmatpush1.bf16.msra.mxu0 %v15280_v26  ;;  %v15300_v39 = vld [vmem:[#allocation3 + $0x4] ss:$16 sps:$4 sm:$0xff]   ;;  %v15304_v42 = vld [vmem:[#allocation3] ss:$16 sps:$4 sm:$0xff]  }
  0x45   :  { %2792 = vmatprep.subr.bf16.mxu0 %v15282_v27  ;;  %v15308_v41 = vld [vmem:[#allocation3 + $0x204] ss:$16 sps:$4 sm:$0xff]   ;;  %v15311_v44 = vld [vmem:[#allocation3 + $0x200] ss:$16 sps:$4 sm:$0xff]  }
  0x46   :  { %2832 = vmatpush1.bf16.msra.mxu1 %v15287_v28  ;;  %v15306_v43 = vld [vmem:[#allocation3 + $0x1e4] ss:$16 sps:$4 sm:$0xff]   ;;  %v15310_v46 = vld [vmem:[#allocation3 + $0x1e0] ss:$16 sps:$4 sm:$0xff]  }
  0x47   :  { %2833 = vmatprep.subr.bf16.mxu1 %v15290_v30  ;;  %v15314_v45 = vld [vmem:[#allocation3 + $0x3e4] ss:$16 sps:$4 sm:$0xff]   ;;  %v15317_v48 = vld [vmem:[#allocation3 + $0x3e0] ss:$16 sps:$4 sm:$0xff]  }
  0x48   :  { %2793 = vmatpush1.bf16.msra.mxu0 %v15286_v29  ;;  %v15312_v47 = vld [vmem:[#allocation3 + $0x1c4] ss:$16 sps:$4 sm:$0xff]   ;;  %v15316_v50 = vld [vmem:[#allocation3 + $0x1c0] ss:$16 sps:$4 sm:$0xff]  }
  0x49   :  { %2794 = vmatprep.subr.bf16.mxu0 %v15288_v31  ;;  %v15320_v49 = vld [vmem:[#allocation3 + $0x3c4] ss:$16 sps:$4 sm:$0xff]   ;;  %v15323_v52 = vld [vmem:[#allocation3 + $0x3c0] ss:$16 sps:$4 sm:$0xff]  }
  0x4a   :  { %2834 = vmatpush1.bf16.msra.mxu1 %v15293_v32  ;;  %v15318_v51 = vld [vmem:[#allocation3 + $0x1a4] ss:$16 sps:$4 sm:$0xff]   ;;  %v15322_v53 = vld [vmem:[#allocation3 + $0x1a0] ss:$16 sps:$4 sm:$0xff]  }
  0x4b   :  { %2835 = vmatprep.subr.bf16.mxu1 %v15296_v33  ;;  %v15326_v19 = vld [vmem:[#allocation3 + $0x3a4] ss:$16 sps:$4 sm:$0xff]   ;;  %v15328_v20 = vld [vmem:[#allocation3 + $0x180] ss:$16 sps:$4 sm:$0xff]  }
  0x4c   :  { %2795 = vmatpush1.bf16.msra.mxu0 %v15292_v34  ;;  %v15329_v21 = vld [vmem:[#allocation3 + $0x3a0] ss:$16 sps:$4 sm:$0xff]   ;;  %v15330_v22 = vld [vmem:[#allocation3 + $0x164] ss:$16 sps:$4 sm:$0xff]  }
  0x4d   :  { %2796 = vmatprep.subr.bf16.mxu0 %v15294_v35  ;;  %v15332_v23 = vld [vmem:[#allocation3 + $0x384] ss:$16 sps:$4 sm:$0xff]   ;;  %v15334_v24 = vld [vmem:[#allocation3 + $0x160] ss:$16 sps:$4 sm:$0xff]  }
  0x4e   :  { %2836 = vmatpush1.bf16.msra.mxu1 %v15299_v36  ;;  %v15335_v25 = vld [vmem:[#allocation3 + $0x380] ss:$16 sps:$4 sm:$0xff]   ;;  %v15336_v26 = vld [vmem:[#allocation3 + $0x144] ss:$16 sps:$4 sm:$0xff]  }
  0x4f   :  { %2837 = vmatprep.subr.bf16.mxu1 %v15302_v37  ;;  %v15338_v27 = vld [vmem:[#allocation3 + $0x364] ss:$16 sps:$4 sm:$0xff]   ;;  %v15340_v28 = vld [vmem:[#allocation3 + $0x140] ss:$16 sps:$4 sm:$0xff]  }
  0x50   :  { %2797 = vmatpush1.bf16.msra.mxu0 %v15298_v38  ;;  %v15341_v29 = vld [vmem:[#allocation3 + $0x360] ss:$16 sps:$4 sm:$0xff]   ;;  %v15342_v30 = vld [vmem:[#allocation3 + $0x124] ss:$16 sps:$4 sm:$0xff]  }
  0x51   :  { %2798 = vmatprep.subr.bf16.mxu0 %v15300_v39  ;;  %v15344_v31 = vld [vmem:[#allocation3 + $0x344] ss:$16 sps:$4 sm:$0xff]   ;;  %v15346_v32 = vld [vmem:[#allocation3 + $0x120] ss:$16 sps:$4 sm:$0xff]  }
  0x52   :  { %2838 = vmatpush1.bf16.msra.mxu1 %v15305_v40  ;;  %v15347_v33 = vld [vmem:[#allocation3 + $0x340] ss:$16 sps:$4 sm:$0xff]   ;;  %v15348_v34 = vld [vmem:[#allocation3 + $0x104] ss:$16 sps:$4 sm:$0xff]  }
  0x53   :  { %2839 = vmatprep.subr.bf16.mxu1 %v15308_v41  ;;  %v15350_v35 = vld [vmem:[#allocation3 + $0x324] ss:$16 sps:$4 sm:$0xff]   ;;  %v15352_v36 = vld [vmem:[#allocation3 + $0x100] ss:$16 sps:$4 sm:$0xff]  }
  0x54   :  { %2799 = vmatpush1.bf16.msra.mxu0 %v15304_v42  ;;  %v15353_v37 = vld [vmem:[#allocation3 + $0x320] ss:$16 sps:$4 sm:$0xff]   ;;  %v15354_v38 = vld [vmem:[#allocation3 + $0x304] ss:$16 sps:$4 sm:$0xff]  }
  0x55   :  { %2800 = vmatprep.subr.bf16.mxu0 %v15306_v43  ;;  %v15358_v39 = vld [vmem:[#allocation3 + $0x4e4] ss:$16 sps:$4 sm:$0xff]   ;;  %v15359_v40 = vld [vmem:[#allocation3 + $0x300] ss:$16 sps:$4 sm:$0xff]  }
  0x56   :  { %2840 = vmatpush1.bf16.msra.mxu1 %v15311_v44  ;;  %v15365_v41 = vld [vmem:[#allocation3 + $0x6e4] ss:$16 sps:$4 sm:$0xff]  }
  0x57   :  { %2841 = vmatprep.subr.bf16.mxu1 %v15314_v45 }
  0x58   :  { %2801 = vmatpush2.bf16.msra.mxu0 %v15310_v46 }
  0x59   :  { %2802 = vmatprep.subr.bf16.mxu0 %v15312_v47 }
  0x5a   :  { %2842 = vmatpush2.bf16.msra.mxu1 %v15317_v48 }
  0x5b   :  { %2843 = vmatprep.subr.bf16.mxu1 %v15320_v49 }
  0x5c   :  { %2803 = vmatpush2.bf16.msra.mxu0 %v15316_v50 }
  0x5d   :  { %2804 = vmatprep.subr.bf16.mxu0 %v15318_v51 }
  0x5e   :  { %2844 = vmatpush2.bf16.msra.mxu1 %v15323_v52 }
  0x5f   :  { %2845 = vmatprep.subr.bf16.mxu1 %v15326_v19  ;;  %v15372_v19 = vld [vmem:[#allocation3 + $0x480] ss:$16 sps:$4 sm:$0xff]  }
  0x60   :  { %2805 = vmatpush2.bf16.msra.mxu0 %v15322_v53 }
  0x62   :  { %2846 = vmatpush2.bf16.msra.mxu1 %v15329_v21  ;;  %v15383_v21 = vld [vmem:[#allocation3 + $0x684] ss:$16 sps:$4 sm:$0xff]  }
  0x63   :  { %2847 = vmatprep.subr.bf16.mxu1 %v15332_v23  ;;  %v15381_v23 = vld [vmem:[#allocation3 + $0x680] ss:$16 sps:$4 sm:$0xff]  }
  0x66   :  { %2848 = vmatpush2.bf16.msra.mxu1 %v15335_v25  ;;  %v15389_v25 = vld [vmem:[#allocation3 + $0x664] ss:$16 sps:$4 sm:$0xff]  }
  0x67   :  { %2849 = vmatprep.subr.bf16.mxu1 %v15338_v27  ;;  %v15387_v27 = vld [vmem:[#allocation3 + $0x660] ss:$16 sps:$4 sm:$0xff]  }
  0x6a   :  { %2850 = vmatpush2.bf16.msra.mxu1 %v15341_v29  ;;  %v15395_v29 = vld [vmem:[#allocation3 + $0x644] ss:$16 sps:$4 sm:$0xff]  }
  0x6b   :  { %2851 = vmatprep.subr.bf16.mxu1 %v15344_v31  ;;  %v15393_v31 = vld [vmem:[#allocation3 + $0x640] ss:$16 sps:$4 sm:$0xff]  }
  0x6e   :  { %2852 = vmatpush2.bf16.msra.mxu1 %v15347_v33  ;;  %v15401_v33 = vld [vmem:[#allocation3 + $0x624] ss:$16 sps:$4 sm:$0xff]  }
  0x6f   :  { %2853 = vmatprep.subr.bf16.mxu1 %v15350_v35  ;;  %v15399_v35 = vld [vmem:[#allocation3 + $0x620] ss:$16 sps:$4 sm:$0xff]  }
  0x72   :  { %2854 = vmatpush2.bf16.msra.mxu1 %v15353_v37  ;;  %v15407_v37 = vld [vmem:[#allocation3 + $0x604] ss:$16 sps:$4 sm:$0xff]  }
  0x73   :  { %2855 = vmatprep.subr.bf16.mxu1 %v15354_v38  ;;  %v15402_v38 = vld [vmem:[#allocation3 + $0x5e0] ss:$16 sps:$4 sm:$0xff]  }
  0x76   :  { %2856 = vmatpush2.bf16.msra.mxu1 %v15359_v40  ;;  %v15410_v40 = vld [vmem:[#allocation3 + $0x5c4] ss:$16 sps:$4 sm:$0xff]  }
  0x77   :  { %2907 = vmatprep.subr.bf16.mxu1 %v15365_v41  ;;  %v15413_v41 = vld [vmem:[#allocation3 + $0x7e4] ss:$16 sps:$4 sm:$0xff]  }
  0xbf   :  { %v90_v54 = vpop.xlane.xlu0 %89 }
  0xc0   :  { %v92_v55 = vmul.f32 0.00390625, %v90_v54  ;;  %v141_v56 = vpop.xlane.xlu1 %140 }
  0xc1   :  { %v142_v57 = vmul.f32 0.00390625, %v141_v56 }
  0xc2   :  { %v16262_v58 = vsub.f32 %v16216_v0, %v92_v55  ;;  %v16265_v59 = vsub.f32 %v16221_v1, %v92_v55 }
  0xc3   :  { %v16268_v60 = vsub.f32 %v16226_v2, %v142_v57  ;;  %v16271_v61 = vsub.f32 %v16233_v4, %v142_v57  ;;  %v116_v62 = vpop.xlane.xlu0 %115 }
  0xc4   :  { %v117_v63 = vmul.f32 0.00390625, %v116_v62  ;;  %v166_v3 = vpop.xlane.xlu1 %165  ;;  %v95_v7 = vmul.f32 %v16262_v58, %v16262_v58  ;;  %v96_v10 = vmul.f32 %v16265_v59, %v16265_v59  ;;  %v15356_v62 = vld [vmem:[#allocation3 + $0x4e0] ss:$16 sps:$4 sm:$0xff]  }
  0xc5   :  { %v167_v0 = vmul.f32 0.00390625, %v166_v3  ;;  %v145_v1 = vmul.f32 %v16268_v60, %v16268_v60  ;;  %v146_v2 = vmul.f32 %v16271_v61, %v16271_v61 }
  0xc6   :  { %v16282_v11 = vsub.f32 %v16238_v5, %v117_v63  ;;  %v16285_v4 = vsub.f32 %v16243_v6, %v117_v63  ;;  %v97_v12 = vadd.f32 %v96_v10, %v95_v7  ;;  %v15362_v7 = vld [vmem:[#allocation3 + $0x4c4] ss:$16 sps:$4 sm:$0xff]  }
  0xc7   :  { %v16288_v13 = vsub.f32 %v16250_v8, %v167_v0  ;;  %v16291_v14 = vsub.f32 %v16255_v9, %v167_v0  ;;  %v147_v15 = vadd.f32 %v146_v2, %v145_v1  ;;  %v15324_v9 = vld [vmem:[#allocation3 + $0x184] ss:$16 sps:$4 sm:$0xff]   ;;  %v15360_v2 = vld [vmem:[#allocation3 + $0x4c0] ss:$16 sps:$4 sm:$0xff]  }
  0xc8   :  { %98 = vadd.xlane.f32.xlu0 %v97_v12  ;;  %v120_v16 = vmul.f32 %v16282_v11, %v16282_v11  ;;  %v121_v17 = vmul.f32 %v16285_v4, %v16285_v4  ;;  %2806 = vmatprep.subr.bf16.mxu0 %v15324_v9  ;;  %v15363_v12 = vld [vmem:[#allocation3 + $0x6e0] ss:$16 sps:$4 sm:$0xff]   ;;  %v15377_v9 = vld [vmem:[#allocation3 + $0x6a4] ss:$16 sps:$4 sm:$0xff]  }
  0xc9   :  { %v170_v5 = vmul.f32 %v16288_v13, %v16288_v13  ;;  %v171_v6 = vmul.f32 %v16291_v14, %v16291_v14  ;;  %2807 = vmatpush2.bf16.msra.mxu0 %v15328_v20  ;;  %v15380_v20 = vld [vmem:[#allocation3 + $0x464] ss:$16 sps:$4 sm:$0xff]  }
  0xca   :  { %v122_v18 = vadd.f32 %v121_v17, %v120_v16  ;;  %2808 = vmatprep.subr.bf16.mxu0 %v15330_v22  ;;  %v15378_v22 = vld [vmem:[#allocation3 + $0x460] ss:$16 sps:$4 sm:$0xff]  }
  0xcb   :  { %v172_v8 = vadd.f32 %v171_v6, %v170_v5  ;;  %v15371_v5 = vld [vmem:[#allocation3 + $0x6c4] ss:$16 sps:$4 sm:$0xff]   ;;  %v15369_v6 = vld [vmem:[#allocation3 + $0x6c0] ss:$16 sps:$4 sm:$0xff]  }
  0xcc   :  { %148 = vadd.xlane.f32.xlu0 %v147_v15  ;;  %123 = vadd.xlane.f32.xlu1 %v122_v18 }
  0xcd   :  { %2809 = vmatpush2.bf16.msra.mxu0 %v15334_v24  ;;  %v15386_v24 = vld [vmem:[#allocation3 + $0x444] ss:$16 sps:$4 sm:$0xff]  }
  0xce   :  { %2810 = vmatprep.subr.bf16.mxu0 %v15336_v26  ;;  %v15384_v26 = vld [vmem:[#allocation3 + $0x440] ss:$16 sps:$4 sm:$0xff]  }
  0xd0   :  { %173 = vadd.xlane.f32.xlu1 %v172_v8  ;;  %v15374_v8 = vld [vmem:[#allocation3 + $0x484] ss:$16 sps:$4 sm:$0xff]  }
  0xd1   :  { %2811 = vmatpush2.bf16.msra.mxu0 %v15340_v28  ;;  %v15392_v28 = vld [vmem:[#allocation3 + $0x424] ss:$16 sps:$4 sm:$0xff]  }
  0xd2   :  { %2812 = vmatprep.subr.bf16.mxu0 %v15342_v30  ;;  %v15390_v30 = vld [vmem:[#allocation3 + $0x420] ss:$16 sps:$4 sm:$0xff]  }
  0xd5   :  { %2813 = vmatpush2.bf16.msra.mxu0 %v15346_v32  ;;  %v15398_v32 = vld [vmem:[#allocation3 + $0x404] ss:$16 sps:$4 sm:$0xff]  }
  0xd6   :  { %2814 = vmatprep.subr.bf16.mxu0 %v15348_v34  ;;  %v15396_v34 = vld [vmem:[#allocation3 + $0x400] ss:$16 sps:$4 sm:$0xff]  }
  0xd9   :  { %2815 = vmatpush2.bf16.msra.mxu0 %v15352_v36  ;;  %v15404_v36 = vld [vmem:[#allocation3 + $0x5e4] ss:$16 sps:$4 sm:$0xff]  }
  0xda   :  { %2866 = vmatprep.subr.bf16.mxu0 %v15358_v39  ;;  %v15405_v39 = vld [vmem:[#allocation3 + $0x600] ss:$16 sps:$4 sm:$0xff]  }
 0x151   :  { %v99_v42 = vpop.xlane.xlu0 %98 }
 0x152   :  { %v100_v43 = vmul.f32 0.00390625, %v99_v42  ;;  %v15408_v42 = vld [vmem:[#allocation3 + $0x5c0] ss:$16 sps:$4 sm:$0xff]  }
 0x154   :  { %v101_v44 = vadd.f32 1e-05, %v100_v43  ;;  %v15411_v43 = vld [vmem:[#allocation3 + $0x7e0] ss:$16 sps:$4 sm:$0xff]  }
 0x155   :  { %v124_v45 = vpop.xlane.xlu1 %123  ;;  %v149_v46 = vpop.xlane.xlu0 %148 }
 0x156   :  { %16029 = vrsqrt.f32 %v101_v44  ;;  %v125_v47 = vmul.f32 0.00390625, %v124_v45  ;;  %v150_v48 = vmul.f32 0.00390625, %v149_v46  ;;  %v15416_v44 = vld [vmem:[#allocation3 + $0x5a4] ss:$16 sps:$4 sm:$0xff]   ;;  %v15414_v46 = vld [vmem:[#allocation3 + $0x5a0] ss:$16 sps:$4 sm:$0xff]  }
 0x157   :  { %v15419_v45 = vld [vmem:[#allocation3 + $0x7c4] ss:$16 sps:$4 sm:$0xff]  }
 0x158   :  { %v126_v49 = vadd.f32 1e-05, %v125_v47  ;;  %v151_v50 = vadd.f32 1e-05, %v150_v48  ;;  %v15417_v47 = vld [vmem:[#allocation3 + $0x7c0] ss:$16 sps:$4 sm:$0xff]  }
 0x159   :  { %v174_v51 = vpop.xlane.xlu1 %173  ;;  %v15422_v48 = vld [vmem:[#allocation3 + $0x584] ss:$16 sps:$4 sm:$0xff]  }
 0x15a   :  { %16031 = vrsqrt.f32 %v126_v49  ;;  %v175_v52 = vmul.f32 0.00390625, %v174_v51  ;;  %v15425_v49 = vld [vmem:[#allocation3 + $0x7a4] ss:$16 sps:$4 sm:$0xff]   ;;  %v15423_v51 = vld [vmem:[#allocation3 + $0x7a0] ss:$16 sps:$4 sm:$0xff]  }
 0x15b   :  { %16033 = vrsqrt.f32 %v151_v50  ;;  %v15420_v50 = vld [vmem:[#allocation3 + $0x580] ss:$16 sps:$4 sm:$0xff]  }
 0x15c   :  { %v176_v53 = vadd.f32 1e-05, %v175_v52  ;;  %v15428_v52 = vld [vmem:[#allocation3 + $0x564] ss:$16 sps:$4 sm:$0xff]  }
 0x15e   :  { %16035 = vrsqrt.f32 %v176_v53  ;;  %v15431_v53 = vld [vmem:[#allocation3 + $0x784] ss:$16 sps:$4 sm:$0xff]  }
 0x163   :  { %v16030_v54 = vpop.eup %16029 }
 0x164   :  { %v104_v55 = vmul.f32 %v16030_v54, %v16265_v59  ;;  %v103_v56 = vmul.f32 %v16030_v54, %v16262_v58  ;;  %v15426_v54 = vld [vmem:[#allocation3 + $0x560] ss:$16 sps:$4 sm:$0xff]  }
 0x166   :  { %v16303_v57 = vpack.c.bf16 %v104_v55, %v104_v55  ;;  %v16305_v63 = vpack.c.bf16 %v103_v56, %v103_v56  ;;  %v15429_v55 = vld [vmem:[#allocation3 + $0x780] ss:$16 sps:$4 sm:$0xff]   ;;  %v15434_v56 = vld [vmem:[#allocation3 + $0x544] ss:$16 sps:$4 sm:$0xff]  }
 0x167   :  { %v16032_v3 = vpop.eup %16031 }
 0x168   :  { %v16307_v10 = vpop.eup %16033  ;;  %2816 = vmatprep.mubr.bf16.mxu0 %v16303_v57  ;;  %v129_v0 = vmul.f32 %v16032_v3, %v16285_v4  ;;  %v128_v1 = vmul.f32 %v16032_v3, %v16282_v11  ;;  %v15368_v4 = vld [vmem:[#allocation3 + $0x4a4] ss:$16 sps:$4 sm:$0xff]   ;;  %v15432_v3 = vld [vmem:[#allocation3 + $0x540] ss:$16 sps:$4 sm:$0xff]  }
 0x169   :  { %2817 = vmatmul.mubr.bf16.vlgmr.msra.gmra.mxu0 %v16305_v63  ;;  %v154_v58 = vmul.f32 %v16307_v10, %v16271_v61  ;;  %v15366_v61 = vld [vmem:[#allocation3 + $0x4a0] ss:$16 sps:$4 sm:$0xff]  }
 0x16a   :  { %2867 = vmatpush1.bf16.msra.mxu0 %v15356_v62  ;;  %v16315_v59 = vpack.c.bf16 %v129_v0, %v129_v0  ;;  %v16317_v15 = vpack.c.bf16 %v128_v1, %v128_v1  ;;  %v15437_v62 = vld [vmem:[#allocation3 + $0x764] ss:$16 sps:$4 sm:$0xff]  }
 0x16b   :  { %v16319_v16 = vpop.eup %16035  ;;  %2868 = vmatprep.subr.bf16.mxu0 %v15362_v7  ;;  %v16321_v17 = vpack.c.bf16 %v154_v58, %v154_v58  ;;  %v15435_v7 = vld [vmem:[#allocation3 + $0x760] ss:$16 sps:$4 sm:$0xff]   ;;  %v15440_v0 = vld [vmem:[#allocation3 + $0x524] ss:$16 sps:$4 sm:$0xff]  }
 0x16c   :  { %2857 = vmatprep.mubr.bf16.mxu1 %v16315_v59  ;;  %v179_v11 = vmul.f32 %v16319_v16, %v16291_v14  ;;  %v15375_v14 = vld [vmem:[#allocation3 + $0x6a0] ss:$16 sps:$4 sm:$0xff]   ;;  %v15443_v1 = vld [vmem:[#allocation3 + $0x744] ss:$16 sps:$4 sm:$0xff]  }
 0x16d   :  { %2898 = vmatprep.mubr.bf16.mxu0 %v16321_v17  ;;  %2858 = vmatmul.mubr.bf16.vlgmr.msra.gmra.mxu1 %v16317_v15  ;;  %v15438_v58 = vld [vmem:[#allocation3 + $0x520] ss:$16 sps:$4 sm:$0xff]  }
 0x16e   :  { %2869 = vmatpush1.bf16.msra.mxu0 %v15360_v2  ;;  %2908 = vmatpush1.bf16.msra.mxu1 %v15363_v12  ;;  %v16328_v18 = vpack.c.bf16 %v179_v11, %v179_v11  ;;  %v15441_v2 = vld [vmem:[#allocation3 + $0x740] ss:$16 sps:$4 sm:$0xff]   ;;  %v15446_v12 = vld [vmem:[#allocation3 + $0x504] ss:$16 sps:$4 sm:$0xff]  }
 0x16f   :  { %2870 = vmatprep.subr.bf16.mxu0 %v15368_v4  ;;  %2909 = vmatprep.subr.bf16.mxu1 %v15371_v5  ;;  %v15449_v4 = vld [vmem:[#allocation3 + $0x724] ss:$16 sps:$4 sm:$0xff]   ;;  %v15444_v5 = vld [vmem:[#allocation3 + $0x500] ss:$16 sps:$4 sm:$0xff]  }
 0x170   :  { %2939 = vmatprep.mubr.bf16.mxu1 %v16328_v18  ;;  %v15447_v11 = vld [vmem:[#allocation3 + $0x720] ss:$16 sps:$4 sm:$0xff]  }
 0x172   :  { %2871 = vmatpush1.bf16.msra.mxu0 %v15366_v61  ;;  %2910 = vmatpush1.bf16.msra.mxu1 %v15369_v6  ;;  %v153_v61 = vmul.f32 %v16307_v10, %v16268_v60  ;;  %v15452_v6 = vld [vmem:[#allocation3 + $0x704] ss:$16 sps:$4 sm:$0xff]   ;;  %v15456_v60 = vld [vmem:[#allocation3 + $0xc8] ss:$16 sps:$4 sm:$0xff]  }
 0x173   :  { %2872 = vmatprep.subr.bf16.mxu0 %v15374_v8  ;;  %2911 = vmatprep.subr.bf16.mxu1 %v15377_v9  ;;  %v15455_v8 = vld [vmem:[#allocation3 + $0xec] ss:$16 sps:$4 sm:$0xff]   ;;  %v15450_v9 = vld [vmem:[#allocation3 + $0x700] ss:$16 sps:$4 sm:$0xff]   ;;  %v15459_v10 = vld [vmem:[#allocation3 + $0x2e8] ss:$16 sps:$4 sm:$0xff]  }
 0x176   :  { %2873 = vmatpush1.bf16.msra.mxu0 %v15372_v19  ;;  %2912 = vmatpush1.bf16.msra.mxu1 %v15375_v14  ;;  %v15453_v19 = vld [vmem:[#allocation3 + $0xe8] ss:$16 sps:$4 sm:$0xff]   ;;  %v16333_v14 = vpack.c.bf16 %v153_v61, %v153_v61  ;;  %v15536_v61 = vld [vmem:[#allocation3 + $0x12c] ss:$16 sps:$4 sm:$0xff]  }
 0x177   :  { %2874 = vmatprep.subr.bf16.mxu0 %v15380_v20  ;;  %2913 = vmatprep.subr.bf16.mxu1 %v15383_v21  ;;  %v178_v20 = vmul.f32 %v16319_v16, %v16288_v13  ;;  %v15458_v21 = vld [vmem:[#allocation3 + $0xcc] ss:$16 sps:$4 sm:$0xff]   ;;  %v15462_v13 = vld [vmem:[#allocation3 + $0xa8] ss:$16 sps:$4 sm:$0xff]  }
 0x178   :  { %v15465_v16 = vld [vmem:[#allocation3 + $0x2c8] ss:$16 sps:$4 sm:$0xff]  }
 0x17a   :  { %2875 = vmatpush1.bf16.msra.mxu0 %v15378_v22  ;;  %2914 = vmatpush1.bf16.msra.mxu1 %v15381_v23  ;;  %v15461_v22 = vld [vmem:[#allocation3 + $0x2ec] ss:$16 sps:$4 sm:$0xff]   ;;  %v16339_v23 = vpack.c.bf16 %v178_v20, %v178_v20 }
 0x17b   :  { %2876 = vmatprep.subr.bf16.mxu0 %v15386_v24  ;;  %2915 = vmatprep.subr.bf16.mxu1 %v15389_v25  ;;  %v15464_v24 = vld [vmem:[#allocation3 + $0xac] ss:$16 sps:$4 sm:$0xff]  }
 0x17c   :  { %v15467_v25 = vld [vmem:[#allocation3 + $0x2cc] ss:$16 sps:$4 sm:$0xff]  }
 0x17d   :  { %v15545_v20 = vld [vmem:[#allocation3 + $0x32c] ss:$16 sps:$4 sm:$0xff]  }
 0x17e   :  { %2877 = vmatpush1.bf16.msra.mxu0 %v15384_v26  ;;  %2916 = vmatpush1.bf16.msra.mxu1 %v15387_v27  ;;  %v15470_v26 = vld [vmem:[#allocation3 + $0x8c] ss:$16 sps:$4 sm:$0xff]  }
 0x17f   :  { %2878 = vmatprep.subr.bf16.mxu0 %v15392_v28  ;;  %2917 = vmatprep.subr.bf16.mxu1 %v15395_v29  ;;  %v15473_v27 = vld [vmem:[#allocation3 + $0x2ac] ss:$16 sps:$4 sm:$0xff]   ;;  %v15471_v28 = vld [vmem:[#allocation3 + $0x2a8] ss:$16 sps:$4 sm:$0xff]  }
 0x180   :  { %v15476_v29 = vld [vmem:[#allocation3 + $0x6c] ss:$16 sps:$4 sm:$0xff]  }
 0x182   :  { %2879 = vmatpush1.bf16.msra.mxu0 %v15390_v30  ;;  %2918 = vmatpush1.bf16.msra.mxu1 %v15393_v31  ;;  %v15479_v30 = vld [vmem:[#allocation3 + $0x28c] ss:$16 sps:$4 sm:$0xff]   ;;  %v15474_v31 = vld [vmem:[#allocation3 + $0x68] ss:$16 sps:$4 sm:$0xff]  }
 0x183   :  { %2880 = vmatprep.subr.bf16.mxu0 %v15398_v32  ;;  %2919 = vmatprep.subr.bf16.mxu1 %v15401_v33  ;;  %v15477_v32 = vld [vmem:[#allocation3 + $0x288] ss:$16 sps:$4 sm:$0xff]   ;;  %v15482_v33 = vld [vmem:[#allocation3 + $0x4c] ss:$16 sps:$4 sm:$0xff]  }
 0x186   :  { %2881 = vmatpush1.bf16.msra.mxu0 %v15396_v34  ;;  %2920 = vmatpush1.bf16.msra.mxu1 %v15399_v35  ;;  %v15480_v34 = vld [vmem:[#allocation3 + $0x48] ss:$16 sps:$4 sm:$0xff]  }
 0x187   :  { %2882 = vmatprep.subr.bf16.mxu0 %v15404_v36  ;;  %2921 = vmatprep.subr.bf16.mxu1 %v15407_v37  ;;  %v15483_v35 = vld [vmem:[#allocation3 + $0x268] ss:$16 sps:$4 sm:$0xff]   ;;  %v15488_v36 = vld [vmem:[#allocation3 + $0x2c] ss:$16 sps:$4 sm:$0xff]  }
 0x188   :  { %v15491_v37 = vld [vmem:[#allocation3 + $0x24c] ss:$16 sps:$4 sm:$0xff]  }
 0x18a   :  { %2883 = vmatpush2.bf16.msra.mxu0 %v15402_v38  ;;  %2922 = vmatpush1.bf16.msra.mxu1 %v15405_v39  ;;  %v15486_v38 = vld [vmem:[#allocation3 + $0x28] ss:$16 sps:$4 sm:$0xff]  }
 0x18b   :  { %2884 = vmatprep.subr.bf16.mxu0 %v15410_v40  ;;  %2923 = vmatprep.subr.bf16.mxu1 %v15413_v41  ;;  %v15489_v39 = vld [vmem:[#allocation3 + $0x248] ss:$16 sps:$4 sm:$0xff]   ;;  %v15494_v40 = vld [vmem:[#allocation3 + $0xc] ss:$16 sps:$4 sm:$0xff]  }
 0x18c   :  { %v15497_v41 = vld [vmem:[#allocation3 + $0x22c] ss:$16 sps:$4 sm:$0xff]  }
 0x18e   :  { %2885 = vmatpush2.bf16.msra.mxu0 %v15408_v42  ;;  %2924 = vmatpush2.bf16.msra.mxu1 %v15411_v43  ;;  %v15492_v42 = vld [vmem:[#allocation3 + $0x8] ss:$16 sps:$4 sm:$0xff]  }
 0x18f   :  { %2886 = vmatprep.subr.bf16.mxu0 %v15416_v44  ;;  %2925 = vmatprep.subr.bf16.mxu1 %v15419_v45  ;;  %v15495_v43 = vld [vmem:[#allocation3 + $0x228] ss:$16 sps:$4 sm:$0xff]   ;;  %v15500_v44 = vld [vmem:[#allocation3 + $0x1ec] ss:$16 sps:$4 sm:$0xff]  }
 0x190   :  { %v15503_v45 = vld [vmem:[#allocation3 + $0x20c] ss:$16 sps:$4 sm:$0xff]  }
 0x192   :  { %2887 = vmatpush2.bf16.msra.mxu0 %v15414_v46  ;;  %2926 = vmatpush2.bf16.msra.mxu1 %v15417_v47  ;;  %v15498_v46 = vld [vmem:[#allocation3 + $0x1e8] ss:$16 sps:$4 sm:$0xff]  }
 0x193   :  { %2888 = vmatprep.subr.bf16.mxu0 %v15422_v48  ;;  %2927 = vmatprep.subr.bf16.mxu1 %v15425_v49  ;;  %v15501_v47 = vld [vmem:[#allocation3 + $0x208] ss:$16 sps:$4 sm:$0xff]   ;;  %v15506_v48 = vld [vmem:[#allocation3 + $0x1cc] ss:$16 sps:$4 sm:$0xff]  }
 0x194   :  { %v15509_v49 = vld [vmem:[#allocation3 + $0x3ec] ss:$16 sps:$4 sm:$0xff]  }
 0x196   :  { %2889 = vmatpush2.bf16.msra.mxu0 %v15420_v50  ;;  %2928 = vmatpush2.bf16.msra.mxu1 %v15423_v51  ;;  %v15504_v50 = vld [vmem:[#allocation3 + $0x1c8] ss:$16 sps:$4 sm:$0xff]  }
 0x197   :  { %2890 = vmatprep.subr.bf16.mxu0 %v15428_v52  ;;  %2929 = vmatprep.subr.bf16.mxu1 %v15431_v53  ;;  %v15507_v51 = vld [vmem:[#allocation3 + $0x3e8] ss:$16 sps:$4 sm:$0xff]   ;;  %v15512_v52 = vld [vmem:[#allocation3 + $0x1ac] ss:$16 sps:$4 sm:$0xff]  }
 0x198   :  { %v15515_v53 = vld [vmem:[#allocation3 + $0x3cc] ss:$16 sps:$4 sm:$0xff]  }
 0x19a   :  { %2891 = vmatpush2.bf16.msra.mxu0 %v15426_v54  ;;  %2930 = vmatpush2.bf16.msra.mxu1 %v15429_v55  ;;  %v15510_v54 = vld [vmem:[#allocation3 + $0x1a8] ss:$16 sps:$4 sm:$0xff]  }
 0x19b   :  { %2892 = vmatprep.subr.bf16.mxu0 %v15434_v56  ;;  %2931 = vmatprep.subr.bf16.mxu1 %v15437_v62  ;;  %v15513_v55 = vld [vmem:[#allocation3 + $0x3c8] ss:$16 sps:$4 sm:$0xff]   ;;  %v15518_v56 = vld [vmem:[#allocation3 + $0x18c] ss:$16 sps:$4 sm:$0xff]  }
 0x19c   :  { %v15521_v62 = vld [vmem:[#allocation3 + $0x3ac] ss:$16 sps:$4 sm:$0xff]  }
 0x19e   :  { %2893 = vmatpush2.bf16.msra.mxu0 %v15432_v3  ;;  %2932 = vmatpush2.bf16.msra.mxu1 %v15435_v7  ;;  %v15516_v3 = vld [vmem:[#allocation3 + $0x188] ss:$16 sps:$4 sm:$0xff]  }
 0x19f   :  { %2894 = vmatprep.subr.bf16.mxu0 %v15440_v0  ;;  %2933 = vmatprep.subr.bf16.mxu1 %v15443_v1  ;;  %v15519_v7 = vld [vmem:[#allocation3 + $0x3a8] ss:$16 sps:$4 sm:$0xff]   ;;  %v15524_v0 = vld [vmem:[#allocation3 + $0x16c] ss:$16 sps:$4 sm:$0xff]  }
 0x1a0   :  { %v15527_v1 = vld [vmem:[#allocation3 + $0x38c] ss:$16 sps:$4 sm:$0xff]  }
 0x1a2   :  { %2895 = vmatpush2.bf16.msra.mxu0 %v15438_v58  ;;  %2934 = vmatpush2.bf16.msra.mxu1 %v15441_v2  ;;  %v15522_v58 = vld [vmem:[#allocation3 + $0x168] ss:$16 sps:$4 sm:$0xff]  }
 0x1a3   :  { %2896 = vmatprep.subr.bf16.mxu0 %v15446_v12  ;;  %2935 = vmatprep.subr.bf16.mxu1 %v15449_v4  ;;  %v15525_v2 = vld [vmem:[#allocation3 + $0x388] ss:$16 sps:$4 sm:$0xff]   ;;  %v15530_v12 = vld [vmem:[#allocation3 + $0x14c] ss:$16 sps:$4 sm:$0xff]  }
 0x1a4   :  { %v15533_v4 = vld [vmem:[#allocation3 + $0x36c] ss:$16 sps:$4 sm:$0xff]  }
 0x1a6   :  { %2897 = vmatpush2.bf16.msra.mxu0 %v15444_v5  ;;  %2936 = vmatpush2.bf16.msra.mxu1 %v15447_v11  ;;  %v15528_v5 = vld [vmem:[#allocation3 + $0x148] ss:$16 sps:$4 sm:$0xff]  }
 0x1a7   :  { %2937 = vmatprep.subr.bf16.mxu1 %v15452_v6  ;;  %2948 = vmatprep.subr.bf16.mxu0 %v15455_v8  ;;  %v15531_v11 = vld [vmem:[#allocation3 + $0x368] ss:$16 sps:$4 sm:$0xff]   ;;  %v15539_v6 = vld [vmem:[#allocation3 + $0x34c] ss:$16 sps:$4 sm:$0xff]  }
 0x1a8   :  { %v15534_v8 = vld [vmem:[#allocation3 + $0x128] ss:$16 sps:$4 sm:$0xff]  }
 0x1a9   :  { %2899 = vmatmul.mubr.bf16.vlgmr.msra.gmra.mxu0 %v16333_v14 }
 0x1aa   :  { %2938 = vmatpush2.bf16.msra.mxu1 %v15450_v9  ;;  %2949 = vmatpush1.bf16.msra.mxu0 %v15453_v19  ;;  %v15537_v9 = vld [vmem:[#allocation3 + $0x348] ss:$16 sps:$4 sm:$0xff]   ;;  %v15542_v19 = vld [vmem:[#allocation3 + $0x10c] ss:$16 sps:$4 sm:$0xff]  }
 0x1ab   :  { %2980 = vmatprep.mubr.bf16.mxu0 %v16303_v57  ;;  %2950 = vmatprep.subr.bf16.mxu0 %v15458_v21  ;;  %v15468_v57 = vld [vmem:[#allocation3 + $0x88] ss:$16 sps:$4 sm:$0xff]  }
 0x1ac   :  { %2989 = vmatprep.subr.bf16.mxu1 %v15461_v22  ;;  %v15540_v21 = vld [vmem:[#allocation3 + $0x108] ss:$16 sps:$4 sm:$0xff]  }
 0x1ad   :  { %2940 = vmatmul.mubr.bf16.vlgmr.msra.gmra.mxu1 %v16339_v23  ;;  %v15543_v22 = vld [vmem:[#allocation3 + $0x328] ss:$16 sps:$4 sm:$0xff]  }
 0x1ae   :  { %2951 = vmatpush1.bf16.msra.mxu0 %v15456_v60  ;;  %2990 = vmatpush1.bf16.msra.mxu1 %v15459_v10  ;;  %v15548_v60 = vld [vmem:[#allocation3 + $0x30c] ss:$16 sps:$4 sm:$0xff]  }
 0x1af   :  { %3021 = vmatprep.mubr.bf16.mxu1 %v16315_v59  ;;  %2952 = vmatprep.subr.bf16.mxu0 %v15464_v24  ;;  %v15485_v59 = vld [vmem:[#allocation3 + $0x26c] ss:$16 sps:$4 sm:$0xff]   ;;  %v15546_v24 = vld [vmem:[#allocation3 + $0x308] ss:$16 sps:$4 sm:$0xff]  }
 0x1b0   :  { %2991 = vmatprep.subr.bf16.mxu1 %v15467_v25  ;;  %v15551_v10 = vld [vmem:[#allocation3 + $0x4ec] ss:$16 sps:$4 sm:$0xff]   ;;  %v15549_v25 = vld [vmem:[#allocation3 + $0x4e8] ss:$16 sps:$4 sm:$0xff]  }
 0x1b2   :  { %2953 = vmatpush1.bf16.msra.mxu0 %v15462_v13  ;;  %2992 = vmatpush1.bf16.msra.mxu1 %v15465_v16  ;;  %v15554_v13 = vld [vmem:[#allocation3 + $0x4cc] ss:$16 sps:$4 sm:$0xff]  }
 0x1b3   :  { %2954 = vmatprep.subr.bf16.mxu0 %v15470_v26  ;;  %2993 = vmatprep.subr.bf16.mxu1 %v15473_v27  ;;  %v15557_v16 = vld [vmem:[#allocation3 + $0x6ec] ss:$16 sps:$4 sm:$0xff]   ;;  %v15552_v26 = vld [vmem:[#allocation3 + $0x4c8] ss:$16 sps:$4 sm:$0xff]  }
 0x1b4   :  { %v15555_v27 = vld [vmem:[#allocation3 + $0x6e8] ss:$16 sps:$4 sm:$0xff]  }
 0x1b6   :  { %2955 = vmatpush1.bf16.msra.mxu0 %v15468_v57  ;;  %2994 = vmatpush1.bf16.msra.mxu1 %v15471_v28  ;;  %v15560_v57 = vld [vmem:[#allocation3 + $0x4ac] ss:$16 sps:$4 sm:$0xff]  }
 0x1b7   :  { %2956 = vmatprep.subr.bf16.mxu0 %v15476_v29  ;;  %2995 = vmatprep.subr.bf16.mxu1 %v15479_v30  ;;  %v15563_v28 = vld [vmem:[#allocation3 + $0x6cc] ss:$16 sps:$4 sm:$0xff]   ;;  %v15558_v29 = vld [vmem:[#allocation3 + $0x4a8] ss:$16 sps:$4 sm:$0xff]  }
 0x1b8   :  { %v15561_v30 = vld [vmem:[#allocation3 + $0x6c8] ss:$16 sps:$4 sm:$0xff]  }
 0x1ba   :  { %2957 = vmatpush1.bf16.msra.mxu0 %v15474_v31  ;;  %2996 = vmatpush1.bf16.msra.mxu1 %v15477_v32  ;;  %v15569_v31 = vld [vmem:[#allocation3 + $0x6ac] ss:$16 sps:$4 sm:$0xff]   ;;  %v15564_v32 = vld [vmem:[#allocation3 + $0x488] ss:$16 sps:$4 sm:$0xff]  }
 0x1bb   :  { %2958 = vmatprep.subr.bf16.mxu0 %v15482_v33  ;;  %2997 = vmatprep.subr.bf16.mxu1 %v15485_v59  ;;  %v15572_v33 = vld [vmem:[#allocation3 + $0x46c] ss:$16 sps:$4 sm:$0xff]  }
 0x1bc   :  { %v15575_v59 = vld [vmem:[#allocation3 + $0x68c] ss:$16 sps:$4 sm:$0xff]  }
 0x1be   :  { %2959 = vmatpush1.bf16.msra.mxu0 %v15480_v34  ;;  %2998 = vmatpush1.bf16.msra.mxu1 %v15483_v35  ;;  %v15573_v34 = vld [vmem:[#allocation3 + $0x688] ss:$16 sps:$4 sm:$0xff]   ;;  %v15578_v35 = vld [vmem:[#allocation3 + $0x44c] ss:$16 sps:$4 sm:$0xff]  }
 0x1bf   :  { %2960 = vmatprep.subr.bf16.mxu0 %v15488_v36  ;;  %2999 = vmatprep.subr.bf16.mxu1 %v15491_v37  ;;  %v15576_v36 = vld [vmem:[#allocation3 + $0x448] ss:$16 sps:$4 sm:$0xff]  }
 0x1c0   :  { %v15579_v37 = vld [vmem:[#allocation3 + $0x668] ss:$16 sps:$4 sm:$0xff]  }
 0x1c2   :  { %2961 = vmatpush1.bf16.msra.mxu0 %v15486_v38  ;;  %3000 = vmatpush1.bf16.msra.mxu1 %v15489_v39  ;;  %v15584_v38 = vld [vmem:[#allocation3 + $0x42c] ss:$16 sps:$4 sm:$0xff]  }
 0x1c3   :  { %2962 = vmatprep.subr.bf16.mxu0 %v15494_v40  ;;  %3001 = vmatprep.subr.bf16.mxu1 %v15497_v41  ;;  %v15587_v39 = vld [vmem:[#allocation3 + $0x64c] ss:$16 sps:$4 sm:$0xff]   ;;  %v15582_v40 = vld [vmem:[#allocation3 + $0x428] ss:$16 sps:$4 sm:$0xff]  }
 0x1c4   :  { %v15585_v41 = vld [vmem:[#allocation3 + $0x648] ss:$16 sps:$4 sm:$0xff]  }
 0x1c6   :  { %2963 = vmatpush1.bf16.msra.mxu0 %v15492_v42  ;;  %3002 = vmatpush1.bf16.msra.mxu1 %v15495_v43  ;;  %v15590_v42 = vld [vmem:[#allocation3 + $0x40c] ss:$16 sps:$4 sm:$0xff]  }
 0x1c7   :  { %2964 = vmatprep.subr.bf16.mxu0 %v15500_v44  ;;  %3003 = vmatprep.subr.bf16.mxu1 %v15503_v45  ;;  %v15593_v43 = vld [vmem:[#allocation3 + $0x62c] ss:$16 sps:$4 sm:$0xff]   ;;  %v15588_v44 = vld [vmem:[#allocation3 + $0x408] ss:$16 sps:$4 sm:$0xff]  }
 0x1c8   :  { %v15591_v45 = vld [vmem:[#allocation3 + $0x628] ss:$16 sps:$4 sm:$0xff]  }
 0x1ca   :  { %2965 = vmatpush2.bf16.msra.mxu0 %v15498_v46  ;;  %3004 = vmatpush1.bf16.msra.mxu1 %v15501_v47  ;;  %v15596_v46 = vld [vmem:[#allocation3 + $0x5ec] ss:$16 sps:$4 sm:$0xff]  }
 0x1cb   :  { %2966 = vmatprep.subr.bf16.mxu0 %v15506_v48  ;;  %3005 = vmatprep.subr.bf16.mxu1 %v15509_v49  ;;  %v15599_v47 = vld [vmem:[#allocation3 + $0x60c] ss:$16 sps:$4 sm:$0xff]   ;;  %v15594_v48 = vld [vmem:[#allocation3 + $0x5e8] ss:$16 sps:$4 sm:$0xff]  }
 0x1cc   :  { %v15597_v49 = vld [vmem:[#allocation3 + $0x608] ss:$16 sps:$4 sm:$0xff]  }
 0x1ce   :  { %2967 = vmatpush2.bf16.msra.mxu0 %v15504_v50  ;;  %3006 = vmatpush2.bf16.msra.mxu1 %v15507_v51  ;;  %v15602_v50 = vld [vmem:[#allocation3 + $0x5cc] ss:$16 sps:$4 sm:$0xff]  }
 0x1cf   :  { %2968 = vmatprep.subr.bf16.mxu0 %v15512_v52  ;;  %3007 = vmatprep.subr.bf16.mxu1 %v15515_v53  ;;  %v15605_v51 = vld [vmem:[#allocation3 + $0x7ec] ss:$16 sps:$4 sm:$0xff]   ;;  %v15600_v52 = vld [vmem:[#allocation3 + $0x5c8] ss:$16 sps:$4 sm:$0xff]  }
 0x1d0   :  { %v15603_v53 = vld [vmem:[#allocation3 + $0x7e8] ss:$16 sps:$4 sm:$0xff]  }
 0x1d2   :  { %2969 = vmatpush2.bf16.msra.mxu0 %v15510_v54  ;;  %3008 = vmatpush2.bf16.msra.mxu1 %v15513_v55  ;;  %v15608_v54 = vld [vmem:[#allocation3 + $0x5ac] ss:$16 sps:$4 sm:$0xff]  }
 0x1d3   :  { %2970 = vmatprep.subr.bf16.mxu0 %v15518_v56  ;;  %3009 = vmatprep.subr.bf16.mxu1 %v15521_v62  ;;  %v15611_v55 = vld [vmem:[#allocation3 + $0x7cc] ss:$16 sps:$4 sm:$0xff]   ;;  %v15606_v56 = vld [vmem:[#allocation3 + $0x5a8] ss:$16 sps:$4 sm:$0xff]  }
 0x1d4   :  { %v15609_v62 = vld [vmem:[#allocation3 + $0x7c8] ss:$16 sps:$4 sm:$0xff]  }
 0x1d6   :  { %2971 = vmatpush2.bf16.msra.mxu0 %v15516_v3  ;;  %3010 = vmatpush2.bf16.msra.mxu1 %v15519_v7  ;;  %v15614_v3 = vld [vmem:[#allocation3 + $0x58c] ss:$16 sps:$4 sm:$0xff]  }
 0x1d7   :  { %2972 = vmatprep.subr.bf16.mxu0 %v15524_v0  ;;  %3011 = vmatprep.subr.bf16.mxu1 %v15527_v1  ;;  %v15617_v7 = vld [vmem:[#allocation3 + $0x7ac] ss:$16 sps:$4 sm:$0xff]   ;;  %v15612_v0 = vld [vmem:[#allocation3 + $0x588] ss:$16 sps:$4 sm:$0xff]  }
 0x1d8   :  { %v15615_v1 = vld [vmem:[#allocation3 + $0x7a8] ss:$16 sps:$4 sm:$0xff]  }
 0x1da   :  { %2973 = vmatpush2.bf16.msra.mxu0 %v15522_v58  ;;  %3012 = vmatpush2.bf16.msra.mxu1 %v15525_v2  ;;  %v15620_v58 = vld [vmem:[#allocation3 + $0x56c] ss:$16 sps:$4 sm:$0xff]  }
 0x1db   :  { %2974 = vmatprep.subr.bf16.mxu0 %v15530_v12  ;;  %3013 = vmatprep.subr.bf16.mxu1 %v15533_v4  ;;  %v15623_v2 = vld [vmem:[#allocation3 + $0x78c] ss:$16 sps:$4 sm:$0xff]   ;;  %v15618_v12 = vld [vmem:[#allocation3 + $0x568] ss:$16 sps:$4 sm:$0xff]  }
 0x1dc   :  { %v15621_v4 = vld [vmem:[#allocation3 + $0x788] ss:$16 sps:$4 sm:$0xff]  }
 0x1de   :  { %2975 = vmatpush2.bf16.msra.mxu0 %v15528_v5  ;;  %3014 = vmatpush2.bf16.msra.mxu1 %v15531_v11  ;;  %v15626_v5 = vld [vmem:[#allocation3 + $0x54c] ss:$16 sps:$4 sm:$0xff]  }
 0x1df   :  { %2976 = vmatprep.subr.bf16.mxu0 %v15536_v61  ;;  %3015 = vmatprep.subr.bf16.mxu1 %v15539_v6  ;;  %v15629_v11 = vld [vmem:[#allocation3 + $0x76c] ss:$16 sps:$4 sm:$0xff]   ;;  %v15624_v61 = vld [vmem:[#allocation3 + $0x548] ss:$16 sps:$4 sm:$0xff]  }
 0x1e0   :  { %v15627_v6 = vld [vmem:[#allocation3 + $0x768] ss:$16 sps:$4 sm:$0xff]  }
 0x1e2   :  { %2977 = vmatpush2.bf16.msra.mxu0 %v15534_v8  ;;  %3016 = vmatpush2.bf16.msra.mxu1 %v15537_v9  ;;  %v15632_v8 = vld [vmem:[#allocation3 + $0x52c] ss:$16 sps:$4 sm:$0xff]  }
 0x1e3   :  { %2978 = vmatprep.subr.bf16.mxu0 %v15542_v19  ;;  %3017 = vmatprep.subr.bf16.mxu1 %v15545_v20  ;;  %v15635_v9 = vld [vmem:[#allocation3 + $0x74c] ss:$16 sps:$4 sm:$0xff]   ;;  %v15630_v19 = vld [vmem:[#allocation3 + $0x528] ss:$16 sps:$4 sm:$0xff]  }
 0x1e4   :  { %v15633_v20 = vld [vmem:[#allocation3 + $0x748] ss:$16 sps:$4 sm:$0xff]  }
 0x1e6   :  { %2979 = vmatpush2.bf16.msra.mxu0 %v15540_v21  ;;  %3018 = vmatpush2.bf16.msra.mxu1 %v15543_v22  ;;  %v15638_v21 = vld [vmem:[#allocation3 + $0x50c] ss:$16 sps:$4 sm:$0xff]  }
 0x1e7   :  { %3019 = vmatprep.subr.bf16.mxu1 %v15548_v60  ;;  %3030 = vmatprep.subr.bf16.mxu0 %v15551_v10  ;;  %v15641_v22 = vld [vmem:[#allocation3 + $0x72c] ss:$16 sps:$4 sm:$0xff]   ;;  %v762_v60 = vld [vmem:[#allocation5 + $0x1c0] sm:$0xff] }
 0x1e8   :  { %v766_v10 = vld [vmem:[#allocation5 + $0x1e0] sm:$0xff] }
 0x1e9   :  { %2981 = vmatmul.mubr.bf16.vlgmr.msra.gmra.mxu0 %v16305_v63  ;;  %v15566_v63 = vld [vmem:[#allocation3 + $0x48c] ss:$16 sps:$4 sm:$0xff]  }
 0x1ea   :  { %3020 = vmatpush2.bf16.msra.mxu1 %v15546_v24  ;;  %3031 = vmatpush1.bf16.msra.mxu0 %v15549_v25  ;;  %v15636_v24 = vld [vmem:[#allocation3 + $0x508] ss:$16 sps:$4 sm:$0xff]  }
 0x1eb   :  { %3062 = vmatprep.mubr.bf16.mxu0 %v16321_v17  ;;  %3032 = vmatprep.subr.bf16.mxu0 %v15554_v13  ;;  %v15567_v17 = vld [vmem:[#allocation3 + $0x6a8] ss:$16 sps:$4 sm:$0xff]   ;;  %v15644_v13 = vld [vmem:[#allocation3 + $0x70c] ss:$16 sps:$4 sm:$0xff]  }
 0x1ec   :  { %3071 = vmatprep.subr.bf16.mxu1 %v15557_v16  ;;  %v15639_v25 = vld [vmem:[#allocation3 + $0x728] ss:$16 sps:$4 sm:$0xff]   ;;  %v13762_v16 = vcombine.high %v762_v60, %v766_v10 }
 0x1ed   :  { %3022 = vmatmul.mubr.bf16.vlgmr.msra.gmra.mxu1 %v16317_v15  ;;  %v15570_v15 = vld [vmem:[#allocation3 + $0x468] ss:$16 sps:$4 sm:$0xff]  }
 0x1ee   :  { %3033 = vmatpush1.bf16.msra.mxu0 %v15552_v26  ;;  %3072 = vmatpush1.bf16.msra.mxu1 %v15555_v27  ;;  %v754_v26 = vld [vmem:[#allocation5 + $0x180] sm:$0xff] }
 0x1ef   :  { %3103 = vmatprep.mubr.bf16.mxu1 %v16328_v18  ;;  %3034 = vmatprep.subr.bf16.mxu0 %v15560_v57  ;;  %v15581_v18 = vld [vmem:[#allocation3 + $0x66c] ss:$16 sps:$4 sm:$0xff]   ;;  %v758_v27 = vld [vmem:[#allocation5 + $0x1a0] sm:$0xff]  ;;  %v15642_v57 = vld [vmem:[#allocation3 + $0x708] ss:$16 sps:$4 sm:$0xff]  }
 0x1f0   :  { %3073 = vmatprep.subr.bf16.mxu1 %v15563_v28  ;;  %v13761_v28 = vcombine.low %v762_v60, %v766_v10  ;;  %v822_v60 = vld [vmem:[#allocation5 + $0x3a0] sm:$0xff] }
 0x1f1   :  { %v858_v10 = vld [vmem:[#allocation5 + $0x4c0] sm:$0xff] }
 0x1f2   :  { %3035 = vmatpush1.bf16.msra.mxu0 %v15558_v29  ;;  %3074 = vmatpush1.bf16.msra.mxu1 %v15561_v30  ;;  %v13754_v29 = vcombine.high %v754_v26, %v758_v27  ;;  %v746_v30 = vld [vmem:[#allocation5 + $0x140] sm:$0xff] }
 0x1f3   :  { %3036 = vmatprep.subr.bf16.mxu0 %v15566_v63  ;;  %3075 = vmatprep.subr.bf16.mxu1 %v15569_v31  ;;  %v750_v63 = vld [vmem:[#allocation5 + $0x160] sm:$0xff] }
 0x1f6   :  { %3037 = vmatpush1.bf16.msra.mxu0 %v15564_v32  ;;  %3076 = vmatpush1.bf16.msra.mxu1 %v15567_v17  ;;  %v13753_v32 = vcombine.low %v754_v26, %v758_v27  ;;  %v810_v27 = vld [vmem:[#allocation5 + $0x340] sm:$0xff] }
 0x1f7   :  { %3038 = vmatprep.subr.bf16.mxu0 %v15572_v33  ;;  %3077 = vmatprep.subr.bf16.mxu1 %v15575_v59  ;;  %v13746_v33 = vcombine.high %v746_v30, %v750_v63  ;;  %v738_v59 = vld [vmem:[#allocation5 + $0x100] sm:$0xff] }
 0x1fa   :  { %3039 = vmatpush1.bf16.msra.mxu0 %v15570_v15  ;;  %3078 = vmatpush1.bf16.msra.mxu1 %v15573_v34  ;;  %v742_v15 = vld [vmem:[#allocation5 + $0x120] sm:$0xff] }
 0x1fb   :  { %3040 = vmatprep.subr.bf16.mxu0 %v15578_v35  ;;  %3079 = vmatprep.subr.bf16.mxu1 %v15581_v18  ;;  %v13745_v18 = vcombine.low %v746_v30, %v750_v63 }
 0x1fe   :  { %3041 = vmatpush1.bf16.msra.mxu0 %v15576_v36  ;;  %3080 = vmatpush1.bf16.msra.mxu1 %v15579_v37  ;;  %v13738_v37 = vcombine.high %v738_v59, %v742_v15 }
 0x1ff   :  { %3042 = vmatprep.subr.bf16.mxu0 %v15584_v38  ;;  %3081 = vmatprep.subr.bf16.mxu1 %v15587_v39  ;;  %v730_v38 = vld [vmem:[#allocation5 + $0xc0] sm:$0xff] }
 0x200   :  { %v734_v39 = vld [vmem:[#allocation5 + $0xe0] sm:$0xff] }
 0x202   :  { %3043 = vmatpush1.bf16.msra.mxu0 %v15582_v40  ;;  %3082 = vmatpush1.bf16.msra.mxu1 %v15585_v41  ;;  %v13737_v41 = vcombine.low %v738_v59, %v742_v15  ;;  %v802_v59 = vld [vmem:[#allocation5 + $0x300] sm:$0xff] }
 0x203   :  { %3044 = vmatprep.subr.bf16.mxu0 %v15590_v42  ;;  %3083 = vmatprep.subr.bf16.mxu1 %v15593_v43  ;;  %v13730_v43 = vcombine.high %v730_v38, %v734_v39  ;;  %v806_v15 = vld [vmem:[#allocation5 + $0x320] sm:$0xff] }
 0x206   :  { %3045 = vmatpush1.bf16.msra.mxu0 %v15588_v44  ;;  %3084 = vmatpush1.bf16.msra.mxu1 %v15591_v45  ;;  %v722_v44 = vld [vmem:[#allocation5 + $0x80] sm:$0xff] }
 0x207   :  { %3046 = vmatprep.subr.bf16.mxu0 %v15596_v46  ;;  %3085 = vmatprep.subr.bf16.mxu1 %v15599_v47  ;;  %v890_v45 = vld [vmem:[#allocation5 + $0x5c0] sm:$0xff] }
 0x208   :  { %v894_v46 = vld [vmem:[#allocation5 + $0x5e0] sm:$0xff] }
 0x209   :  { %v13889_v47 = vcombine.low %v890_v45, %v894_v46 }
 0x20a   :  { %3047 = vmatpush2.bf16.msra.mxu0 %v15594_v48  ;;  %3086 = vmatpush1.bf16.msra.mxu1 %v15597_v49  ;;  %v13890_v48 = vcombine.high %v890_v45, %v894_v46  ;;  %v13729_v49 = vcombine.low %v730_v38, %v734_v39  ;;  %v13802_v39 = vcombine.high %v802_v59, %v806_v15 }
 0x20b   :  { %3048 = vmatprep.subr.bf16.mxu0 %v15602_v50  ;;  %3087 = vmatprep.subr.bf16.mxu1 %v15605_v51  ;;  %v714_v51 = vld [vmem:[#allocation5 + $0x40] sm:$0xff]  ;;  %v13801_v45 = vcombine.low %v802_v59, %v806_v15 }
 0x20c   :  { %v906_v15 = vld [vmem:[#allocation5 + $0x640] sm:$0xff] }
 0x20e   :  { %3049 = vmatpush2.bf16.msra.mxu0 %v15600_v52  ;;  %3088 = vmatpush2.bf16.msra.mxu1 %v15603_v53  ;;  %v718_v52 = vld [vmem:[#allocation5 + $0x60] sm:$0xff] }
 0x20f   :  { %3050 = vmatprep.subr.bf16.mxu0 %v15608_v54  ;;  %3089 = vmatprep.subr.bf16.mxu1 %v15611_v55  ;;  %v882_v53 = vld [vmem:[#allocation5 + $0x580] sm:$0xff] }
 0x210   :  { %v886_v54 = vld [vmem:[#allocation5 + $0x5a0] sm:$0xff] }
 0x211   :  { %v13881_v55 = vcombine.low %v882_v53, %v886_v54 }
 0x212   :  { %3051 = vmatpush2.bf16.msra.mxu0 %v15606_v56  ;;  %3090 = vmatpush2.bf16.msra.mxu1 %v15609_v62  ;;  %v13882_v56 = vcombine.high %v882_v53, %v886_v54 }
 0x213   :  { %3052 = vmatprep.subr.bf16.mxu0 %v15614_v3  ;;  %3091 = vmatprep.subr.bf16.mxu1 %v15617_v7  ;;  %v13714_v3 = vcombine.high %v714_v51, %v718_v52  ;;  %v706_v7 = vld [vmem:[#allocation5] sm:$0xff] }
 0x216   :  { %3053 = vmatpush2.bf16.msra.mxu0 %v15612_v0  ;;  %3092 = vmatpush2.bf16.msra.mxu1 %v15615_v1  ;;  %v710_v0 = vld [vmem:[#allocation5 + $0x20] sm:$0xff] }
 0x217   :  { %3054 = vmatprep.subr.bf16.mxu0 %v15620_v58  ;;  %3093 = vmatprep.subr.bf16.mxu1 %v15623_v2  ;;  %v874_v1 = vld [vmem:[#allocation5 + $0x540] sm:$0xff] }
 0x218   :  { %v878_v58 = vld [vmem:[#allocation5 + $0x560] sm:$0xff] }
 0x219   :  { %v13873_v2 = vcombine.low %v874_v1, %v878_v58 }
 0x21a   :  { %3055 = vmatpush2.bf16.msra.mxu0 %v15618_v12  ;;  %3094 = vmatpush2.bf16.msra.mxu1 %v15621_v4  ;;  %v13874_v12 = vcombine.high %v874_v1, %v878_v58  ;;  %v13713_v4 = vcombine.low %v714_v51, %v718_v52 }
 0x21b   :  { %3056 = vmatprep.subr.bf16.mxu0 %v15626_v5  ;;  %3095 = vmatprep.subr.bf16.mxu1 %v15629_v11  ;;  %v13706_v5 = vcombine.high %v706_v7, %v710_v0  ;;  %v826_v11 = vld [vmem:[#allocation5 + $0x3c0] sm:$0xff] }
 0x21e   :  { %3057 = vmatpush2.bf16.msra.mxu0 %v15624_v61  ;;  %3096 = vmatpush2.bf16.msra.mxu1 %v15627_v6  ;;  %v830_v61 = vld [vmem:[#allocation5 + $0x3e0] sm:$0xff] }
 0x21f   :  { %3058 = vmatprep.subr.bf16.mxu0 %v15632_v8  ;;  %3097 = vmatprep.subr.bf16.mxu1 %v15635_v9  ;;  %v866_v6 = vld [vmem:[#allocation5 + $0x500] sm:$0xff] }
 0x220   :  { %v870_v8 = vld [vmem:[#allocation5 + $0x520] sm:$0xff] }
 0x221   :  { %v13865_v9 = vcombine.low %v866_v6, %v870_v8 }
 0x222   :  { %3059 = vmatpush2.bf16.msra.mxu0 %v15630_v19  ;;  %3098 = vmatpush2.bf16.msra.mxu1 %v15633_v20  ;;  %v13866_v19 = vcombine.high %v866_v6, %v870_v8  ;;  %v13705_v20 = vcombine.low %v706_v7, %v710_v0 }
 0x223   :  { %3060 = vmatprep.subr.bf16.mxu0 %v15638_v21  ;;  %3099 = vmatprep.subr.bf16.mxu1 %v15641_v22  ;;  %v13826_v21 = vcombine.high %v826_v11, %v830_v61  ;;  %v818_v22 = vld [vmem:[#allocation5 + $0x380] sm:$0xff] }
 0x224   :  { %v13818_v26 = vcombine.high %v818_v22, %v822_v60 }
 0x226   :  { %3061 = vmatpush2.bf16.msra.mxu0 %v15636_v24  ;;  %3100 = vmatpush2.bf16.msra.mxu1 %v15639_v25  ;;  %v862_v24 = vld [vmem:[#allocation5 + $0x4e0] sm:$0xff] }
 0x227   :  { %3101 = vmatprep.subr.bf16.mxu1 %v15644_v13  ;;  %4400 = vmatprep.subr.bf16.mxu0 %v13762_v16  ;;  %v13857_v25 = vcombine.low %v858_v10, %v862_v24  ;;  %v13858_v13 = vcombine.high %v858_v10, %v862_v24  ;;  %v13825_v16 = vcombine.low %v826_v11, %v830_v61 }
 0x229   :  { %3063 = vmatmul.mubr.bf16.vlgmr.msra.gmra.mxu0 %v16333_v14  ;;  %v16348_v31 = vpop.f32.mrf.mxu0 }
 0x22a   :  { %3102 = vmatpush2.bf16.msra.mxu1 %v15642_v57  ;;  %4401 = vmatpush1.bf16.msra.mxu0 %v13761_v28  ;;  %v814_v57 = vld [vmem:[#allocation5 + $0x360] sm:$0xff] }
 0x22b   :  { %v16350_v17 = vpop.f32.mrf.mxu0  ;;  %4402 = vmatprep.subr.bf16.mxu0 %v13754_v29  ;;  %4441 = vmatprep.subr.bf16.mxu1 %v13890_v48  ;;  %v850_v28 = vld [vmem:[#allocation5 + $0x480] sm:$0xff]  ;;  %v13809_v38 = vcombine.low %v810_v27, %v814_v57 }
 0x22c   :  { %v854_v29 = vld [vmem:[#allocation5 + $0x4a0] sm:$0xff] }
 0x22d   :  { %3104 = vmatmul.mubr.bf16.vlgmr.msra.gmra.mxu1 %v16339_v23  ;;  %v2822_v34 = vpop.f32.mrf.mxu0  ;;  %v16353_v35 = vpop.f32.mrf.mxu1  ;;  %v726_v23 = vld [vmem:[#allocation5 + $0xa0] sm:$0xff]  ;;  %v13849_v30 = vcombine.low %v850_v28, %v854_v29  ;;  %v13850_v63 = vcombine.high %v850_v28, %v854_v29 }
 0x22e   :  { %4403 = vmatpush1.bf16.msra.mxu0 %v13753_v32  ;;  %v13722_v50 = vcombine.high %v722_v44, %v726_v23  ;;  %4442 = vmatpush1.bf16.msra.mxu1 %v13889_v47  ;;  %v13721_v62 = vcombine.low %v722_v44, %v726_v23  ;;  %v13817_v32 = vcombine.low %v818_v22, %v822_v60  ;;  %v842_v34 = vld [vmem:[#allocation5 + $0x440] sm:$0xff] }
 0x22f   :  { %v2823_v36 = vpop.f32.mrf.mxu0  ;;  %v16355_v14 = vpop.f32.mrf.mxu1  ;;  %4404 = vmatprep.subr.bf16.mxu0 %v13746_v33  ;;  %4443 = vmatprep.subr.bf16.mxu1 %v13882_v56  ;;  %v13810_v33 = vcombine.high %v810_v27, %v814_v57  ;;  %v786_v47 = vld [vmem:[#allocation5 + $0x280] sm:$0xff] }
 0x230   :  { %v790_v48 = vld [vmem:[#allocation5 + $0x2a0] sm:$0xff] }
 0x231   :  { %v2863_v40 = vpop.f32.mrf.mxu1  ;;  %v13786_v54 = vcombine.high %v786_v47, %v790_v48  ;;  %v782_v56 = vld [vmem:[#allocation5 + $0x260] sm:$0xff]  ;;  %v13785_v1 = vcombine.low %v786_v47, %v790_v48 }
 0x232   :  { %4405 = vmatpush1.bf16.msra.mxu0 %v13745_v18  ;;  %4444 = vmatpush1.bf16.msra.mxu1 %v13881_v55  ;;  %v846_v18 = vld [vmem:[#allocation5 + $0x460] sm:$0xff] }
 0x233   :  { %v2864_v42 = vpop.f32.mrf.mxu1  ;;  %4406 = vmatprep.subr.bf16.mxu0 %v13738_v37  ;;  %4445 = vmatprep.subr.bf16.mxu1 %v13874_v12  ;;  %v13841_v36 = vcombine.low %v842_v34, %v846_v18  ;;  %v13842_v37 = vcombine.high %v842_v34, %v846_v18  ;;  %v794_v40 = vld [vmem:[#allocation5 + $0x2c0] sm:$0xff] }
 0x234   :  { %v834_v42 = vld [vmem:[#allocation5 + $0x400] sm:$0xff] }
 0x235   :  { %v778_v55 = vld [vmem:[#allocation5 + $0x240] sm:$0xff] }
 0x236   :  { %4407 = vmatpush1.bf16.msra.mxu0 %v13737_v41  ;;  %4446 = vmatpush1.bf16.msra.mxu1 %v13873_v2  ;;  %v798_v41 = vld [vmem:[#allocation5 + $0x2e0] sm:$0xff]  ;;  %v13778_v58 = vcombine.high %v778_v55, %v782_v56  ;;  %v13777_v6 = vcombine.low %v778_v55, %v782_v56  ;;  %v747_v56 = vld [vmem:[#allocation5 + $0x148] sm:$0xff] }
 0x237   :  { %4408 = vmatprep.subr.bf16.mxu0 %v13730_v43  ;;  %4447 = vmatprep.subr.bf16.mxu1 %v13866_v19  ;;  %v838_v43 = vld [vmem:[#allocation5 + $0x420] sm:$0xff]  ;;  %v13794_v46 = vcombine.high %v794_v40, %v798_v41  ;;  %v13793_v53 = vcombine.low %v794_v40, %v798_v41  ;;  %v16359_v19 = vld [vmem:[#allocation5 + $0x1e8] sm:$0xff] }
 0x238   :  { %v13833_v44 = vcombine.low %v834_v42, %v838_v43  ;;  %v13834_v23 = vcombine.high %v834_v42, %v838_v43  ;;  %v770_v2 = vld [vmem:[#allocation5 + $0x200] sm:$0xff] }
 0x239   :  { %v774_v12 = vld [vmem:[#allocation5 + $0x220] sm:$0xff] }
 0x23a   :  { %4409 = vmatpush1.bf16.msra.mxu0 %v13729_v49  ;;  %4448 = vmatpush1.bf16.msra.mxu1 %v13865_v9  ;;  %v954_v49 = vld [vmem:[#allocation5 + $0x7c0] sm:$0xff]  ;;  %v13770_v8 = vcombine.high %v770_v2, %v774_v12  ;;  %v16357_v9 = vld [vmem:[#allocation5 + $0x1c8] sm:$0xff]  ;;  %v13769_v10 = vcombine.low %v770_v2, %v774_v12 }
 0x23b   :  { %4410 = vmatprep.subr.bf16.mxu0 %v13722_v50  ;;  %4449 = vmatprep.subr.bf16.mxu1 %v13858_v13  ;;  %v958_v50 = vld [vmem:[#allocation5 + $0x7e0] sm:$0xff]  ;;  %v13764_v24 = vcombine.high %v16357_v9, %v16359_v19 }
 0x23c   :  { %v13953_v51 = vcombine.low %v954_v49, %v958_v50  ;;  %v13954_v52 = vcombine.high %v954_v49, %v958_v50  ;;  %v926_v13 = vld [vmem:[#allocation5 + $0x6e0] sm:$0xff]  ;;  %v13763_v50 = vcombine.low %v16357_v9, %v16359_v19 }
 0x23d   :  { %v914_v27 = vld [vmem:[#allocation5 + $0x680] sm:$0xff] }
 0x23e   :  { %4411 = vmatpush1.bf16.msra.mxu0 %v13721_v62  ;;  %4450 = vmatpush1.bf16.msra.mxu1 %v13857_v25  ;;  %v946_v62 = vld [vmem:[#allocation5 + $0x780] sm:$0xff] }
 0x23f   :  { %4412 = vmatprep.subr.bf16.mxu0 %v13714_v3  ;;  %4451 = vmatprep.subr.bf16.mxu1 %v13850_v63  ;;  %v950_v3 = vld [vmem:[#allocation5 + $0x7a0] sm:$0xff] }
 0x240   :  { %v13945_v7 = vcombine.low %v946_v62, %v950_v3  ;;  %v13946_v0 = vcombine.high %v946_v62, %v950_v3  ;;  %v922_v25 = vld [vmem:[#allocation5 + $0x6c0] sm:$0xff]  ;;  %v751_v62 = vld [vmem:[#allocation5 + $0x168] sm:$0xff] }
 0x241   :  { %v918_v57 = vld [vmem:[#allocation5 + $0x6a0] sm:$0xff]  ;;  %v13747_v2 = vcombine.low %v747_v56, %v751_v62 }
 0x242   :  { %4413 = vmatpush1.bf16.msra.mxu0 %v13713_v4  ;;  %4452 = vmatpush1.bf16.msra.mxu1 %v13849_v30  ;;  %v938_v4 = vld [vmem:[#allocation5 + $0x740] sm:$0xff]  ;;  %v13914_v29 = vcombine.high %v914_v27, %v918_v57  ;;  %v2860_v30 = vadd.f32 %v16353_v35, %v16348_v31  ;;  %v13913_v63 = vcombine.low %v914_v27, %v918_v57 }
 0x243   :  { %4414 = vmatprep.subr.bf16.mxu0 %v13706_v5  ;;  %4453 = vmatprep.subr.bf16.mxu1 %v13842_v37  ;;  %v942_v5 = vld [vmem:[#allocation5 + $0x760] sm:$0xff] }
 0x244   :  { %v13937_v11 = vcombine.low %v938_v4, %v942_v5  ;;  %v13938_v61 = vcombine.high %v938_v4, %v942_v5  ;;  %v910_v34 = vld [vmem:[#allocation5 + $0x660] sm:$0xff]  ;;  %v731_v4 = vld [vmem:[#allocation5 + $0xc8] sm:$0xff] }
 0x245   :  { %v13906_v37 = vcombine.high %v906_v15, %v910_v34  ;;  %v13905_v40 = vcombine.low %v906_v15, %v910_v34  ;;  %v898_v35 = vld [vmem:[#allocation5 + $0x600] sm:$0xff]  ;;  %v735_v5 = vld [vmem:[#allocation5 + $0xe8] sm:$0xff] }
 0x246   :  { %4415 = vmatpush1.bf16.msra.mxu0 %v13705_v20  ;;  %4454 = vmatpush1.bf16.msra.mxu1 %v13841_v36  ;;  %v930_v20 = vld [vmem:[#allocation5 + $0x700] sm:$0xff]  ;;  %v13731_v9 = vcombine.low %v731_v4, %v735_v5  ;;  %v803_v34 = vld [vmem:[#allocation5 + $0x308] sm:$0xff] }
 0x247   :  { %4416 = vmatprep.subr.bf16.mxu0 %v13826_v21  ;;  %4455 = vmatprep.subr.bf16.mxu1 %v13834_v23  ;;  %v934_v21 = vld [vmem:[#allocation5 + $0x720] sm:$0xff] }
 0x248   :  { %v13929_v22 = vcombine.low %v930_v20, %v934_v21  ;;  %v13930_v60 = vcombine.high %v930_v20, %v934_v21  ;;  %v902_v43 = vld [vmem:[#allocation5 + $0x620] sm:$0xff]  ;;  %v715_v20 = vld [vmem:[#allocation5 + $0x48] sm:$0xff] }
 0x249   :  { %v13897_v47 = vcombine.low %v898_v35, %v902_v43  ;;  %v719_v21 = vld [vmem:[#allocation5 + $0x68] sm:$0xff] }
 0x24a   :  { %4417 = vmatpush2.bf16.msra.mxu0 %v13825_v16  ;;  %4456 = vmatpush1.bf16.msra.mxu1 %v13833_v44  ;;  %v13921_v16 = vcombine.low %v922_v25, %v926_v13 }
 0x24b   :  { %4418 = vmatprep.subr.bf16.mxu0 %v13818_v26  ;;  %4457 = vmatprep.subr.bf16.mxu1 %v13954_v52  ;;  %v13922_v26 = vcombine.high %v922_v25, %v926_v13  ;;  %v16373_v52 = vld [vmem:[#allocation5 + $0x5e8] sm:$0xff]  ;;  %v13715_v25 = vcombine.low %v715_v20, %v719_v21 }
 0x24e   :  { %4419 = vmatpush2.bf16.msra.mxu0 %v13817_v32  ;;  %4458 = vmatpush2.bf16.msra.mxu1 %v13953_v51  ;;  %v16371_v51 = vld [vmem:[#allocation5 + $0x5c8] sm:$0xff] }
 0x24f   :  { %4420 = vmatprep.subr.bf16.mxu0 %v13810_v33  ;;  %4459 = vmatprep.subr.bf16.mxu1 %v13946_v0  ;;  %v2862_v33 = vadd.f32 %v16355_v14, %v16350_v17  ;;  %v13898_v17 = vcombine.high %v898_v35, %v902_v43  ;;  %v13892_v55 = vcombine.high %v16371_v51, %v16373_v52 }
 0x250   :  { %v13891_v3 = vcombine.low %v16371_v51, %v16373_v52  ;;  %v13748_v0 = vcombine.high %v747_v56, %v751_v62  ;;  %v764_v62 = vld [vmem:[#allocation5 + $0x1d0] sm:$0xff] }
 0x252   :  { %4421 = vmatpush2.bf16.msra.mxu0 %v13809_v38  ;;  %4460 = vmatpush2.bf16.msra.mxu1 %v13945_v7 }
 0x253   :  { %4422 = vmatprep.subr.bf16.mxu0 %v13802_v39  ;;  %4461 = vmatprep.subr.bf16.mxu1 %v13938_v61  ;;  %v13732_v61 = vcombine.high %v731_v4, %v735_v5  ;;  %v756_v4 = vld [vmem:[#allocation5 + $0x190] sm:$0xff] }
 0x254   :  { %v760_v5 = vld [vmem:[#allocation5 + $0x1b0] sm:$0xff] }
 0x256   :  { %4423 = vmatpush2.bf16.msra.mxu0 %v13801_v45  ;;  %4462 = vmatpush2.bf16.msra.mxu1 %v13937_v11  ;;  %v755_v45 = vld [vmem:[#allocation5 + $0x188] sm:$0xff] }
 0x257   :  { %4424 = vmatprep.subr.bf16.mxu0 %v13794_v46  ;;  %4463 = vmatprep.subr.bf16.mxu1 %v13930_v60  ;;  %v759_v46 = vld [vmem:[#allocation5 + $0x1a8] sm:$0xff]  ;;  %v13716_v60 = vcombine.high %v715_v20, %v719_v21  ;;  %v740_v21 = vld [vmem:[#allocation5 + $0x110] sm:$0xff] }
 0x258   :  { %v13755_v7 = vcombine.low %v755_v45, %v759_v46 }
 0x25a   :  { %4425 = vmatpush2.bf16.msra.mxu0 %v13793_v53  ;;  %4464 = vmatpush2.bf16.msra.mxu1 %v13929_v22 }
 0x25b   :  { %4426 = vmatprep.subr.bf16.mxu0 %v13786_v54  ;;  %4465 = vmatprep.subr.bf16.mxu1 %v13922_v26  ;;  %v13756_v54 = vcombine.high %v755_v45, %v759_v46  ;;  %v831_v26 = vld [vmem:[#allocation5 + $0x3e8] sm:$0xff] }
 0x25c   :  { %v771_v46 = vld [vmem:[#allocation5 + $0x208] sm:$0xff] }
 0x25e   :  { %4427 = vmatpush2.bf16.msra.mxu0 %v13785_v1  ;;  %4466 = vmatpush2.bf16.msra.mxu1 %v13921_v16  ;;  %v739_v1 = vld [vmem:[#allocation5 + $0x108] sm:$0xff] }
 0x25f   :  { %4428 = vmatprep.subr.bf16.mxu0 %v13778_v58  ;;  %4467 = vmatprep.subr.bf16.mxu1 %v13914_v29  ;;  %v743_v58 = vld [vmem:[#allocation5 + $0x128] sm:$0xff] }
 0x260   :  { %v13740_v12 = vcombine.high %v739_v1, %v743_v58  ;;  %v13739_v11 = vcombine.low %v739_v1, %v743_v58  ;;  %v827_v16 = vld [vmem:[#allocation5 + $0x3c8] sm:$0xff] }
 0x261   :  { %v13828_v57 = vcombine.high %v827_v16, %v831_v26  ;;  %v823_v29 = vld [vmem:[#allocation5 + $0x3a8] sm:$0xff] }
 0x262   :  { %4429 = vmatpush2.bf16.msra.mxu0 %v13777_v6  ;;  %4468 = vmatpush2.bf16.msra.mxu1 %v13913_v63  ;;  %v723_v6 = vld [vmem:[#allocation5 + $0x88] sm:$0xff] }
 0x263   :  { %4430 = vmatprep.subr.bf16.mxu0 %v13770_v8  ;;  %4469 = vmatprep.subr.bf16.mxu1 %v13906_v37  ;;  %v727_v8 = vld [vmem:[#allocation5 + $0xa8] sm:$0xff] }
 0x264   :  { %v13724_v19 = vcombine.high %v723_v6, %v727_v8  ;;  %v13723_v22 = vcombine.low %v723_v6, %v727_v8  ;;  %v13758_v6 = vcombine.high %v756_v4, %v760_v5  ;;  %v748_v8 = vld [vmem:[#allocation5 + $0x150] sm:$0xff] }
 0x266   :  { %4431 = vmatpush2.bf16.msra.mxu0 %v13769_v10  ;;  %4470 = vmatpush2.bf16.msra.mxu1 %v13905_v40  ;;  %v707_v10 = vld [vmem:[#allocation5 + $0x8] sm:$0xff] }
 0x267   :  { %4482 = vmatprep.subr.bf16.mxu0 %v13764_v24  ;;  %4471 = vmatprep.subr.bf16.mxu1 %v13898_v17  ;;  %v711_v24 = vld [vmem:[#allocation5 + $0x28] sm:$0xff] }
 0x268   :  { %v13708_v13 = vcombine.high %v707_v10, %v711_v24  ;;  %v13707_v27 = vcombine.low %v707_v10, %v711_v24  ;;  %v732_v24 = vld [vmem:[#allocation5 + $0xd0] sm:$0xff] }
 0x269   :  { %v2900_v28 = vpop.f32.mrf.mxu0 }
 0x26a   :  { %v2901_v59 = vadd.f32 %v2900_v28, %v2860_v30  ;;  %4472 = vmatpush2.bf16.msra.mxu1 %v13897_v47  ;;  %v819_v28 = vld [vmem:[#allocation5 + $0x388] sm:$0xff]  ;;  %v13827_v30 = vcombine.low %v827_v16, %v831_v26  ;;  %v724_v26 = vld [vmem:[#allocation5 + $0x90] sm:$0xff] }
 0x26b   :  { %v2902_v32 = vpop.f32.mrf.mxu0  ;;  %4523 = vmatprep.subr.bf16.mxu1 %v13892_v55  ;;  %v13820_v63 = vcombine.high %v819_v28, %v823_v29  ;;  %v775_v47 = vld [vmem:[#allocation5 + $0x228] sm:$0xff] }
 0x26c   :  { %v2903_v38 = vadd.f32 %v2902_v32, %v2862_v33  ;;  %v811_v32 = vld [vmem:[#allocation5 + $0x348] sm:$0xff]  ;;  %v13772_v56 = vcombine.high %v771_v46, %v775_v47  ;;  %v13771_v58 = vcombine.low %v771_v46, %v775_v47  ;;  %v796_v47 = vld [vmem:[#allocation5 + $0x2d0] sm:$0xff] }
 0x26d   :  { %v2904_v18 = vpop.f32.mrf.mxu0  ;;  %v2941_v36 = vpop.f32.mrf.mxu1  ;;  %v815_v33 = vld [vmem:[#allocation5 + $0x368] sm:$0xff] }
 0x26e   :  { %v2942_v39 = vadd.f32 %v2941_v36, %v2901_v59  ;;  %v13819_v59 = vcombine.low %v819_v28, %v823_v29  ;;  %v13812_v15 = vcombine.high %v811_v32, %v815_v33  ;;  %v807_v18 = vld [vmem:[#allocation5 + $0x328] sm:$0xff]  ;;  %v13811_v36 = vcombine.low %v811_v32, %v815_v33  ;;  %v716_v29 = vld [vmem:[#allocation5 + $0x50] sm:$0xff] }
 0x26f   :  { %v2905_v41 = vpop.f32.mrf.mxu0  ;;  %v2943_v42 = vpop.f32.mrf.mxu1  ;;  %v13804_v37 = vcombine.high %v803_v34, %v807_v18  ;;  %v13803_v40 = vcombine.low %v803_v34, %v807_v18  ;;  %v708_v33 = vld [vmem:[#allocation5 + $0x10] sm:$0xff] }
 0x270   :  { %v2944_v31 = vadd.f32 %v2943_v42, %v2903_v38  ;;  %v3112_v44 = vmax.f32 %v2942_v39, 0.0  ;;  %v795_v38 = vld [vmem:[#allocation5 + $0x2c8] sm:$0xff]  ;;  %v828_v18 = vld [vmem:[#allocation5 + $0x3d0] sm:$0xff] }
 0x271   :  { %v2945_v23 = vpop.f32.mrf.mxu1  ;;  %v799_v39 = vld [vmem:[#allocation5 + $0x2e8] sm:$0xff] }
 0x272   :  { %v3113_v14 = vmax.f32 %v2944_v31, 0.0  ;;  %v16375_v53 = vpack.c.bf16 %v3112_v44, %v3112_v44  ;;  %v13796_v41 = vcombine.high %v795_v38, %v799_v39  ;;  %v787_v42 = vld [vmem:[#allocation5 + $0x288] sm:$0xff]  ;;  %v13795_v35 = vcombine.low %v795_v38, %v799_v39  ;;  %v820_v39 = vld [vmem:[#allocation5 + $0x390] sm:$0xff] }
 0x273   :  { %v2946_v48 = vpop.f32.mrf.mxu1  ;;  %v791_v31 = vld [vmem:[#allocation5 + $0x2a8] sm:$0xff] }
 0x274   :  { %v16367_v49 = vpack.c.bf16 %v3113_v14, %v3113_v14  ;;  %v13788_v43 = vcombine.high %v787_v42, %v791_v31  ;;  %v779_v44 = vld [vmem:[#allocation5 + $0x248] sm:$0xff]  ;;  %v13787_v17 = vcombine.low %v787_v42, %v791_v31  ;;  %v812_v31 = vld [vmem:[#allocation5 + $0x350] sm:$0xff] }
 0x275   :  { %v783_v23 = vld [vmem:[#allocation5 + $0x268] sm:$0xff] }
 0x276   :  { %4432 = vmatprep.mubr.bf16.mxu0 %v16367_v49  ;;  %v13780_v45 = vcombine.high %v779_v44, %v783_v23 }
 0x277   :  { %4433 = vmatmul.mubr.bf16.vlgmr.msra.gmra.mxu0 %v16375_v53 }
 0x278   :  { %4483 = vmatpush1.bf16.msra.mxu0 %v13763_v50  ;;  %4514 = vmatprep.mubr.bf16.mxu0 %v16367_v49  ;;  %v13779_v50 = vcombine.low %v779_v44, %v783_v23  ;;  %v804_v23 = vld [vmem:[#allocation5 + $0x310] sm:$0xff] }
 0x279   :  { %4484 = vmatprep.subr.bf16.mxu0 %v13756_v54 }
 0x27c   :  { %4485 = vmatpush1.bf16.msra.mxu0 %v13755_v7  ;;  %v768_v7 = vld [vmem:[#allocation5 + $0x1f0] sm:$0xff] }
 0x27d   :  { %4486 = vmatprep.subr.bf16.mxu0 %v13748_v0 }
 0x280   :  { %4487 = vmatpush1.bf16.msra.mxu0 %v13747_v2 }
 0x281   :  { %4488 = vmatprep.subr.bf16.mxu0 %v13740_v12  ;;  %v13766_v12 = vcombine.high %v764_v62, %v768_v7 }
 0x284   :  { %4489 = vmatpush1.bf16.msra.mxu0 %v13739_v11 }
 0x285   :  { %4490 = vmatprep.subr.bf16.mxu0 %v13732_v61  ;;  %v13765_v61 = vcombine.low %v764_v62, %v768_v7  ;;  %v788_v62 = vld [vmem:[#allocation5 + $0x290] sm:$0xff] }
 0x286   :  { %v792_v7 = vld [vmem:[#allocation5 + $0x2b0] sm:$0xff] }
 0x288   :  { %4491 = vmatpush1.bf16.msra.mxu0 %v13731_v9  ;;  %v752_v9 = vld [vmem:[#allocation5 + $0x170] sm:$0xff] }
 0x289   :  { %4492 = vmatprep.subr.bf16.mxu0 %v13724_v19  ;;  %v13757_v19 = vcombine.low %v756_v4, %v760_v5  ;;  %v13750_v20 = vcombine.high %v748_v8, %v752_v9  ;;  %v13789_v4 = vcombine.low %v788_v62, %v792_v7 }
 0x28c   :  { %4493 = vmatpush1.bf16.msra.mxu0 %v13723_v22  ;;  %v744_v22 = vld [vmem:[#allocation5 + $0x130] sm:$0xff] }
 0x28d   :  { %4494 = vmatprep.subr.bf16.mxu0 %v13716_v60  ;;  %v13749_v60 = vcombine.low %v748_v8, %v752_v9  ;;  %v13742_v10 = vcombine.high %v740_v21, %v744_v22  ;;  %v776_v8 = vld [vmem:[#allocation5 + $0x230] sm:$0xff] }
 0x290   :  { %4495 = vmatpush1.bf16.msra.mxu0 %v13715_v25  ;;  %v736_v25 = vld [vmem:[#allocation5 + $0xf0] sm:$0xff] }
 0x291   :  { %4496 = vmatprep.subr.bf16.mxu0 %v13708_v13  ;;  %v13741_v13 = vcombine.low %v740_v21, %v744_v22  ;;  %v13734_v16 = vcombine.high %v732_v24, %v736_v25 }
 0x294   :  { %4497 = vmatpush1.bf16.msra.mxu0 %v13707_v27  ;;  %v728_v27 = vld [vmem:[#allocation5 + $0xb0] sm:$0xff] }
 0x295   :  { %4498 = vmatprep.subr.bf16.mxu0 %v13828_v57  ;;  %v13733_v57 = vcombine.low %v732_v24, %v736_v25  ;;  %v13726_v28 = vcombine.high %v724_v26, %v728_v27 }
 0x298   :  { %4499 = vmatpush2.bf16.msra.mxu0 %v13827_v30  ;;  %v720_v30 = vld [vmem:[#allocation5 + $0x70] sm:$0xff] }
 0x299   :  { %4500 = vmatprep.subr.bf16.mxu0 %v13820_v63  ;;  %v13725_v63 = vcombine.low %v724_v26, %v728_v27  ;;  %v13718_v32 = vcombine.high %v716_v29, %v720_v30 }
 0x29c   :  { %4501 = vmatpush2.bf16.msra.mxu0 %v13819_v59  ;;  %v712_v59 = vld [vmem:[#allocation5 + $0x30] sm:$0xff] }
 0x29d   :  { %4502 = vmatprep.subr.bf16.mxu0 %v13812_v15  ;;  %v13717_v15 = vcombine.low %v716_v29, %v720_v30  ;;  %v13710_v34 = vcombine.high %v708_v33, %v712_v59  ;;  %v883_v29 = vld [vmem:[#allocation5 + $0x588] sm:$0xff] }
 0x2a0   :  { %4503 = vmatpush2.bf16.msra.mxu0 %v13811_v36  ;;  %v832_v36 = vld [vmem:[#allocation5 + $0x3f0] sm:$0xff] }
 0x2a1   :  { %4504 = vmatprep.subr.bf16.mxu0 %v13804_v37  ;;  %v13709_v37 = vcombine.low %v708_v33, %v712_v59  ;;  %v13830_v38 = vcombine.high %v828_v18, %v832_v36  ;;  %v761_v33 = vld [vmem:[#allocation5 + $0x1b8] sm:$0xff] }
 0x2a4   :  { %4505 = vmatpush2.bf16.msra.mxu0 %v13803_v40  ;;  %v824_v40 = vld [vmem:[#allocation5 + $0x3b0] sm:$0xff] }
 0x2a5   :  { %4506 = vmatprep.subr.bf16.mxu0 %v13796_v41  ;;  %v13829_v41 = vcombine.low %v828_v18, %v832_v36  ;;  %v13822_v42 = vcombine.high %v820_v39, %v824_v40  ;;  %v875_v18 = vld [vmem:[#allocation5 + $0x548] sm:$0xff] }
 0x2a8   :  { %4507 = vmatpush2.bf16.msra.mxu0 %v13795_v35  ;;  %v816_v35 = vld [vmem:[#allocation5 + $0x370] sm:$0xff] }
 0x2a9   :  { %v16384_v14 = vpop.f32.mrf.mxu0  ;;  %4508 = vmatprep.subr.bf16.mxu0 %v13788_v43  ;;  %v13821_v43 = vcombine.low %v820_v39, %v824_v40  ;;  %v13814_v44 = vcombine.high %v812_v31, %v816_v35  ;;  %v749_v39 = vld [vmem:[#allocation5 + $0x158] sm:$0xff] }
 0x2aa   :  { %v753_v40 = vld [vmem:[#allocation5 + $0x178] sm:$0xff] }
 0x2ab   :  { %v16386_v48 = vpop.f32.mrf.mxu0  ;;  %v13751_v51 = vcombine.low %v749_v39, %v753_v40 }
 0x2ac   :  { %4509 = vmatpush2.bf16.msra.mxu0 %v13787_v17  ;;  %v808_v17 = vld [vmem:[#allocation5 + $0x330] sm:$0xff] }
 0x2ad   :  { %v2986_v54 = vpop.f32.mrf.mxu0  ;;  %v16388_v55 = vpop.f32.mrf.mxu1  ;;  %4510 = vmatprep.subr.bf16.mxu0 %v13780_v45  ;;  %v13813_v45 = vcombine.low %v812_v31, %v816_v35  ;;  %v13806_v46 = vcombine.high %v804_v23, %v808_v17  ;;  %v13752_v35 = vcombine.high %v749_v39, %v753_v40  ;;  %v939_v40 = vld [vmem:[#allocation5 + $0x748] sm:$0xff] }
 0x2ae   :  { %v13805_v54 = vcombine.low %v804_v23, %v808_v17  ;;  %v741_v23 = vld [vmem:[#allocation5 + $0x118] sm:$0xff] }
 0x2af   :  { %v2987_v0 = vpop.f32.mrf.mxu0  ;;  %v16390_v1 = vpop.f32.mrf.mxu1  ;;  %v745_v17 = vld [vmem:[#allocation5 + $0x138] sm:$0xff] }
 0x2b0   :  { %4511 = vmatpush2.bf16.msra.mxu0 %v13779_v50  ;;  %v800_v50 = vld [vmem:[#allocation5 + $0x2f0] sm:$0xff] }
 0x2b1   :  { %v3027_v2 = vpop.f32.mrf.mxu1  ;;  %4512 = vmatprep.subr.bf16.mxu0 %v13772_v56  ;;  %v13798_v56 = vcombine.high %v796_v47, %v800_v50  ;;  %v13797_v0 = vcombine.low %v796_v47, %v800_v50  ;;  %v733_v47 = vld [vmem:[#allocation5 + $0xd8] sm:$0xff] }
 0x2b2   :  { %v780_v2 = vld [vmem:[#allocation5 + $0x250] sm:$0xff]  ;;  %v737_v50 = vld [vmem:[#allocation5 + $0xf8] sm:$0xff] }
 0x2b3   :  { %v3028_v11 = vpop.f32.mrf.mxu1 }
 0x2b4   :  { %4513 = vmatpush2.bf16.msra.mxu0 %v13771_v58  ;;  %v13790_v58 = vcombine.high %v788_v62, %v792_v7  ;;  %v13736_v7 = vcombine.high %v733_v47, %v737_v50 }
 0x2b5   :  { %4564 = vmatprep.subr.bf16.mxu0 %v13766_v12  ;;  %v784_v12 = vld [vmem:[#allocation5 + $0x270] sm:$0xff] }
 0x2b6   :  { %v13782_v11 = vcombine.high %v780_v2, %v784_v12  ;;  %v13781_v21 = vcombine.low %v780_v2, %v784_v12  ;;  %v725_v2 = vld [vmem:[#allocation5 + $0x98] sm:$0xff] }
 0x2b7   :  { %4515 = vmatmul.mubr.bf16.vlgmr.msra.gmra.mxu0 %v16375_v53  ;;  %v729_v12 = vld [vmem:[#allocation5 + $0xb8] sm:$0xff] }
 0x2b8   :  { %4565 = vmatpush1.bf16.msra.mxu0 %v13765_v61  ;;  %4596 = vmatprep.mubr.bf16.mxu0 %v16367_v49  ;;  %v3024_v61 = vadd.f32 %v16388_v55, %v16384_v14 }
 0x2b9   :  { %4566 = vmatprep.subr.bf16.mxu0 %v13758_v6  ;;  %v772_v6 = vld [vmem:[#allocation5 + $0x210] sm:$0xff] }
 0x2ba   :  { %v13773_v55 = vcombine.low %v772_v6, %v776_v8 }
 0x2bc   :  { %4567 = vmatpush1.bf16.msra.mxu0 %v13757_v19  ;;  %v3026_v19 = vadd.f32 %v16390_v1, %v16386_v48 }
 0x2bd   :  { %4568 = vmatprep.subr.bf16.mxu0 %v13750_v20 }
 0x2c0   :  { %4569 = vmatpush1.bf16.msra.mxu0 %v13749_v60 }
 0x2c1   :  { %4570 = vmatprep.subr.bf16.mxu0 %v13742_v10  ;;  %v13774_v10 = vcombine.high %v772_v6, %v776_v8  ;;  %v843_v6 = vld [vmem:[#allocation5 + $0x448] sm:$0xff] }
 0x2c2   :  { %v847_v8 = vld [vmem:[#allocation5 + $0x468] sm:$0xff] }
 0x2c4   :  { %4571 = vmatpush1.bf16.msra.mxu0 %v13741_v13  ;;  %v765_v13 = vld [vmem:[#allocation5 + $0x1d8] sm:$0xff] }
 0x2c5   :  { %4572 = vmatprep.subr.bf16.mxu0 %v13734_v16  ;;  %v769_v16 = vld [vmem:[#allocation5 + $0x1f8] sm:$0xff] }
 0x2c6   :  { %v13768_v48 = vcombine.high %v765_v13, %v769_v16 }
 0x2c8   :  { %4573 = vmatpush1.bf16.msra.mxu0 %v13733_v57 }
 0x2c9   :  { %4574 = vmatprep.subr.bf16.mxu0 %v13726_v28 }
 0x2cc   :  { %4575 = vmatpush1.bf16.msra.mxu0 %v13725_v63  ;;  %v887_v63 = vld [vmem:[#allocation5 + $0x5a8] sm:$0xff] }
 0x2cd   :  { %4576 = vmatprep.subr.bf16.mxu0 %v13718_v32  ;;  %v757_v32 = vld [vmem:[#allocation5 + $0x198] sm:$0xff]  ;;  %v13884_v36 = vcombine.high %v883_v29, %v887_v63 }
 0x2d0   :  { %4577 = vmatpush1.bf16.msra.mxu0 %v13717_v15  ;;  %v13767_v15 = vcombine.low %v765_v13, %v769_v16  ;;  %v713_v13 = vld [vmem:[#allocation5 + $0x38] sm:$0xff]  ;;  %v13843_v16 = vcombine.low %v843_v6, %v847_v8 }
 0x2d1   :  { %4578 = vmatprep.subr.bf16.mxu0 %v13710_v34 }
 0x2d4   :  { %4579 = vmatpush1.bf16.msra.mxu0 %v13709_v37  ;;  %v13760_v37 = vcombine.high %v757_v32, %v761_v33 }
 0x2d5   :  { %4580 = vmatprep.subr.bf16.mxu0 %v13830_v38  ;;  %v879_v38 = vld [vmem:[#allocation5 + $0x568] sm:$0xff] }
 0x2d6   :  { %v13876_v31 = vcombine.high %v875_v18, %v879_v38 }
 0x2d8   :  { %4581 = vmatpush2.bf16.msra.mxu0 %v13829_v41  ;;  %v13883_v41 = vcombine.low %v883_v29, %v887_v63 }
 0x2d9   :  { %4582 = vmatprep.subr.bf16.mxu0 %v13822_v42  ;;  %v13759_v42 = vcombine.low %v757_v32, %v761_v33  ;;  %v947_v32 = vld [vmem:[#allocation5 + $0x788] sm:$0xff] }
 0x2da   :  { %v951_v33 = vld [vmem:[#allocation5 + $0x7a8] sm:$0xff] }
 0x2dc   :  { %4583 = vmatpush2.bf16.msra.mxu0 %v13821_v43  ;;  %v867_v43 = vld [vmem:[#allocation5 + $0x508] sm:$0xff] }
 0x2dd   :  { %4584 = vmatprep.subr.bf16.mxu0 %v13814_v44  ;;  %v871_v44 = vld [vmem:[#allocation5 + $0x528] sm:$0xff] }
 0x2de   :  { %v13868_v52 = vcombine.high %v867_v43, %v871_v44 }
 0x2e0   :  { %4585 = vmatpush2.bf16.msra.mxu0 %v13813_v45  ;;  %v13875_v45 = vcombine.low %v875_v18, %v879_v38  ;;  %v825_v18 = vld [vmem:[#allocation5 + $0x3b8] sm:$0xff]  ;;  %v13948_v38 = vcombine.high %v947_v32, %v951_v33 }
 0x2e1   :  { %4586 = vmatprep.subr.bf16.mxu0 %v13806_v46  ;;  %v859_v46 = vld [vmem:[#allocation5 + $0x4c8] sm:$0xff] }
 0x2e4   :  { %4587 = vmatpush2.bf16.msra.mxu0 %v13805_v54  ;;  %v13867_v54 = vcombine.low %v867_v43, %v871_v44 }
 0x2e5   :  { %4588 = vmatprep.subr.bf16.mxu0 %v13798_v56  ;;  %v13743_v56 = vcombine.low %v741_v23, %v745_v17 }
 0x2e8   :  { %4589 = vmatpush2.bf16.msra.mxu0 %v13797_v0  ;;  %v851_v0 = vld [vmem:[#allocation5 + $0x488] sm:$0xff] }
 0x2e9   :  { %v3064_v5 = vpop.f32.mrf.mxu0  ;;  %4590 = vmatprep.subr.bf16.mxu0 %v13790_v58  ;;  %v855_v58 = vld [vmem:[#allocation5 + $0x4a8] sm:$0xff] }
 0x2ea   :  { %v3065_v20 = vadd.f32 %v3064_v5, %v3024_v61  ;;  %v13735_v5 = vcombine.low %v733_v47, %v737_v50  ;;  %v13728_v61 = vcombine.high %v725_v2, %v729_v12  ;;  %v923_v50 = vld [vmem:[#allocation5 + $0x6c8] sm:$0xff] }
 0x2eb   :  { %v3066_v9 = vpop.f32.mrf.mxu0 }
 0x2ec   :  { %4591 = vmatpush2.bf16.msra.mxu0 %v13789_v4  ;;  %v3067_v24 = vadd.f32 %v3066_v9, %v3026_v19  ;;  %v717_v9 = vld [vmem:[#allocation5 + $0x58] sm:$0xff] }
 0x2ed   :  { %v3068_v22 = vpop.f32.mrf.mxu0  ;;  %v3105_v60 = vpop.f32.mrf.mxu1  ;;  %4592 = vmatprep.subr.bf16.mxu0 %v13782_v11  ;;  %v13852_v11 = vcombine.high %v851_v0, %v855_v58  ;;  %v721_v19 = vld [vmem:[#allocation5 + $0x78] sm:$0xff] }
 0x2ee   :  { %v3106_v25 = vadd.f32 %v3105_v60, %v3065_v20  ;;  %v13851_v20 = vcombine.low %v851_v0, %v855_v58  ;;  %v13844_v22 = vcombine.high %v843_v6, %v847_v8  ;;  %v13720_v60 = vcombine.high %v717_v9, %v721_v19 }
 0x2ef   :  { %v3069_v26 = vpop.f32.mrf.mxu0  ;;  %v3107_v27 = vpop.f32.mrf.mxu1 }
 0x2f0   :  { %v3108_v14 = vadd.f32 %v3107_v27, %v3067_v24  ;;  %4593 = vmatpush2.bf16.msra.mxu0 %v13781_v21  ;;  %v3114_v57 = vmax.f32 %v3106_v25, 0.0  ;;  %v13727_v21 = vcombine.low %v725_v2, %v729_v12  ;;  %v839_v24 = vld [vmem:[#allocation5 + $0x428] sm:$0xff]  ;;  %v709_v25 = vld [vmem:[#allocation5 + $0x18] sm:$0xff]  ;;  %v13719_v26 = vcombine.low %v717_v9, %v721_v19 }
 0x2f1   :  { %v3109_v28 = vpop.f32.mrf.mxu1  ;;  %4594 = vmatprep.subr.bf16.mxu0 %v13774_v10  ;;  %v835_v10 = vld [vmem:[#allocation5 + $0x408] sm:$0xff]  ;;  %v13711_v29 = vcombine.low %v709_v25, %v713_v13 }
 0x2f2   :  { %v3115_v1 = vmax.f32 %v3108_v14, 0.0  ;;  %v16400_v34 = vpack.c.bf16 %v3114_v57, %v3114_v57  ;;  %v13836_v27 = vcombine.high %v835_v10, %v839_v24  ;;  %v13712_v14 = vcombine.high %v709_v25, %v713_v13  ;;  %v959_v57 = vld [vmem:[#allocation5 + $0x7e8] sm:$0xff]  ;;  %v829_v28 = vld [vmem:[#allocation5 + $0x3d8] sm:$0xff] }
 0x2f3   :  { %v3110_v30 = vpop.f32.mrf.mxu1  ;;  %v915_v12 = vld [vmem:[#allocation5 + $0x688] sm:$0xff] }
 0x2f4   :  { %v16398_v59 = vpack.c.bf16 %v3115_v1, %v3115_v1  ;;  %4595 = vmatpush2.bf16.msra.mxu0 %v13773_v55  ;;  %v955_v55 = vld [vmem:[#allocation5 + $0x7c8] sm:$0xff]  ;;  %v13835_v1 = vcombine.low %v835_v10, %v839_v24 }
 0x2f5   :  { %4646 = vmatprep.subr.bf16.mxu0 %v13768_v48  ;;  %v833_v48 = vld [vmem:[#allocation5 + $0x3f8] sm:$0xff]  ;;  %v13956_v30 = vcombine.high %v955_v55, %v959_v57  ;;  %v907_v19 = vld [vmem:[#allocation5 + $0x648] sm:$0xff] }
 0x2f6   :  { %4473 = vmatprep.mubr.bf16.mxu1 %v16398_v59  ;;  %v13832_v63 = vcombine.high %v829_v28, %v833_v48  ;;  %v899_v13 = vld [vmem:[#allocation5 + $0x608] sm:$0xff] }
 0x2f7   :  { %4597 = vmatmul.mubr.bf16.vlgmr.msra.gmra.mxu0 %v16375_v53  ;;  %4474 = vmatmul.mubr.bf16.vlgmr.msra.gmra.mxu1 %v16400_v34 }
 0x2f8   :  { %4524 = vmatpush1.bf16.msra.mxu1 %v13891_v3  ;;  %4647 = vmatpush1.bf16.msra.mxu0 %v13767_v15  ;;  %v13744_v3 = vcombine.high %v741_v23, %v745_v17  ;;  %v821_v15 = vld [vmem:[#allocation5 + $0x398] sm:$0xff]  ;;  %v931_v17 = vld [vmem:[#allocation5 + $0x708] sm:$0xff] }
 0x2f9   :  { %4678 = vmatprep.mubr.bf16.mxu0 %v16367_v49  ;;  %4555 = vmatprep.mubr.bf16.mxu1 %v16398_v59  ;;  %v863_v49 = vld [vmem:[#allocation5 + $0x4e8] sm:$0xff]  ;;  %v13824_v39 = vcombine.high %v821_v15, %v825_v18  ;;  %v13823_v43 = vcombine.low %v821_v15, %v825_v18  ;;  %v884_v18 = vld [vmem:[#allocation5 + $0x590] sm:$0xff] }
 0x2fa   :  { %4525 = vmatprep.subr.bf16.mxu1 %v13884_v36  ;;  %4648 = vmatprep.subr.bf16.mxu0 %v13760_v37  ;;  %v13860_v62 = vcombine.high %v859_v46, %v863_v49  ;;  %v13859_v4 = vcombine.low %v859_v46, %v863_v49  ;;  %v13955_v36 = vcombine.low %v955_v55, %v959_v57 }
 0x2fb   :  { %v13831_v37 = vcombine.low %v829_v28, %v833_v48  ;;  %v892_v48 = vld [vmem:[#allocation5 + $0x5d0] sm:$0xff] }
 0x2fc   :  { %4526 = vmatpush1.bf16.msra.mxu1 %v13883_v41  ;;  %4649 = vmatpush1.bf16.msra.mxu0 %v13759_v42  ;;  %v943_v41 = vld [vmem:[#allocation5 + $0x768] sm:$0xff]  ;;  %v813_v42 = vld [vmem:[#allocation5 + $0x358] sm:$0xff] }
 0x2fd   :  { %4527 = vmatprep.subr.bf16.mxu1 %v13876_v31  ;;  %4650 = vmatprep.subr.bf16.mxu0 %v13752_v35  ;;  %v817_v31 = vld [vmem:[#allocation5 + $0x378] sm:$0xff]  ;;  %v13947_v35 = vcombine.low %v947_v32, %v951_v33  ;;  %v13940_v44 = vcombine.high %v939_v40, %v943_v41 }
 0x2fe   :  { %v13816_v23 = vcombine.high %v813_v42, %v817_v31  ;;  %v13815_v46 = vcombine.low %v813_v42, %v817_v31  ;;  %v876_v42 = vld [vmem:[#allocation5 + $0x550] sm:$0xff] }
 0x2ff   :  { %v880_v31 = vld [vmem:[#allocation5 + $0x570] sm:$0xff] }
 0x300   :  { %4528 = vmatpush1.bf16.msra.mxu1 %v13875_v45  ;;  %4651 = vmatpush1.bf16.msra.mxu0 %v13751_v51  ;;  %v935_v45 = vld [vmem:[#allocation5 + $0x728] sm:$0xff]  ;;  %v805_v51 = vld [vmem:[#allocation5 + $0x318] sm:$0xff] }
 0x301   :  { %4529 = vmatprep.subr.bf16.mxu1 %v13868_v52  ;;  %4652 = vmatprep.subr.bf16.mxu0 %v13744_v3  ;;  %v809_v52 = vld [vmem:[#allocation5 + $0x338] sm:$0xff]  ;;  %v13939_v3 = vcombine.low %v939_v40, %v943_v41  ;;  %v13932_v49 = vcombine.high %v931_v17, %v935_v45 }
 0x302   :  { %v13808_v47 = vcombine.high %v805_v51, %v809_v52  ;;  %v13807_v0 = vcombine.low %v805_v51, %v809_v52  ;;  %v13878_v51 = vcombine.high %v876_v42, %v880_v31 }
 0x304   :  { %4530 = vmatpush1.bf16.msra.mxu1 %v13867_v54  ;;  %4653 = vmatpush1.bf16.msra.mxu0 %v13743_v56  ;;  %v927_v54 = vld [vmem:[#allocation5 + $0x6e8] sm:$0xff]  ;;  %v797_v56 = vld [vmem:[#allocation5 + $0x2d8] sm:$0xff] }
 0x305   :  { %4531 = vmatprep.subr.bf16.mxu1 %v13860_v62  ;;  %4654 = vmatprep.subr.bf16.mxu0 %v13736_v7  ;;  %v801_v62 = vld [vmem:[#allocation5 + $0x2f8] sm:$0xff]  ;;  %v13931_v7 = vcombine.low %v931_v17, %v935_v45  ;;  %v13924_v58 = vcombine.high %v923_v50, %v927_v54 }
 0x306   :  { %v13800_v2 = vcombine.high %v797_v56, %v801_v62  ;;  %v13799_v6 = vcombine.low %v797_v56, %v801_v62 }
 0x308   :  { %4532 = vmatpush1.bf16.msra.mxu1 %v13859_v4  ;;  %4655 = vmatpush1.bf16.msra.mxu0 %v13735_v5  ;;  %v919_v4 = vld [vmem:[#allocation5 + $0x6a8] sm:$0xff]  ;;  %v789_v5 = vld [vmem:[#allocation5 + $0x298] sm:$0xff] }
 0x309   :  { %4533 = vmatprep.subr.bf16.mxu1 %v13852_v11  ;;  %4656 = vmatprep.subr.bf16.mxu0 %v13728_v61  ;;  %v793_v11 = vld [vmem:[#allocation5 + $0x2b8] sm:$0xff]  ;;  %v13923_v61 = vcombine.low %v923_v50, %v927_v54  ;;  %v13916_v8 = vcombine.high %v915_v12, %v919_v4  ;;  %v4780_v50 = vld [vmem:[#allocation7 + $0x120] sm:$0xff]  ;;  %v13877_v54 = vcombine.low %v876_v42, %v880_v31 }
 0x30a   :  { %v13792_v9 = vcombine.high %v789_v5, %v793_v11  ;;  %v13791_v10 = vcombine.low %v789_v5, %v793_v11  ;;  %v4856_v31 = vld [vmem:[#allocation7 + $0x380] sm:$0xff] }
 0x30c   :  { %4534 = vmatpush1.bf16.msra.mxu1 %v13851_v20  ;;  %4657 = vmatpush1.bf16.msra.mxu0 %v13727_v21  ;;  %v911_v20 = vld [vmem:[#allocation5 + $0x668] sm:$0xff]  ;;  %v781_v21 = vld [vmem:[#allocation5 + $0x258] sm:$0xff] }
 0x30d   :  { %4535 = vmatprep.subr.bf16.mxu1 %v13844_v22  ;;  %4658 = vmatprep.subr.bf16.mxu0 %v13720_v60  ;;  %v785_v22 = vld [vmem:[#allocation5 + $0x278] sm:$0xff]  ;;  %v13915_v60 = vcombine.low %v915_v12, %v919_v4  ;;  %v13908_v24 = vcombine.high %v907_v19, %v911_v20  ;;  %v4768_v12 = vld [vmem:[#allocation7 + $0xc0] sm:$0xff] }
 0x30e   :  { %v13784_v25 = vcombine.high %v781_v21, %v785_v22  ;;  %v13783_v55 = vcombine.low %v781_v21, %v785_v22  ;;  %v4772_v4 = vld [vmem:[#allocation7 + $0xe0] sm:$0xff] }
 0x310   :  { %4536 = vmatpush1.bf16.msra.mxu1 %v13843_v16  ;;  %4659 = vmatpush1.bf16.msra.mxu0 %v13719_v26  ;;  %v903_v16 = vld [vmem:[#allocation5 + $0x628] sm:$0xff]  ;;  %v773_v26 = vld [vmem:[#allocation5 + $0x218] sm:$0xff] }
 0x311   :  { %4537 = vmatprep.subr.bf16.mxu1 %v13836_v27  ;;  %4660 = vmatprep.subr.bf16.mxu0 %v13712_v14  ;;  %v777_v27 = vld [vmem:[#allocation5 + $0x238] sm:$0xff]  ;;  %v13907_v14 = vcombine.low %v907_v19, %v911_v20  ;;  %v13900_v57 = vcombine.high %v899_v13, %v903_v16  ;;  %v4760_v19 = vld [vmem:[#allocation7 + $0x80] sm:$0xff] }
 0x312   :  { %v13776_v28 = vcombine.high %v773_v26, %v777_v27  ;;  %v13775_v32 = vcombine.low %v773_v26, %v777_v27  ;;  %v4764_v20 = vld [vmem:[#allocation7 + $0xa0] sm:$0xff] }
 0x314   :  { %4538 = vmatpush1.bf16.msra.mxu1 %v13835_v1  ;;  %4661 = vmatpush1.bf16.msra.mxu0 %v13711_v29  ;;  %v896_v1 = vld [vmem:[#allocation5 + $0x5f0] sm:$0xff]  ;;  %v4800_v29 = vld [vmem:[#allocation7 + $0x1c0] sm:$0xff] }
 0x315   :  { %4539 = vmatprep.subr.bf16.mxu1 %v13956_v30  ;;  %4662 = vmatprep.subr.bf16.mxu0 %v13832_v63  ;;  %v4804_v30 = vld [vmem:[#allocation7 + $0x1e0] sm:$0xff]  ;;  %v13899_v63 = vcombine.low %v899_v13, %v903_v16  ;;  %v13894_v33 = vcombine.high %v892_v48, %v896_v1 }
 0x316   :  { %v14018_v15 = vcombine.high %v4800_v29, %v4804_v30  ;;  %v14017_v41 = vcombine.low %v4800_v29, %v4804_v30  ;;  %v4752_v13 = vld [vmem:[#allocation7 + $0x40] sm:$0xff] }
 0x317   :  { %v4756_v16 = vld [vmem:[#allocation7 + $0x60] sm:$0xff] }
 0x318   :  { %4540 = vmatpush2.bf16.msra.mxu1 %v13955_v36  ;;  %4663 = vmatpush2.bf16.msra.mxu0 %v13831_v37  ;;  %v888_v36 = vld [vmem:[#allocation5 + $0x5b0] sm:$0xff]  ;;  %v4792_v37 = vld [vmem:[#allocation7 + $0x180] sm:$0xff] }
 0x319   :  { %4541 = vmatprep.subr.bf16.mxu1 %v13948_v38  ;;  %4664 = vmatprep.subr.bf16.mxu0 %v13824_v39  ;;  %v4796_v38 = vld [vmem:[#allocation7 + $0x1a0] sm:$0xff]  ;;  %v13893_v39 = vcombine.low %v892_v48, %v896_v1  ;;  %v13886_v40 = vcombine.high %v884_v18, %v888_v36  ;;  %v13885_v17 = vcombine.low %v884_v18, %v888_v36 }
 0x31a   :  { %v14009_v52 = vcombine.low %v4792_v37, %v4796_v38  ;;  %v4744_v48 = vld [vmem:[#allocation7] sm:$0xff] }
 0x31b   :  { %v4748_v1 = vld [vmem:[#allocation7 + $0x20] sm:$0xff] }
 0x31c   :  { %4542 = vmatpush2.bf16.msra.mxu1 %v13947_v35  ;;  %4665 = vmatpush2.bf16.msra.mxu0 %v13823_v43  ;;  %v14010_v35 = vcombine.high %v4792_v37, %v4796_v38  ;;  %v4864_v18 = vld [vmem:[#allocation7 + $0x3c0] sm:$0xff] }
 0x31d   :  { %4543 = vmatprep.subr.bf16.mxu1 %v13940_v44  ;;  %4666 = vmatprep.subr.bf16.mxu0 %v13816_v23  ;;  %v4784_v44 = vld [vmem:[#allocation7 + $0x140] sm:$0xff] }
 0x31e   :  { %v4788_v23 = vld [vmem:[#allocation7 + $0x160] sm:$0xff] }
 0x31f   :  { %v4868_v36 = vld [vmem:[#allocation7 + $0x3e0] sm:$0xff] }
 0x320   :  { %4544 = vmatpush2.bf16.msra.mxu1 %v13939_v3  ;;  %4667 = vmatpush2.bf16.msra.mxu0 %v13815_v46  ;;  %v868_v3 = vld [vmem:[#allocation5 + $0x510] sm:$0xff]  ;;  %v14082_v42 = vcombine.high %v4864_v18, %v4868_v36 }
 0x321   :  { %4545 = vmatprep.subr.bf16.mxu1 %v13932_v49  ;;  %4668 = vmatprep.subr.bf16.mxu0 %v13808_v47  ;;  %v872_v46 = vld [vmem:[#allocation5 + $0x530] sm:$0xff]  ;;  %v14002_v49 = vcombine.high %v4784_v44, %v4788_v23 }
 0x322   :  { %v13870_v62 = vcombine.high %v868_v3, %v872_v46  ;;  %v13869_v5 = vcombine.low %v868_v3, %v872_v46  ;;  %v4848_v46 = vld [vmem:[#allocation7 + $0x340] sm:$0xff] }
 0x324   :  { %4546 = vmatpush2.bf16.msra.mxu1 %v13931_v7  ;;  %4669 = vmatpush2.bf16.msra.mxu0 %v13807_v0  ;;  %v14001_v7 = vcombine.low %v4784_v44, %v4788_v23  ;;  %v860_v0 = vld [vmem:[#allocation5 + $0x4d0] sm:$0xff] }
 0x325   :  { %4547 = vmatprep.subr.bf16.mxu1 %v13924_v58  ;;  %4670 = vmatprep.subr.bf16.mxu0 %v13800_v2  ;;  %v864_v58 = vld [vmem:[#allocation5 + $0x4f0] sm:$0xff] }
 0x326   :  { %v13862_v11 = vcombine.high %v860_v0, %v864_v58  ;;  %v13861_v21 = vcombine.low %v860_v0, %v864_v58  ;;  %v4844_v0 = vld [vmem:[#allocation7 + $0x320] sm:$0xff] }
 0x328   :  { %4548 = vmatpush2.bf16.msra.mxu1 %v13923_v61  ;;  %4671 = vmatpush2.bf16.msra.mxu0 %v13799_v6  ;;  %v852_v6 = vld [vmem:[#allocation5 + $0x490] sm:$0xff] }
 0x329   :  { %4549 = vmatprep.subr.bf16.mxu1 %v13916_v8  ;;  %4672 = vmatprep.subr.bf16.mxu0 %v13792_v9  ;;  %v856_v8 = vld [vmem:[#allocation5 + $0x4b0] sm:$0xff]  ;;  %v13986_v9 = vcombine.high %v4768_v12, %v4772_v4 }
 0x32a   :  { %v13854_v22 = vcombine.high %v852_v6, %v856_v8  ;;  %v13853_v26 = vcombine.low %v852_v6, %v856_v8  ;;  %v4836_v6 = vld [vmem:[#allocation7 + $0x2e0] sm:$0xff] }
 0x32c   :  { %4550 = vmatpush2.bf16.msra.mxu1 %v13915_v60  ;;  %4673 = vmatpush2.bf16.msra.mxu0 %v13791_v10  ;;  %v13985_v60 = vcombine.low %v4768_v12, %v4772_v4  ;;  %v844_v10 = vld [vmem:[#allocation5 + $0x450] sm:$0xff] }
 0x32d   :  { %4551 = vmatprep.subr.bf16.mxu1 %v13908_v24  ;;  %4674 = vmatprep.subr.bf16.mxu0 %v13784_v25  ;;  %v848_v24 = vld [vmem:[#allocation5 + $0x470] sm:$0xff]  ;;  %v13978_v25 = vcombine.high %v4760_v19, %v4764_v20 }
 0x32e   :  { %v13846_v27 = vcombine.high %v844_v10, %v848_v24  ;;  %v13845_v29 = vcombine.low %v844_v10, %v848_v24  ;;  %v924_v4 = vld [vmem:[#allocation5 + $0x6d0] sm:$0xff]  ;;  %v4828_v10 = vld [vmem:[#allocation7 + $0x2a0] sm:$0xff] }
 0x330   :  { %4552 = vmatpush2.bf16.msra.mxu1 %v13907_v14  ;;  %4675 = vmatpush2.bf16.msra.mxu0 %v13783_v55  ;;  %v13977_v14 = vcombine.low %v4760_v19, %v4764_v20  ;;  %v836_v55 = vld [vmem:[#allocation5 + $0x410] sm:$0xff] }
 0x331   :  { %4553 = vmatprep.subr.bf16.mxu1 %v13900_v57  ;;  %4676 = vmatprep.subr.bf16.mxu0 %v13776_v28  ;;  %v840_v57 = vld [vmem:[#allocation5 + $0x430] sm:$0xff]  ;;  %v13970_v28 = vcombine.high %v4752_v13, %v4756_v16 }
 0x332   :  { %v13838_v30 = vcombine.high %v836_v55, %v840_v57  ;;  %v13837_v37 = vcombine.low %v836_v55, %v840_v57  ;;  %v916_v20 = vld [vmem:[#allocation5 + $0x690] sm:$0xff]  ;;  %v4820_v55 = vld [vmem:[#allocation7 + $0x260] sm:$0xff] }
 0x334   :  { %4554 = vmatpush2.bf16.msra.mxu1 %v13899_v63  ;;  %4677 = vmatpush2.bf16.msra.mxu0 %v13775_v32  ;;  %v13969_v63 = vcombine.low %v4752_v13, %v4756_v16  ;;  %v956_v32 = vld [vmem:[#allocation5 + $0x7d0] sm:$0xff] }
 0x335   :  { %4605 = vmatprep.subr.bf16.mxu1 %v13894_v33  ;;  %7858 = vmatprep.subr.bf16.mxu0 %v14018_v15  ;;  %v960_v33 = vld [vmem:[#allocation5 + $0x7f0] sm:$0xff]  ;;  %v13962_v15 = vcombine.high %v4744_v48, %v4748_v1 }
 0x336   :  { %v13958_v38 = vcombine.high %v956_v32, %v960_v33  ;;  %v13957_v44 = vcombine.low %v956_v32, %v960_v33  ;;  %v908_v16 = vld [vmem:[#allocation5 + $0x650] sm:$0xff]  ;;  %v4812_v32 = vld [vmem:[#allocation7 + $0x220] sm:$0xff] }
 0x337   :  { %4556 = vmatmul.mubr.bf16.vlgmr.msra.gmra.mxu1 %v16400_v34  ;;  %4679 = vmatmul.mubr.bf16.vlgmr.msra.gmra.mxu0 %v16375_v53  ;;  %v16412_v43 = vpop.f32.mrf.mxu0  ;;  %v4776_v53 = vld [vmem:[#allocation7 + $0x100] sm:$0xff] }
 0x338   :  { %4606 = vmatpush1.bf16.msra.mxu1 %v13893_v39  ;;  %4637 = vmatprep.mubr.bf16.mxu1 %v16398_v59  ;;  %v13994_v2 = vcombine.high %v4776_v53, %v4780_v50  ;;  %v13993_v61 = vcombine.low %v4776_v53, %v4780_v50  ;;  %v13961_v39 = vcombine.low %v4744_v48, %v4748_v1  ;;  %v900_v1 = vld [vmem:[#allocation5 + $0x610] sm:$0xff] }
 0x339   :  { %v16415_v45 = vpop.f32.mrf.mxu0  ;;  %4607 = vmatprep.subr.bf16.mxu1 %v13886_v40  ;;  %7859 = vmatpush1.bf16.msra.mxu0 %v14017_v41  ;;  %v948_v40 = vld [vmem:[#allocation5 + $0x790] sm:$0xff] }
 0x33a   :  { %7860 = vmatprep.subr.bf16.mxu0 %v14010_v35  ;;  %v952_v41 = vld [vmem:[#allocation5 + $0x7b0] sm:$0xff]  ;;  %v4860_v35 = vld [vmem:[#allocation7 + $0x3a0] sm:$0xff] }
 0x33b   :  { %v4438_v47 = vpop.f32.mrf.mxu0  ;;  %v13950_v23 = vcombine.high %v948_v40, %v952_v41  ;;  %v14074_v3 = vcombine.high %v4856_v31, %v4860_v35  ;;  %v14073_v50 = vcombine.low %v4856_v31, %v4860_v35  ;;  %v889_v31 = vld [vmem:[#allocation5 + $0x5b8] sm:$0xff] }
 0x33c   :  { %4608 = vmatpush1.bf16.msra.mxu1 %v13885_v17  ;;  %v14081_v17 = vcombine.low %v4864_v18, %v4868_v36  ;;  %v13949_v47 = vcombine.low %v948_v40, %v952_v41  ;;  %v893_v36 = vld [vmem:[#allocation5 + $0x5d8] sm:$0xff] }
 0x33d   :  { %v4439_v56 = vpop.f32.mrf.mxu0  ;;  %4609 = vmatprep.subr.bf16.mxu1 %v13878_v51  ;;  %7861 = vmatpush1.bf16.msra.mxu0 %v14009_v52  ;;  %v940_v51 = vld [vmem:[#allocation5 + $0x750] sm:$0xff] }
 0x33e   :  { %7862 = vmatprep.subr.bf16.mxu0 %v14002_v49  ;;  %v944_v52 = vld [vmem:[#allocation5 + $0x770] sm:$0xff]  ;;  %v4852_v49 = vld [vmem:[#allocation7 + $0x360] sm:$0xff] }
 0x33f   :  { %v13942_v53 = vcombine.high %v940_v51, %v944_v52  ;;  %v936_v56 = vld [vmem:[#allocation5 + $0x730] sm:$0xff]  ;;  %v13941_v58 = vcombine.low %v940_v51, %v944_v52  ;;  %v14065_v12 = vcombine.low %v4848_v46, %v4852_v49 }
 0x340   :  { %4610 = vmatpush1.bf16.msra.mxu1 %v13877_v54  ;;  %v932_v54 = vld [vmem:[#allocation5 + $0x710] sm:$0xff] }
 0x341   :  { %4611 = vmatprep.subr.bf16.mxu1 %v13870_v62  ;;  %7863 = vmatpush1.bf16.msra.mxu0 %v14001_v7  ;;  %v14066_v62 = vcombine.high %v4848_v46, %v4852_v49  ;;  %v4840_v7 = vld [vmem:[#allocation7 + $0x300] sm:$0xff]  ;;  %v13933_v8 = vcombine.low %v932_v54, %v936_v56  ;;  %v869_v49 = vld [vmem:[#allocation5 + $0x518] sm:$0xff] }
 0x342   :  { %7864 = vmatprep.subr.bf16.mxu0 %v13994_v2  ;;  %v13934_v2 = vcombine.high %v932_v54, %v936_v56  ;;  %v14057_v19 = vcombine.low %v4840_v7, %v4844_v0 }
 0x344   :  { %4612 = vmatpush1.bf16.msra.mxu1 %v13869_v5  ;;  %v928_v5 = vld [vmem:[#allocation5 + $0x6f0] sm:$0xff] }
 0x345   :  { %4613 = vmatprep.subr.bf16.mxu1 %v13862_v11  ;;  %7865 = vmatpush1.bf16.msra.mxu0 %v13993_v61  ;;  %v14058_v11 = vcombine.high %v4840_v7, %v4844_v0  ;;  %v4832_v61 = vld [vmem:[#allocation7 + $0x2c0] sm:$0xff]  ;;  %v13925_v24 = vcombine.low %v924_v4, %v928_v5  ;;  %v865_v7 = vld [vmem:[#allocation5 + $0x4f8] sm:$0xff] }
 0x346   :  { %7866 = vmatprep.subr.bf16.mxu0 %v13986_v9  ;;  %v13926_v9 = vcombine.high %v924_v4, %v928_v5  ;;  %v14049_v13 = vcombine.low %v4832_v61, %v4836_v6  ;;  %v16423_v0 = vld [vmem:[#allocation7 + $0x9c0] sm:$0xff]  ;;  %v853_v5 = vld [vmem:[#allocation5 + $0x498] sm:$0xff] }
 0x348   :  { %4614 = vmatpush1.bf16.msra.mxu1 %v13861_v21  ;;  %v920_v21 = vld [vmem:[#allocation5 + $0x6b0] sm:$0xff] }
 0x349   :  { %4615 = vmatprep.subr.bf16.mxu1 %v13854_v22  ;;  %7867 = vmatpush1.bf16.msra.mxu0 %v13985_v60  ;;  %v14050_v22 = vcombine.high %v4832_v61, %v4836_v6  ;;  %v4824_v60 = vld [vmem:[#allocation7 + $0x280] sm:$0xff]  ;;  %v13917_v57 = vcombine.low %v916_v20, %v920_v21 }
 0x34a   :  { %7868 = vmatprep.subr.bf16.mxu0 %v13978_v25  ;;  %v13918_v25 = vcombine.high %v916_v20, %v920_v21  ;;  %v14041_v48 = vcombine.low %v4824_v60, %v4828_v10  ;;  %v837_v21 = vld [vmem:[#allocation5 + $0x418] sm:$0xff] }
 0x34c   :  { %4616 = vmatpush1.bf16.msra.mxu1 %v13853_v26  ;;  %v912_v26 = vld [vmem:[#allocation5 + $0x670] sm:$0xff] }
 0x34d   :  { %4617 = vmatprep.subr.bf16.mxu1 %v13846_v27  ;;  %7869 = vmatpush1.bf16.msra.mxu0 %v13977_v14  ;;  %v14042_v27 = vcombine.high %v4824_v60, %v4828_v10  ;;  %v4816_v14 = vld [vmem:[#allocation7 + $0x240] sm:$0xff]  ;;  %v13909_v33 = vcombine.low %v908_v16, %v912_v26 }
 0x34e   :  { %7870 = vmatprep.subr.bf16.mxu0 %v13970_v28  ;;  %v13910_v28 = vcombine.high %v908_v16, %v912_v26  ;;  %v14033_v18 = vcombine.low %v4816_v14, %v4820_v55  ;;  %v949_v26 = vld [vmem:[#allocation5 + $0x798] sm:$0xff] }
 0x350   :  { %4618 = vmatpush1.bf16.msra.mxu1 %v13845_v29  ;;  %v904_v29 = vld [vmem:[#allocation5 + $0x630] sm:$0xff] }
 0x351   :  { %4619 = vmatprep.subr.bf16.mxu1 %v13838_v30  ;;  %7871 = vmatpush1.bf16.msra.mxu0 %v13969_v63  ;;  %v14034_v30 = vcombine.high %v4816_v14, %v4820_v55  ;;  %v4808_v63 = vld [vmem:[#allocation7 + $0x200] sm:$0xff] }
 0x352   :  { %7872 = vmatprep.subr.bf16.mxu0 %v13962_v15  ;;  %v13902_v15 = vcombine.high %v900_v1, %v904_v29  ;;  %v14025_v41 = vcombine.low %v4808_v63, %v4812_v32 }
 0x354   :  { %4620 = vmatpush1.bf16.msra.mxu1 %v13837_v37  ;;  %v897_v37 = vld [vmem:[#allocation5 + $0x5f8] sm:$0xff] }
 0x355   :  { %4621 = vmatprep.subr.bf16.mxu1 %v13958_v38  ;;  %7873 = vmatpush1.bf16.msra.mxu0 %v13961_v39  ;;  %v14026_v38 = vcombine.high %v4808_v63, %v4812_v32  ;;  %v13901_v39 = vcombine.low %v900_v1, %v904_v29  ;;  %v13896_v40 = vcombine.high %v893_v36, %v897_v37  ;;  %v933_v29 = vld [vmem:[#allocation5 + $0x718] sm:$0xff] }
 0x356   :  { %7874 = vmatprep.subr.bf16.mxu0 %v14082_v42  ;;  %v885_v42 = vld [vmem:[#allocation5 + $0x598] sm:$0xff]  ;;  %v13895_v35 = vcombine.low %v893_v36, %v897_v37 }
 0x357   :  { %v13887_v52 = vcombine.low %v885_v42, %v889_v31  ;;  %v917_v37 = vld [vmem:[#allocation5 + $0x698] sm:$0xff] }
 0x358   :  { %4622 = vmatpush2.bf16.msra.mxu1 %v13957_v44  ;;  %v13888_v44 = vcombine.high %v885_v42, %v889_v31  ;;  %v913_v42 = vld [vmem:[#allocation5 + $0x678] sm:$0xff] }
 0x359   :  { %4623 = vmatprep.subr.bf16.mxu1 %v13950_v23  ;;  %7875 = vmatpush2.bf16.msra.mxu0 %v14081_v17  ;;  %v877_v23 = vld [vmem:[#allocation5 + $0x558] sm:$0xff] }
 0x35a   :  { %7876 = vmatprep.subr.bf16.mxu0 %v14074_v3  ;;  %v881_v17 = vld [vmem:[#allocation5 + $0x578] sm:$0xff] }
 0x35b   :  { %v13880_v46 = vcombine.high %v877_v23, %v881_v17 }
 0x35c   :  { %4624 = vmatpush2.bf16.msra.mxu1 %v13949_v47  ;;  %v873_v47 = vld [vmem:[#allocation5 + $0x538] sm:$0xff] }
 0x35d   :  { %4625 = vmatprep.subr.bf16.mxu1 %v13942_v53  ;;  %7877 = vmatpush2.bf16.msra.mxu0 %v14073_v50  ;;  %v13879_v50 = vcombine.low %v877_v23, %v881_v17  ;;  %v13872_v56 = vcombine.high %v869_v49, %v873_v47  ;;  %v905_v23 = vld [vmem:[#allocation5 + $0x638] sm:$0xff] }
 0x35e   :  { %7878 = vmatprep.subr.bf16.mxu0 %v14066_v62  ;;  %v861_v62 = vld [vmem:[#allocation5 + $0x4d8] sm:$0xff] }
 0x35f   :  { %v13864_v4 = vcombine.high %v861_v62, %v865_v7  ;;  %v13863_v61 = vcombine.low %v861_v62, %v865_v7  ;;  %v4912_v7 = vld [vmem:[#allocation7 + $0x540] sm:$0xff] }
 0x360   :  { %4626 = vmatpush2.bf16.msra.mxu1 %v13941_v58  ;;  %v16425_v58 = vld [vmem:[#allocation7 + $0x9e0] sm:$0xff] }
 0x361   :  { %4627 = vmatprep.subr.bf16.mxu1 %v13934_v2  ;;  %7879 = vmatpush2.bf16.msra.mxu0 %v14065_v12  ;;  %v13871_v2 = vcombine.low %v869_v49, %v873_v47  ;;  %v14273_v12 = vcombine.low %v16423_v0, %v16425_v58  ;;  %v4932_v49 = vld [vmem:[#allocation7 + $0x5e0] sm:$0xff] }
 0x362   :  { %7880 = vmatprep.subr.bf16.mxu0 %v14058_v11  ;;  %v857_v11 = vld [vmem:[#allocation5 + $0x4b8] sm:$0xff] }
 0x363   :  { %v13856_v6 = vcombine.high %v853_v5, %v857_v11 }
 0x364   :  { %4628 = vmatpush2.bf16.msra.mxu1 %v13933_v8  ;;  %v845_v8 = vld [vmem:[#allocation5 + $0x458] sm:$0xff] }
 0x365   :  { %4629 = vmatprep.subr.bf16.mxu1 %v13926_v9  ;;  %7881 = vmatpush2.bf16.msra.mxu0 %v14057_v19  ;;  %v849_v9 = vld [vmem:[#allocation5 + $0x478] sm:$0xff]  ;;  %v13855_v19 = vcombine.low %v853_v5, %v857_v11 }
 0x366   :  { %7882 = vmatprep.subr.bf16.mxu0 %v14050_v22  ;;  %v13848_v20 = vcombine.high %v845_v8, %v849_v9  ;;  %v841_v22 = vld [vmem:[#allocation5 + $0x438] sm:$0xff]  ;;  %v13847_v60 = vcombine.low %v845_v8, %v849_v9 }
 0x367   :  { %v13840_v10 = vcombine.high %v837_v21, %v841_v22 }
 0x368   :  { %4630 = vmatpush2.bf16.msra.mxu1 %v13925_v24  ;;  %v957_v24 = vld [vmem:[#allocation5 + $0x7d8] sm:$0xff] }
 0x369   :  { %4631 = vmatprep.subr.bf16.mxu1 %v13918_v25  ;;  %7883 = vmatpush2.bf16.msra.mxu0 %v14049_v13  ;;  %v961_v25 = vld [vmem:[#allocation5 + $0x7f8] sm:$0xff]  ;;  %v13839_v13 = vcombine.low %v837_v21, %v841_v22 }
 0x36a   :  { %7884 = vmatprep.subr.bf16.mxu0 %v14042_v27  ;;  %v13960_v16 = vcombine.high %v957_v24, %v961_v25  ;;  %v953_v27 = vld [vmem:[#allocation5 + $0x7b8] sm:$0xff]  ;;  %v13959_v14 = vcombine.low %v957_v24, %v961_v25  ;;  %v5048_v24 = vld [vmem:[#allocation7 + $0x980] sm:$0xff] }
 0x36b   :  { %v13952_v55 = vcombine.high %v949_v26, %v953_v27  ;;  %v5052_v25 = vld [vmem:[#allocation7 + $0x9a0] sm:$0xff] }
 0x36c   :  { %4632 = vmatpush2.bf16.msra.mxu1 %v13917_v57  ;;  %v941_v57 = vld [vmem:[#allocation5 + $0x758] sm:$0xff] }
 0x36d   :  { %4633 = vmatprep.subr.bf16.mxu1 %v13910_v28  ;;  %7885 = vmatpush2.bf16.msra.mxu0 %v14041_v48  ;;  %v945_v28 = vld [vmem:[#allocation5 + $0x778] sm:$0xff]  ;;  %v13951_v48 = vcombine.low %v949_v26, %v953_v27  ;;  %v4896_v27 = vld [vmem:[#allocation7 + $0x4c0] sm:$0xff] }
 0x36e   :  { %7886 = vmatprep.subr.bf16.mxu0 %v14034_v30  ;;  %v13944_v1 = vcombine.high %v941_v57, %v945_v28  ;;  %v937_v30 = vld [vmem:[#allocation5 + $0x738] sm:$0xff]  ;;  %v13943_v63 = vcombine.low %v941_v57, %v945_v28  ;;  %v14266_v57 = vcombine.high %v5048_v24, %v5052_v25  ;;  %v16444_v28 = vld [vmem:[#allocation7 + $0x1e8] sm:$0xff] }
 0x36f   :  { %v13936_v32 = vcombine.high %v933_v29, %v937_v30 }
 0x370   :  { %4634 = vmatpush2.bf16.msra.mxu1 %v13909_v33  ;;  %v925_v33 = vld [vmem:[#allocation5 + $0x6d8] sm:$0xff] }
 0x371   :  { %4635 = vmatprep.subr.bf16.mxu1 %v13902_v15  ;;  %7887 = vmatpush2.bf16.msra.mxu0 %v14033_v18  ;;  %v929_v15 = vld [vmem:[#allocation5 + $0x6f8] sm:$0xff]  ;;  %v13935_v18 = vcombine.low %v933_v29, %v937_v30  ;;  %v5044_v29 = vld [vmem:[#allocation7 + $0x960] sm:$0xff] }
 0x372   :  { %7888 = vmatprep.subr.bf16.mxu0 %v14026_v38  ;;  %v13928_v36 = vcombine.high %v925_v33, %v929_v15  ;;  %v921_v38 = vld [vmem:[#allocation5 + $0x6b8] sm:$0xff] }
 0x373   :  { %v13919_v31 = vcombine.low %v917_v37, %v921_v38 }
 0x374   :  { %4636 = vmatpush2.bf16.msra.mxu1 %v13901_v39  ;;  %v13927_v39 = vcombine.low %v925_v33, %v929_v15  ;;  %v4892_v33 = vld [vmem:[#allocation7 + $0x4a0] sm:$0xff]  ;;  %v14265_v15 = vcombine.low %v5048_v24, %v5052_v25 }
 0x375   :  { %4687 = vmatprep.subr.bf16.mxu1 %v13896_v40  ;;  %7889 = vmatpush2.bf16.msra.mxu0 %v14025_v41  ;;  %v13920_v40 = vcombine.high %v917_v37, %v921_v38  ;;  %v909_v41 = vld [vmem:[#allocation5 + $0x658] sm:$0xff]  ;;  %v5032_v37 = vld [vmem:[#allocation7 + $0x900] sm:$0xff] }
 0x376   :  { %v13911_v17 = vcombine.low %v909_v41, %v913_v42  ;;  %v5036_v38 = vld [vmem:[#allocation7 + $0x920] sm:$0xff] }
 0x377   :  { %v16417_v51 = vpop.f32.mrf.mxu0  ;;  %4638 = vmatmul.mubr.bf16.vlgmr.msra.gmra.mxu1 %v16400_v34 }
 0x378   :  { %4688 = vmatpush1.bf16.msra.mxu1 %v13895_v35  ;;  %4719 = vmatprep.mubr.bf16.mxu1 %v16398_v59  ;;  %v14274_v59 = vcombine.high %v16423_v0, %v16425_v58  ;;  %v13912_v35 = vcombine.high %v909_v41, %v913_v42  ;;  %v4884_v41 = vld [vmem:[#allocation7 + $0x460] sm:$0xff] }
 0x379   :  { %v16421_v3 = vpop.f32.mrf.mxu0  ;;  %4689 = vmatprep.subr.bf16.mxu1 %v13888_v44  ;;  %v901_v44 = vld [vmem:[#allocation5 + $0x618] sm:$0xff]  ;;  %v5028_v0 = vld [vmem:[#allocation7 + $0x8e0] sm:$0xff] }
 0x37a   :  { %7940 = vmatprep.subr.bf16.mxu0 %v14274_v59  ;;  %v13903_v47 = vcombine.low %v901_v44, %v905_v23  ;;  %v4916_v59 = vld [vmem:[#allocation7 + $0x560] sm:$0xff] }
 0x37b   :  { %v4520_v53 = vpop.f32.mrf.mxu0  ;;  %v14130_v8 = vcombine.high %v4912_v7, %v4916_v59 }
 0x37c   :  { %4690 = vmatpush1.bf16.msra.mxu1 %v13887_v52  ;;  %v13904_v52 = vcombine.high %v901_v44, %v905_v23  ;;  %v5024_v44 = vld [vmem:[#allocation7 + $0x8c0] sm:$0xff] }
 0x37d   :  { %v4521_v54 = vpop.f32.mrf.mxu0  ;;  %4691 = vmatprep.subr.bf16.mxu1 %v13880_v46  ;;  %v4928_v46 = vld [vmem:[#allocation7 + $0x5c0] sm:$0xff] }
 0x37e   :  { %v14146_v53 = vcombine.high %v4928_v46, %v4932_v49  ;;  %v4924_v54 = vld [vmem:[#allocation7 + $0x5a0] sm:$0xff] }
 0x37f   :  { %v4876_v23 = vld [vmem:[#allocation7 + $0x420] sm:$0xff] }
 0x380   :  { %4692 = vmatpush1.bf16.msra.mxu1 %v13879_v50  ;;  %v4920_v50 = vld [vmem:[#allocation7 + $0x580] sm:$0xff] }
 0x381   :  { %4693 = vmatprep.subr.bf16.mxu1 %v13872_v56  ;;  %v14145_v56 = vcombine.low %v4928_v46, %v4932_v49  ;;  %v14138_v62 = vcombine.high %v4920_v50, %v4924_v54  ;;  %v14137_v11 = vcombine.low %v4920_v50, %v4924_v54  ;;  %v5016_v49 = vld [vmem:[#allocation7 + $0x880] sm:$0xff] }
 0x382   :  { %v4992_v50 = vld [vmem:[#allocation7 + $0x7c0] sm:$0xff] }
 0x383   :  { %v4996_v54 = vld [vmem:[#allocation7 + $0x7e0] sm:$0xff] }
 0x384   :  { %4694 = vmatpush1.bf16.msra.mxu1 %v13871_v2 }
 0x385   :  { %4695 = vmatprep.subr.bf16.mxu1 %v13864_v4 }
 0x388   :  { %4696 = vmatpush1.bf16.msra.mxu1 %v13863_v61 }
 0x389   :  { %4697 = vmatprep.subr.bf16.mxu1 %v13856_v6 }
 0x38c   :  { %4698 = vmatpush1.bf16.msra.mxu1 %v13855_v19  ;;  %v4904_v19 = vld [vmem:[#allocation7 + $0x500] sm:$0xff] }
 0x38d   :  { %4699 = vmatprep.subr.bf16.mxu1 %v13848_v20  ;;  %v4908_v20 = vld [vmem:[#allocation7 + $0x520] sm:$0xff] }
 0x390   :  { %4700 = vmatpush1.bf16.msra.mxu1 %v13847_v60 }
 0x391   :  { %4701 = vmatprep.subr.bf16.mxu1 %v13840_v10 }
 0x394   :  { %4702 = vmatpush1.bf16.msra.mxu1 %v13839_v13 }
 0x395   :  { %4703 = vmatprep.subr.bf16.mxu1 %v13960_v16  ;;  %v14122_v16 = vcombine.high %v4904_v19, %v4908_v20 }
 0x398   :  { %4704 = vmatpush2.bf16.msra.mxu1 %v13959_v14  ;;  %v4900_v14 = vld [vmem:[#allocation7 + $0x4e0] sm:$0xff] }
 0x399   :  { %4705 = vmatprep.subr.bf16.mxu1 %v13952_v55  ;;  %v16440_v55 = vld [vmem:[#allocation7 + $0x1c8] sm:$0xff] }
 0x39a   :  { %v14019_v30 = vcombine.low %v16440_v55, %v16444_v28 }
 0x39c   :  { %4706 = vmatpush2.bf16.msra.mxu1 %v13951_v48  ;;  %v14121_v48 = vcombine.low %v4904_v19, %v4908_v20  ;;  %v14209_v19 = vcombine.low %v4992_v50, %v4996_v54  ;;  %v5000_v20 = vld [vmem:[#allocation7 + $0x800] sm:$0xff] }
 0x39d   :  { %4707 = vmatprep.subr.bf16.mxu1 %v13944_v1  ;;  %v5040_v1 = vld [vmem:[#allocation7 + $0x940] sm:$0xff] }
 0x39e   :  { %v14257_v42 = vcombine.low %v5040_v1, %v5044_v29 }
 0x3a0   :  { %4708 = vmatpush2.bf16.msra.mxu1 %v13943_v63  ;;  %v14114_v63 = vcombine.high %v4896_v27, %v4900_v14 }
 0x3a1   :  { %4709 = vmatprep.subr.bf16.mxu1 %v13936_v32  ;;  %v4888_v32 = vld [vmem:[#allocation7 + $0x480] sm:$0xff] }
 0x3a4   :  { %4710 = vmatpush2.bf16.msra.mxu1 %v13935_v18  ;;  %v14258_v18 = vcombine.high %v5040_v1, %v5044_v29  ;;  %v5112_v29 = vld [vmem:[#allocation7 + $0xb80] sm:$0xff] }
 0x3a5   :  { %4711 = vmatprep.subr.bf16.mxu1 %v13928_v36  ;;  %v14113_v36 = vcombine.low %v4896_v27, %v4900_v14  ;;  %v4968_v27 = vld [vmem:[#allocation7 + $0x700] sm:$0xff] }
 0x3a6   :  { %v4972_v14 = vld [vmem:[#allocation7 + $0x720] sm:$0xff] }
 0x3a8   :  { %4712 = vmatpush2.bf16.msra.mxu1 %v13927_v39  ;;  %v14106_v39 = vcombine.high %v4888_v32, %v4892_v33 }
 0x3a9   :  { %4713 = vmatprep.subr.bf16.mxu1 %v13920_v40  ;;  %v4880_v40 = vld [vmem:[#allocation7 + $0x440] sm:$0xff] }
 0x3aa   :  { %v14098_v58 = vcombine.high %v4880_v40, %v4884_v41  ;;  %v14097_v46 = vcombine.low %v4880_v40, %v4884_v41  ;;  %v4952_v41 = vld [vmem:[#allocation7 + $0x680] sm:$0xff] }
 0x3ac   :  { %4714 = vmatpush2.bf16.msra.mxu1 %v13919_v31  ;;  %v14250_v31 = vcombine.high %v5032_v37, %v5036_v38 }
 0x3ad   :  { %4715 = vmatprep.subr.bf16.mxu1 %v13912_v35  ;;  %v14105_v35 = vcombine.low %v4888_v32, %v4892_v33  ;;  %v14186_v32 = vcombine.high %v4968_v27, %v4972_v14  ;;  %v4960_v33 = vld [vmem:[#allocation7 + $0x6c0] sm:$0xff] }
 0x3b0   :  { %4716 = vmatpush2.bf16.msra.mxu1 %v13911_v17  ;;  %v14249_v17 = vcombine.low %v5032_v37, %v5036_v38  ;;  %v14185_v37 = vcombine.low %v4968_v27, %v4972_v14  ;;  %v5104_v38 = vld [vmem:[#allocation7 + $0xb40] sm:$0xff] }
 0x3b1   :  { %4717 = vmatprep.subr.bf16.mxu1 %v13904_v52  ;;  %v14242_v52 = vcombine.high %v5024_v44, %v5028_v0 }
 0x3b4   :  { %4718 = vmatpush2.bf16.msra.mxu1 %v13903_v47  ;;  %v5020_v47 = vld [vmem:[#allocation7 + $0x8a0] sm:$0xff] }
 0x3b5   :  { %7899 = vmatprep.subr.bf16.mxu1 %v14146_v53 }
 0x3b7   :  { %v16431_v2 = vpop.f32.mrf.mxu0  ;;  %4720 = vmatmul.mubr.bf16.vlgmr.msra.gmra.mxu1 %v16400_v34  ;;  %v4475_v4 = vpop.f32.mrf.mxu1  ;;  %v14129_v34 = vcombine.low %v4912_v7, %v4916_v59  ;;  %v5008_v59 = vld [vmem:[#allocation7 + $0x840] sm:$0xff] }
 0x3b8   :  { %v4476_v5 = vadd.f32 %v4475_v4, %v16412_v43  ;;  %7900 = vmatpush1.bf16.msra.mxu1 %v14145_v56  ;;  %v14241_v56 = vcombine.low %v5024_v44, %v5028_v0  ;;  %v5012_v4 = vld [vmem:[#allocation7 + $0x860] sm:$0xff] }
 0x3b9   :  { %v16435_v61 = vpop.f32.mrf.mxu0  ;;  %v4477_v6 = vpop.f32.mrf.mxu1  ;;  %7901 = vmatprep.subr.bf16.mxu1 %v14138_v62  ;;  %v14234_v62 = vcombine.high %v5016_v49, %v5020_v47  ;;  %v5096_v0 = vld [vmem:[#allocation7 + $0xb00] sm:$0xff] }
 0x3ba   :  { %v4478_v9 = vadd.f32 %v4477_v6, %v16415_v45  ;;  %v4728_v21 = vmax.f32 %v4476_v5, 0.0  ;;  %v14210_v5 = vcombine.high %v4992_v50, %v4996_v54  ;;  %v4988_v6 = vld [vmem:[#allocation7 + $0x7a0] sm:$0xff] }
 0x3bb   :  { %v4602_v22 = vpop.f32.mrf.mxu0  ;;  %v4479_v60 = vpop.f32.mrf.mxu1  ;;  %v4936_v54 = vld [vmem:[#allocation7 + $0x600] sm:$0xff] }
 0x3bc   :  { %v4729_v10 = vmax.f32 %v4478_v9, 0.0  ;;  %7902 = vmatpush1.bf16.msra.mxu1 %v14137_v11  ;;  %v16442_v45 = vpack.c.bf16 %v4728_v21, %v4728_v21  ;;  %v4984_v11 = vld [vmem:[#allocation7 + $0x780] sm:$0xff]  ;;  %v14226_v9 = vcombine.high %v5008_v59, %v5012_v4 }
 0x3bd   :  { %v4603_v43 = vpop.f32.mrf.mxu0  ;;  %v4480_v13 = vpop.f32.mrf.mxu1  ;;  %7903 = vmatprep.subr.bf16.mxu1 %v14130_v8  ;;  %v14233_v8 = vcombine.low %v5016_v49, %v5020_v47  ;;  %v5004_v21 = vld [vmem:[#allocation7 + $0x820] sm:$0xff]  ;;  %v14202_v22 = vcombine.high %v4984_v11, %v4988_v6  ;;  %v14201_v25 = vcombine.low %v4984_v11, %v4988_v6 }
 0x3be   :  { %v16438_v26 = vpack.c.bf16 %v4729_v10, %v4729_v10  ;;  %v4976_v60 = vld [vmem:[#allocation7 + $0x740] sm:$0xff]  ;;  %v14218_v24 = vcombine.high %v5000_v20, %v5004_v21 }
 0x3bf   :  { %v4980_v10 = vld [vmem:[#allocation7 + $0x760] sm:$0xff] }
 0x3c0   :  { %7890 = vmatprep.mubr.bf16.mxu0 %v16438_v26  ;;  %7904 = vmatpush1.bf16.msra.mxu1 %v14129_v34  ;;  %v14225_v34 = vcombine.low %v5008_v59, %v5012_v4  ;;  %v5120_v43 = vld [vmem:[#allocation7 + $0xbc0] sm:$0xff]  ;;  %v14193_v1 = vcombine.low %v4976_v60, %v4980_v10 }
 0x3c1   :  { %7891 = vmatmul.mubr.bf16.vlgmr.msra.gmra.mxu0 %v16442_v45  ;;  %7905 = vmatprep.subr.bf16.mxu1 %v14122_v16  ;;  %v5124_v13 = vld [vmem:[#allocation7 + $0xbe0] sm:$0xff]  ;;  %v14194_v16 = vcombine.high %v4976_v60, %v4980_v10 }
 0x3c2   :  { %7941 = vmatpush1.bf16.msra.mxu0 %v14273_v12  ;;  %v4872_v12 = vld [vmem:[#allocation7 + $0x400] sm:$0xff] }
 0x3c3   :  { %7942 = vmatprep.subr.bf16.mxu0 %v14266_v57  ;;  %v14090_v53 = vcombine.high %v4872_v12, %v4876_v23  ;;  %v14089_v7 = vcombine.low %v4872_v12, %v4876_v23  ;;  %v14217_v57 = vcombine.low %v5000_v20, %v5004_v21  ;;  %v4944_v23 = vld [vmem:[#allocation7 + $0x640] sm:$0xff] }
 0x3c4   :  { %7906 = vmatpush1.bf16.msra.mxu1 %v14121_v48  ;;  %v14338_v48 = vcombine.high %v5120_v43, %v5124_v13  ;;  %v5088_v47 = vld [vmem:[#allocation7 + $0xac0] sm:$0xff] }
 0x3c5   :  { %7907 = vmatprep.subr.bf16.mxu1 %v14114_v63  ;;  %v5116_v63 = vld [vmem:[#allocation7 + $0xba0] sm:$0xff] }
 0x3c6   :  { %7943 = vmatpush1.bf16.msra.mxu0 %v14265_v15  ;;  %v4964_v15 = vld [vmem:[#allocation7 + $0x6e0] sm:$0xff] }
 0x3c7   :  { %7944 = vmatprep.subr.bf16.mxu0 %v14258_v18  ;;  %v14337_v18 = vcombine.low %v5120_v43, %v5124_v13  ;;  %v14178_v40 = vcombine.high %v4960_v33, %v4964_v15  ;;  %v14177_v44 = vcombine.low %v4960_v33, %v4964_v15  ;;  %v5080_v4 = vld [vmem:[#allocation7 + $0xa80] sm:$0xff]  ;;  %v14020_v15 = vcombine.high %v16440_v55, %v16444_v28  ;;  %v4765_v55 = vld [vmem:[#allocation7 + $0xa8] sm:$0xff] }
 0x3c8   :  { %7908 = vmatpush1.bf16.msra.mxu1 %v14113_v36  ;;  %v14330_v36 = vcombine.high %v5112_v29, %v5116_v63  ;;  %v5072_v21 = vld [vmem:[#allocation7 + $0xa40] sm:$0xff] }
 0x3c9   :  { %7909 = vmatprep.subr.bf16.mxu1 %v14106_v39  ;;  %v5108_v39 = vld [vmem:[#allocation7 + $0xb60] sm:$0xff] }
 0x3ca   :  { %7945 = vmatpush1.bf16.msra.mxu0 %v14257_v42  ;;  %v4956_v42 = vld [vmem:[#allocation7 + $0x6a0] sm:$0xff] }
 0x3cb   :  { %7946 = vmatprep.subr.bf16.mxu0 %v14250_v31  ;;  %v14329_v31 = vcombine.low %v5112_v29, %v5116_v63  ;;  %v14170_v12 = vcombine.high %v4952_v41, %v4956_v42  ;;  %v14169_v49 = vcombine.low %v4952_v41, %v4956_v42  ;;  %v16463_v41 = vld [vmem:[#allocation7 + $0x5c8] sm:$0xff] }
 0x3cc   :  { %7910 = vmatpush1.bf16.msra.mxu1 %v14105_v35  ;;  %v14322_v35 = vcombine.high %v5104_v38, %v5108_v39 }
 0x3cd   :  { %7911 = vmatprep.subr.bf16.mxu1 %v14098_v58  ;;  %v5100_v58 = vld [vmem:[#allocation7 + $0xb20] sm:$0xff] }
 0x3ce   :  { %7947 = vmatpush1.bf16.msra.mxu0 %v14249_v17  ;;  %v4948_v17 = vld [vmem:[#allocation7 + $0x660] sm:$0xff] }
 0x3cf   :  { %7948 = vmatprep.subr.bf16.mxu0 %v14242_v52  ;;  %v14321_v52 = vcombine.low %v5104_v38, %v5108_v39  ;;  %v14162_v50 = vcombine.high %v4944_v23, %v4948_v17  ;;  %v14161_v59 = vcombine.low %v4944_v23, %v4948_v17  ;;  %v5160_v23 = vld [vmem:[#allocation7 + $0xd00] sm:$0xff] }
 0x3d0   :  { %7912 = vmatpush1.bf16.msra.mxu1 %v14097_v46  ;;  %v14314_v46 = vcombine.high %v5096_v0, %v5100_v58  ;;  %v5164_v17 = vld [vmem:[#allocation7 + $0xd20] sm:$0xff] }
 0x3d1   :  { %7913 = vmatprep.subr.bf16.mxu1 %v14090_v53  ;;  %v5092_v53 = vld [vmem:[#allocation7 + $0xae0] sm:$0xff] }
 0x3d2   :  { %7949 = vmatpush1.bf16.msra.mxu0 %v14241_v56  ;;  %v4940_v56 = vld [vmem:[#allocation7 + $0x620] sm:$0xff]  ;;  %v14305_v6 = vcombine.low %v5088_v47, %v5092_v53 }
 0x3d3   :  { %7950 = vmatprep.subr.bf16.mxu0 %v14234_v62  ;;  %v14313_v62 = vcombine.low %v5096_v0, %v5100_v58  ;;  %v14154_v11 = vcombine.high %v4936_v54, %v4940_v56  ;;  %v14153_v20 = vcombine.low %v4936_v54, %v4940_v56  ;;  %v5144_v54 = vld [vmem:[#allocation7 + $0xc80] sm:$0xff] }
 0x3d4   :  { %7914 = vmatpush1.bf16.msra.mxu1 %v14089_v7  ;;  %v14306_v7 = vcombine.high %v5088_v47, %v5092_v53  ;;  %v5156_v47 = vld [vmem:[#allocation7 + $0xce0] sm:$0xff]  ;;  %v14377_v53 = vcombine.low %v5160_v23, %v5164_v17 }
 0x3d5   :  { %7915 = vmatprep.subr.bf16.mxu1 %v14210_v5  ;;  %v5084_v5 = vld [vmem:[#allocation7 + $0xaa0] sm:$0xff] }
 0x3d6   :  { %7951 = vmatpush1.bf16.msra.mxu0 %v14233_v8  ;;  %v5184_v8 = vld [vmem:[#allocation7 + $0xdc0] sm:$0xff]  ;;  %v14297_v10 = vcombine.low %v5080_v4, %v5084_v5 }
 0x3d7   :  { %7952 = vmatprep.subr.bf16.mxu0 %v14226_v9  ;;  %v5188_v9 = vld [vmem:[#allocation7 + $0xde0] sm:$0xff] }
 0x3d8   :  { %7916 = vmatpush2.bf16.msra.mxu1 %v14209_v19  ;;  %v14298_v19 = vcombine.high %v5080_v4, %v5084_v5  ;;  %v14402_v60 = vcombine.high %v5184_v8, %v5188_v9  ;;  %v5148_v56 = vld [vmem:[#allocation7 + $0xca0] sm:$0xff] }
 0x3d9   :  { %7917 = vmatprep.subr.bf16.mxu1 %v14202_v22  ;;  %v5076_v22 = vld [vmem:[#allocation7 + $0xa60] sm:$0xff]  ;;  %v14361_v5 = vcombine.low %v5144_v54, %v5148_v56 }
 0x3da   :  { %7953 = vmatpush1.bf16.msra.mxu0 %v14225_v34  ;;  %v14290_v34 = vcombine.high %v5072_v21, %v5076_v22  ;;  %v14289_v43 = vcombine.low %v5072_v21, %v5076_v22  ;;  %v5140_v4 = vld [vmem:[#allocation7 + $0xc60] sm:$0xff] }
 0x3db   :  { %7954 = vmatprep.subr.bf16.mxu0 %v14218_v24  ;;  %v5064_v24 = vld [vmem:[#allocation7 + $0xa00] sm:$0xff] }
 0x3dc   :  { %7918 = vmatpush2.bf16.msra.mxu1 %v14201_v25  ;;  %v5068_v25 = vld [vmem:[#allocation7 + $0xa20] sm:$0xff] }
 0x3dd   :  { %7919 = vmatprep.subr.bf16.mxu1 %v14194_v16  ;;  %v14282_v27 = vcombine.high %v5064_v24, %v5068_v25  ;;  %v14281_v29 = vcombine.low %v5064_v24, %v5068_v25  ;;  %v5252_v21 = vld [vmem:[#allocation7 + $0xfe0] sm:$0xff] }
 0x3de   :  { %7955 = vmatpush1.bf16.msra.mxu0 %v14217_v57 }
 0x3df   :  { %7956 = vmatprep.subr.bf16.mxu0 %v14338_v48 }
 0x3e0   :  { %7920 = vmatpush2.bf16.msra.mxu1 %v14193_v1 }
 0x3e1   :  { %7921 = vmatprep.subr.bf16.mxu1 %v14186_v32 }
 0x3e2   :  { %7957 = vmatpush2.bf16.msra.mxu0 %v14337_v18 }
 0x3e3   :  { %7958 = vmatprep.subr.bf16.mxu0 %v14330_v36  ;;  %v5176_v36 = vld [vmem:[#allocation7 + $0xd80] sm:$0xff] }
 0x3e4   :  { %7922 = vmatpush2.bf16.msra.mxu1 %v14185_v37  ;;  %v5180_v37 = vld [vmem:[#allocation7 + $0xda0] sm:$0xff] }
 0x3e5   :  { %7923 = vmatprep.subr.bf16.mxu1 %v14178_v40  ;;  %v14401_v40 = vcombine.low %v5184_v8, %v5188_v9  ;;  %v14393_v58 = vcombine.low %v5176_v36, %v5180_v37  ;;  %v5132_v8 = vld [vmem:[#allocation7 + $0xc20] sm:$0xff] }
 0x3e6   :  { %7959 = vmatpush2.bf16.msra.mxu0 %v14329_v31  ;;  %v14394_v31 = vcombine.high %v5176_v36, %v5180_v37  ;;  %v5208_v36 = vld [vmem:[#allocation7 + $0xe80] sm:$0xff] }
 0x3e7   :  { %7960 = vmatprep.subr.bf16.mxu0 %v14322_v35  ;;  %v5168_v35 = vld [vmem:[#allocation7 + $0xd40] sm:$0xff] }
 0x3e8   :  { %7924 = vmatpush2.bf16.msra.mxu1 %v14177_v44  ;;  %v5172_v44 = vld [vmem:[#allocation7 + $0xd60] sm:$0xff] }
 0x3e9   :  { %7925 = vmatprep.subr.bf16.mxu1 %v14170_v12  ;;  %v14386_v12 = vcombine.high %v5168_v35, %v5172_v44  ;;  %v5212_v37 = vld [vmem:[#allocation7 + $0xea0] sm:$0xff] }
 0x3ea   :  { %7961 = vmatpush2.bf16.msra.mxu0 %v14321_v52  ;;  %v14385_v52 = vcombine.low %v5168_v35, %v5172_v44  ;;  %v14425_v35 = vcombine.low %v5208_v36, %v5212_v37 }
 0x3eb   :  { %7962 = vmatprep.subr.bf16.mxu0 %v14314_v46  ;;  %v14378_v46 = vcombine.high %v5160_v23, %v5164_v17 }
 0x3ec   :  { %7926 = vmatpush2.bf16.msra.mxu1 %v14169_v49  ;;  %v5152_v49 = vld [vmem:[#allocation7 + $0xcc0] sm:$0xff] }
 0x3ed   :  { %7927 = vmatprep.subr.bf16.mxu1 %v14162_v50  ;;  %v14370_v50 = vcombine.high %v5152_v49, %v5156_v47 }
 0x3ee   :  { %7963 = vmatpush2.bf16.msra.mxu0 %v14313_v62  ;;  %v14369_v62 = vcombine.low %v5152_v49, %v5156_v47 }
 0x3ef   :  { %7964 = vmatprep.subr.bf16.mxu0 %v14306_v7  ;;  %v14362_v7 = vcombine.high %v5144_v54, %v5148_v56 }
 0x3f0   :  { %7928 = vmatpush2.bf16.msra.mxu1 %v14161_v59  ;;  %v5136_v59 = vld [vmem:[#allocation7 + $0xc40] sm:$0xff] }
 0x3f1   :  { %7929 = vmatprep.subr.bf16.mxu1 %v14154_v11  ;;  %v14354_v11 = vcombine.high %v5136_v59, %v5140_v4  ;;  %v14353_v9 = vcombine.low %v5136_v59, %v5140_v4  ;;  %v4797_v59 = vld [vmem:[#allocation7 + $0x1a8] sm:$0xff] }
 0x3f2   :  { %7965 = vmatpush2.bf16.msra.mxu0 %v14305_v6  ;;  %v5128_v6 = vld [vmem:[#allocation7 + $0xc00] sm:$0xff] }
 0x3f3   :  { %7966 = vmatprep.subr.bf16.mxu0 %v14298_v19  ;;  %v14346_v19 = vcombine.high %v5128_v6, %v5132_v8  ;;  %v14345_v22 = vcombine.low %v5128_v6, %v5132_v8  ;;  %v4789_v6 = vld [vmem:[#allocation7 + $0x168] sm:$0xff] }
 0x3f4   :  { %7930 = vmatpush2.bf16.msra.mxu1 %v14153_v20  ;;  %v5248_v20 = vld [vmem:[#allocation7 + $0xfc0] sm:$0xff] }
 0x3f5   :  { %7981 = vmatprep.subr.bf16.mxu1 %v14402_v60  ;;  %v14466_v60 = vcombine.high %v5248_v20, %v5252_v21  ;;  %v14465_v24 = vcombine.low %v5248_v20, %v5252_v21  ;;  %v4781_v20 = vld [vmem:[#allocation7 + $0x128] sm:$0xff] }
 0x3f6   :  { %7967 = vmatpush2.bf16.msra.mxu0 %v14297_v10  ;;  %v5240_v10 = vld [vmem:[#allocation7 + $0xf80] sm:$0xff] }
 0x3f7   :  { %v4557_v13 = vpop.f32.mrf.mxu1  ;;  %v16453_v16 = vpop.f32.mrf.mxu0  ;;  %7968 = vmatprep.subr.bf16.mxu0 %v14290_v34  ;;  %v5244_v34 = vld [vmem:[#allocation7 + $0xfa0] sm:$0xff] }
 0x3f8   :  { %v4558_v14 = vadd.f32 %v4557_v13, %v16417_v51  ;;  %v14458_v25 = vcombine.high %v5240_v10, %v5244_v34  ;;  %v5236_v13 = vld [vmem:[#allocation7 + $0xf60] sm:$0xff] }
 0x3f9   :  { %v4559_v57 = vpop.f32.mrf.mxu1  ;;  %v16456_v48 = vpop.f32.mrf.mxu0 }
 0x3fa   :  { %v4560_v1 = vadd.f32 %v4559_v57, %v16421_v3  ;;  %7969 = vmatpush2.bf16.msra.mxu0 %v14289_v43  ;;  %v4730_v63 = vmax.f32 %v4558_v14, 0.0  ;;  %v16465_v3 = vld [vmem:[#allocation7 + $0x5e8] sm:$0xff]  ;;  %v5232_v43 = vld [vmem:[#allocation7 + $0xf40] sm:$0xff] }
 0x3fb   :  { %v4561_v32 = vpop.f32.mrf.mxu1  ;;  %v4684_v33 = vpop.f32.mrf.mxu0  ;;  %7970 = vmatprep.subr.bf16.mxu0 %v14282_v27  ;;  %v14147_v0 = vcombine.low %v16463_v41, %v16465_v3  ;;  %v14457_v27 = vcombine.low %v5240_v10, %v5244_v34  ;;  %v14450_v14 = vcombine.high %v5232_v43, %v5236_v13  ;;  %v5224_v57 = vld [vmem:[#allocation7 + $0xf00] sm:$0xff]  ;;  %v14148_v56 = vcombine.high %v16463_v41, %v16465_v3  ;;  %v4773_v10 = vld [vmem:[#allocation7 + $0xe8] sm:$0xff] }
 0x3fc   :  { %v4731_v18 = vmax.f32 %v4560_v1, 0.0  ;;  %v16467_v42 = vpack.c.bf16 %v4730_v63, %v4730_v63  ;;  %v5228_v1 = vld [vmem:[#allocation7 + $0xf20] sm:$0xff] }
 0x3fd   :  { %v4562_v38 = vpop.f32.mrf.mxu1  ;;  %v4685_v39 = vpop.f32.mrf.mxu0  ;;  %v14442_v63 = vcombine.high %v5224_v57, %v5228_v1  ;;  %v5216_v32 = vld [vmem:[#allocation7 + $0xec0] sm:$0xff] }
 0x3fe   :  { %v16461_v51 = vpack.c.bf16 %v4731_v18, %v4731_v18  ;;  %7971 = vmatpush2.bf16.msra.mxu0 %v14281_v29  ;;  %v14449_v29 = vcombine.low %v5232_v43, %v5236_v13  ;;  %v5220_v33 = vld [vmem:[#allocation7 + $0xee0] sm:$0xff]  ;;  %v14426_v39 = vcombine.high %v5208_v36, %v5212_v37  ;;  %v4753_v43 = vld [vmem:[#allocation7 + $0x48] sm:$0xff] }
 0x3ff   :  { %8022 = vmatprep.subr.bf16.mxu0 %v14020_v15  ;;  %v14441_v15 = vcombine.low %v5224_v57, %v5228_v1  ;;  %v14434_v18 = vcombine.high %v5216_v32, %v5220_v33  ;;  %v14433_v38 = vcombine.low %v5216_v32, %v5220_v33  ;;  %v4757_v13 = vld [vmem:[#allocation7 + $0x68] sm:$0xff] }
 0x400   :  { %7931 = vmatprep.mubr.bf16.mxu1 %v16461_v51  ;;  %v4745_v57 = vld [vmem:[#allocation7 + $0x8] sm:$0xff] }
 0x401   :  { %7932 = vmatmul.mubr.bf16.vlgmr.msra.gmra.mxu1 %v16467_v42  ;;  %v4749_v1 = vld [vmem:[#allocation7 + $0x28] sm:$0xff] }
 0x402   :  { %7982 = vmatpush1.bf16.msra.mxu1 %v14401_v40  ;;  %v5200_v40 = vld [vmem:[#allocation7 + $0xe40] sm:$0xff]  ;;  %v4865_v32 = vld [vmem:[#allocation7 + $0x3c8] sm:$0xff] }
 0x403   :  { %7983 = vmatprep.subr.bf16.mxu1 %v14394_v31  ;;  %v5204_v31 = vld [vmem:[#allocation7 + $0xe60] sm:$0xff]  ;;  %v4869_v33 = vld [vmem:[#allocation7 + $0x3e8] sm:$0xff] }
 0x404   :  { %v14418_v44 = vcombine.high %v5200_v40, %v5204_v31  ;;  %v14417_v23 = vcombine.low %v5200_v40, %v5204_v31  ;;  %v4857_v36 = vld [vmem:[#allocation7 + $0x388] sm:$0xff] }
 0x405   :  { %v4861_v37 = vld [vmem:[#allocation7 + $0x3a8] sm:$0xff] }
 0x406   :  { %7984 = vmatpush1.bf16.msra.mxu1 %v14393_v58  ;;  %v5192_v58 = vld [vmem:[#allocation7 + $0xe00] sm:$0xff]  ;;  %v4849_v40 = vld [vmem:[#allocation7 + $0x348] sm:$0xff] }
 0x407   :  { %7985 = vmatprep.subr.bf16.mxu1 %v14386_v12  ;;  %v5196_v12 = vld [vmem:[#allocation7 + $0xe20] sm:$0xff]  ;;  %v4853_v31 = vld [vmem:[#allocation7 + $0x368] sm:$0xff] }
 0x40a   :  { %7986 = vmatpush1.bf16.msra.mxu1 %v14385_v52  ;;  %v14410_v52 = vcombine.high %v5192_v58, %v5196_v12 }
 0x40b   :  { %7987 = vmatprep.subr.bf16.mxu1 %v14378_v46 }
 0x40e   :  { %7988 = vmatpush1.bf16.msra.mxu1 %v14377_v53  ;;  %v14409_v53 = vcombine.low %v5192_v58, %v5196_v12  ;;  %v4841_v58 = vld [vmem:[#allocation7 + $0x308] sm:$0xff] }
 0x40f   :  { %7989 = vmatprep.subr.bf16.mxu1 %v14370_v50  ;;  %v4845_v12 = vld [vmem:[#allocation7 + $0x328] sm:$0xff] }
 0x412   :  { %7990 = vmatpush1.bf16.msra.mxu1 %v14369_v62 }
 0x413   :  { %7991 = vmatprep.subr.bf16.mxu1 %v14362_v7  ;;  %v4793_v7 = vld [vmem:[#allocation7 + $0x188] sm:$0xff] }
 0x414   :  { %v14011_v8 = vcombine.low %v4793_v7, %v4797_v59 }
 0x416   :  { %7992 = vmatpush1.bf16.msra.mxu1 %v14361_v5 }
 0x417   :  { %7993 = vmatprep.subr.bf16.mxu1 %v14354_v11 }
 0x41a   :  { %7994 = vmatpush1.bf16.msra.mxu1 %v14353_v9 }
 0x41b   :  { %7995 = vmatprep.subr.bf16.mxu1 %v14346_v19  ;;  %v4777_v19 = vld [vmem:[#allocation7 + $0x108] sm:$0xff] }
 0x41c   :  { %v13995_v34 = vcombine.low %v4777_v19, %v4781_v20 }
 0x41e   :  { %7996 = vmatpush1.bf16.msra.mxu1 %v14345_v22  ;;  %v13996_v22 = vcombine.high %v4777_v19, %v4781_v20  ;;  %v5057_v20 = vld [vmem:[#allocation7 + $0x9c8] sm:$0xff] }
 0x41f   :  { %7997 = vmatprep.subr.bf16.mxu1 %v14466_v60  ;;  %v4769_v60 = vld [vmem:[#allocation7 + $0xc8] sm:$0xff] }
 0x420   :  { %v13987_v28 = vcombine.low %v4769_v60, %v4773_v10 }
 0x422   :  { %7998 = vmatpush2.bf16.msra.mxu1 %v14465_v24  ;;  %v13988_v24 = vcombine.high %v4769_v60, %v4773_v10 }
 0x423   :  { %7999 = vmatprep.subr.bf16.mxu1 %v14458_v25  ;;  %v4761_v25 = vld [vmem:[#allocation7 + $0x88] sm:$0xff] }
 0x426   :  { %8000 = vmatpush2.bf16.msra.mxu1 %v14457_v27  ;;  %v13979_v27 = vcombine.low %v4761_v25, %v4765_v55 }
 0x427   :  { %8001 = vmatprep.subr.bf16.mxu1 %v14450_v14  ;;  %v13972_v14 = vcombine.high %v4753_v43, %v4757_v13 }
 0x42a   :  { %8002 = vmatpush2.bf16.msra.mxu1 %v14449_v29  ;;  %v13971_v29 = vcombine.low %v4753_v43, %v4757_v13  ;;  %v4925_v43 = vld [vmem:[#allocation7 + $0x5a8] sm:$0xff] }
 0x42b   :  { %8003 = vmatprep.subr.bf16.mxu1 %v14442_v63  ;;  %v13964_v63 = vcombine.high %v4745_v57, %v4749_v1  ;;  %v5049_v13 = vld [vmem:[#allocation7 + $0x988] sm:$0xff] }
 0x42e   :  { %8004 = vmatpush2.bf16.msra.mxu1 %v14441_v15  ;;  %v13963_v15 = vcombine.low %v4745_v57, %v4749_v1 }
 0x42f   :  { %8005 = vmatprep.subr.bf16.mxu1 %v14434_v18  ;;  %v14084_v18 = vcombine.high %v4865_v32, %v4869_v33 }
 0x432   :  { %8006 = vmatpush2.bf16.msra.mxu1 %v14433_v38  ;;  %v14083_v38 = vcombine.low %v4865_v32, %v4869_v33  ;;  %v5041_v32 = vld [vmem:[#allocation7 + $0x948] sm:$0xff] }
 0x433   :  { %8007 = vmatprep.subr.bf16.mxu1 %v14426_v39  ;;  %v14076_v39 = vcombine.high %v4857_v36, %v4861_v37  ;;  %v5045_v33 = vld [vmem:[#allocation7 + $0x968] sm:$0xff] }
 0x434   :  { %v14259_v3 = vcombine.low %v5041_v32, %v5045_v33 }
 0x436   :  { %8008 = vmatpush2.bf16.msra.mxu1 %v14425_v35  ;;  %v14075_v35 = vcombine.low %v4857_v36, %v4861_v37 }
 0x437   :  { %v4639_v17 = vpop.f32.mrf.mxu1  ;;  %8009 = vmatprep.subr.bf16.mxu1 %v14418_v44  ;;  %v14068_v44 = vcombine.high %v4849_v40, %v4853_v31 }
 0x438   :  { %v4640_v46 = vadd.f32 %v4639_v17, %v16431_v2  ;;  %v14012_v2 = vcombine.high %v4793_v7, %v4797_v59  ;;  %v14060_v17 = vcombine.high %v4841_v58, %v4845_v12  ;;  %v4821_v7 = vld [vmem:[#allocation7 + $0x268] sm:$0xff] }
 0x439   :  { %v4641_v49 = vpop.f32.mrf.mxu1 }
 0x43a   :  { %v4642_v47 = vadd.f32 %v4641_v49, %v16435_v61  ;;  %8010 = vmatpush2.bf16.msra.mxu1 %v14417_v23  ;;  %v4732_v50 = vmax.f32 %v4640_v46, 0.0  ;;  %v4785_v61 = vld [vmem:[#allocation7 + $0x148] sm:$0xff]  ;;  %v14067_v23 = vcombine.low %v4849_v40, %v4853_v31  ;;  %v14059_v49 = vcombine.low %v4841_v58, %v4845_v12 }
 0x43b   :  { %v4643_v54 = vpop.f32.mrf.mxu1  ;;  %8011 = vmatprep.subr.bf16.mxu1 %v14410_v52  ;;  %v14004_v9 = vcombine.high %v4785_v61, %v4789_v6  ;;  %v14003_v21 = vcombine.low %v4785_v61, %v4789_v6  ;;  %v4833_v52 = vld [vmem:[#allocation7 + $0x2c8] sm:$0xff] }
 0x43c   :  { %v4733_v62 = vmax.f32 %v4642_v47, 0.0  ;;  %v16479_v11 = vpack.c.bf16 %v4732_v50, %v4732_v50  ;;  %v4837_v46 = vld [vmem:[#allocation7 + $0x2e8] sm:$0xff] }
 0x43d   :  { %v4644_v4 = vpop.f32.mrf.mxu1  ;;  %v14052_v47 = vcombine.high %v4833_v52, %v4837_v46  ;;  %v4829_v50 = vld [vmem:[#allocation7 + $0x2a8] sm:$0xff]  ;;  %v14051_v54 = vcombine.low %v4833_v52, %v4837_v46 }
 0x43e   :  { %v16477_v5 = vpack.c.bf16 %v4733_v62, %v4733_v62  ;;  %8012 = vmatpush2.bf16.msra.mxu1 %v14409_v53  ;;  %v4825_v53 = vld [vmem:[#allocation7 + $0x288] sm:$0xff] }
 0x43f   :  { %8063 = vmatprep.subr.bf16.mxu1 %v14148_v56  ;;  %v14044_v56 = vcombine.high %v4825_v53, %v4829_v50  ;;  %v4817_v62 = vld [vmem:[#allocation7 + $0x248] sm:$0xff]  ;;  %v14043_v59 = vcombine.low %v4825_v53, %v4829_v50 }
 0x440   :  { %7972 = vmatprep.mubr.bf16.mxu0 %v16477_v5  ;;  %v14036_v4 = vcombine.high %v4817_v62, %v4821_v7  ;;  %v4813_v61 = vld [vmem:[#allocation7 + $0x228] sm:$0xff]  ;;  %v14035_v6 = vcombine.low %v4817_v62, %v4821_v7 }
 0x441   :  { %7973 = vmatmul.mubr.bf16.vlgmr.msra.gmra.mxu0 %v16479_v11  ;;  %v4905_v40 = vld [vmem:[#allocation7 + $0x508] sm:$0xff] }
 0x442   :  { %8023 = vmatpush1.bf16.msra.mxu0 %v14019_v30  ;;  %8054 = vmatprep.mubr.bf16.mxu0 %v16438_v26  ;;  %v13980_v30 = vcombine.high %v4761_v25, %v4765_v55  ;;  %v4909_v31 = vld [vmem:[#allocation7 + $0x528] sm:$0xff] }
 0x443   :  { %8024 = vmatprep.subr.bf16.mxu0 %v14012_v2  ;;  %v4809_v2 = vld [vmem:[#allocation7 + $0x208] sm:$0xff]  ;;  %v14124_v12 = vcombine.high %v4905_v40, %v4909_v31 }
 0x444   :  { %v14027_v10 = vcombine.low %v4809_v2, %v4813_v61  ;;  %v4901_v52 = vld [vmem:[#allocation7 + $0x4e8] sm:$0xff] }
 0x445   :  { %v5025_v46 = vld [vmem:[#allocation7 + $0x8c8] sm:$0xff] }
 0x446   :  { %8025 = vmatpush1.bf16.msra.mxu0 %v14011_v8  ;;  %v4893_v62 = vld [vmem:[#allocation7 + $0x4a8] sm:$0xff] }
 0x447   :  { %8026 = vmatprep.subr.bf16.mxu0 %v14004_v9  ;;  %v14028_v9 = vcombine.high %v4809_v2, %v4813_v61  ;;  %v5017_v7 = vld [vmem:[#allocation7 + $0x888] sm:$0xff] }
 0x44a   :  { %8027 = vmatpush1.bf16.msra.mxu0 %v14003_v21  ;;  %v5061_v21 = vld [vmem:[#allocation7 + $0x9e8] sm:$0xff] }
 0x44b   :  { %8028 = vmatprep.subr.bf16.mxu0 %v13996_v22  ;;  %v14276_v25 = vcombine.high %v5057_v20, %v5061_v21 }
 0x44e   :  { %8029 = vmatpush1.bf16.msra.mxu0 %v13995_v34 }
 0x44f   :  { %8030 = vmatprep.subr.bf16.mxu0 %v13988_v24 }
 0x452   :  { %8031 = vmatpush1.bf16.msra.mxu0 %v13987_v28  ;;  %v4921_v28 = vld [vmem:[#allocation7 + $0x588] sm:$0xff] }
 0x453   :  { %8032 = vmatprep.subr.bf16.mxu0 %v13980_v30  ;;  %v14140_v1 = vcombine.high %v4921_v28, %v4925_v43 }
 0x456   :  { %8033 = vmatpush1.bf16.msra.mxu0 %v13979_v27  ;;  %v5053_v27 = vld [vmem:[#allocation7 + $0x9a8] sm:$0xff] }
 0x457   :  { %8034 = vmatprep.subr.bf16.mxu0 %v13972_v14  ;;  %v14267_v36 = vcombine.low %v5049_v13, %v5053_v27 }
 0x45a   :  { %8035 = vmatpush1.bf16.msra.mxu0 %v13971_v29  ;;  %v14268_v29 = vcombine.high %v5049_v13, %v5053_v27  ;;  %v4993_v27 = vld [vmem:[#allocation7 + $0x7c8] sm:$0xff] }
 0x45b   :  { %8036 = vmatprep.subr.bf16.mxu0 %v13964_v63  ;;  %v4917_v63 = vld [vmem:[#allocation7 + $0x568] sm:$0xff] }
 0x45e   :  { %8037 = vmatpush1.bf16.msra.mxu0 %v13963_v15 }
 0x45f   :  { %8038 = vmatprep.subr.bf16.mxu0 %v14084_v18  ;;  %v14139_v18 = vcombine.low %v4921_v28, %v4925_v43 }
 0x462   :  { %8039 = vmatpush2.bf16.msra.mxu0 %v14083_v38 }
 0x463   :  { %8040 = vmatprep.subr.bf16.mxu0 %v14076_v39  ;;  %v14260_v39 = vcombine.high %v5041_v32, %v5045_v33 }
 0x466   :  { %8041 = vmatpush2.bf16.msra.mxu0 %v14075_v35  ;;  %v5033_v35 = vld [vmem:[#allocation7 + $0x908] sm:$0xff] }
 0x467   :  { %8042 = vmatprep.subr.bf16.mxu0 %v14068_v44  ;;  %v5037_v44 = vld [vmem:[#allocation7 + $0x928] sm:$0xff] }
 0x468   :  { %v14251_v53 = vcombine.low %v5033_v35, %v5037_v44 }
 0x46a   :  { %8043 = vmatpush2.bf16.msra.mxu0 %v14067_v23  ;;  %v14252_v23 = vcombine.high %v5033_v35, %v5037_v44 }
 0x46b   :  { %8044 = vmatprep.subr.bf16.mxu0 %v14060_v17  ;;  %v4897_v17 = vld [vmem:[#allocation7 + $0x4c8] sm:$0xff] }
 0x46c   :  { %v14116_v50 = vcombine.high %v4897_v17, %v4901_v52 }
 0x46e   :  { %8045 = vmatpush2.bf16.msra.mxu0 %v14059_v49  ;;  %v5029_v49 = vld [vmem:[#allocation7 + $0x8e8] sm:$0xff] }
 0x46f   :  { %8046 = vmatprep.subr.bf16.mxu0 %v14052_v47  ;;  %v14123_v47 = vcombine.low %v4905_v40, %v4909_v31  ;;  %v14243_v2 = vcombine.low %v5025_v46, %v5029_v49 }
 0x472   :  { %8047 = vmatpush2.bf16.msra.mxu0 %v14051_v54  ;;  %v14244_v54 = vcombine.high %v5025_v46, %v5029_v49  ;;  %v4969_v46 = vld [vmem:[#allocation7 + $0x708] sm:$0xff] }
 0x473   :  { %8048 = vmatprep.subr.bf16.mxu0 %v14044_v56  ;;  %v4889_v56 = vld [vmem:[#allocation7 + $0x488] sm:$0xff] }
 0x474   :  { %v14108_v61 = vcombine.high %v4889_v56, %v4893_v62  ;;  %v4973_v49 = vld [vmem:[#allocation7 + $0x728] sm:$0xff] }
 0x476   :  { %8049 = vmatpush2.bf16.msra.mxu0 %v14043_v59  ;;  %v5021_v59 = vld [vmem:[#allocation7 + $0x8a8] sm:$0xff] }
 0x477   :  { %v4721_v8 = vpop.f32.mrf.mxu1  ;;  %8050 = vmatprep.subr.bf16.mxu0 %v14036_v4  ;;  %v14115_v4 = vcombine.low %v4897_v17, %v4901_v52 }
 0x478   :  { %v4722_v19 = vadd.f32 %v4721_v8, %v16453_v16  ;;  %v14275_v16 = vcombine.low %v5057_v20, %v5061_v21  ;;  %v4881_v8 = vld [vmem:[#allocation7 + $0x448] sm:$0xff]  ;;  %v14107_v21 = vcombine.low %v4889_v56, %v4893_v62  ;;  %v14188_v56 = vcombine.high %v4969_v46, %v4973_v49 }
 0x479   :  { %v4723_v22 = vpop.f32.mrf.mxu1  ;;  %v5013_v20 = vld [vmem:[#allocation7 + $0x868] sm:$0xff] }
 0x47a   :  { %v4724_v60 = vadd.f32 %v4723_v22, %v16456_v48  ;;  %8051 = vmatpush2.bf16.msra.mxu0 %v14035_v6  ;;  %v4734_v34 = vmax.f32 %v4722_v19, 0.0  ;;  %v4913_v48 = vld [vmem:[#allocation7 + $0x548] sm:$0xff]  ;;  %v14236_v6 = vcombine.high %v5017_v7, %v5021_v59  ;;  %v14235_v22 = vcombine.low %v5017_v7, %v5021_v59 }
 0x47b   :  { %v4725_v24 = vpop.f32.mrf.mxu1  ;;  %8052 = vmatprep.subr.bf16.mxu0 %v14028_v9  ;;  %v14132_v38 = vcombine.high %v4913_v48, %v4917_v63  ;;  %v14131_v41 = vcombine.low %v4913_v48, %v4917_v63  ;;  %v4885_v9 = vld [vmem:[#allocation7 + $0x468] sm:$0xff] }
 0x47c   :  { %v4735_v55 = vmax.f32 %v4724_v60, 0.0  ;;  %v16491_v57 = vpack.c.bf16 %v4734_v34, %v4734_v34  ;;  %v5009_v19 = vld [vmem:[#allocation7 + $0x848] sm:$0xff]  ;;  %v14100_v60 = vcombine.high %v4881_v8, %v4885_v9  ;;  %v14099_v28 = vcombine.low %v4881_v8, %v4885_v9 }
 0x47d   :  { %v4726_v30 = vpop.f32.mrf.mxu1  ;;  %v4873_v34 = vld [vmem:[#allocation7 + $0x408] sm:$0xff] }
 0x47e   :  { %v16489_v14 = vpack.c.bf16 %v4735_v55, %v4735_v55  ;;  %8053 = vmatpush2.bf16.msra.mxu0 %v14027_v10  ;;  %v14228_v10 = vcombine.high %v5009_v19, %v5013_v20  ;;  %v4877_v24 = vld [vmem:[#allocation7 + $0x428] sm:$0xff]  ;;  %v14227_v30 = vcombine.low %v5009_v19, %v5013_v20 }
 0x47f   :  { %8104 = vmatprep.subr.bf16.mxu0 %v14276_v25  ;;  %v5001_v25 = vld [vmem:[#allocation7 + $0x808] sm:$0xff]  ;;  %v14092_v43 = vcombine.high %v4873_v34, %v4877_v24 }
 0x480   :  { %8013 = vmatprep.mubr.bf16.mxu1 %v16489_v14  ;;  %v5005_v55 = vld [vmem:[#allocation7 + $0x828] sm:$0xff] }
 0x481   :  { %8055 = vmatmul.mubr.bf16.vlgmr.msra.gmra.mxu0 %v16442_v45  ;;  %8014 = vmatmul.mubr.bf16.vlgmr.msra.gmra.mxu1 %v16491_v57  ;;  %v16496_v15 = vpop.f32.mrf.mxu0  ;;  %v14220_v13 = vcombine.high %v5001_v25, %v5005_v55  ;;  %v5121_v48 = vld [vmem:[#allocation7 + $0xbc8] sm:$0xff]  ;;  %v14219_v63 = vcombine.low %v5001_v25, %v5005_v55  ;;  %v5258_v55 = vlaneseq }
 0x482   :  { %8064 = vmatpush1.bf16.msra.mxu1 %v14147_v0  ;;  %8105 = vmatpush1.bf16.msra.mxu0 %v14275_v16  ;;  %v4997_v16 = vld [vmem:[#allocation7 + $0x7e8] sm:$0xff] }
 0x483   :  { %8136 = vmatprep.mubr.bf16.mxu0 %v16477_v5  ;;  %8095 = vmatprep.mubr.bf16.mxu1 %v16461_v51  ;;  %v16503_v37 = vpop.f32.mrf.mxu0  ;;  %v14212_v32 = vcombine.high %v4993_v27, %v4997_v16  ;;  %v14211_v40 = vcombine.low %v4993_v27, %v4997_v16  ;;  %v4961_v7 = vld [vmem:[#allocation7 + $0x6c8] sm:$0xff] }
 0x484   :  { %8065 = vmatprep.subr.bf16.mxu1 %v14140_v1  ;;  %8106 = vmatprep.subr.bf16.mxu0 %v14268_v29  ;;  %v5125_v1 = vld [vmem:[#allocation7 + $0xbe8] sm:$0xff]  ;;  %v14091_v29 = vcombine.low %v4873_v34, %v4877_v24 }
 0x485   :  { %v7896_v58 = vpop.f32.mrf.mxu0  ;;  %v14340_v33 = vcombine.high %v5121_v48, %v5125_v1  ;;  %v14339_v31 = vcombine.low %v5121_v48, %v5125_v1  ;;  %v4965_v59 = vld [vmem:[#allocation7 + $0x6e8] sm:$0xff] }
 0x486   :  { %8066 = vmatpush1.bf16.msra.mxu1 %v14139_v18  ;;  %8107 = vmatpush1.bf16.msra.mxu0 %v14267_v36  ;;  %v4985_v18 = vld [vmem:[#allocation7 + $0x788] sm:$0xff]  ;;  %v14180_v8 = vcombine.high %v4961_v7, %v4965_v59 }
 0x487   :  { %v7897_v0 = vpop.f32.mrf.mxu0  ;;  %8067 = vmatprep.subr.bf16.mxu1 %v14132_v38  ;;  %8108 = vmatprep.subr.bf16.mxu0 %v14260_v39  ;;  %v4989_v36 = vld [vmem:[#allocation7 + $0x7a8] sm:$0xff] }
 0x488   :  { %v5113_v38 = vld [vmem:[#allocation7 + $0xb88] sm:$0xff]  ;;  %v14204_v35 = vcombine.high %v4985_v18, %v4989_v36 }
 0x489   :  { %v5117_v39 = vld [vmem:[#allocation7 + $0xba8] sm:$0xff] }
 0x48a   :  { %8068 = vmatpush1.bf16.msra.mxu1 %v14131_v41  ;;  %8109 = vmatpush1.bf16.msra.mxu0 %v14259_v3  ;;  %v14332_v44 = vcombine.high %v5113_v38, %v5117_v39  ;;  %v4977_v58 = vld [vmem:[#allocation7 + $0x748] sm:$0xff] }
 0x48b   :  { %8069 = vmatprep.subr.bf16.mxu1 %v14124_v12  ;;  %8110 = vmatprep.subr.bf16.mxu0 %v14252_v23  ;;  %v4981_v41 = vld [vmem:[#allocation7 + $0x768] sm:$0xff]  ;;  %v14203_v12 = vcombine.low %v4985_v18, %v4989_v36  ;;  %v14331_v23 = vcombine.low %v5113_v38, %v5117_v39 }
 0x48c   :  { %v5105_v3 = vld [vmem:[#allocation7 + $0xb48] sm:$0xff]  ;;  %v14196_v17 = vcombine.high %v4977_v58, %v4981_v41 }
 0x48d   :  { %v5109_v0 = vld [vmem:[#allocation7 + $0xb68] sm:$0xff] }
 0x48e   :  { %8070 = vmatpush1.bf16.msra.mxu1 %v14123_v47  ;;  %8111 = vmatpush1.bf16.msra.mxu0 %v14251_v53  ;;  %v14324_v52 = vcombine.high %v5105_v3, %v5109_v0  ;;  %v5097_v47 = vld [vmem:[#allocation7 + $0xb08] sm:$0xff] }
 0x48f   :  { %8071 = vmatprep.subr.bf16.mxu1 %v14116_v50  ;;  %8112 = vmatprep.subr.bf16.mxu0 %v14244_v54  ;;  %v5101_v53 = vld [vmem:[#allocation7 + $0xb28] sm:$0xff]  ;;  %v14195_v50 = vcombine.low %v4977_v58, %v4981_v41  ;;  %v14323_v54 = vcombine.low %v5105_v3, %v5109_v0  ;;  %v4806_v58 = vld [vmem:[#allocation7 + $0x1f0] sm:$0xff]  ;;  %v5256_v41 = vld [vmem:[#allocation8] sm:$0xff] }
 0x490   :  { %v14316_v62 = vcombine.high %v5097_v47, %v5101_v53  ;;  %v4953_v19 = vld [vmem:[#allocation7 + $0x688] sm:$0xff] }
 0x491   :  { %v4957_v20 = vld [vmem:[#allocation7 + $0x6a8] sm:$0xff] }
 0x492   :  { %8072 = vmatpush1.bf16.msra.mxu1 %v14115_v4  ;;  %8113 = vmatpush1.bf16.msra.mxu0 %v14243_v2  ;;  %v5089_v4 = vld [vmem:[#allocation7 + $0xac8] sm:$0xff]  ;;  %v14172_v34 = vcombine.high %v4953_v19, %v4957_v20 }
 0x493   :  { %8073 = vmatprep.subr.bf16.mxu1 %v14108_v61  ;;  %8114 = vmatprep.subr.bf16.mxu0 %v14236_v6  ;;  %v5093_v2 = vld [vmem:[#allocation7 + $0xae8] sm:$0xff]  ;;  %v14187_v61 = vcombine.low %v4969_v46, %v4973_v49  ;;  %v14315_v6 = vcombine.low %v5097_v47, %v5101_v53  ;;  %v4794_v47 = vld [vmem:[#allocation7 + $0x190] sm:$0xff] }
 0x494   :  { %v14308_v9 = vcombine.high %v5089_v4, %v5093_v2  ;;  %v4945_v25 = vld [vmem:[#allocation7 + $0x648] sm:$0xff]  ;;  %v4798_v53 = vld [vmem:[#allocation7 + $0x1b0] sm:$0xff] }
 0x495   :  { %v4937_v1 = vld [vmem:[#allocation7 + $0x608] sm:$0xff] }
 0x496   :  { %8074 = vmatpush1.bf16.msra.mxu1 %v14107_v21  ;;  %8115 = vmatpush1.bf16.msra.mxu0 %v14235_v22  ;;  %v5081_v21 = vld [vmem:[#allocation7 + $0xa88] sm:$0xff] }
 0x497   :  { %8075 = vmatprep.subr.bf16.mxu1 %v14100_v60  ;;  %8116 = vmatprep.subr.bf16.mxu0 %v14228_v10  ;;  %v5085_v22 = vld [vmem:[#allocation7 + $0xaa8] sm:$0xff]  ;;  %v14179_v60 = vcombine.low %v4961_v7, %v4965_v59  ;;  %v14307_v10 = vcombine.low %v5089_v4, %v5093_v2  ;;  %v14014_v59 = vcombine.high %v4794_v47, %v4798_v53 }
 0x498   :  { %v14300_v24 = vcombine.high %v5081_v21, %v5085_v22  ;;  %v14299_v27 = vcombine.low %v5081_v21, %v5085_v22  ;;  %v5177_v46 = vld [vmem:[#allocation7 + $0xd88] sm:$0xff]  ;;  %v14013_v21 = vcombine.low %v4794_v47, %v4798_v53 }
 0x499   :  { %v5181_v49 = vld [vmem:[#allocation7 + $0xda8] sm:$0xff] }
 0x49a   :  { %8076 = vmatpush1.bf16.msra.mxu1 %v14099_v28  ;;  %8117 = vmatpush1.bf16.msra.mxu0 %v14227_v30  ;;  %v4949_v28 = vld [vmem:[#allocation7 + $0x668] sm:$0xff]  ;;  %v14396_v7 = vcombine.high %v5177_v46, %v5181_v49 }
 0x49b   :  { %8077 = vmatprep.subr.bf16.mxu1 %v14092_v43  ;;  %8118 = vmatprep.subr.bf16.mxu0 %v14220_v13  ;;  %v5073_v30 = vld [vmem:[#allocation7 + $0xa48] sm:$0xff]  ;;  %v14171_v13 = vcombine.low %v4953_v19, %v4957_v20  ;;  %v14164_v16 = vcombine.high %v4945_v25, %v4949_v28  ;;  %v14163_v18 = vcombine.low %v4945_v25, %v4949_v28  ;;  %v4778_v25 = vld [vmem:[#allocation7 + $0x110] sm:$0xff] }
 0x49c   :  { %v5077_v43 = vld [vmem:[#allocation7 + $0xa68] sm:$0xff]  ;;  %v14395_v20 = vcombine.low %v5177_v46, %v5181_v49 }
 0x49d   :  { %v14292_v48 = vcombine.high %v5073_v30, %v5077_v43  ;;  %v14291_v36 = vcombine.low %v5073_v30, %v5077_v43  ;;  %v5169_v4 = vld [vmem:[#allocation7 + $0xd48] sm:$0xff] }
 0x49e   :  { %8078 = vmatpush1.bf16.msra.mxu1 %v14091_v29  ;;  %8119 = vmatpush1.bf16.msra.mxu0 %v14219_v63  ;;  %v16505_v29 = vshrl.u32 %v5258_v55, 7  ;;  %v4941_v63 = vld [vmem:[#allocation7 + $0x628] sm:$0xff]  ;;  %v4782_v55 = vld [vmem:[#allocation7 + $0x130] sm:$0xff] }
 0x49f   :  { %8079 = vmatprep.subr.bf16.mxu1 %v14212_v32  ;;  %8120 = vmatprep.subr.bf16.mxu0 %v14340_v33  ;;  %v5065_v32 = vld [vmem:[#allocation7 + $0xa08] sm:$0xff]  ;;  %v14156_v38 = vcombine.high %v4937_v1, %v4941_v63  ;;  %v14155_v0 = vcombine.low %v4937_v1, %v4941_v63  ;;  %v4770_v1 = vld [vmem:[#allocation7 + $0xd0] sm:$0xff] }
 0x4a0   :  { %v5069_v33 = vld [vmem:[#allocation7 + $0xa28] sm:$0xff]  ;;  %v5264_v3 = vsub.s32 1, %v16505_v29  ;;  %v4774_v63 = vld [vmem:[#allocation7 + $0xf0] sm:$0xff] }
 0x4a1   :  { %v14284_v39 = vcombine.high %v5065_v32, %v5069_v33  ;;  %v5173_v2 = vld [vmem:[#allocation7 + $0xd68] sm:$0xff] }
 0x4a2   :  { %8080 = vmatpush2.bf16.msra.mxu1 %v14211_v40  ;;  %8121 = vmatpush2.bf16.msra.mxu0 %v14339_v31  ;;  %v5185_v40 = vld [vmem:[#allocation7 + $0xdc8] sm:$0xff]  ;;  %v5260_v31 = vsub.s32 0, %v16505_v29  ;;  %v14388_v22 = vcombine.high %v5169_v4, %v5173_v2  ;;  %v14387_v28 = vcombine.low %v5169_v4, %v5173_v2 }
 0x4a3   :  { %8081 = vmatprep.subr.bf16.mxu1 %v14204_v35  ;;  %8122 = vmatprep.subr.bf16.mxu0 %v14332_v44  ;;  %v5189_v35 = vld [vmem:[#allocation7 + $0xde8] sm:$0xff]  ;;  %v4802_v44 = vld [vmem:[#allocation7 + $0x1d0] sm:$0xff] }
 0x4a4   :  { %v5129_v47 = vld [vmem:[#allocation7 + $0xc08] sm:$0xff] }
 0x4a5   :  { %v5133_v53 = vld [vmem:[#allocation7 + $0xc28] sm:$0xff] }
 0x4a6   :  { %8082 = vmatpush2.bf16.msra.mxu1 %v14203_v12  ;;  %8123 = vmatpush2.bf16.msra.mxu0 %v14331_v23  ;;  %v14283_v12 = vcombine.low %v5065_v32, %v5069_v33  ;;  %v14404_v23 = vcombine.high %v5185_v40, %v5189_v35  ;;  %v13997_v33 = vcombine.low %v4778_v25, %v4782_v55  ;;  %v5249_v4 = vld [vmem:[#allocation7 + $0xfc8] sm:$0xff] }
 0x4a7   :  { %8083 = vmatprep.subr.bf16.mxu1 %v14196_v17  ;;  %8124 = vmatprep.subr.bf16.mxu0 %v14324_v52  ;;  %v14022_v17 = vcombine.high %v4802_v44, %v4806_v58  ;;  %v5261_v52 = vrot.slane %v5256_v41, %v5260_v31  ;;  %v4766_v31 = vld [vmem:[#allocation7 + $0xb0] sm:$0xff]  ;;  %v5253_v2 = vld [vmem:[#allocation7 + $0xfe8] sm:$0xff] }
 0x4aa   :  { %8084 = vmatpush2.bf16.msra.mxu1 %v14195_v50  ;;  %8125 = vmatpush2.bf16.msra.mxu0 %v14323_v54  ;;  %v5265_v50 = vrot.slane %v5256_v41, %v5264_v3  ;;  %v14403_v54 = vcombine.low %v5185_v40, %v5189_v35  ;;  %v4762_v40 = vld [vmem:[#allocation7 + $0x90] sm:$0xff]  ;;  %v5137_v3 = vld [vmem:[#allocation7 + $0xc48] sm:$0xff] }
 0x4ab   :  { %8085 = vmatprep.subr.bf16.mxu1 %v14188_v56  ;;  %8126 = vmatprep.subr.bf16.mxu0 %v14316_v62  ;;  %v14021_v56 = vcombine.low %v4802_v44, %v4806_v58  ;;  %v7893_v62 = vadd.f32 %v16496_v15, %v5261_v52  ;;  %v13989_v44 = vcombine.low %v4770_v1, %v4774_v63 }
 0x4ac   :  { %v13982_v41 = vcombine.high %v4762_v40, %v4766_v31  ;;  %v13981_v52 = vcombine.low %v4762_v40, %v4766_v31  ;;  %v5217_v31 = vld [vmem:[#allocation7 + $0xec8] sm:$0xff] }
 0x4ae   :  { %8086 = vmatpush2.bf16.msra.mxu1 %v14187_v61  ;;  %8127 = vmatpush2.bf16.msra.mxu0 %v14315_v6  ;;  %v4786_v6 = vld [vmem:[#allocation7 + $0x150] sm:$0xff] }
 0x4af   :  { %8087 = vmatprep.subr.bf16.mxu1 %v14180_v8  ;;  %8128 = vmatprep.subr.bf16.mxu0 %v14308_v9  ;;  %v4790_v8 = vld [vmem:[#allocation7 + $0x170] sm:$0xff]  ;;  %v7895_v9 = vadd.f32 %v16503_v37, %v5265_v50 }
 0x4b0   :  { %v14005_v43 = vcombine.low %v4786_v6, %v4790_v8  ;;  %v4746_v50 = vld [vmem:[#allocation7 + $0x10] sm:$0xff] }
 0x4b2   :  { %8088 = vmatpush2.bf16.msra.mxu1 %v14179_v60  ;;  %8129 = vmatpush2.bf16.msra.mxu0 %v14307_v10  ;;  %v14006_v10 = vcombine.high %v4786_v6, %v4790_v8  ;;  %v4870_v6 = vld [vmem:[#allocation7 + $0x3f0] sm:$0xff]  ;;  %v14347_v8 = vcombine.low %v5129_v47, %v5133_v53 }
 0x4b3   :  { %8089 = vmatprep.subr.bf16.mxu1 %v14172_v34  ;;  %8130 = vmatprep.subr.bf16.mxu0 %v14300_v24  ;;  %v5161_v34 = vld [vmem:[#allocation7 + $0xd08] sm:$0xff] }
 0x4b4   :  { %v5165_v24 = vld [vmem:[#allocation7 + $0xd28] sm:$0xff] }
 0x4b5   :  { %v14379_v32 = vcombine.low %v5161_v34, %v5165_v24 }
 0x4b6   :  { %8090 = vmatpush2.bf16.msra.mxu1 %v14171_v13  ;;  %8131 = vmatpush2.bf16.msra.mxu0 %v14299_v27  ;;  %v14380_v13 = vcombine.high %v5161_v34, %v5165_v24  ;;  %v13998_v27 = vcombine.high %v4778_v25, %v4782_v55  ;;  %v4862_v34 = vld [vmem:[#allocation7 + $0x3b0] sm:$0xff]  ;;  %v14467_v24 = vcombine.low %v5249_v4, %v5253_v2 }
 0x4b7   :  { %8091 = vmatprep.subr.bf16.mxu1 %v14164_v16  ;;  %8132 = vmatprep.subr.bf16.mxu0 %v14292_v48  ;;  %v5153_v16 = vld [vmem:[#allocation7 + $0xcc8] sm:$0xff] }
 0x4b8   :  { %v5157_v48 = vld [vmem:[#allocation7 + $0xce8] sm:$0xff] }
 0x4b9   :  { %v14371_v35 = vcombine.low %v5153_v16, %v5157_v48 }
 0x4ba   :  { %8092 = vmatpush2.bf16.msra.mxu1 %v14163_v18  ;;  %8133 = vmatpush2.bf16.msra.mxu0 %v14291_v36  ;;  %v14372_v18 = vcombine.high %v5153_v16, %v5157_v48  ;;  %v13990_v36 = vcombine.high %v4770_v1, %v4774_v63  ;;  %v5225_v63 = vld [vmem:[#allocation7 + $0xf08] sm:$0xff] }
 0x4bb   :  { %8093 = vmatprep.subr.bf16.mxu1 %v14156_v38  ;;  %8134 = vmatprep.subr.bf16.mxu0 %v14284_v39  ;;  %v5145_v38 = vld [vmem:[#allocation7 + $0xc88] sm:$0xff] }
 0x4bc   :  { %v5149_v39 = vld [vmem:[#allocation7 + $0xca8] sm:$0xff] }
 0x4bd   :  { %v14364_v58 = vcombine.high %v5145_v38, %v5149_v39 }
 0x4be   :  { %8094 = vmatpush2.bf16.msra.mxu1 %v14155_v0  ;;  %8135 = vmatpush2.bf16.msra.mxu0 %v14283_v12  ;;  %v5141_v0 = vld [vmem:[#allocation7 + $0xc68] sm:$0xff]  ;;  %v4754_v12 = vld [vmem:[#allocation7 + $0x50] sm:$0xff] }
 0x4bf   :  { %8145 = vmatprep.subr.bf16.mxu1 %v14404_v23  ;;  %8186 = vmatprep.subr.bf16.mxu0 %v14022_v17  ;;  %v4758_v23 = vld [vmem:[#allocation7 + $0x70] sm:$0xff]  ;;  %v14363_v17 = vcombine.low %v5145_v38, %v5149_v39  ;;  %v14356_v46 = vcombine.high %v5137_v3, %v5141_v0 }
 0x4c0   :  { %v13974_v49 = vcombine.high %v4754_v12, %v4758_v23 }
 0x4c1   :  { %8096 = vmatmul.mubr.bf16.vlgmr.msra.gmra.mxu1 %v16467_v42  ;;  %8137 = vmatmul.mubr.bf16.vlgmr.msra.gmra.mxu0 %v16479_v11  ;;  %v7933_v61 = vpop.f32.mrf.mxu1 }
 0x4c2   :  { %v16513_v19 = vadd.f32 %v7933_v61, %v7893_v62  ;;  %8146 = vmatpush1.bf16.msra.mxu1 %v14403_v54  ;;  %8177 = vmatprep.mubr.bf16.mxu1 %v16489_v14  ;;  %v4750_v54 = vld [vmem:[#allocation7 + $0x30] sm:$0xff]  ;;  %v13973_v62 = vcombine.low %v4754_v12, %v4758_v23  ;;  %v5209_v23 = vld [vmem:[#allocation7 + $0xe88] sm:$0xff] }
 0x4c3   :  { %8187 = vmatpush1.bf16.msra.mxu0 %v14021_v56  ;;  %8218 = vmatprep.mubr.bf16.mxu0 %v16438_v26  ;;  %v7935_v15 = vpop.f32.mrf.mxu1  ;;  %v14355_v56 = vcombine.low %v5137_v3, %v5141_v0  ;;  %v4866_v61 = vld [vmem:[#allocation7 + $0x3d0] sm:$0xff] }
 0x4c4   :  { %v16517_v60 = vadd.f32 %v7935_v15, %v7895_v9  ;;  %8147 = vmatprep.subr.bf16.mxu1 %v14396_v7  ;;  %8188 = vmatprep.subr.bf16.mxu0 %v14014_v59  ;;  %v14348_v7 = vcombine.high %v5129_v47, %v5133_v53  ;;  %v13966_v59 = vcombine.high %v4746_v50, %v4750_v54 }
 0x4c5   :  { %v7937_v37 = vpop.f32.mrf.mxu1  ;;  %v13965_v9 = vcombine.low %v4746_v50, %v4750_v54  ;;  %v14086_v15 = vcombine.high %v4866_v61, %v4870_v6  ;;  %v5201_v54 = vld [vmem:[#allocation7 + $0xe48] sm:$0xff] }
 0x4c6   :  { %8148 = vmatpush1.bf16.msra.mxu1 %v14395_v20  ;;  %v14468_v20 = vcombine.high %v5249_v4, %v5253_v2  ;;  %v14085_v37 = vcombine.low %v4866_v61, %v4870_v6  ;;  %v5193_v6 = vld [vmem:[#allocation7 + $0xe08] sm:$0xff] }
 0x4c7   :  { %8189 = vmatpush1.bf16.msra.mxu0 %v14013_v21  ;;  %v7938_v30 = vpop.f32.mrf.mxu1  ;;  %8149 = vmatprep.subr.bf16.mxu1 %v14388_v22  ;;  %v5241_v21 = vld [vmem:[#allocation7 + $0xf88] sm:$0xff] }
 0x4c8   :  { %8190 = vmatprep.subr.bf16.mxu0 %v14006_v10  ;;  %v5245_v22 = vld [vmem:[#allocation7 + $0xfa8] sm:$0xff]  ;;  %v4858_v10 = vld [vmem:[#allocation7 + $0x390] sm:$0xff] }
 0x4c9   :  { %v14460_v25 = vcombine.high %v5241_v21, %v5245_v22  ;;  %v14078_v55 = vcombine.high %v4858_v10, %v4862_v34  ;;  %v5237_v30 = vld [vmem:[#allocation7 + $0xf68] sm:$0xff]  ;;  %v14077_v16 = vcombine.low %v4858_v10, %v4862_v34  ;;  %v4930_v34 = vld [vmem:[#allocation7 + $0x5d0] sm:$0xff] }
 0x4ca   :  { %8150 = vmatpush1.bf16.msra.mxu1 %v14387_v28  ;;  %v5233_v28 = vld [vmem:[#allocation7 + $0xf48] sm:$0xff] }
 0x4cb   :  { %8191 = vmatpush1.bf16.msra.mxu0 %v14005_v43  ;;  %8151 = vmatprep.subr.bf16.mxu1 %v14380_v13  ;;  %v4850_v43 = vld [vmem:[#allocation7 + $0x350] sm:$0xff]  ;;  %v14452_v48 = vcombine.high %v5233_v28, %v5237_v30 }
 0x4cc   :  { %8192 = vmatprep.subr.bf16.mxu0 %v13998_v27  ;;  %v4854_v13 = vld [vmem:[#allocation7 + $0x370] sm:$0xff]  ;;  %v14459_v27 = vcombine.low %v5241_v21, %v5245_v22 }
 0x4cd   :  { %v14070_v1 = vcombine.high %v4850_v43, %v4854_v13  ;;  %v14069_v38 = vcombine.low %v4850_v43, %v4854_v13  ;;  %v4922_v13 = vld [vmem:[#allocation7 + $0x590] sm:$0xff] }
 0x4ce   :  { %8152 = vmatpush1.bf16.msra.mxu1 %v14379_v32  ;;  %v5229_v32 = vld [vmem:[#allocation7 + $0xf28] sm:$0xff] }
 0x4cf   :  { %8193 = vmatpush1.bf16.msra.mxu0 %v13997_v33  ;;  %8153 = vmatprep.subr.bf16.mxu1 %v14372_v18  ;;  %v4842_v33 = vld [vmem:[#allocation7 + $0x310] sm:$0xff]  ;;  %v14444_v39 = vcombine.high %v5225_v63, %v5229_v32 }
 0x4d0   :  { %8194 = vmatprep.subr.bf16.mxu0 %v13990_v36  ;;  %v4846_v18 = vld [vmem:[#allocation7 + $0x330] sm:$0xff]  ;;  %v14451_v36 = vcombine.low %v5233_v28, %v5237_v30 }
 0x4d1   :  { %v14062_v40 = vcombine.high %v4842_v33, %v4846_v18  ;;  %v14061_v3 = vcombine.low %v4842_v33, %v4846_v18  ;;  %v4914_v33 = vld [vmem:[#allocation7 + $0x550] sm:$0xff] }
 0x4d2   :  { %8154 = vmatpush1.bf16.msra.mxu1 %v14371_v35  ;;  %v5221_v35 = vld [vmem:[#allocation7 + $0xee8] sm:$0xff]  ;;  %v4918_v18 = vld [vmem:[#allocation7 + $0x570] sm:$0xff] }
 0x4d3   :  { %8195 = vmatpush1.bf16.msra.mxu0 %v13989_v44  ;;  %8155 = vmatprep.subr.bf16.mxu1 %v14364_v58  ;;  %v4834_v44 = vld [vmem:[#allocation7 + $0x2d0] sm:$0xff]  ;;  %v14436_v0 = vcombine.high %v5217_v31, %v5221_v35 }
 0x4d4   :  { %8196 = vmatprep.subr.bf16.mxu0 %v13982_v41  ;;  %v4838_v58 = vld [vmem:[#allocation7 + $0x2f0] sm:$0xff]  ;;  %v14443_v41 = vcombine.low %v5225_v63, %v5229_v32 }
 0x4d5   :  { %v14054_v12 = vcombine.high %v4834_v44, %v4838_v58  ;;  %v14053_v47 = vcombine.low %v4834_v44, %v4838_v58  ;;  %v14134_v58 = vcombine.high %v4914_v33, %v4918_v18 }
 0x4d6   :  { %8156 = vmatpush1.bf16.msra.mxu1 %v14363_v17  ;;  %v5213_v17 = vld [vmem:[#allocation7 + $0xea8] sm:$0xff] }
 0x4d7   :  { %8197 = vmatpush1.bf16.msra.mxu0 %v13981_v52  ;;  %8157 = vmatprep.subr.bf16.mxu1 %v14356_v46  ;;  %v4826_v52 = vld [vmem:[#allocation7 + $0x290] sm:$0xff]  ;;  %v14428_v53 = vcombine.high %v5209_v23, %v5213_v17 }
 0x4d8   :  { %8198 = vmatprep.subr.bf16.mxu0 %v13974_v49  ;;  %v4830_v46 = vld [vmem:[#allocation7 + $0x2b0] sm:$0xff]  ;;  %v14435_v49 = vcombine.low %v5217_v31, %v5221_v35 }
 0x4d9   :  { %v14046_v50 = vcombine.high %v4826_v52, %v4830_v46  ;;  %v14045_v4 = vcombine.low %v4826_v52, %v4830_v46  ;;  %v14133_v52 = vcombine.low %v4914_v33, %v4918_v18  ;;  %v4994_v33 = vld [vmem:[#allocation7 + $0x7d0] sm:$0xff] }
 0x4da   :  { %8158 = vmatpush1.bf16.msra.mxu1 %v14355_v56  ;;  %v5205_v56 = vld [vmem:[#allocation7 + $0xe68] sm:$0xff]  ;;  %v4998_v18 = vld [vmem:[#allocation7 + $0x7f0] sm:$0xff] }
 0x4db   :  { %8199 = vmatpush1.bf16.msra.mxu0 %v13973_v62  ;;  %8159 = vmatprep.subr.bf16.mxu1 %v14348_v7  ;;  %v4818_v62 = vld [vmem:[#allocation7 + $0x250] sm:$0xff]  ;;  %v14420_v2 = vcombine.high %v5201_v54, %v5205_v56 }
 0x4dc   :  { %8200 = vmatprep.subr.bf16.mxu0 %v13966_v59  ;;  %v4822_v7 = vld [vmem:[#allocation7 + $0x270] sm:$0xff]  ;;  %v14427_v59 = vcombine.low %v5209_v23, %v5213_v17 }
 0x4dd   :  { %v14038_v61 = vcombine.high %v4818_v62, %v4822_v7  ;;  %v14037_v21 = vcombine.low %v4818_v62, %v4822_v7  ;;  %v5034_v23 = vld [vmem:[#allocation7 + $0x910] sm:$0xff] }
 0x4de   :  { %8160 = vmatpush1.bf16.msra.mxu1 %v14347_v8  ;;  %v5197_v8 = vld [vmem:[#allocation7 + $0xe28] sm:$0xff]  ;;  %v5038_v17 = vld [vmem:[#allocation7 + $0x930] sm:$0xff] }
 0x4df   :  { %8201 = vmatpush1.bf16.msra.mxu0 %v13965_v9  ;;  %8161 = vmatprep.subr.bf16.mxu1 %v14468_v20  ;;  %v4810_v9 = vld [vmem:[#allocation7 + $0x210] sm:$0xff]  ;;  %v14412_v22 = vcombine.high %v5193_v6, %v5197_v8 }
 0x4e0   :  { %8202 = vmatprep.subr.bf16.mxu0 %v14086_v15  ;;  %v4814_v20 = vld [vmem:[#allocation7 + $0x230] sm:$0xff]  ;;  %v14419_v15 = vcombine.low %v5201_v54, %v5205_v56 }
 0x4e1   :  { %v14030_v10 = vcombine.high %v4810_v9, %v4814_v20  ;;  %v14029_v28 = vcombine.low %v4810_v9, %v4814_v20  ;;  %v4902_v54 = vld [vmem:[#allocation7 + $0x4f0] sm:$0xff] }
 0x4e2   :  { %8162 = vmatpush2.bf16.msra.mxu1 %v14467_v24  ;;  %v4934_v24 = vld [vmem:[#allocation7 + $0x5f0] sm:$0xff] }
 0x4e3   :  { %8203 = vmatpush2.bf16.msra.mxu0 %v14085_v37  ;;  %8163 = vmatprep.subr.bf16.mxu1 %v14460_v25  ;;  %v5058_v37 = vld [vmem:[#allocation7 + $0x9d0] sm:$0xff]  ;;  %v14150_v30 = vcombine.high %v4930_v34, %v4934_v24 }
 0x4e4   :  { %8204 = vmatprep.subr.bf16.mxu0 %v14078_v55  ;;  %v5062_v25 = vld [vmem:[#allocation7 + $0x9f0] sm:$0xff]  ;;  %v14411_v55 = vcombine.low %v5193_v6, %v5197_v8 }
 0x4e5   :  { %v14278_v43 = vcombine.high %v5058_v37, %v5062_v25  ;;  %v14277_v63 = vcombine.low %v5058_v37, %v5062_v25  ;;  %v5026_v56 = vld [vmem:[#allocation7 + $0x8d0] sm:$0xff] }
 0x4e6   :  { %8164 = vmatpush2.bf16.msra.mxu1 %v14459_v27  ;;  %v4926_v27 = vld [vmem:[#allocation7 + $0x5b0] sm:$0xff] }
 0x4e7   :  { %8205 = vmatpush2.bf16.msra.mxu0 %v14077_v16  ;;  %8165 = vmatprep.subr.bf16.mxu1 %v14452_v48  ;;  %v14149_v16 = vcombine.low %v4930_v34, %v4934_v24  ;;  %v5050_v48 = vld [vmem:[#allocation7 + $0x990] sm:$0xff]  ;;  %v14142_v32 = vcombine.high %v4922_v13, %v4926_v27  ;;  %v14141_v31 = vcombine.low %v4922_v13, %v4926_v27 }
 0x4e8   :  { %8206 = vmatprep.subr.bf16.mxu0 %v14070_v1  ;;  %v5054_v1 = vld [vmem:[#allocation7 + $0x9b0] sm:$0xff] }
 0x4e9   :  { %v14269_v44 = vcombine.low %v5050_v48, %v5054_v1  ;;  %v5030_v62 = vld [vmem:[#allocation7 + $0x8f0] sm:$0xff] }
 0x4ea   :  { %8166 = vmatpush2.bf16.msra.mxu1 %v14451_v36  ;;  %v4894_v6 = vld [vmem:[#allocation7 + $0x4b0] sm:$0xff] }
 0x4eb   :  { %8207 = vmatpush2.bf16.msra.mxu0 %v14069_v38  ;;  %8167 = vmatprep.subr.bf16.mxu1 %v14444_v39  ;;  %v14270_v38 = vcombine.high %v5050_v48, %v5054_v1  ;;  %v5042_v39 = vld [vmem:[#allocation7 + $0x950] sm:$0xff] }
 0x4ec   :  { %8208 = vmatprep.subr.bf16.mxu0 %v14062_v40  ;;  %v5046_v40 = vld [vmem:[#allocation7 + $0x970] sm:$0xff] }
 0x4ed   :  { %v5018_v8 = vld [vmem:[#allocation7 + $0x890] sm:$0xff] }
 0x4ee   :  { %8168 = vmatpush2.bf16.msra.mxu1 %v14443_v41  ;;  %v14262_v41 = vcombine.high %v5042_v39, %v5046_v40  ;;  %v5022_v9 = vld [vmem:[#allocation7 + $0x8b0] sm:$0xff] }
 0x4ef   :  { %8209 = vmatpush2.bf16.msra.mxu0 %v14061_v3  ;;  %8169 = vmatprep.subr.bf16.mxu1 %v14436_v0  ;;  %v4906_v3 = vld [vmem:[#allocation7 + $0x510] sm:$0xff] }
 0x4f0   :  { %8210 = vmatprep.subr.bf16.mxu0 %v14054_v12  ;;  %v4910_v0 = vld [vmem:[#allocation7 + $0x530] sm:$0xff] }
 0x4f1   :  { %v14125_v7 = vcombine.low %v4906_v3, %v4910_v0  ;;  %v4886_v34 = vld [vmem:[#allocation7 + $0x470] sm:$0xff] }
 0x4f2   :  { %8170 = vmatpush2.bf16.msra.mxu1 %v14435_v49  ;;  %v14261_v49 = vcombine.low %v5042_v39, %v5046_v40  ;;  %v5010_v24 = vld [vmem:[#allocation7 + $0x850] sm:$0xff] }
 0x4f3   :  { %8211 = vmatpush2.bf16.msra.mxu0 %v14053_v47  ;;  %8171 = vmatprep.subr.bf16.mxu1 %v14428_v53  ;;  %v14126_v47 = vcombine.high %v4906_v3, %v4910_v0  ;;  %v14254_v53 = vcombine.high %v5034_v23, %v5038_v17  ;;  %v5014_v37 = vld [vmem:[#allocation7 + $0x870] sm:$0xff] }
 0x4f4   :  { %8212 = vmatprep.subr.bf16.mxu0 %v14046_v50  ;;  %v4898_v50 = vld [vmem:[#allocation7 + $0x4d0] sm:$0xff]  ;;  %v14229_v1 = vcombine.low %v5010_v24, %v5014_v37 }
 0x4f5   :  { %v14117_v20 = vcombine.low %v4898_v50, %v4902_v54  ;;  %v4878_v13 = vld [vmem:[#allocation7 + $0x430] sm:$0xff] }
 0x4f6   :  { %8172 = vmatpush2.bf16.msra.mxu1 %v14427_v59  ;;  %v14253_v59 = vcombine.low %v5034_v23, %v5038_v17  ;;  %v5002_v27 = vld [vmem:[#allocation7 + $0x810] sm:$0xff]  ;;  %v14213_v23 = vcombine.low %v4994_v33, %v4998_v18 }
 0x4f7   :  { %8213 = vmatpush2.bf16.msra.mxu0 %v14045_v4  ;;  %8173 = vmatprep.subr.bf16.mxu1 %v14420_v2  ;;  %v14118_v4 = vcombine.high %v4898_v50, %v4902_v54  ;;  %v14246_v2 = vcombine.high %v5026_v56, %v5030_v62  ;;  %v5126_v39 = vld [vmem:[#allocation7 + $0xbf0] sm:$0xff] }
 0x4f8   :  { %8214 = vmatprep.subr.bf16.mxu0 %v14038_v61  ;;  %v4890_v61 = vld [vmem:[#allocation7 + $0x490] sm:$0xff] }
 0x4f9   :  { %v14109_v25 = vcombine.low %v4890_v61, %v4894_v6  ;;  %v4990_v3 = vld [vmem:[#allocation7 + $0x7b0] sm:$0xff] }
 0x4fa   :  { %8174 = vmatpush2.bf16.msra.mxu1 %v14419_v15  ;;  %v14245_v15 = vcombine.low %v5026_v56, %v5030_v62  ;;  %v5114_v0 = vld [vmem:[#allocation7 + $0xb90] sm:$0xff] }
 0x4fb   :  { %8215 = vmatpush2.bf16.msra.mxu0 %v14037_v21  ;;  %8175 = vmatprep.subr.bf16.mxu1 %v14412_v22  ;;  %v14110_v21 = vcombine.high %v4890_v61, %v4894_v6  ;;  %v14238_v22 = vcombine.high %v5018_v8, %v5022_v9  ;;  %v5110_v50 = vld [vmem:[#allocation7 + $0xb70] sm:$0xff] }
 0x4fc   :  { %8216 = vmatprep.subr.bf16.mxu0 %v14030_v10  ;;  %v4882_v10 = vld [vmem:[#allocation7 + $0x450] sm:$0xff] }
 0x4fd   :  { %v14101_v48 = vcombine.low %v4882_v10, %v4886_v34  ;;  %v5102_v61 = vld [vmem:[#allocation7 + $0xb30] sm:$0xff] }
 0x4fe   :  { %8176 = vmatpush2.bf16.msra.mxu1 %v14411_v55  ;;  %v14237_v55 = vcombine.low %v5018_v8, %v5022_v9 }
 0x4ff   :  { %8217 = vmatpush2.bf16.msra.mxu0 %v14029_v28  ;;  %8227 = vmatprep.subr.bf16.mxu1 %v14150_v30  ;;  %v14102_v28 = vcombine.high %v4882_v10, %v4886_v34  ;;  %v14230_v30 = vcombine.high %v5010_v24, %v5014_v37  ;;  %v5094_v10 = vld [vmem:[#allocation7 + $0xaf0] sm:$0xff] }
 0x500   :  { %8268 = vmatprep.subr.bf16.mxu0 %v14278_v43  ;;  %v4874_v43 = vld [vmem:[#allocation7 + $0x410] sm:$0xff] }
 0x501   :  { %8178 = vmatmul.mubr.bf16.vlgmr.msra.gmra.mxu1 %v16491_v57  ;;  %v16520_v36 = vpop.f32.mrf.mxu0  ;;  %v14093_v40 = vcombine.low %v4874_v43, %v4878_v13 }
 0x502   :  { %8219 = vmatmul.mubr.bf16.vlgmr.msra.gmra.mxu0 %v16442_v45  ;;  %8228 = vmatpush1.bf16.msra.mxu1 %v14149_v16  ;;  %v5006_v16 = vld [vmem:[#allocation7 + $0x830] sm:$0xff] }
 0x503   :  { %8259 = vmatprep.mubr.bf16.mxu1 %v16461_v51  ;;  %8269 = vmatpush1.bf16.msra.mxu0 %v14277_v63  ;;  %v16524_v35 = vpop.f32.mrf.mxu0  ;;  %v14094_v63 = vcombine.high %v4874_v43, %v4878_v13  ;;  %v5086_v43 = vld [vmem:[#allocation7 + $0xab0] sm:$0xff] }
 0x504   :  { %8300 = vmatprep.mubr.bf16.mxu0 %v16477_v5  ;;  %8229 = vmatprep.subr.bf16.mxu1 %v14142_v32  ;;  %v14222_v32 = vcombine.high %v5002_v27, %v5006_v16 }
 0x505   :  { %8270 = vmatprep.subr.bf16.mxu0 %v14270_v38  ;;  %v7978_v12 = vpop.f32.mrf.mxu0  ;;  %v5122_v38 = vld [vmem:[#allocation7 + $0xbd0] sm:$0xff] }
 0x506   :  { %8230 = vmatpush1.bf16.msra.mxu1 %v14141_v31  ;;  %v14221_v31 = vcombine.low %v5002_v27, %v5006_v16  ;;  %v5118_v12 = vld [vmem:[#allocation7 + $0xbb0] sm:$0xff]  ;;  %v14341_v17 = vcombine.low %v5122_v38, %v5126_v39 }
 0x507   :  { %8271 = vmatpush1.bf16.msra.mxu0 %v14269_v44  ;;  %v7979_v46 = vpop.f32.mrf.mxu0  ;;  %8231 = vmatprep.subr.bf16.mxu1 %v14134_v58  ;;  %v14214_v44 = vcombine.high %v4994_v33, %v4998_v18  ;;  %v14342_v58 = vcombine.high %v5122_v38, %v5126_v39  ;;  %v14333_v56 = vcombine.low %v5114_v0, %v5118_v12  ;;  %v5078_v33 = vld [vmem:[#allocation7 + $0xa70] sm:$0xff] }
 0x508   :  { %8272 = vmatprep.subr.bf16.mxu0 %v14262_v41  ;;  %v4986_v41 = vld [vmem:[#allocation7 + $0x790] sm:$0xff]  ;;  %v14334_v46 = vcombine.high %v5114_v0, %v5118_v12 }
 0x509   :  { %v14205_v54 = vcombine.low %v4986_v41, %v4990_v3 }
 0x50a   :  { %8232 = vmatpush1.bf16.msra.mxu1 %v14133_v52  ;;  %v14206_v52 = vcombine.high %v4986_v41, %v4990_v3  ;;  %v5070_v41 = vld [vmem:[#allocation7 + $0xa30] sm:$0xff] }
 0x50b   :  { %8273 = vmatpush1.bf16.msra.mxu0 %v14261_v49  ;;  %8233 = vmatprep.subr.bf16.mxu1 %v14126_v47  ;;  %v4978_v49 = vld [vmem:[#allocation7 + $0x750] sm:$0xff] }
 0x50c   :  { %8274 = vmatprep.subr.bf16.mxu0 %v14254_v53  ;;  %v4982_v47 = vld [vmem:[#allocation7 + $0x770] sm:$0xff] }
 0x50d   :  { %v5106_v53 = vld [vmem:[#allocation7 + $0xb50] sm:$0xff]  ;;  %v14198_v62 = vcombine.high %v4978_v49, %v4982_v47  ;;  %v14197_v6 = vcombine.low %v4978_v49, %v4982_v47  ;;  %v4807_v49 = vld [vmem:[#allocation7 + $0x1f8] sm:$0xff] }
 0x50e   :  { %8234 = vmatpush1.bf16.msra.mxu1 %v14125_v7  ;;  %v14326_v7 = vcombine.high %v5106_v53, %v5110_v50  ;;  %v14325_v8 = vcombine.low %v5106_v53, %v5110_v50 }
 0x50f   :  { %8275 = vmatpush1.bf16.msra.mxu0 %v14253_v59  ;;  %8235 = vmatprep.subr.bf16.mxu1 %v14118_v4  ;;  %v4970_v59 = vld [vmem:[#allocation7 + $0x710] sm:$0xff] }
 0x510   :  { %8276 = vmatprep.subr.bf16.mxu0 %v14246_v2  ;;  %v4974_v4 = vld [vmem:[#allocation7 + $0x730] sm:$0xff] }
 0x511   :  { %v5098_v2 = vld [vmem:[#allocation7 + $0xb10] sm:$0xff]  ;;  %v14190_v9 = vcombine.high %v4970_v59, %v4974_v4  ;;  %v14189_v34 = vcombine.low %v4970_v59, %v4974_v4  ;;  %v4795_v59 = vld [vmem:[#allocation7 + $0x198] sm:$0xff] }
 0x512   :  { %8236 = vmatpush1.bf16.msra.mxu1 %v14117_v20  ;;  %v14318_v20 = vcombine.high %v5098_v2, %v5102_v61  ;;  %v14317_v24 = vcombine.low %v5098_v2, %v5102_v61  ;;  %v4799_v4 = vld [vmem:[#allocation7 + $0x1b8] sm:$0xff]  ;;  %v7975_v61 = vadd.f32 %v16520_v36, %v16513_v19 }
 0x513   :  { %8277 = vmatpush1.bf16.msra.mxu0 %v14245_v15  ;;  %8237 = vmatprep.subr.bf16.mxu1 %v14110_v21  ;;  %v4962_v15 = vld [vmem:[#allocation7 + $0x6d0] sm:$0xff] }
 0x514   :  { %8278 = vmatprep.subr.bf16.mxu0 %v14238_v22  ;;  %v4966_v21 = vld [vmem:[#allocation7 + $0x6f0] sm:$0xff] }
 0x515   :  { %v5090_v22 = vld [vmem:[#allocation7 + $0xad0] sm:$0xff]  ;;  %v14182_v37 = vcombine.high %v4962_v15, %v4966_v21  ;;  %v14181_v13 = vcombine.low %v4962_v15, %v4966_v21  ;;  %v14016_v21 = vcombine.high %v4795_v59, %v4799_v4 }
 0x516   :  { %8238 = vmatpush1.bf16.msra.mxu1 %v14109_v25  ;;  %v14310_v25 = vcombine.high %v5090_v22, %v5094_v10  ;;  %v14309_v27 = vcombine.low %v5090_v22, %v5094_v10  ;;  %v4787_v22 = vld [vmem:[#allocation7 + $0x158] sm:$0xff] }
 0x517   :  { %8279 = vmatpush1.bf16.msra.mxu0 %v14237_v55  ;;  %8239 = vmatprep.subr.bf16.mxu1 %v14102_v28  ;;  %v4954_v55 = vld [vmem:[#allocation7 + $0x690] sm:$0xff]  ;;  %v4791_v10 = vld [vmem:[#allocation7 + $0x178] sm:$0xff] }
 0x518   :  { %8280 = vmatprep.subr.bf16.mxu0 %v14230_v30  ;;  %v4958_v28 = vld [vmem:[#allocation7 + $0x6b0] sm:$0xff] }
 0x519   :  { %v5082_v30 = vld [vmem:[#allocation7 + $0xa90] sm:$0xff]  ;;  %v14174_v16 = vcombine.high %v4954_v55, %v4958_v28  ;;  %v14173_v18 = vcombine.low %v4954_v55, %v4958_v28 }
 0x51a   :  { %8240 = vmatpush1.bf16.msra.mxu1 %v14101_v48  ;;  %v14302_v48 = vcombine.high %v5082_v30, %v5086_v43  ;;  %v14301_v38 = vcombine.low %v5082_v30, %v5086_v43  ;;  %v5162_v28 = vld [vmem:[#allocation7 + $0xd10] sm:$0xff] }
 0x51b   :  { %8281 = vmatpush1.bf16.msra.mxu0 %v14229_v1  ;;  %8241 = vmatprep.subr.bf16.mxu1 %v14094_v63  ;;  %v4946_v1 = vld [vmem:[#allocation7 + $0x650] sm:$0xff] }
 0x51c   :  { %8282 = vmatprep.subr.bf16.mxu0 %v14222_v32  ;;  %v4950_v63 = vld [vmem:[#allocation7 + $0x670] sm:$0xff] }
 0x51d   :  { %v5074_v32 = vld [vmem:[#allocation7 + $0xa50] sm:$0xff]  ;;  %v14166_v39 = vcombine.high %v4946_v1, %v4950_v63  ;;  %v14165_v3 = vcombine.low %v4946_v1, %v4950_v63 }
 0x51e   :  { %8242 = vmatpush1.bf16.msra.mxu1 %v14093_v40  ;;  %v14294_v40 = vcombine.high %v5074_v32, %v5078_v33  ;;  %v14293_v0 = vcombine.low %v5074_v32, %v5078_v33  ;;  %v5166_v30 = vld [vmem:[#allocation7 + $0xd30] sm:$0xff] }
 0x51f   :  { %8283 = vmatpush1.bf16.msra.mxu0 %v14221_v31  ;;  %8243 = vmatprep.subr.bf16.mxu1 %v14214_v44  ;;  %v4938_v31 = vld [vmem:[#allocation7 + $0x610] sm:$0xff]  ;;  %v14382_v32 = vcombine.high %v5162_v28, %v5166_v30 }
 0x520   :  { %8284 = vmatprep.subr.bf16.mxu0 %v14342_v58  ;;  %v4942_v44 = vld [vmem:[#allocation7 + $0x630] sm:$0xff] }
 0x521   :  { %v5066_v58 = vld [vmem:[#allocation7 + $0xa10] sm:$0xff]  ;;  %v14158_v12 = vcombine.high %v4938_v31, %v4942_v44  ;;  %v14157_v47 = vcombine.low %v4938_v31, %v4942_v44  ;;  %v14381_v31 = vcombine.low %v5162_v28, %v5166_v30  ;;  %v4859_v28 = vld [vmem:[#allocation7 + $0x398] sm:$0xff] }
 0x522   :  { %8244 = vmatpush2.bf16.msra.mxu1 %v14213_v23  ;;  %v14286_v23 = vcombine.high %v5066_v58, %v5070_v41  ;;  %v14285_v53 = vcombine.low %v5066_v58, %v5070_v41  ;;  %v4863_v30 = vld [vmem:[#allocation7 + $0x3b8] sm:$0xff] }
 0x523   :  { %8285 = vmatpush2.bf16.msra.mxu0 %v14341_v17  ;;  %8245 = vmatprep.subr.bf16.mxu1 %v14206_v52  ;;  %v5186_v17 = vld [vmem:[#allocation7 + $0xdd0] sm:$0xff] }
 0x524   :  { %8286 = vmatprep.subr.bf16.mxu0 %v14334_v46  ;;  %v5190_v52 = vld [vmem:[#allocation7 + $0xdf0] sm:$0xff]  ;;  %v4803_v46 = vld [vmem:[#allocation7 + $0x1d8] sm:$0xff] }
 0x525   :  { %v14406_v50 = vcombine.high %v5186_v17, %v5190_v52  ;;  %v14023_v2 = vcombine.low %v4803_v46, %v4807_v49 }
 0x526   :  { %8246 = vmatpush2.bf16.msra.mxu1 %v14205_v54  ;;  %v14024_v54 = vcombine.high %v4803_v46, %v4807_v49 }
 0x527   :  { %8287 = vmatpush2.bf16.msra.mxu0 %v14333_v56  ;;  %8247 = vmatprep.subr.bf16.mxu1 %v14198_v62  ;;  %v5178_v56 = vld [vmem:[#allocation7 + $0xd90] sm:$0xff] }
 0x528   :  { %8288 = vmatprep.subr.bf16.mxu0 %v14326_v7  ;;  %v5182_v62 = vld [vmem:[#allocation7 + $0xdb0] sm:$0xff]  ;;  %v14405_v7 = vcombine.low %v5186_v17, %v5190_v52 }
 0x529   :  { %v14397_v19 = vcombine.low %v5178_v56, %v5182_v62 }
 0x52a   :  { %8248 = vmatpush2.bf16.msra.mxu1 %v14197_v6  ;;  %v14398_v6 = vcombine.high %v5178_v56, %v5182_v62 }
 0x52b   :  { %8289 = vmatpush2.bf16.msra.mxu0 %v14325_v8  ;;  %8249 = vmatprep.subr.bf16.mxu1 %v14190_v9  ;;  %v5170_v8 = vld [vmem:[#allocation7 + $0xd50] sm:$0xff] }
 0x52c   :  { %8290 = vmatprep.subr.bf16.mxu0 %v14318_v20  ;;  %v5174_v9 = vld [vmem:[#allocation7 + $0xd70] sm:$0xff] }
 0x52d   :  { %v14390_v55 = vcombine.high %v5170_v8, %v5174_v9 }
 0x52e   :  { %8250 = vmatpush2.bf16.msra.mxu1 %v14189_v34  ;;  %v7977_v34 = vadd.f32 %v16524_v35, %v16517_v60  ;;  %v14008_v35 = vcombine.high %v4787_v22, %v4791_v10 }
 0x52f   :  { %8291 = vmatpush2.bf16.msra.mxu0 %v14317_v24  ;;  %8251 = vmatprep.subr.bf16.mxu1 %v14182_v37 }
 0x530   :  { %8292 = vmatprep.subr.bf16.mxu0 %v14310_v25  ;;  %v14015_v25 = vcombine.low %v4795_v59, %v4799_v4  ;;  %v5130_v4 = vld [vmem:[#allocation7 + $0xc10] sm:$0xff] }
 0x532   :  { %8252 = vmatpush2.bf16.msra.mxu1 %v14181_v13 }
 0x533   :  { %8293 = vmatpush2.bf16.msra.mxu0 %v14309_v27  ;;  %8253 = vmatprep.subr.bf16.mxu1 %v14174_v16  ;;  %v4779_v27 = vld [vmem:[#allocation7 + $0x118] sm:$0xff] }
 0x534   :  { %8294 = vmatprep.subr.bf16.mxu0 %v14302_v48  ;;  %v4783_v16 = vld [vmem:[#allocation7 + $0x138] sm:$0xff]  ;;  %v14389_v48 = vcombine.low %v5170_v8, %v5174_v9 }
 0x535   :  { %v14000_v33 = vcombine.high %v4779_v27, %v4783_v16  ;;  %v13999_v44 = vcombine.low %v4779_v27, %v4783_v16  ;;  %v14080_v16 = vcombine.high %v4859_v28, %v4863_v30 }
 0x536   :  { %8254 = vmatpush2.bf16.msra.mxu1 %v14173_v18  ;;  %v5154_v18 = vld [vmem:[#allocation7 + $0xcd0] sm:$0xff] }
 0x537   :  { %8295 = vmatpush2.bf16.msra.mxu0 %v14301_v38  ;;  %8255 = vmatprep.subr.bf16.mxu1 %v14166_v39  ;;  %v5158_v38 = vld [vmem:[#allocation7 + $0xcf0] sm:$0xff]  ;;  %v4771_v39 = vld [vmem:[#allocation7 + $0xd8] sm:$0xff] }
 0x538   :  { %8296 = vmatprep.subr.bf16.mxu0 %v14294_v40  ;;  %v4775_v40 = vld [vmem:[#allocation7 + $0xf8] sm:$0xff]  ;;  %v14374_v58 = vcombine.high %v5154_v18, %v5158_v38  ;;  %v14373_v17 = vcombine.low %v5154_v18, %v5158_v38 }
 0x539   :  { %v13992_v41 = vcombine.high %v4771_v39, %v4775_v40  ;;  %v13991_v52 = vcombine.low %v4771_v39, %v4775_v40  ;;  %v5226_v39 = vld [vmem:[#allocation7 + $0xf10] sm:$0xff] }
 0x53a   :  { %8256 = vmatpush2.bf16.msra.mxu1 %v14165_v3  ;;  %v5146_v3 = vld [vmem:[#allocation7 + $0xc90] sm:$0xff] }
 0x53b   :  { %8297 = vmatpush2.bf16.msra.mxu0 %v14293_v0  ;;  %8257 = vmatprep.subr.bf16.mxu1 %v14158_v12  ;;  %v5150_v0 = vld [vmem:[#allocation7 + $0xcb0] sm:$0xff]  ;;  %v4763_v12 = vld [vmem:[#allocation7 + $0x98] sm:$0xff] }
 0x53c   :  { %8298 = vmatprep.subr.bf16.mxu0 %v14286_v23  ;;  %v4767_v23 = vld [vmem:[#allocation7 + $0xb8] sm:$0xff]  ;;  %v14366_v46 = vcombine.high %v5146_v3, %v5150_v0  ;;  %v14365_v56 = vcombine.low %v5146_v3, %v5150_v0  ;;  %v5230_v40 = vld [vmem:[#allocation7 + $0xf30] sm:$0xff] }
 0x53d   :  { %v13984_v49 = vcombine.high %v4763_v12, %v4767_v23  ;;  %v13983_v62 = vcombine.low %v4763_v12, %v4767_v23  ;;  %v14446_v3 = vcombine.high %v5226_v39, %v5230_v40  ;;  %v5218_v12 = vld [vmem:[#allocation7 + $0xed0] sm:$0xff] }
 0x53e   :  { %8258 = vmatpush2.bf16.msra.mxu1 %v14157_v47  ;;  %v5138_v47 = vld [vmem:[#allocation7 + $0xc50] sm:$0xff] }
 0x53f   :  { %8299 = vmatpush2.bf16.msra.mxu0 %v14285_v53  ;;  %8309 = vmatprep.subr.bf16.mxu1 %v14406_v50  ;;  %v5142_v53 = vld [vmem:[#allocation7 + $0xc70] sm:$0xff]  ;;  %v4755_v50 = vld [vmem:[#allocation7 + $0x58] sm:$0xff] }
 0x540   :  { %8350 = vmatprep.subr.bf16.mxu0 %v14024_v54  ;;  %v4759_v54 = vld [vmem:[#allocation7 + $0x78] sm:$0xff]  ;;  %v14357_v8 = vcombine.low %v5138_v47, %v5142_v53  ;;  %v5222_v23 = vld [vmem:[#allocation7 + $0xef0] sm:$0xff] }
 0x541   :  { %v16529_v20 = vpop.f32.mrf.mxu0  ;;  %8260 = vmatmul.mubr.bf16.vlgmr.msra.gmra.mxu1 %v16467_v42  ;;  %v8015_v15 = vpop.f32.mrf.mxu1  ;;  %v13976_v59 = vcombine.high %v4755_v50, %v4759_v54  ;;  %v13975_v9 = vcombine.low %v4755_v50, %v4759_v54  ;;  %v5210_v50 = vld [vmem:[#allocation7 + $0xe90] sm:$0xff] }
 0x542   :  { %8301 = vmatmul.mubr.bf16.vlgmr.msra.gmra.mxu0 %v16479_v11  ;;  %v8016_v24 = vadd.f32 %v8015_v15, %v7975_v61  ;;  %8310 = vmatpush1.bf16.msra.mxu1 %v14405_v7  ;;  %v14358_v7 = vcombine.high %v5138_v47, %v5142_v53  ;;  %v4747_v61 = vld [vmem:[#allocation7 + $0x18] sm:$0xff]  ;;  %v14438_v47 = vcombine.high %v5218_v12, %v5222_v23  ;;  %v5214_v54 = vld [vmem:[#allocation7 + $0xeb0] sm:$0xff] }
 0x543   :  { %8341 = vmatprep.mubr.bf16.mxu1 %v16489_v14  ;;  %8351 = vmatpush1.bf16.msra.mxu0 %v14023_v2  ;;  %v16536_v36 = vpop.f32.mrf.mxu0  ;;  %v8017_v37 = vpop.f32.mrf.mxu1  ;;  %v5134_v2 = vld [vmem:[#allocation7 + $0xc30] sm:$0xff] }
 0x544   :  { %13398 = vst [vmem:[%s16892_s6] sm:$0xff] %v8016_v24  ;;  %8382 = vmatprep.mubr.bf16.mxu0 %v16438_v26  ;;  %v8018_v60 = vadd.f32 %v8017_v37, %v7977_v34  ;;  %8311 = vmatprep.subr.bf16.mxu1 %v14398_v6  ;;  %v14007_v26 = vcombine.low %v4787_v22, %v4791_v10  ;;  %v4751_v6 = vld [vmem:[#allocation7 + $0x38] sm:$0xff]  ;;  %v5250_v22 = vld [vmem:[#allocation7 + $0xfd0] sm:$0xff] }
 0x545   :  { %v8060_v43 = vpop.f32.mrf.mxu0  ;;  %8352 = vmatprep.subr.bf16.mxu0 %v14016_v21  ;;  %v8019_v13 = vpop.f32.mrf.mxu1  ;;  %v14350_v15 = vcombine.high %v5130_v4, %v5134_v2  ;;  %v13968_v21 = vcombine.high %v4747_v61, %v4751_v6  ;;  %v5254_v10 = vld [vmem:[#allocation7 + $0xff0] sm:$0xff]  ;;  %v4867_v34 = vld [vmem:[#allocation7 + $0x3d8] sm:$0xff]  ;;  %v13967_v37 = vcombine.low %v4747_v61, %v4751_v6 }
 0x546   :  { %13399 = vst [vmem:[%s16892_s6 + $0x8] sm:$0xff] %v8018_v60  ;;  %8312 = vmatpush1.bf16.msra.mxu1 %v14397_v19  ;;  %v4871_v24 = vld [vmem:[#allocation7 + $0x3f8] sm:$0xff]  ;;  %v14349_v19 = vcombine.low %v5130_v4, %v5134_v2  ;;  %v5242_v60 = vld [vmem:[#allocation7 + $0xf90] sm:$0xff]  ;;  %v14469_v43 = vcombine.low %v5250_v22, %v5254_v10  ;;  %v14430_v4 = vcombine.high %v5210_v50, %v5214_v54 }
 0x547   :  { %8353 = vmatpush1.bf16.msra.mxu0 %v14015_v25  ;;  %v8061_v1 = vpop.f32.mrf.mxu0  ;;  %v8020_v63 = vpop.f32.mrf.mxu1  ;;  %8313 = vmatprep.subr.bf16.mxu1 %v14390_v55  ;;  %v14470_v25 = vcombine.high %v5250_v22, %v5254_v10  ;;  %v14088_v55 = vcombine.high %v4867_v34, %v4871_v24  ;;  %v14087_v13 = vcombine.low %v4867_v34, %v4871_v24  ;;  %v5202_v61 = vld [vmem:[#allocation7 + $0xe50] sm:$0xff] }
 0x548   :  { %8354 = vmatprep.subr.bf16.mxu0 %v14008_v35  ;;  %v5246_v35 = vld [vmem:[#allocation7 + $0xfb0] sm:$0xff]  ;;  %v4851_v63 = vld [vmem:[#allocation7 + $0x358] sm:$0xff] }
 0x549   :  { %v14462_v27 = vcombine.high %v5242_v60, %v5246_v35  ;;  %v5238_v1 = vld [vmem:[#allocation7 + $0xf70] sm:$0xff] }
 0x54a   :  { %8314 = vmatpush1.bf16.msra.mxu1 %v14389_v48  ;;  %v5234_v48 = vld [vmem:[#allocation7 + $0xf50] sm:$0xff] }
 0x54b   :  { %8355 = vmatpush1.bf16.msra.mxu0 %v14007_v26  ;;  %8315 = vmatprep.subr.bf16.mxu1 %v14382_v32  ;;  %v4855_v26 = vld [vmem:[#allocation7 + $0x378] sm:$0xff]  ;;  %v14461_v32 = vcombine.low %v5242_v60, %v5246_v35  ;;  %v14454_v18 = vcombine.high %v5234_v48, %v5238_v1  ;;  %v5206_v6 = vld [vmem:[#allocation7 + $0xe70] sm:$0xff] }
 0x54c   :  { %8356 = vmatprep.subr.bf16.mxu0 %v14000_v33  ;;  %v14079_v33 = vcombine.low %v4859_v28, %v4863_v30  ;;  %v14072_v38 = vcombine.high %v4851_v63, %v4855_v26  ;;  %v14422_v22 = vcombine.high %v5202_v61, %v5206_v6  ;;  %v5194_v34 = vld [vmem:[#allocation7 + $0xe10] sm:$0xff]  ;;  %v4931_v28 = vld [vmem:[#allocation7 + $0x5d8] sm:$0xff] }
 0x54d   :  { %v5198_v24 = vld [vmem:[#allocation7 + $0xe30] sm:$0xff]  ;;  %v4935_v30 = vld [vmem:[#allocation7 + $0x5f8] sm:$0xff] }
 0x54e   :  { %8316 = vmatpush1.bf16.msra.mxu1 %v14381_v31  ;;  %v4843_v31 = vld [vmem:[#allocation7 + $0x318] sm:$0xff]  ;;  %v14414_v60 = vcombine.high %v5194_v34, %v5198_v24 }
 0x54f   :  { %8357 = vmatpush1.bf16.msra.mxu0 %v13999_v44  ;;  %8317 = vmatprep.subr.bf16.mxu1 %v14374_v58  ;;  %v4847_v44 = vld [vmem:[#allocation7 + $0x338] sm:$0xff]  ;;  %v14453_v58 = vcombine.low %v5234_v48, %v5238_v1  ;;  %v14152_v48 = vcombine.high %v4931_v28, %v4935_v30 }
 0x550   :  { %8358 = vmatprep.subr.bf16.mxu0 %v13992_v41  ;;  %v14071_v41 = vcombine.low %v4851_v63, %v4855_v26  ;;  %v14064_v0 = vcombine.high %v4843_v31, %v4847_v44  ;;  %v4923_v63 = vld [vmem:[#allocation7 + $0x598] sm:$0xff] }
 0x551   :  { %v4927_v26 = vld [vmem:[#allocation7 + $0x5b8] sm:$0xff] }
 0x552   :  { %8318 = vmatpush1.bf16.msra.mxu1 %v14373_v17  ;;  %v4835_v17 = vld [vmem:[#allocation7 + $0x2d8] sm:$0xff] }
 0x553   :  { %8359 = vmatpush1.bf16.msra.mxu0 %v13991_v52  ;;  %8319 = vmatprep.subr.bf16.mxu1 %v14366_v46  ;;  %v4839_v52 = vld [vmem:[#allocation7 + $0x2f8] sm:$0xff]  ;;  %v14445_v46 = vcombine.low %v5226_v39, %v5230_v40  ;;  %v14144_v39 = vcombine.high %v4923_v63, %v4927_v26 }
 0x554   :  { %8360 = vmatprep.subr.bf16.mxu0 %v13984_v49  ;;  %v14063_v49 = vcombine.low %v4843_v31, %v4847_v44  ;;  %v14056_v53 = vcombine.high %v4835_v17, %v4839_v52  ;;  %v4915_v40 = vld [vmem:[#allocation7 + $0x558] sm:$0xff] }
 0x555   :  { %v4919_v31 = vld [vmem:[#allocation7 + $0x578] sm:$0xff] }
 0x556   :  { %8320 = vmatpush1.bf16.msra.mxu1 %v14365_v56  ;;  %v4827_v56 = vld [vmem:[#allocation7 + $0x298] sm:$0xff] }
 0x557   :  { %8361 = vmatpush1.bf16.msra.mxu0 %v13983_v62  ;;  %8321 = vmatprep.subr.bf16.mxu1 %v14358_v7  ;;  %v4831_v62 = vld [vmem:[#allocation7 + $0x2b8] sm:$0xff]  ;;  %v14437_v7 = vcombine.low %v5218_v12, %v5222_v23  ;;  %v14143_v12 = vcombine.low %v4923_v63, %v4927_v26 }
 0x558   :  { %8362 = vmatprep.subr.bf16.mxu0 %v13976_v59  ;;  %v14055_v59 = vcombine.low %v4835_v17, %v4839_v52  ;;  %v14048_v2 = vcombine.high %v4827_v56, %v4831_v62  ;;  %v4879_v63 = vld [vmem:[#allocation7 + $0x438] sm:$0xff] }
 0x559   :  { %v5003_v26 = vld [vmem:[#allocation7 + $0x818] sm:$0xff] }
 0x55a   :  { %8322 = vmatpush1.bf16.msra.mxu1 %v14357_v8  ;;  %v4819_v8 = vld [vmem:[#allocation7 + $0x258] sm:$0xff] }
 0x55b   :  { %8363 = vmatpush1.bf16.msra.mxu0 %v13975_v9  ;;  %8323 = vmatprep.subr.bf16.mxu1 %v14350_v15  ;;  %v4823_v9 = vld [vmem:[#allocation7 + $0x278] sm:$0xff]  ;;  %v14429_v15 = vcombine.low %v5210_v50, %v5214_v54 }
 0x55c   :  { %8364 = vmatprep.subr.bf16.mxu0 %v13968_v21  ;;  %v14047_v21 = vcombine.low %v4827_v56, %v4831_v62  ;;  %v14040_v10 = vcombine.high %v4819_v8, %v4823_v9  ;;  %v5039_v56 = vld [vmem:[#allocation7 + $0x938] sm:$0xff] }
 0x55e   :  { %8324 = vmatpush1.bf16.msra.mxu1 %v14349_v19  ;;  %v4811_v19 = vld [vmem:[#allocation7 + $0x218] sm:$0xff] }
 0x55f   :  { %8365 = vmatpush1.bf16.msra.mxu0 %v13967_v37  ;;  %8325 = vmatprep.subr.bf16.mxu1 %v14470_v25  ;;  %v4815_v37 = vld [vmem:[#allocation7 + $0x238] sm:$0xff]  ;;  %v14421_v25 = vcombine.low %v5202_v61, %v5206_v6 }
 0x560   :  { %8366 = vmatprep.subr.bf16.mxu0 %v14088_v55  ;;  %v14039_v55 = vcombine.low %v4819_v8, %v4823_v9  ;;  %v14032_v35 = vcombine.high %v4811_v19, %v4815_v37  ;;  %v4903_v61 = vld [vmem:[#allocation7 + $0x4f8] sm:$0xff] }
 0x561   :  { %v5027_v6 = vld [vmem:[#allocation7 + $0x8d8] sm:$0xff] }
 0x562   :  { %8326 = vmatpush2.bf16.msra.mxu1 %v14469_v43  ;;  %v5059_v43 = vld [vmem:[#allocation7 + $0x9d8] sm:$0xff] }
 0x563   :  { %8367 = vmatpush2.bf16.msra.mxu0 %v14087_v13  ;;  %8327 = vmatprep.subr.bf16.mxu1 %v14462_v27  ;;  %v5063_v13 = vld [vmem:[#allocation7 + $0x9f8] sm:$0xff]  ;;  %v14413_v27 = vcombine.low %v5194_v34, %v5198_v24 }
 0x564   :  { %8368 = vmatprep.subr.bf16.mxu0 %v14080_v16  ;;  %v14031_v16 = vcombine.low %v4811_v19, %v4815_v37  ;;  %v14280_v1 = vcombine.high %v5059_v43, %v5063_v13  ;;  %v5031_v8 = vld [vmem:[#allocation7 + $0x8f8] sm:$0xff] }
 0x565   :  { %v4895_v34 = vld [vmem:[#allocation7 + $0x4b8] sm:$0xff] }
 0x566   :  { %8328 = vmatpush2.bf16.msra.mxu1 %v14461_v32  ;;  %v14151_v32 = vcombine.low %v4931_v28, %v4935_v30  ;;  %v5019_v24 = vld [vmem:[#allocation7 + $0x898] sm:$0xff] }
 0x567   :  { %8369 = vmatpush2.bf16.msra.mxu0 %v14079_v33  ;;  %8329 = vmatprep.subr.bf16.mxu1 %v14454_v18  ;;  %v5051_v33 = vld [vmem:[#allocation7 + $0x998] sm:$0xff] }
 0x568   :  { %8370 = vmatprep.subr.bf16.mxu0 %v14072_v38  ;;  %v5055_v18 = vld [vmem:[#allocation7 + $0x9b8] sm:$0xff]  ;;  %v14279_v38 = vcombine.low %v5059_v43, %v5063_v13 }
 0x569   :  { %v14271_v52 = vcombine.low %v5051_v33, %v5055_v18  ;;  %v5023_v19 = vld [vmem:[#allocation7 + $0x8b8] sm:$0xff] }
 0x56a   :  { %8330 = vmatpush2.bf16.msra.mxu1 %v14453_v58  ;;  %v4887_v28 = vld [vmem:[#allocation7 + $0x478] sm:$0xff] }
 0x56b   :  { %8371 = vmatpush2.bf16.msra.mxu0 %v14071_v41  ;;  %8331 = vmatprep.subr.bf16.mxu1 %v14446_v3  ;;  %v14272_v41 = vcombine.high %v5051_v33, %v5055_v18  ;;  %v5043_v3 = vld [vmem:[#allocation7 + $0x958] sm:$0xff] }
 0x56c   :  { %8372 = vmatprep.subr.bf16.mxu0 %v14064_v0  ;;  %v5047_v0 = vld [vmem:[#allocation7 + $0x978] sm:$0xff] }
 0x56d   :  { %v5011_v30 = vld [vmem:[#allocation7 + $0x858] sm:$0xff] }
 0x56e   :  { %8332 = vmatpush2.bf16.msra.mxu1 %v14445_v46  ;;  %v14136_v46 = vcombine.high %v4915_v40, %v4919_v31  ;;  %v5015_v43 = vld [vmem:[#allocation7 + $0x878] sm:$0xff] }
 0x56f   :  { %8373 = vmatpush2.bf16.msra.mxu0 %v14063_v49  ;;  %8333 = vmatprep.subr.bf16.mxu1 %v14438_v47  ;;  %v14264_v49 = vcombine.high %v5043_v3, %v5047_v0  ;;  %v4907_v47 = vld [vmem:[#allocation7 + $0x518] sm:$0xff]  ;;  %v14231_v18 = vcombine.low %v5011_v30, %v5015_v43 }
 0x570   :  { %8374 = vmatprep.subr.bf16.mxu0 %v14056_v53  ;;  %v4911_v53 = vld [vmem:[#allocation7 + $0x538] sm:$0xff] }
 0x571   :  { %v14127_v9 = vcombine.low %v4907_v47, %v4911_v53 }
 0x572   :  { %8334 = vmatpush2.bf16.msra.mxu1 %v14437_v7 }
 0x573   :  { %8375 = vmatpush2.bf16.msra.mxu0 %v14055_v59  ;;  %8335 = vmatprep.subr.bf16.mxu1 %v14430_v4  ;;  %v14263_v59 = vcombine.low %v5043_v3, %v5047_v0  ;;  %v14128_v4 = vcombine.high %v4907_v47, %v4911_v53  ;;  %v5127_v3 = vld [vmem:[#allocation7 + $0xbf8] sm:$0xff] }
 0x574   :  { %8376 = vmatprep.subr.bf16.mxu0 %v14048_v2  ;;  %v4991_v47 = vld [vmem:[#allocation7 + $0x7b8] sm:$0xff] }
 0x575   :  { %v5115_v53 = vld [vmem:[#allocation7 + $0xb98] sm:$0xff] }
 0x576   :  { %8336 = vmatpush2.bf16.msra.mxu1 %v14429_v15 }
 0x577   :  { %8377 = vmatpush2.bf16.msra.mxu0 %v14047_v21  ;;  %8337 = vmatprep.subr.bf16.mxu1 %v14422_v22  ;;  %v14248_v22 = vcombine.high %v5027_v6, %v5031_v8 }
 0x578   :  { %8378 = vmatprep.subr.bf16.mxu0 %v14040_v10  ;;  %v4891_v10 = vld [vmem:[#allocation7 + $0x498] sm:$0xff] }
 0x579   :  { %v14111_v13 = vcombine.low %v4891_v10, %v4895_v34 }
 0x57a   :  { %8338 = vmatpush2.bf16.msra.mxu1 %v14421_v25  ;;  %v14247_v25 = vcombine.low %v5027_v6, %v5031_v8  ;;  %v4971_v8 = vld [vmem:[#allocation7 + $0x718] sm:$0xff] }
 0x57b   :  { %8379 = vmatpush2.bf16.msra.mxu0 %v14039_v55  ;;  %8339 = vmatprep.subr.bf16.mxu1 %v14414_v60  ;;  %v14112_v55 = vcombine.high %v4891_v10, %v4895_v34  ;;  %v14240_v60 = vcombine.high %v5019_v24, %v5023_v19 }
 0x57c   :  { %8380 = vmatprep.subr.bf16.mxu0 %v14032_v35  ;;  %v4883_v35 = vld [vmem:[#allocation7 + $0x458] sm:$0xff] }
 0x57d   :  { %v14103_v33 = vcombine.low %v4883_v35, %v4887_v28 }
 0x57e   :  { %8340 = vmatpush2.bf16.msra.mxu1 %v14413_v27  ;;  %v14239_v27 = vcombine.low %v5019_v24, %v5023_v19  ;;  %v4963_v19 = vld [vmem:[#allocation7 + $0x6d8] sm:$0xff] }
 0x57f   :  { %8381 = vmatpush2.bf16.msra.mxu0 %v14031_v16  ;;  %8391 = vmatprep.subr.bf16.mxu1 %v14152_v48  ;;  %v14104_v16 = vcombine.high %v4883_v35, %v4887_v28  ;;  %v14232_v48 = vcombine.high %v5011_v30, %v5015_v43  ;;  %v4955_v43 = vld [vmem:[#allocation7 + $0x698] sm:$0xff] }
 0x580   :  { %8432 = vmatprep.subr.bf16.mxu0 %v14280_v1  ;;  %v4875_v1 = vld [vmem:[#allocation7 + $0x418] sm:$0xff] }
 0x581   :  { %v16545_v44 = vpop.f32.mrf.mxu1  ;;  %v16547_v58 = vpop.f32.mrf.mxu0  ;;  %8342 = vmatmul.mubr.bf16.vlgmr.msra.gmra.mxu1 %v16491_v57  ;;  %v14095_v0 = vcombine.low %v4875_v1, %v4879_v63 }
 0x582   :  { %8383 = vmatmul.mubr.bf16.vlgmr.msra.gmra.mxu0 %v16442_v45  ;;  %8392 = vmatpush1.bf16.msra.mxu1 %v14151_v32  ;;  %v5035_v45 = vld [vmem:[#allocation7 + $0x918] sm:$0xff] }
 0x583   :  { %8423 = vmatprep.mubr.bf16.mxu1 %v16461_v51  ;;  %8433 = vmatpush1.bf16.msra.mxu0 %v14279_v38  ;;  %v16552_v23 = vpop.f32.mrf.mxu1  ;;  %v16554_v17 = vpop.f32.mrf.mxu0  ;;  %v14135_v51 = vcombine.low %v4915_v40, %v4919_v31  ;;  %v14256_v2 = vcombine.high %v5035_v45, %v5039_v56  ;;  %v14255_v15 = vcombine.low %v5035_v45, %v5039_v56  ;;  %v5007_v32 = vld [vmem:[#allocation7 + $0x838] sm:$0xff] }
 0x584   :  { %8464 = vmatprep.mubr.bf16.mxu0 %v16477_v5  ;;  %8393 = vmatprep.subr.bf16.mxu1 %v14144_v39  ;;  %v4899_v5 = vld [vmem:[#allocation7 + $0x4d8] sm:$0xff]  ;;  %v14096_v38 = vcombine.high %v4875_v1, %v4879_v63  ;;  %v14224_v39 = vcombine.high %v5003_v26, %v5007_v32 }
 0x585   :  { %v8101_v50 = vpop.f32.mrf.mxu1  ;;  %v8142_v54 = vpop.f32.mrf.mxu0  ;;  %8434 = vmatprep.subr.bf16.mxu0 %v14272_v41  ;;  %v14120_v21 = vcombine.high %v4899_v5, %v4903_v61  ;;  %v14119_v37 = vcombine.low %v4899_v5, %v4903_v61  ;;  %v4995_v40 = vld [vmem:[#allocation7 + $0x7d8] sm:$0xff] }
 0x586   :  { %8394 = vmatpush1.bf16.msra.mxu1 %v14143_v12  ;;  %v4999_v31 = vld [vmem:[#allocation7 + $0x7f8] sm:$0xff]  ;;  %v14223_v12 = vcombine.low %v5003_v26, %v5007_v32 }
 0x587   :  { %8435 = vmatpush1.bf16.msra.mxu0 %v14271_v52  ;;  %v8102_v62 = vpop.f32.mrf.mxu1  ;;  %v8143_v7 = vpop.f32.mrf.mxu0  ;;  %8395 = vmatprep.subr.bf16.mxu1 %v14136_v46  ;;  %v5123_v41 = vld [vmem:[#allocation7 + $0xbd8] sm:$0xff]  ;;  %v14216_v52 = vcombine.high %v4995_v40, %v4999_v31  ;;  %v14215_v54 = vcombine.low %v4995_v40, %v4999_v31 }
 0x588   :  { %8436 = vmatprep.subr.bf16.mxu0 %v14264_v49  ;;  %v14344_v46 = vcombine.high %v5123_v41, %v5127_v3  ;;  %v4987_v49 = vld [vmem:[#allocation7 + $0x798] sm:$0xff]  ;;  %v14343_v45 = vcombine.low %v5123_v41, %v5127_v3  ;;  %v5272_v3 = vsub.s32 3, %v16505_v29 }
 0x589   :  { %v5119_v50 = vld [vmem:[#allocation7 + $0xbb8] sm:$0xff]  ;;  %v14208_v56 = vcombine.high %v4987_v49, %v4991_v47 }
 0x58a   :  { %8396 = vmatpush1.bf16.msra.mxu1 %v14135_v51  ;;  %v14336_v51 = vcombine.high %v5115_v53, %v5119_v50  ;;  %v4979_v62 = vld [vmem:[#allocation7 + $0x758] sm:$0xff]  ;;  %v14335_v5 = vcombine.low %v5115_v53, %v5119_v50 }
 0x58b   :  { %8437 = vmatpush1.bf16.msra.mxu0 %v14263_v59  ;;  %8397 = vmatprep.subr.bf16.mxu1 %v14128_v4  ;;  %v4983_v7 = vld [vmem:[#allocation7 + $0x778] sm:$0xff] }
 0x58c   :  { %8438 = vmatprep.subr.bf16.mxu0 %v14256_v2  ;;  %v5107_v59 = vld [vmem:[#allocation7 + $0xb58] sm:$0xff]  ;;  %v14207_v2 = vcombine.low %v4987_v49, %v4991_v47  ;;  %v14200_v61 = vcombine.high %v4979_v62, %v4983_v7  ;;  %v16559_v47 = vld [vmem:[#allocation8] sm:$0xff] }
 0x58d   :  { %v5111_v4 = vld [vmem:[#allocation7 + $0xb78] sm:$0xff] }
 0x58e   :  { %8398 = vmatpush1.bf16.msra.mxu1 %v14127_v9  ;;  %v14328_v6 = vcombine.high %v5107_v59, %v5111_v4  ;;  %v4975_v9 = vld [vmem:[#allocation7 + $0x738] sm:$0xff]  ;;  %v14327_v10 = vcombine.low %v5107_v59, %v5111_v4  ;;  %v1019_v59 = vld [vmem:[#allocation5 + $0x9c0] sm:$0xff] }
 0x58f   :  { %8439 = vmatpush1.bf16.msra.mxu0 %v14255_v15  ;;  %8399 = vmatprep.subr.bf16.mxu1 %v14120_v21  ;;  %v5099_v15 = vld [vmem:[#allocation7 + $0xb18] sm:$0xff]  ;;  %v14192_v34 = vcombine.high %v4971_v8, %v4975_v9  ;;  %v1023_v4 = vld [vmem:[#allocation5 + $0x9e0] sm:$0xff] }
 0x590   :  { %8440 = vmatprep.subr.bf16.mxu0 %v14248_v22  ;;  %v5103_v21 = vld [vmem:[#allocation7 + $0xb38] sm:$0xff]  ;;  %v14199_v22 = vcombine.low %v4979_v62, %v4983_v7 }
 0x591   :  { %v14320_v24 = vcombine.high %v5099_v15, %v5103_v21  ;;  %v14319_v35 = vcombine.low %v5099_v15, %v5103_v21  ;;  %v4947_v32 = vld [vmem:[#allocation7 + $0x658] sm:$0xff] }
 0x592   :  { %8400 = vmatpush1.bf16.msra.mxu1 %v14119_v37  ;;  %v4967_v37 = vld [vmem:[#allocation7 + $0x6f8] sm:$0xff] }
 0x593   :  { %8441 = vmatpush1.bf16.msra.mxu0 %v14247_v25  ;;  %8401 = vmatprep.subr.bf16.mxu1 %v14112_v55  ;;  %v5091_v25 = vld [vmem:[#allocation7 + $0xad8] sm:$0xff]  ;;  %v14184_v28 = vcombine.high %v4963_v19, %v4967_v37 }
 0x594   :  { %8442 = vmatprep.subr.bf16.mxu0 %v14240_v60  ;;  %v5095_v55 = vld [vmem:[#allocation7 + $0xaf8] sm:$0xff]  ;;  %v14191_v60 = vcombine.low %v4971_v8, %v4975_v9 }
 0x595   :  { %v14312_v30 = vcombine.high %v5091_v25, %v5095_v55  ;;  %v14311_v1 = vcombine.low %v5091_v25, %v5095_v55  ;;  %v5071_v49 = vld [vmem:[#allocation7 + $0xa38] sm:$0xff] }
 0x596   :  { %8402 = vmatpush1.bf16.msra.mxu1 %v14111_v13  ;;  %v4959_v13 = vld [vmem:[#allocation7 + $0x6b8] sm:$0xff] }
 0x597   :  { %8443 = vmatpush1.bf16.msra.mxu0 %v14239_v27  ;;  %8403 = vmatprep.subr.bf16.mxu1 %v14104_v16  ;;  %v5083_v27 = vld [vmem:[#allocation7 + $0xa98] sm:$0xff]  ;;  %v14176_v63 = vcombine.high %v4955_v43, %v4959_v13  ;;  %v14175_v40 = vcombine.low %v4955_v43, %v4959_v13  ;;  %v1003_v43 = vld [vmem:[#allocation5 + $0x940] sm:$0xff] }
 0x598   :  { %8444 = vmatprep.subr.bf16.mxu0 %v14232_v48  ;;  %v5087_v16 = vld [vmem:[#allocation7 + $0xab8] sm:$0xff]  ;;  %v14183_v48 = vcombine.low %v4963_v19, %v4967_v37  ;;  %v1007_v13 = vld [vmem:[#allocation5 + $0x960] sm:$0xff] }
 0x599   :  { %v14304_v26 = vcombine.high %v5083_v27, %v5087_v16  ;;  %v14303_v31 = vcombine.low %v5083_v27, %v5087_v16  ;;  %v5187_v62 = vld [vmem:[#allocation7 + $0xdd8] sm:$0xff] }
 0x59a   :  { %8404 = vmatpush1.bf16.msra.mxu1 %v14103_v33  ;;  %v4951_v33 = vld [vmem:[#allocation7 + $0x678] sm:$0xff] }
 0x59b   :  { %8445 = vmatpush1.bf16.msra.mxu0 %v14231_v18  ;;  %8405 = vmatprep.subr.bf16.mxu1 %v14096_v38  ;;  %v5075_v18 = vld [vmem:[#allocation7 + $0xa58] sm:$0xff]  ;;  %v14168_v41 = vcombine.high %v4947_v32, %v4951_v33  ;;  %v14167_v50 = vcombine.low %v4947_v32, %v4951_v33  ;;  %v995_v32 = vld [vmem:[#allocation5 + $0x900] sm:$0xff] }
 0x59c   :  { %8446 = vmatprep.subr.bf16.mxu0 %v14224_v39  ;;  %v5079_v38 = vld [vmem:[#allocation7 + $0xa78] sm:$0xff]  ;;  %v5268_v39 = vsub.s32 2, %v16505_v29  ;;  %v999_v33 = vld [vmem:[#allocation5 + $0x920] sm:$0xff] }
 0x59d   :  { %v5191_v7 = vld [vmem:[#allocation7 + $0xdf8] sm:$0xff] }
 0x59e   :  { %8406 = vmatpush1.bf16.msra.mxu1 %v14095_v0  ;;  %v14296_v0 = vcombine.high %v5075_v18, %v5079_v38  ;;  %v5269_v53 = vrot.slane %v16559_v47, %v5268_v39  ;;  %v5179_v15 = vld [vmem:[#allocation7 + $0xd98] sm:$0xff] }
 0x59f   :  { %8447 = vmatpush1.bf16.msra.mxu0 %v14223_v12  ;;  %8407 = vmatprep.subr.bf16.mxu1 %v14216_v52  ;;  %v4939_v12 = vld [vmem:[#allocation7 + $0x618] sm:$0xff] }
 0x5a0   :  { %8448 = vmatprep.subr.bf16.mxu0 %v14344_v46  ;;  %v4943_v52 = vld [vmem:[#allocation7 + $0x638] sm:$0xff] }
 0x5a1   :  { %v5067_v46 = vld [vmem:[#allocation7 + $0xa18] sm:$0xff] }
 0x5a2   :  { %8408 = vmatpush2.bf16.msra.mxu1 %v14215_v54  ;;  %v14295_v54 = vcombine.low %v5075_v18, %v5079_v38  ;;  %v5183_v21 = vld [vmem:[#allocation7 + $0xdb8] sm:$0xff] }
 0x5a3   :  { %8449 = vmatpush2.bf16.msra.mxu0 %v14343_v45  ;;  %8409 = vmatprep.subr.bf16.mxu1 %v14208_v56  ;;  %v14160_v45 = vcombine.high %v4939_v12, %v4943_v52  ;;  %v5273_v56 = vrot.slane %v16559_v47, %v5272_v3  ;;  %v14400_v19 = vcombine.high %v5179_v15, %v5183_v21  ;;  %v5171_v25 = vld [vmem:[#allocation7 + $0xd58] sm:$0xff] }
 0x5a4   :  { %8450 = vmatprep.subr.bf16.mxu0 %v14336_v51  ;;  %v14288_v51 = vcombine.high %v5067_v46, %v5071_v49  ;;  %v5175_v55 = vld [vmem:[#allocation7 + $0xd78] sm:$0xff]  ;;  %v14506_v3 = vcombine.high %v995_v32, %v999_v33 }
 0x5a5   :  { %v8059_v8 = vadd.f32 %v16536_v36, %v5273_v56  ;;  %v14529_v36 = vcombine.low %v1019_v59, %v1023_v4  ;;  %v14392_v27 = vcombine.high %v5171_v25, %v5175_v55  ;;  %v5163_v16 = vld [vmem:[#allocation7 + $0xd18] sm:$0xff]  ;;  %v979_v56 = vld [vmem:[#allocation5 + $0x880] sm:$0xff] }
 0x5a6   :  { %8410 = vmatpush2.bf16.msra.mxu1 %v14207_v2  ;;  %v8057_v2 = vadd.f32 %v16529_v20, %v5269_v53  ;;  %v1015_v20 = vld [vmem:[#allocation5 + $0x9a0] sm:$0xff]  ;;  %v5151_v53 = vld [vmem:[#allocation7 + $0xcb8] sm:$0xff] }
 0x5a7   :  { %8451 = vmatpush2.bf16.msra.mxu0 %v14335_v5  ;;  %8411 = vmatprep.subr.bf16.mxu1 %v14200_v61  ;;  %v14159_v5 = vcombine.low %v4939_v12, %v4943_v52  ;;  %v14287_v61 = vcombine.low %v5067_v46, %v5071_v49  ;;  %v987_v12 = vld [vmem:[#allocation5 + $0x8c0] sm:$0xff]  ;;  %v5147_v49 = vld [vmem:[#allocation7 + $0xc98] sm:$0xff] }
 0x5a8   :  { %8452 = vmatprep.subr.bf16.mxu0 %v14328_v6  ;;  %v14408_v6 = vcombine.high %v5187_v62, %v5191_v7  ;;  %v8098_v9 = vadd.f32 %v16545_v44, %v8057_v2  ;;  %v991_v52 = vld [vmem:[#allocation5 + $0x8e0] sm:$0xff] }
 0x5aa   :  { %8412 = vmatpush2.bf16.msra.mxu1 %v14199_v22  ;;  %v14530_v22 = vcombine.high %v1019_v59, %v1023_v4  ;;  %v8139_v37 = vadd.f32 %v16547_v58, %v8098_v9  ;;  %v5143_v59 = vld [vmem:[#allocation7 + $0xc78] sm:$0xff]  ;;  %v14497_v4 = vcombine.low %v987_v12, %v991_v52 }
 0x5ab   :  { %8453 = vmatpush2.bf16.msra.mxu0 %v14327_v10  ;;  %8413 = vmatprep.subr.bf16.mxu1 %v14192_v34  ;;  %v8100_v10 = vadd.f32 %v16552_v23, %v8059_v8  ;;  %v14407_v34 = vcombine.low %v5187_v62, %v5191_v7  ;;  %v14368_v62 = vcombine.high %v5147_v49, %v5151_v53  ;;  %v5139_v7 = vld [vmem:[#allocation7 + $0xc58] sm:$0xff] }
 0x5ac   :  { %8454 = vmatprep.subr.bf16.mxu0 %v14320_v24  ;;  %v1011_v24 = vld [vmem:[#allocation5 + $0x980] sm:$0xff]  ;;  %v14360_v8 = vcombine.high %v5139_v7, %v5143_v59  ;;  %v5131_v9 = vld [vmem:[#allocation7 + $0xc18] sm:$0xff] }
 0x5ae   :  { %8414 = vmatpush2.bf16.msra.mxu1 %v14191_v60  ;;  %v14522_v60 = vcombine.high %v1011_v24, %v1015_v20 }
 0x5af   :  { %8455 = vmatpush2.bf16.msra.mxu0 %v14319_v35  ;;  %8415 = vmatprep.subr.bf16.mxu1 %v14184_v28  ;;  %v8141_v35 = vadd.f32 %v16554_v17, %v8100_v10  ;;  %v14359_v10 = vcombine.low %v5139_v7, %v5143_v59  ;;  %v5211_v7 = vld [vmem:[#allocation7 + $0xe98] sm:$0xff] }
 0x5b0   :  { %8456 = vmatprep.subr.bf16.mxu0 %v14312_v30  ;;  %v14399_v30 = vcombine.low %v5179_v15, %v5183_v21  ;;  %v5135_v15 = vld [vmem:[#allocation7 + $0xc38] sm:$0xff] }
 0x5b1   :  { %v5215_v59 = vld [vmem:[#allocation7 + $0xeb8] sm:$0xff] }
 0x5b2   :  { %8416 = vmatpush2.bf16.msra.mxu1 %v14183_v48  ;;  %v5167_v48 = vld [vmem:[#allocation7 + $0xd38] sm:$0xff] }
 0x5b3   :  { %8457 = vmatpush2.bf16.msra.mxu0 %v14311_v1  ;;  %8417 = vmatprep.subr.bf16.mxu1 %v14176_v63  ;;  %v14514_v63 = vcombine.high %v1003_v43, %v1007_v13  ;;  %v14384_v38 = vcombine.high %v5163_v16, %v5167_v48 }
 0x5b4   :  { %8458 = vmatprep.subr.bf16.mxu0 %v14304_v26  ;;  %v14391_v26 = vcombine.low %v5171_v25, %v5175_v55 }
 0x5b6   :  { %8418 = vmatpush2.bf16.msra.mxu1 %v14175_v40  ;;  %v5155_v40 = vld [vmem:[#allocation7 + $0xcd8] sm:$0xff] }
 0x5b7   :  { %8459 = vmatpush2.bf16.msra.mxu0 %v14303_v31  ;;  %8419 = vmatprep.subr.bf16.mxu1 %v14168_v41  ;;  %v5159_v31 = vld [vmem:[#allocation7 + $0xcf8] sm:$0xff]  ;;  %v14513_v41 = vcombine.low %v1003_v43, %v1007_v13 }
 0x5b8   :  { %8460 = vmatprep.subr.bf16.mxu0 %v14296_v0  ;;  %v14383_v0 = vcombine.low %v5163_v16, %v5167_v48  ;;  %v14376_v46 = vcombine.high %v5155_v40, %v5159_v31  ;;  %v1075_v16 = vld [vmem:[#allocation5 + $0xb80] sm:$0xff] }
 0x5b9   :  { %v1079_v48 = vld [vmem:[#allocation5 + $0xba0] sm:$0xff] }
 0x5ba   :  { %8420 = vmatpush2.bf16.msra.mxu1 %v14167_v50  ;;  %v14505_v50 = vcombine.low %v995_v32, %v999_v33  ;;  %v14586_v32 = vcombine.high %v1075_v16, %v1079_v48 }
 0x5bb   :  { %8461 = vmatpush2.bf16.msra.mxu0 %v14295_v54  ;;  %8421 = vmatprep.subr.bf16.mxu1 %v14160_v45  ;;  %v14498_v54 = vcombine.high %v987_v12, %v991_v52  ;;  %v14375_v45 = vcombine.low %v5155_v40, %v5159_v31  ;;  %v5227_v40 = vld [vmem:[#allocation7 + $0xf18] sm:$0xff]  ;;  %v1059_v12 = vld [vmem:[#allocation5 + $0xb00] sm:$0xff] }
 0x5bc   :  { %8462 = vmatprep.subr.bf16.mxu0 %v14288_v51  ;;  %v983_v51 = vld [vmem:[#allocation5 + $0x8a0] sm:$0xff]  ;;  %v5231_v31 = vld [vmem:[#allocation7 + $0xf38] sm:$0xff] }
 0x5bd   :  { %v14490_v2 = vcombine.high %v979_v56, %v983_v51  ;;  %v14489_v21 = vcombine.low %v979_v56, %v983_v51  ;;  %v1063_v52 = vld [vmem:[#allocation5 + $0xb20] sm:$0xff] }
 0x5be   :  { %8422 = vmatpush2.bf16.msra.mxu1 %v14159_v5  ;;  %v14367_v5 = vcombine.low %v5147_v49, %v5151_v53  ;;  %v5219_v49 = vld [vmem:[#allocation7 + $0xed8] sm:$0xff]  ;;  %v1051_v56 = vld [vmem:[#allocation5 + $0xac0] sm:$0xff] }
 0x5bf   :  { %8463 = vmatpush2.bf16.msra.mxu0 %v14287_v61  ;;  %8473 = vmatprep.subr.bf16.mxu1 %v14408_v6  ;;  %v971_v61 = vld [vmem:[#allocation5 + $0x840] sm:$0xff]  ;;  %v5223_v53 = vld [vmem:[#allocation7 + $0xef8] sm:$0xff] }
 0x5c0   :  { %9822 = vmatprep.subr.bf16.mxu0 %v14530_v22  ;;  %v975_v6 = vld [vmem:[#allocation5 + $0x860] sm:$0xff] }
 0x5c1   :  { %v8179_v44 = vpop.f32.mrf.mxu1  ;;  %8424 = vmatmul.mubr.bf16.vlgmr.msra.gmra.mxu1 %v16467_v42  ;;  %v14482_v22 = vcombine.high %v971_v61, %v975_v6  ;;  %v14481_v25 = vcombine.low %v971_v61, %v975_v6  ;;  %v1055_v51 = vld [vmem:[#allocation5 + $0xae0] sm:$0xff] }
 0x5c2   :  { %v8180_v23 = vadd.f32 %v8179_v44, %v8139_v37  ;;  %v16570_v28 = vpop.f32.mrf.mxu0  ;;  %8465 = vmatmul.mubr.bf16.vlgmr.msra.gmra.mxu0 %v16479_v11  ;;  %8474 = vmatpush1.bf16.msra.mxu1 %v14407_v34  ;;  %v14521_v11 = vcombine.low %v1011_v24, %v1015_v20  ;;  %v963_v34 = vld [vmem:[#allocation5 + $0x800] sm:$0xff]  ;;  %v14352_v20 = vcombine.high %v5131_v9, %v5135_v15  ;;  %v5255_v37 = vld [vmem:[#allocation7 + $0xff8] sm:$0xff] }
 0x5c3   :  { %8505 = vmatprep.mubr.bf16.mxu1 %v16489_v14  ;;  %v8181_v58 = vpop.f32.mrf.mxu1  ;;  %8475 = vmatprep.subr.bf16.mxu1 %v14400_v19  ;;  %v967_v24 = vld [vmem:[#allocation5 + $0x820] sm:$0xff]  ;;  %v5251_v19 = vld [vmem:[#allocation7 + $0xfd8] sm:$0xff] }
 0x5c4   :  { %13400 = vst [vmem:[%s16892_s6 + $0x10] sm:$0xff] %v8180_v23  ;;  %v8182_v42 = vadd.f32 %v8181_v58, %v8141_v35  ;;  %v16577_v17 = vpop.f32.mrf.mxu0  ;;  %9823 = vmatpush1.bf16.msra.mxu0 %v14529_v36  ;;  %v14474_v55 = vcombine.high %v963_v34, %v967_v24  ;;  %v14351_v36 = vcombine.low %v5131_v9, %v5135_v15  ;;  %v1083_v44 = vld [vmem:[#allocation5 + $0xbc0] sm:$0xff]  ;;  %v5243_v23 = vld [vmem:[#allocation7 + $0xf98] sm:$0xff]  ;;  %v16582_v58 = vld [vmem:[#allocation5 + $0x9c8] sm:$0xff] }
 0x5c5   :  { %v8183_v1 = vpop.f32.mrf.mxu1  ;;  %9824 = vmatprep.subr.bf16.mxu0 %v14522_v60  ;;  %v1087_v60 = vld [vmem:[#allocation5 + $0xbe0] sm:$0xff]  ;;  %v14472_v35 = vcombine.high %v5251_v19, %v5255_v37  ;;  %v14473_v43 = vcombine.low %v963_v34, %v967_v24  ;;  %v5203_v9 = vld [vmem:[#allocation7 + $0xe58] sm:$0xff] }
 0x5c6   :  { %13401 = vst [vmem:[%s16892_s6 + $0x18] sm:$0xff] %v8182_v42  ;;  %v8224_v14 = vpop.f32.mrf.mxu0  ;;  %8476 = vmatpush1.bf16.msra.mxu1 %v14399_v30  ;;  %v5247_v30 = vld [vmem:[#allocation7 + $0xfb8] sm:$0xff]  ;;  %v14594_v13 = vcombine.high %v1083_v44, %v1087_v60  ;;  %v14471_v42 = vcombine.low %v5251_v19, %v5255_v37  ;;  %v1043_v61 = vld [vmem:[#allocation5 + $0xa80] sm:$0xff] }
 0x5c7   :  { %v8184_v18 = vpop.f32.mrf.mxu1  ;;  %8477 = vmatprep.subr.bf16.mxu1 %v14392_v27  ;;  %v16584_v27 = vld [vmem:[#allocation5 + $0x9e8] sm:$0xff]  ;;  %v14464_v1 = vcombine.high %v5243_v23, %v5247_v30  ;;  %v5239_v14 = vld [vmem:[#allocation7 + $0xf78] sm:$0xff]  ;;  %v14463_v33 = vcombine.low %v5243_v23, %v5247_v30  ;;  %v1047_v6 = vld [vmem:[#allocation5 + $0xaa0] sm:$0xff] }
 0x5c8   :  { %v8225_v39 = vpop.f32.mrf.mxu0  ;;  %9825 = vmatpush1.bf16.msra.mxu0 %v14521_v11  ;;  %v14531_v11 = vcombine.low %v16582_v58, %v16584_v27  ;;  %v1067_v18 = vld [vmem:[#allocation5 + $0xb40] sm:$0xff]  ;;  %v5207_v15 = vld [vmem:[#allocation7 + $0xe78] sm:$0xff] }
 0x5c9   :  { %9826 = vmatprep.subr.bf16.mxu0 %v14514_v63  ;;  %v5235_v63 = vld [vmem:[#allocation7 + $0xf58] sm:$0xff]  ;;  %v1035_v34 = vld [vmem:[#allocation5 + $0xa40] sm:$0xff] }
 0x5ca   :  { %8478 = vmatpush1.bf16.msra.mxu1 %v14391_v26  ;;  %v14593_v26 = vcombine.low %v1083_v44, %v1087_v60  ;;  %v14456_v39 = vcombine.high %v5235_v63, %v5239_v14  ;;  %v1039_v24 = vld [vmem:[#allocation5 + $0xa60] sm:$0xff]  ;;  %v5195_v19 = vld [vmem:[#allocation7 + $0xe18] sm:$0xff] }
 0x5cb   :  { %8479 = vmatprep.subr.bf16.mxu1 %v14384_v38  ;;  %v1071_v38 = vld [vmem:[#allocation5 + $0xb60] sm:$0xff]  ;;  %v5199_v37 = vld [vmem:[#allocation7 + $0xe38] sm:$0xff]  ;;  %v14545_v23 = vcombine.low %v1035_v34, %v1039_v24 }
 0x5cc   :  { %9827 = vmatpush1.bf16.msra.mxu0 %v14513_v41  ;;  %v14585_v41 = vcombine.low %v1075_v16, %v1079_v48  ;;  %v1027_v44 = vld [vmem:[#allocation5 + $0xa00] sm:$0xff] }
 0x5cd   :  { %9828 = vmatprep.subr.bf16.mxu0 %v14506_v3  ;;  %v14578_v3 = vcombine.high %v1067_v18, %v1071_v38  ;;  %v1031_v60 = vld [vmem:[#allocation5 + $0xa20] sm:$0xff] }
 0x5ce   :  { %8480 = vmatpush1.bf16.msra.mxu1 %v14383_v0  ;;  %v14455_v0 = vcombine.low %v5235_v63, %v5239_v14  ;;  %v14538_v30 = vcombine.high %v1027_v44, %v1031_v60 }
 0x5cf   :  { %8481 = vmatprep.subr.bf16.mxu1 %v14376_v46  ;;  %v14448_v46 = vcombine.high %v5227_v40, %v5231_v31 }
 0x5d0   :  { %9829 = vmatpush1.bf16.msra.mxu0 %v14505_v50  ;;  %v14577_v50 = vcombine.low %v1067_v18, %v1071_v38  ;;  %v1147_v18 = vld [vmem:[#allocation5 + $0xdc0] sm:$0xff] }
 0x5d1   :  { %9830 = vmatprep.subr.bf16.mxu0 %v14498_v54  ;;  %v14570_v54 = vcombine.high %v1059_v12, %v1063_v52  ;;  %v1151_v38 = vld [vmem:[#allocation5 + $0xde0] sm:$0xff] }
 0x5d2   :  { %8482 = vmatpush1.bf16.msra.mxu1 %v14375_v45  ;;  %v14447_v45 = vcombine.low %v5227_v40, %v5231_v31  ;;  %v14658_v40 = vcombine.high %v1147_v18, %v1151_v38  ;;  %v1139_v31 = vld [vmem:[#allocation5 + $0xd80] sm:$0xff] }
 0x5d3   :  { %8483 = vmatprep.subr.bf16.mxu1 %v14368_v62  ;;  %v14440_v62 = vcombine.high %v5219_v49, %v5223_v53 }
 0x5d4   :  { %9831 = vmatpush1.bf16.msra.mxu0 %v14497_v4  ;;  %v14569_v4 = vcombine.low %v1059_v12, %v1063_v52  ;;  %v1135_v12 = vld [vmem:[#allocation5 + $0xd60] sm:$0xff] }
 0x5d5   :  { %9832 = vmatprep.subr.bf16.mxu0 %v14490_v2  ;;  %v14562_v2 = vcombine.high %v1051_v56, %v1055_v51 }
 0x5d6   :  { %8484 = vmatpush1.bf16.msra.mxu1 %v14367_v5  ;;  %v14439_v5 = vcombine.low %v5219_v49, %v5223_v53  ;;  %v1123_v49 = vld [vmem:[#allocation5 + $0xd00] sm:$0xff] }
 0x5d7   :  { %8485 = vmatprep.subr.bf16.mxu1 %v14360_v8  ;;  %v14432_v8 = vcombine.high %v5211_v7, %v5215_v59  ;;  %v1127_v53 = vld [vmem:[#allocation5 + $0xd20] sm:$0xff] }
 0x5d8   :  { %9833 = vmatpush1.bf16.msra.mxu0 %v14489_v21  ;;  %v14561_v21 = vcombine.low %v1051_v56, %v1055_v51  ;;  %v1119_v56 = vld [vmem:[#allocation5 + $0xce0] sm:$0xff] }
 0x5d9   :  { %9834 = vmatprep.subr.bf16.mxu0 %v14482_v22  ;;  %v14554_v22 = vcombine.high %v1043_v61, %v1047_v6 }
 0x5da   :  { %8486 = vmatpush1.bf16.msra.mxu1 %v14359_v10  ;;  %v14431_v10 = vcombine.low %v5211_v7, %v5215_v59  ;;  %v1107_v7 = vld [vmem:[#allocation5 + $0xc80] sm:$0xff] }
 0x5db   :  { %8487 = vmatprep.subr.bf16.mxu1 %v14352_v20  ;;  %v14424_v20 = vcombine.high %v5203_v9, %v5207_v15  ;;  %v1111_v59 = vld [vmem:[#allocation5 + $0xca0] sm:$0xff] }
 0x5dc   :  { %9835 = vmatpush1.bf16.msra.mxu0 %v14481_v25  ;;  %v14553_v25 = vcombine.low %v1043_v61, %v1047_v6  ;;  %v5280_v61 = vsub.s32 5, %v16505_v29  ;;  %v1099_v6 = vld [vmem:[#allocation5 + $0xc40] sm:$0xff] }
 0x5dd   :  { %9836 = vmatprep.subr.bf16.mxu0 %v14474_v55  ;;  %v14546_v55 = vcombine.high %v1035_v34, %v1039_v24  ;;  %v1095_v34 = vld [vmem:[#allocation5 + $0xc20] sm:$0xff] }
 0x5de   :  { %8488 = vmatpush1.bf16.msra.mxu1 %v14351_v36  ;;  %v14423_v36 = vcombine.low %v5203_v9, %v5207_v15 }
 0x5df   :  { %8489 = vmatprep.subr.bf16.mxu1 %v14472_v35  ;;  %v14416_v35 = vcombine.high %v5195_v19, %v5199_v37 }
 0x5e0   :  { %9837 = vmatpush1.bf16.msra.mxu0 %v14473_v43  ;;  %v14415_v43 = vcombine.low %v5195_v19, %v5199_v37 }
 0x5e1   :  { %9838 = vmatprep.subr.bf16.mxu0 %v14594_v13  ;;  %v14537_v13 = vcombine.low %v1027_v44, %v1031_v60 }
 0x5e2   :  { %8490 = vmatpush2.bf16.msra.mxu1 %v14471_v42  ;;  %v14532_v42 = vcombine.high %v16582_v58, %v16584_v27  ;;  %v980_v58 = vld [vmem:[#allocation5 + $0x888] sm:$0xff] }
 0x5e3   :  { %8491 = vmatprep.subr.bf16.mxu1 %v14464_v1  ;;  %v984_v27 = vld [vmem:[#allocation5 + $0x8a8] sm:$0xff] }
 0x5e4   :  { %9839 = vmatpush2.bf16.msra.mxu0 %v14593_v26 }
 0x5e5   :  { %9840 = vmatprep.subr.bf16.mxu0 %v14586_v32 }
 0x5e6   :  { %8492 = vmatpush2.bf16.msra.mxu1 %v14463_v33 }
 0x5e7   :  { %8493 = vmatprep.subr.bf16.mxu1 %v14456_v39  ;;  %v14657_v39 = vcombine.low %v1147_v18, %v1151_v38  ;;  %v1199_v18 = vld [vmem:[#allocation5 + $0xf60] sm:$0xff] }
 0x5e8   :  { %9841 = vmatpush2.bf16.msra.mxu0 %v14585_v41  ;;  %v1143_v41 = vld [vmem:[#allocation5 + $0xda0] sm:$0xff] }
 0x5e9   :  { %9842 = vmatprep.subr.bf16.mxu0 %v14578_v3  ;;  %v14650_v3 = vcombine.high %v1139_v31, %v1143_v41 }
 0x5ea   :  { %8494 = vmatpush2.bf16.msra.mxu1 %v14455_v0  ;;  %v1131_v0 = vld [vmem:[#allocation5 + $0xd40] sm:$0xff] }
 0x5eb   :  { %8495 = vmatprep.subr.bf16.mxu1 %v14448_v46  ;;  %v14641_v52 = vcombine.low %v1131_v0, %v1135_v12  ;;  %v14642_v46 = vcombine.high %v1131_v0, %v1135_v12  ;;  %v1187_v0 = vld [vmem:[#allocation5 + $0xf00] sm:$0xff] }
 0x5ec   :  { %9843 = vmatpush2.bf16.msra.mxu0 %v14577_v50  ;;  %v14633_v50 = vcombine.low %v1123_v49, %v1127_v53  ;;  %v1191_v12 = vld [vmem:[#allocation5 + $0xf20] sm:$0xff] }
 0x5ed   :  { %9844 = vmatprep.subr.bf16.mxu0 %v14570_v54  ;;  %v14634_v54 = vcombine.high %v1123_v49, %v1127_v53  ;;  %v1179_v49 = vld [vmem:[#allocation5 + $0xec0] sm:$0xff] }
 0x5ee   :  { %8496 = vmatpush2.bf16.msra.mxu1 %v14447_v45  ;;  %v1115_v45 = vld [vmem:[#allocation5 + $0xcc0] sm:$0xff] }
 0x5ef   :  { %8497 = vmatprep.subr.bf16.mxu1 %v14440_v62  ;;  %v14625_v51 = vcombine.low %v1115_v45, %v1119_v56  ;;  %v14626_v62 = vcombine.high %v1115_v45, %v1119_v56  ;;  %v1183_v53 = vld [vmem:[#allocation5 + $0xee0] sm:$0xff] }
 0x5f0   :  { %9845 = vmatpush2.bf16.msra.mxu0 %v14569_v4  ;;  %v14617_v4 = vcombine.low %v1107_v7, %v1111_v59  ;;  %v1171_v45 = vld [vmem:[#allocation5 + $0xe80] sm:$0xff] }
 0x5f1   :  { %9846 = vmatprep.subr.bf16.mxu0 %v14562_v2  ;;  %v14618_v2 = vcombine.high %v1107_v7, %v1111_v59  ;;  %v1175_v56 = vld [vmem:[#allocation5 + $0xea0] sm:$0xff] }
 0x5f2   :  { %8498 = vmatpush2.bf16.msra.mxu1 %v14439_v5  ;;  %v5276_v5 = vsub.s32 4, %v16505_v29  ;;  %v8526_v7 = vld [vmem:[%s16887_s1] sm:$0xff] }
 0x5f3   :  { %8499 = vmatprep.subr.bf16.mxu1 %v14432_v8  ;;  %v1103_v8 = vld [vmem:[#allocation5 + $0xc60] sm:$0xff] }
 0x5f4   :  { %9847 = vmatpush2.bf16.msra.mxu0 %v14561_v21  ;;  %v14609_v9 = vcombine.low %v1099_v6, %v1103_v8  ;;  %v14610_v15 = vcombine.high %v1099_v6, %v1103_v8  ;;  %v5277_v21 = vrot.slane %v16559_v47, %v5276_v5  ;;  %v1163_v59 = vld [vmem:[#allocation5 + $0xe40] sm:$0xff]  ;;  %v8527_v5 = vld [vmem:[%s16887_s1 + $0x8] sm:$0xff] }
 0x5f5   :  { %9848 = vmatprep.subr.bf16.mxu0 %v14554_v22  ;;  %v5281_v22 = vrot.slane %v16559_v47, %v5280_v61 }
 0x5f6   :  { %8500 = vmatpush2.bf16.msra.mxu1 %v14431_v10  ;;  %v1091_v10 = vld [vmem:[#allocation5 + $0xc00] sm:$0xff]  ;;  %v8221_v19 = vadd.f32 %v16570_v28, %v5277_v21 }
 0x5f7   :  { %8501 = vmatprep.subr.bf16.mxu1 %v14424_v20  ;;  %v14601_v24 = vcombine.low %v1091_v10, %v1095_v34  ;;  %v14602_v20 = vcombine.high %v1091_v10, %v1095_v34  ;;  %v8223_v37 = vadd.f32 %v16577_v17, %v5281_v22  ;;  %v16046_v21 = vld [vmem:[%s16892_s6] sm:$0xff] }
 0x5f8   :  { %9849 = vmatpush2.bf16.msra.mxu0 %v14553_v25  ;;  %v1155_v10 = vld [vmem:[#allocation5 + $0xe00] sm:$0xff] }
 0x5f9   :  { %9850 = vmatprep.subr.bf16.mxu0 %v14546_v55  ;;  %v1211_v55 = vld [vmem:[#allocation5 + $0xfc0] sm:$0xff] }
 0x5fa   :  { %8502 = vmatpush2.bf16.msra.mxu1 %v14423_v36  ;;  %v1215_v36 = vld [vmem:[#allocation5 + $0xfe0] sm:$0xff] }
 0x5fb   :  { %8503 = vmatprep.subr.bf16.mxu1 %v14416_v35  ;;  %v14721_v44 = vcombine.low %v1211_v55, %v1215_v36  ;;  %v14722_v60 = vcombine.high %v1211_v55, %v1215_v36  ;;  %v1159_v34 = vld [vmem:[#allocation5 + $0xe20] sm:$0xff]  ;;  %v1016_v55 = vld [vmem:[#allocation5 + $0x9a8] sm:$0xff] }
 0x5fc   :  { %9851 = vmatpush2.bf16.msra.mxu0 %v14545_v23 }
 0x5fd   :  { %9852 = vmatprep.subr.bf16.mxu0 %v14538_v30  ;;  %v1203_v30 = vld [vmem:[#allocation5 + $0xf80] sm:$0xff] }
 0x5fe   :  { %8504 = vmatpush2.bf16.msra.mxu1 %v14415_v43  ;;  %v1207_v43 = vld [vmem:[#allocation5 + $0xfa0] sm:$0xff] }
 0x5ff   :  { %9863 = vmatprep.subr.bf16.mxu1 %v14658_v40 }
 0x600   :  { %9853 = vmatpush2.bf16.msra.mxu0 %v14537_v13 }
 0x601   :  { %v16590_v16 = vpop.f32.mrf.mxu1  ;;  %8506 = vmatmul.mubr.bf16.vlgmr.msra.gmra.mxu1 %v16491_v57  ;;  %9904 = vmatprep.subr.bf16.mxu0 %v14532_v42  ;;  %v14649_v57 = vcombine.low %v1139_v31, %v1143_v41  ;;  %v14714_v42 = vcombine.high %v1203_v30, %v1207_v43 }
 0x602   :  { %v16593_v48 = vpop.f32.mrf.mxu0  ;;  %9864 = vmatpush1.bf16.msra.mxu1 %v14657_v39  ;;  %v8262_v25 = vadd.f32 %v16590_v16, %v8221_v19  ;;  %v16047_v19 = vld [vmem:[%s16892_s6 + $0x8] sm:$0xff] }
 0x603   :  { %v16595_v1 = vpop.f32.mrf.mxu1  ;;  %9865 = vmatprep.subr.bf16.mxu1 %v14650_v3 }
 0x604   :  { %v16597_v63 = vpop.f32.mrf.mxu0  ;;  %v8264_v35 = vadd.f32 %v16595_v1, %v8223_v37  ;;  %v8303_v47 = vadd.f32 %v16593_v48, %v8262_v25  ;;  %v1012_v25 = vld [vmem:[#allocation5 + $0x988] sm:$0xff] }
 0x605   :  { %v8265_v14 = vpop.f32.mrf.mxu1 }
 0x606   :  { %v8306_v26 = vpop.f32.mrf.mxu0  ;;  %9866 = vmatpush1.bf16.msra.mxu1 %v14649_v57  ;;  %v8305_v28 = vadd.f32 %v16597_v63, %v8264_v35  ;;  %v14713_v14 = vcombine.low %v1203_v30, %v1207_v43  ;;  %v16641_v35 = vld [vmem:[#allocation5 + $0xdc8] sm:$0xff] }
 0x607   :  { %v8266_v32 = vpop.f32.mrf.mxu1  ;;  %9867 = vmatprep.subr.bf16.mxu1 %v14642_v46  ;;  %v14698_v46 = vcombine.high %v1187_v0, %v1191_v12  ;;  %v1008_v30 = vld [vmem:[#allocation5 + $0x968] sm:$0xff] }
 0x608   :  { %v8307_v33 = vpop.f32.mrf.mxu0 }
 0x609   :  { %v1195_v33 = vld [vmem:[#allocation5 + $0xf40] sm:$0xff] }
 0x60a   :  { %9868 = vmatpush1.bf16.msra.mxu1 %v14641_v52  ;;  %v14706_v40 = vcombine.high %v1195_v33, %v1199_v18  ;;  %v14705_v41 = vcombine.low %v1195_v33, %v1199_v18  ;;  %v14697_v52 = vcombine.low %v1187_v0, %v1191_v12  ;;  %v992_v33 = vld [vmem:[#allocation5 + $0x8e8] sm:$0xff] }
 0x60b   :  { %9869 = vmatprep.subr.bf16.mxu1 %v14634_v54  ;;  %v14690_v54 = vcombine.high %v1179_v49, %v1183_v53 }
 0x60e   :  { %9870 = vmatpush1.bf16.msra.mxu1 %v14633_v50  ;;  %v14689_v50 = vcombine.low %v1179_v49, %v1183_v53 }
 0x60f   :  { %9871 = vmatprep.subr.bf16.mxu1 %v14626_v62  ;;  %v14682_v62 = vcombine.high %v1171_v45, %v1175_v56 }
 0x612   :  { %9872 = vmatpush1.bf16.msra.mxu1 %v14625_v51  ;;  %v14681_v51 = vcombine.low %v1171_v45, %v1175_v56 }
 0x613   :  { %9873 = vmatprep.subr.bf16.mxu1 %v14618_v2 }
 0x616   :  { %9874 = vmatpush1.bf16.msra.mxu1 %v14617_v4  ;;  %v1167_v4 = vld [vmem:[#allocation5 + $0xe60] sm:$0xff] }
 0x617   :  { %9875 = vmatprep.subr.bf16.mxu1 %v14610_v15  ;;  %v14673_v61 = vcombine.low %v1163_v59, %v1167_v4  ;;  %v14674_v6 = vcombine.high %v1163_v59, %v1167_v4 }
 0x61a   :  { %9876 = vmatpush1.bf16.msra.mxu1 %v14609_v9 }
 0x61b   :  { %9877 = vmatprep.subr.bf16.mxu1 %v14602_v20  ;;  %v14666_v20 = vcombine.high %v1155_v10, %v1159_v34 }
 0x61e   :  { %9878 = vmatpush1.bf16.msra.mxu1 %v14601_v24  ;;  %v14665_v24 = vcombine.low %v1155_v10, %v1159_v34  ;;  %v1052_v10 = vld [vmem:[#allocation5 + $0xac8] sm:$0xff] }
 0x61f   :  { %9879 = vmatprep.subr.bf16.mxu1 %v14722_v60  ;;  %v14524_v60 = vcombine.high %v1012_v25, %v1016_v55  ;;  %v1056_v34 = vld [vmem:[#allocation5 + $0xae8] sm:$0xff] }
 0x622   :  { %9880 = vmatpush2.bf16.msra.mxu1 %v14721_v44 }
 0x623   :  { %9881 = vmatprep.subr.bf16.mxu1 %v14714_v42 }
 0x626   :  { %9882 = vmatpush2.bf16.msra.mxu1 %v14713_v14  ;;  %v1000_v14 = vld [vmem:[#allocation5 + $0x928] sm:$0xff] }
 0x627   :  { %9883 = vmatprep.subr.bf16.mxu1 %v14706_v40  ;;  %v976_v40 = vld [vmem:[#allocation5 + $0x868] sm:$0xff] }
 0x62a   :  { %9884 = vmatpush2.bf16.msra.mxu1 %v14705_v41 }
 0x62b   :  { %9885 = vmatprep.subr.bf16.mxu1 %v14698_v46  ;;  %v1088_v46 = vld [vmem:[#allocation5 + $0xbe8] sm:$0xff] }
 0x62e   :  { %9886 = vmatpush2.bf16.msra.mxu1 %v14697_v52  ;;  %v1084_v52 = vld [vmem:[#allocation5 + $0xbc8] sm:$0xff] }
 0x62f   :  { %9887 = vmatprep.subr.bf16.mxu1 %v14690_v54  ;;  %v14596_v53 = vcombine.high %v1084_v52, %v1088_v46  ;;  %v1080_v54 = vld [vmem:[#allocation5 + $0xba8] sm:$0xff]  ;;  %v14595_v45 = vcombine.low %v1084_v52, %v1088_v46  ;;  %v989_v52 = vld [vmem:[#allocation5 + $0x8d0] sm:$0xff] }
 0x630   :  { %v993_v46 = vld [vmem:[#allocation5 + $0x8f0] sm:$0xff] }
 0x632   :  { %9888 = vmatpush2.bf16.msra.mxu1 %v14689_v50  ;;  %v1076_v50 = vld [vmem:[#allocation5 + $0xb88] sm:$0xff] }
 0x633   :  { %9889 = vmatprep.subr.bf16.mxu1 %v14682_v62  ;;  %v14588_v56 = vcombine.high %v1076_v50, %v1080_v54  ;;  %v1072_v62 = vld [vmem:[#allocation5 + $0xb68] sm:$0xff] }
 0x636   :  { %9890 = vmatpush2.bf16.msra.mxu1 %v14681_v51  ;;  %v1068_v51 = vld [vmem:[#allocation5 + $0xb48] sm:$0xff] }
 0x637   :  { %9891 = vmatprep.subr.bf16.mxu1 %v14674_v6  ;;  %v14580_v4 = vcombine.high %v1068_v51, %v1072_v62 }
 0x63a   :  { %9892 = vmatpush2.bf16.msra.mxu1 %v14673_v61  ;;  %v1064_v61 = vld [vmem:[#allocation5 + $0xb28] sm:$0xff] }
 0x63b   :  { %9893 = vmatprep.subr.bf16.mxu1 %v14666_v20 }
 0x63e   :  { %9894 = vmatpush2.bf16.msra.mxu1 %v14665_v24 }
 0x641   :  { %v8343_v23 = vpop.f32.mrf.mxu1 }
 0x642   :  { %v8344_v13 = vadd.f32 %v8343_v23, %v8303_v47  ;;  %v16609_v17 = vpop.f32.mrf.mxu0  ;;  %v16643_v47 = vld [vmem:[#allocation5 + $0xde8] sm:$0xff] }
 0x643   :  { %v8345_v16 = vpop.f32.mrf.mxu1  ;;  %v1004_v23 = vld [vmem:[#allocation5 + $0x948] sm:$0xff]  ;;  %v14659_v43 = vcombine.low %v16641_v35, %v16643_v47 }
 0x644   :  { %v8514_v26 = vmul.f32 0.5, %v8344_v13  ;;  %13402 = vst [vmem:[%s16893_s7] sm:$0xff] %v8344_v13  ;;  %v8346_v1 = vadd.f32 %v8345_v16, %v8305_v28  ;;  %v16614_v32 = vpop.f32.mrf.mxu0  ;;  %v14660_v28 = vcombine.high %v16641_v35, %v16643_v47  ;;  %v14523_v13 = vcombine.low %v1012_v25, %v1016_v55  ;;  %v996_v16 = vld [vmem:[#allocation5 + $0x908] sm:$0xff] }
 0x645   :  { %v8347_v48 = vpop.f32.mrf.mxu1  ;;  %v14516_v42 = vcombine.high %v1004_v23, %v1008_v30  ;;  %v14507_v18 = vcombine.low %v996_v16, %v1000_v14  ;;  %v1044_v25 = vld [vmem:[#allocation5 + $0xa88] sm:$0xff] }
 0x646   :  { %v8518_v63 = vmul.f32 1.442695, %v8514_v26  ;;  %v8515_v38 = vmul.f32 0.5, %v8346_v1  ;;  %13403 = vst [vmem:[%s16893_s7 + $0x8] sm:$0xff] %v8346_v1  ;;  %v8388_v39 = vpop.f32.mrf.mxu0  ;;  %9945 = vmatprep.subr.bf16.mxu1 %v14660_v28  ;;  %v14515_v26 = vcombine.low %v1004_v23, %v1008_v30  ;;  %v14508_v1 = vcombine.high %v996_v16, %v1000_v14  ;;  %v988_v48 = vld [vmem:[#allocation5 + $0x8c8] sm:$0xff] }
 0x647   :  { %v8348_v31 = vpop.f32.mrf.mxu1  ;;  %v972_v39 = vld [vmem:[#allocation5 + $0x848] sm:$0xff] }
 0x648   :  { %16037 = vpow2.f32 %v8518_v63  ;;  %v8520_v57 = vmul.f32 1.442695, %v8515_v38  ;;  %v8389_v3 = vpop.f32.mrf.mxu0  ;;  %v14500_v63 = vcombine.high %v988_v48, %v992_v33  ;;  %v14492_v38 = vcombine.high %v980_v58, %v984_v27  ;;  %v1048_v55 = vld [vmem:[#allocation5 + $0xaa8] sm:$0xff] }
 0x649   :  { %v14491_v31 = vcombine.low %v980_v58, %v984_v27  ;;  %v14484_v41 = vcombine.high %v972_v39, %v976_v40  ;;  %v968_v3 = vld [vmem:[#allocation5 + $0x828] sm:$0xff]  ;;  %v14483_v0 = vcombine.low %v972_v39, %v976_v40  ;;  %v14556_v23 = vcombine.high %v1044_v25, %v1048_v55  ;;  %v1013_v58 = vld [vmem:[#allocation5 + $0x990] sm:$0xff] }
 0x64a   :  { %16039 = vpow2.f32 %v8520_v57  ;;  %v964_v57 = vld [vmem:[#allocation5 + $0x808] sm:$0xff]  ;;  %v1017_v27 = vld [vmem:[#allocation5 + $0x9b0] sm:$0xff] }
 0x64b   :  { %v14476_v12 = vcombine.high %v964_v57, %v968_v3  ;;  %v14475_v49 = vcombine.low %v964_v57, %v968_v3  ;;  %v1036_v30 = vld [vmem:[#allocation5 + $0xa48] sm:$0xff]  ;;  %v1005_v39 = vld [vmem:[#allocation5 + $0x950] sm:$0xff] }
 0x64c   :  { %v1040_v28 = vld [vmem:[#allocation5 + $0xa68] sm:$0xff]  ;;  %v1009_v40 = vld [vmem:[#allocation5 + $0x970] sm:$0xff] }
 0x64d   :  { %v1028_v16 = vld [vmem:[#allocation5 + $0xa08] sm:$0xff]  ;;  %v997_v57 = vld [vmem:[#allocation5 + $0x910] sm:$0xff] }
 0x64e   :  { %v1032_v14 = vld [vmem:[#allocation5 + $0xa28] sm:$0xff]  ;;  %v1001_v3 = vld [vmem:[#allocation5 + $0x930] sm:$0xff] }
 0x655   :  { %v16038_v2 = vpop.eup %16037 }
 0x656   :  { %v8530_v8 = vmul.f32 %v16038_v2, %v8526_v7  ;;  %v14587_v7 = vcombine.low %v1076_v50, %v1080_v54  ;;  %v981_v50 = vld [vmem:[#allocation5 + $0x890] sm:$0xff] }
 0x657   :  { %v16040_v9 = vpop.eup %16039  ;;  %v985_v54 = vld [vmem:[#allocation5 + $0x8b0] sm:$0xff] }
 0x658   :  { %v8531_v15 = vmul.f32 %v16040_v9, %v8527_v5  ;;  %v8534_v22 = vadd.f32 %v16046_v21, %v8530_v8  ;;  %v1060_v5 = vld [vmem:[#allocation5 + $0xb08] sm:$0xff]  ;;  %v14579_v9 = vcombine.low %v1068_v51, %v1072_v62  ;;  %v973_v51 = vld [vmem:[#allocation5 + $0x850] sm:$0xff] }
 0x659   :  { %v14572_v21 = vcombine.high %v1060_v5, %v1064_v61  ;;  %v977_v62 = vld [vmem:[#allocation5 + $0x870] sm:$0xff] }
 0x65a   :  { %v8535_v37 = vadd.f32 %v16047_v19, %v8531_v15  ;;  %13406 = vst [vmem:[%s16894_s8] sm:$0xff] %v8534_v22  ;;  %v16639_v44 = vpack.c.bf16 %v8534_v22, %v8534_v22  ;;  %v14571_v19 = vcombine.low %v1060_v5, %v1064_v61  ;;  %v5284_v5 = vsub.s32 6, %v16505_v29  ;;  %v965_v61 = vld [vmem:[#allocation5 + $0x810] sm:$0xff] }
 0x65c   :  { %v16634_v36 = vpack.c.bf16 %v8535_v37, %v8535_v37  ;;  %13407 = vst [vmem:[%s16894_s8 + $0x8] sm:$0xff] %v8535_v37  ;;  %v14564_v37 = vcombine.high %v1052_v10, %v1056_v34 }
 0x65e   :  { %9854 = vmatprep.mubr.bf16.mxu0 %v16634_v36 }
 0x65f   :  { %9855 = vmatmul.mubr.bf16.vlgmr.msra.gmra.mxu0 %v16639_v44 }
 0x660   :  { %9905 = vmatpush1.bf16.msra.mxu0 %v14531_v11  ;;  %9936 = vmatprep.mubr.bf16.mxu0 %v16634_v36  ;;  %v14499_v11 = vcombine.low %v988_v48, %v992_v33  ;;  %v1021_v48 = vld [vmem:[#allocation5 + $0x9d0] sm:$0xff] }
 0x661   :  { %9906 = vmatprep.subr.bf16.mxu0 %v14524_v60  ;;  %v14563_v60 = vcombine.low %v1052_v10, %v1056_v34  ;;  %v1025_v33 = vld [vmem:[#allocation5 + $0x9f0] sm:$0xff]  ;;  %v16048_v10 = vld [vmem:[#allocation8] sm:$0xff] }
 0x662   :  { %v5285_v34 = vrot.slane %v16048_v10, %v5284_v5  ;;  %v8529_v5 = vld [vmem:[%s16887_s1 + $0x18] sm:$0xff] }
 0x664   :  { %9907 = vmatpush1.bf16.msra.mxu0 %v14523_v13  ;;  %v14555_v13 = vcombine.low %v1044_v25, %v1048_v55  ;;  %v8385_v55 = vadd.f32 %v16609_v17, %v5285_v34  ;;  %v16049_v34 = vld [vmem:[%s16892_s6 + $0x10] sm:$0xff] }
 0x665   :  { %9908 = vmatprep.subr.bf16.mxu0 %v14516_v42  ;;  %v14548_v42 = vcombine.high %v1036_v30, %v1040_v28 }
 0x668   :  { %9909 = vmatpush1.bf16.msra.mxu0 %v14515_v26  ;;  %v14547_v26 = vcombine.low %v1036_v30, %v1040_v28 }
 0x669   :  { %9910 = vmatprep.subr.bf16.mxu0 %v14508_v1  ;;  %v14540_v1 = vcombine.high %v1028_v16, %v1032_v14 }
 0x66c   :  { %9911 = vmatpush1.bf16.msra.mxu0 %v14507_v18  ;;  %v14539_v18 = vcombine.low %v1028_v16, %v1032_v14  ;;  %v1069_v16 = vld [vmem:[#allocation5 + $0xb50] sm:$0xff] }
 0x66d   :  { %9912 = vmatprep.subr.bf16.mxu0 %v14500_v63  ;;  %v14534_v63 = vcombine.high %v1021_v48, %v1025_v33  ;;  %v1073_v14 = vld [vmem:[#allocation5 + $0xb70] sm:$0xff] }
 0x66e   :  { %v14582_v17 = vcombine.high %v1069_v16, %v1073_v14 }
 0x670   :  { %9913 = vmatpush1.bf16.msra.mxu0 %v14499_v11  ;;  %v14533_v11 = vcombine.low %v1021_v48, %v1025_v33 }
 0x671   :  { %9914 = vmatprep.subr.bf16.mxu0 %v14492_v38  ;;  %v14526_v38 = vcombine.high %v1013_v58, %v1017_v27 }
 0x674   :  { %9915 = vmatpush1.bf16.msra.mxu0 %v14491_v31  ;;  %v14525_v31 = vcombine.low %v1013_v58, %v1017_v27  ;;  %v14581_v27 = vcombine.low %v1069_v16, %v1073_v14  ;;  %v1136_v14 = vld [vmem:[#allocation5 + $0xd68] sm:$0xff] }
 0x675   :  { %9916 = vmatprep.subr.bf16.mxu0 %v14484_v41  ;;  %v14518_v41 = vcombine.high %v1005_v39, %v1009_v40 }
 0x678   :  { %9917 = vmatpush1.bf16.msra.mxu0 %v14483_v0  ;;  %v14517_v0 = vcombine.low %v1005_v39, %v1009_v40  ;;  %v1057_v40 = vld [vmem:[#allocation5 + $0xaf0] sm:$0xff] }
 0x679   :  { %9918 = vmatprep.subr.bf16.mxu0 %v14476_v12  ;;  %v14510_v12 = vcombine.high %v997_v57, %v1001_v3 }
 0x67c   :  { %9919 = vmatpush1.bf16.msra.mxu0 %v14475_v49  ;;  %v14509_v49 = vcombine.low %v997_v57, %v1001_v3 }
 0x67d   :  { %9920 = vmatprep.subr.bf16.mxu0 %v14596_v53  ;;  %v14502_v53 = vcombine.high %v989_v52, %v993_v46 }
 0x680   :  { %9921 = vmatpush2.bf16.msra.mxu0 %v14595_v45  ;;  %v14501_v45 = vcombine.low %v989_v52, %v993_v46 }
 0x681   :  { %v16655_v59 = vpop.f32.mrf.mxu1  ;;  %9922 = vmatprep.subr.bf16.mxu0 %v14588_v56  ;;  %v14494_v56 = vcombine.high %v981_v50, %v985_v54 }
 0x682   :  { %v16657_v2 = vpop.f32.mrf.mxu0 }
 0x683   :  { %v16659_v6 = vpop.f32.mrf.mxu1 }
 0x684   :  { %v16661_v8 = vpop.f32.mrf.mxu0  ;;  %9923 = vmatpush2.bf16.msra.mxu0 %v14587_v7  ;;  %v14493_v7 = vcombine.low %v981_v50, %v985_v54 }
 0x685   :  { %v8429_v15 = vpop.f32.mrf.mxu1  ;;  %9924 = vmatprep.subr.bf16.mxu0 %v14580_v4  ;;  %v14486_v4 = vcombine.high %v973_v51, %v977_v62 }
 0x686   :  { %v8470_v22 = vpop.f32.mrf.mxu0  ;;  %v5288_v15 = vsub.s32 7, %v16505_v29  ;;  %v8426_v29 = vadd.f32 %v16655_v59, %v8385_v55  ;;  %v1065_v59 = vld [vmem:[#allocation5 + $0xb30] sm:$0xff]  ;;  %v1144_v55 = vld [vmem:[#allocation5 + $0xda8] sm:$0xff] }
 0x687   :  { %v8430_v24 = vpop.f32.mrf.mxu1 }
 0x688   :  { %v8471_v20 = vpop.f32.mrf.mxu0  ;;  %9925 = vmatpush2.bf16.msra.mxu0 %v14579_v9  ;;  %v969_v9 = vld [vmem:[#allocation5 + $0x830] sm:$0xff] }
 0x689   :  { %9926 = vmatprep.subr.bf16.mxu0 %v14572_v21  ;;  %v14485_v21 = vcombine.low %v973_v51, %v977_v62  ;;  %v14478_v22 = vcombine.high %v965_v61, %v969_v9  ;;  %v1085_v24 = vld [vmem:[#allocation5 + $0xbd0] sm:$0xff] }
 0x68a   :  { %v1089_v20 = vld [vmem:[#allocation5 + $0xbf0] sm:$0xff] }
 0x68b   :  { %v14598_v25 = vcombine.high %v1085_v24, %v1089_v20  ;;  %v14597_v28 = vcombine.low %v1085_v24, %v1089_v20  ;;  %v8528_v51 = vld [vmem:[%s16887_s1 + $0x10] sm:$0xff] }
 0x68c   :  { %9927 = vmatpush2.bf16.msra.mxu0 %v14571_v19  ;;  %v5289_v19 = vrot.slane %v16048_v10, %v5288_v15 }
 0x68d   :  { %9928 = vmatprep.subr.bf16.mxu0 %v14564_v37  ;;  %v14477_v37 = vcombine.low %v965_v61, %v969_v9  ;;  %v1022_v61 = vld [vmem:[#allocation5 + $0x9d8] sm:$0xff] }
 0x68e   :  { %v8387_v30 = vadd.f32 %v16614_v32, %v5289_v19  ;;  %v1026_v9 = vld [vmem:[#allocation5 + $0x9f8] sm:$0xff] }
 0x68f   :  { %v14536_v20 = vcombine.high %v1022_v61, %v1026_v9  ;;  %v16050_v19 = vld [vmem:[%s16892_s6 + $0x18] sm:$0xff] }
 0x690   :  { %9929 = vmatpush2.bf16.msra.mxu0 %v14563_v60  ;;  %v1077_v60 = vld [vmem:[#allocation5 + $0xb90] sm:$0xff] }
 0x691   :  { %9930 = vmatprep.subr.bf16.mxu0 %v14556_v23  ;;  %v1081_v23 = vld [vmem:[#allocation5 + $0xbb0] sm:$0xff] }
 0x694   :  { %9931 = vmatpush2.bf16.msra.mxu0 %v14555_v13  ;;  %v14590_v13 = vcombine.high %v1077_v60, %v1081_v23 }
 0x695   :  { %9932 = vmatprep.subr.bf16.mxu0 %v14548_v42  ;;  %v8428_v42 = vadd.f32 %v16659_v6, %v8387_v30 }
 0x697   :  { %v8469_v33 = vadd.f32 %v16661_v8, %v8428_v42  ;;  %v1053_v8 = vld [vmem:[#allocation5 + $0xad0] sm:$0xff] }
 0x698   :  { %9933 = vmatpush2.bf16.msra.mxu0 %v14547_v26  ;;  %v8467_v26 = vadd.f32 %v16657_v2, %v8426_v29  ;;  %v14566_v3 = vcombine.high %v1053_v8, %v1057_v40  ;;  %v14565_v52 = vcombine.low %v1053_v8, %v1057_v40  ;;  %v14535_v29 = vcombine.low %v1022_v61, %v1026_v9  ;;  %v970_v61 = vld [vmem:[#allocation5 + $0x838] sm:$0xff] }
 0x699   :  { %9934 = vmatprep.subr.bf16.mxu0 %v14540_v1  ;;  %v14589_v1 = vcombine.low %v1077_v60, %v1081_v23  ;;  %v1014_v60 = vld [vmem:[#allocation5 + $0x998] sm:$0xff] }
 0x69a   :  { %v1018_v23 = vld [vmem:[#allocation5 + $0x9b8] sm:$0xff] }
 0x69b   :  { %v14528_v16 = vcombine.high %v1014_v60, %v1018_v23 }
 0x69c   :  { %9935 = vmatpush2.bf16.msra.mxu0 %v14539_v18  ;;  %v1061_v18 = vld [vmem:[#allocation5 + $0xb10] sm:$0xff] }
 0x69d   :  { %9986 = vmatprep.subr.bf16.mxu0 %v14534_v63  ;;  %v14573_v57 = vcombine.low %v1061_v18, %v1065_v59 }
 0x69f   :  { %9937 = vmatmul.mubr.bf16.vlgmr.msra.gmra.mxu0 %v16639_v44 }
 0x6a0   :  { %9987 = vmatpush1.bf16.msra.mxu0 %v14533_v11  ;;  %10018 = vmatprep.mubr.bf16.mxu0 %v16634_v36  ;;  %v14574_v11 = vcombine.high %v1061_v18, %v1065_v59  ;;  %v1124_v18 = vld [vmem:[#allocation5 + $0xd08] sm:$0xff] }
 0x6a1   :  { %9988 = vmatprep.subr.bf16.mxu0 %v14526_v38  ;;  %v1128_v59 = vld [vmem:[#allocation5 + $0xd28] sm:$0xff] }
 0x6a2   :  { %v14636_v47 = vcombine.high %v1124_v18, %v1128_v59 }
 0x6a4   :  { %9989 = vmatpush1.bf16.msra.mxu0 %v14525_v31 }
 0x6a5   :  { %9990 = vmatprep.subr.bf16.mxu0 %v14518_v41 }
 0x6a8   :  { %9991 = vmatpush1.bf16.msra.mxu0 %v14517_v0  ;;  %v1045_v0 = vld [vmem:[#allocation5 + $0xa90] sm:$0xff] }
 0x6a9   :  { %9992 = vmatprep.subr.bf16.mxu0 %v14510_v12  ;;  %v1049_v12 = vld [vmem:[#allocation5 + $0xab0] sm:$0xff] }
 0x6aa   :  { %v14558_v46 = vcombine.high %v1045_v0, %v1049_v12  ;;  %v14557_v50 = vcombine.low %v1045_v0, %v1049_v12 }
 0x6ac   :  { %9993 = vmatpush1.bf16.msra.mxu0 %v14509_v49  ;;  %v1037_v49 = vld [vmem:[#allocation5 + $0xa50] sm:$0xff] }
 0x6ad   :  { %9994 = vmatprep.subr.bf16.mxu0 %v14502_v53  ;;  %v1041_v53 = vld [vmem:[#allocation5 + $0xa70] sm:$0xff] }
 0x6ae   :  { %v14550_v54 = vcombine.high %v1037_v49, %v1041_v53  ;;  %v14549_v62 = vcombine.low %v1037_v49, %v1041_v53  ;;  %v1100_v49 = vld [vmem:[#allocation5 + $0xc48] sm:$0xff] }
 0x6af   :  { %v1104_v53 = vld [vmem:[#allocation5 + $0xc68] sm:$0xff] }
 0x6b0   :  { %9995 = vmatpush1.bf16.msra.mxu0 %v14501_v45  ;;  %v1029_v45 = vld [vmem:[#allocation5 + $0xa10] sm:$0xff]  ;;  %v14611_v9 = vcombine.low %v1100_v49, %v1104_v53 }
 0x6b1   :  { %9996 = vmatprep.subr.bf16.mxu0 %v14494_v56  ;;  %v1033_v56 = vld [vmem:[#allocation5 + $0xa30] sm:$0xff] }
 0x6b4   :  { %9997 = vmatpush1.bf16.msra.mxu0 %v14493_v7 }
 0x6b5   :  { %9998 = vmatprep.subr.bf16.mxu0 %v14486_v4  ;;  %v14542_v4 = vcombine.high %v1029_v45, %v1033_v56 }
 0x6b8   :  { %9999 = vmatpush1.bf16.msra.mxu0 %v14485_v21 }
 0x6b9   :  { %10000 = vmatprep.subr.bf16.mxu0 %v14478_v22  ;;  %v14541_v22 = vcombine.low %v1029_v45, %v1033_v56 }
 0x6bc   :  { %10001 = vmatpush1.bf16.msra.mxu0 %v14477_v37 }
 0x6bd   :  { %10002 = vmatprep.subr.bf16.mxu0 %v14598_v25  ;;  %v1140_v25 = vld [vmem:[#allocation5 + $0xd88] sm:$0xff] }
 0x6be   :  { %v14652_v42 = vcombine.high %v1140_v25, %v1144_v55 }
 0x6c0   :  { %10003 = vmatpush2.bf16.msra.mxu0 %v14597_v28 }
 0x6c1   :  { %v8507_v48 = vpop.f32.mrf.mxu1  ;;  %10004 = vmatprep.subr.bf16.mxu0 %v14590_v13  ;;  %v1132_v13 = vld [vmem:[#allocation5 + $0xd48] sm:$0xff] }
 0x6c2   :  { %v8508_v32 = vadd.f32 %v8507_v48, %v8467_v26  ;;  %v1006_v26 = vld [vmem:[#allocation5 + $0x958] sm:$0xff]  ;;  %v14651_v48 = vcombine.low %v1140_v25, %v1144_v55 }
 0x6c3   :  { %v8509_v63 = vpop.f32.mrf.mxu1 }
 0x6c4   :  { %v8516_v58 = vmul.f32 0.5, %v8508_v32  ;;  %13404 = vst [vmem:[%s16893_s7 + $0x10] sm:$0xff] %v8508_v32  ;;  %v8510_v6 = vadd.f32 %v8509_v63, %v8469_v33  ;;  %10005 = vmatpush2.bf16.msra.mxu0 %v14589_v1  ;;  %v1010_v1 = vld [vmem:[#allocation5 + $0x978] sm:$0xff]  ;;  %v14644_v33 = vcombine.high %v1132_v13, %v1136_v14 }
 0x6c5   :  { %v8511_v2 = vpop.f32.mrf.mxu1  ;;  %10006 = vmatprep.subr.bf16.mxu0 %v14582_v17  ;;  %v14527_v17 = vcombine.low %v1014_v60, %v1018_v23  ;;  %v14520_v32 = vcombine.high %v1006_v26, %v1010_v1  ;;  %v998_v63 = vld [vmem:[#allocation5 + $0x918] sm:$0xff]  ;;  %v14519_v35 = vcombine.low %v1006_v26, %v1010_v1  ;;  %v1204_v60 = vld [vmem:[#allocation5 + $0xf88] sm:$0xff] }
 0x6c6   :  { %v8522_v38 = vmul.f32 1.442695, %v8516_v58  ;;  %v8517_v39 = vmul.f32 0.5, %v8510_v6  ;;  %13405 = vst [vmem:[%s16893_s7 + $0x18] sm:$0xff] %v8510_v6  ;;  %v1002_v58 = vld [vmem:[#allocation5 + $0x938] sm:$0xff]  ;;  %v14643_v6 = vcombine.low %v1132_v13, %v1136_v14  ;;  %v1208_v23 = vld [vmem:[#allocation5 + $0xfa8] sm:$0xff] }
 0x6c7   :  { %v8512_v31 = vpop.f32.mrf.mxu1  ;;  %v990_v2 = vld [vmem:[#allocation5 + $0x8d8] sm:$0xff]  ;;  %v14716_v14 = vcombine.high %v1204_v60, %v1208_v23  ;;  %v1196_v1 = vld [vmem:[#allocation5 + $0xf48] sm:$0xff] }
 0x6c8   :  { %16041 = vpow2.f32 %v8522_v38  ;;  %v8524_v41 = vmul.f32 1.442695, %v8517_v39  ;;  %10007 = vmatpush2.bf16.msra.mxu0 %v14581_v27  ;;  %v1116_v27 = vld [vmem:[#allocation5 + $0xcc8] sm:$0xff]  ;;  %v14635_v38 = vcombine.low %v1124_v18, %v1128_v59  ;;  %v14511_v39 = vcombine.low %v998_v63, %v1002_v58  ;;  %v1082_v13 = vld [vmem:[#allocation5 + $0xbb8] sm:$0xff] }
 0x6c9   :  { %10008 = vmatprep.subr.bf16.mxu0 %v14574_v11  ;;  %v994_v11 = vld [vmem:[#allocation5 + $0x8f8] sm:$0xff]  ;;  %v1108_v31 = vld [vmem:[#allocation5 + $0xc88] sm:$0xff] }
 0x6ca   :  { %16043 = vpow2.f32 %v8524_v41  ;;  %v14504_v40 = vcombine.high %v990_v2, %v994_v11  ;;  %v1112_v41 = vld [vmem:[#allocation5 + $0xca8] sm:$0xff]  ;;  %v14503_v12 = vcombine.low %v990_v2, %v994_v11 }
 0x6cb   :  { %v14619_v45 = vcombine.low %v1108_v31, %v1112_v41  ;;  %v1180_v11 = vld [vmem:[#allocation5 + $0xec8] sm:$0xff] }
 0x6cc   :  { %10009 = vmatpush2.bf16.msra.mxu0 %v14573_v57  ;;  %v982_v57 = vld [vmem:[#allocation5 + $0x898] sm:$0xff] }
 0x6cd   :  { %10010 = vmatprep.subr.bf16.mxu0 %v14566_v3  ;;  %v986_v3 = vld [vmem:[#allocation5 + $0x8b8] sm:$0xff] }
 0x6ce   :  { %v14495_v56 = vcombine.low %v982_v57, %v986_v3 }
 0x6d0   :  { %10011 = vmatpush2.bf16.msra.mxu0 %v14565_v52  ;;  %v14620_v52 = vcombine.high %v1108_v31, %v1112_v41 }
 0x6d1   :  { %10012 = vmatprep.subr.bf16.mxu0 %v14558_v46  ;;  %v14496_v46 = vcombine.high %v982_v57, %v986_v3  ;;  %v1172_v3 = vld [vmem:[#allocation5 + $0xe88] sm:$0xff] }
 0x6d4   :  { %10013 = vmatpush2.bf16.msra.mxu0 %v14557_v50  ;;  %v974_v50 = vld [vmem:[#allocation5 + $0x858] sm:$0xff] }
 0x6d5   :  { %v16042_v7 = vpop.eup %16041  ;;  %10014 = vmatprep.subr.bf16.mxu0 %v14550_v54  ;;  %v978_v54 = vld [vmem:[#allocation5 + $0x878] sm:$0xff] }
 0x6d6   :  { %v8532_v15 = vmul.f32 %v16042_v7, %v8528_v51  ;;  %v14612_v51 = vcombine.high %v1100_v49, %v1104_v53  ;;  %v1092_v7 = vld [vmem:[#allocation5 + $0xc08] sm:$0xff] }
 0x6d7   :  { %v16044_v21 = vpop.eup %16043 }
 0x6d8   :  { %10015 = vmatpush2.bf16.msra.mxu0 %v14549_v62  ;;  %v8533_v10 = vmul.f32 %v16044_v21, %v8529_v5  ;;  %v8536_v24 = vadd.f32 %v16049_v34, %v8532_v15  ;;  %v14488_v62 = vcombine.high %v974_v50, %v978_v54  ;;  %v966_v5 = vld [vmem:[#allocation5 + $0x818] sm:$0xff]  ;;  %v14487_v15 = vcombine.low %v974_v50, %v978_v54  ;;  %v1216_v34 = vld [vmem:[#allocation5 + $0xfe8] sm:$0xff] }
 0x6d9   :  { %10016 = vmatprep.subr.bf16.mxu0 %v14542_v4  ;;  %v1096_v4 = vld [vmem:[#allocation5 + $0xc28] sm:$0xff] }
 0x6da   :  { %v8537_v37 = vadd.f32 %v16050_v19, %v8533_v10  ;;  %13408 = vst [vmem:[%s16894_s8 + $0x10] sm:$0xff] %v8536_v24  ;;  %v16699_v28 = vpack.c.bf16 %v8536_v24, %v8536_v24  ;;  %v14604_v21 = vcombine.high %v1092_v7, %v1096_v4  ;;  %v1212_v10 = vld [vmem:[#allocation5 + $0xfc8] sm:$0xff]  ;;  %v1086_v24 = vld [vmem:[#allocation5 + $0xbd8] sm:$0xff]  ;;  %v14603_v19 = vcombine.low %v1092_v7, %v1096_v4 }
 0x6db   :  { %v14724_v25 = vcombine.high %v1212_v10, %v1216_v34  ;;  %v1164_v54 = vld [vmem:[#allocation5 + $0xe48] sm:$0xff] }
 0x6dc   :  { %10017 = vmatpush2.bf16.msra.mxu0 %v14541_v22  ;;  %v16694_v30 = vpack.c.bf16 %v8537_v37, %v8537_v37  ;;  %13409 = vst [vmem:[%s16894_s8 + $0x18] sm:$0xff] %v8537_v37  ;;  %v14480_v22 = vcombine.high %v966_v5, %v970_v61  ;;  %v14479_v37 = vcombine.low %v966_v5, %v970_v61  ;;  %v1156_v61 = vld [vmem:[#allocation5 + $0xe08] sm:$0xff] }
 0x6dd   :  { %10068 = vmatprep.subr.bf16.mxu0 %v14536_v20  ;;  %v1090_v20 = vld [vmem:[#allocation5 + $0xbf8] sm:$0xff] }
 0x6de   :  { %9895 = vmatprep.mubr.bf16.mxu1 %v16694_v30  ;;  %v14600_v55 = vcombine.high %v1086_v24, %v1090_v20 }
 0x6df   :  { %10019 = vmatmul.mubr.bf16.vlgmr.msra.gmra.mxu0 %v16639_v44  ;;  %9896 = vmatmul.mubr.bf16.vlgmr.msra.gmra.mxu1 %v16699_v28 }
 0x6e0   :  { %9946 = vmatpush1.bf16.msra.mxu1 %v14659_v43  ;;  %10069 = vmatpush1.bf16.msra.mxu0 %v14535_v29  ;;  %v14512_v43 = vcombine.high %v998_v63, %v1002_v58  ;;  %v1078_v29 = vld [vmem:[#allocation5 + $0xb98] sm:$0xff]  ;;  %v1188_v58 = vld [vmem:[#allocation5 + $0xf08] sm:$0xff] }
 0x6e1   :  { %10100 = vmatprep.mubr.bf16.mxu0 %v16634_v36  ;;  %9977 = vmatprep.mubr.bf16.mxu1 %v16694_v30  ;;  %v1120_v36 = vld [vmem:[#allocation5 + $0xce8] sm:$0xff]  ;;  %v14592_v26 = vcombine.high %v1078_v29, %v1082_v13  ;;  %v14591_v18 = vcombine.low %v1078_v29, %v1082_v13  ;;  %v1145_v29 = vld [vmem:[#allocation5 + $0xdb0] sm:$0xff] }
 0x6e2   :  { %9947 = vmatprep.subr.bf16.mxu1 %v14652_v42  ;;  %10070 = vmatprep.subr.bf16.mxu0 %v14528_v16  ;;  %v14628_v8 = vcombine.high %v1116_v27, %v1120_v36  ;;  %v14627_v0 = vcombine.low %v1116_v27, %v1120_v36  ;;  %v14723_v42 = vcombine.low %v1212_v10, %v1216_v34 }
 0x6e3   :  { %v14599_v16 = vcombine.low %v1086_v24, %v1090_v20  ;;  %v1149_v20 = vld [vmem:[#allocation5 + $0xdd0] sm:$0xff] }
 0x6e4   :  { %9948 = vmatpush1.bf16.msra.mxu1 %v14651_v48  ;;  %10071 = vmatpush1.bf16.msra.mxu0 %v14527_v17  ;;  %v1200_v48 = vld [vmem:[#allocation5 + $0xf68] sm:$0xff]  ;;  %v1070_v17 = vld [vmem:[#allocation5 + $0xb58] sm:$0xff] }
 0x6e5   :  { %9949 = vmatprep.subr.bf16.mxu1 %v14644_v33  ;;  %10072 = vmatprep.subr.bf16.mxu0 %v14520_v32  ;;  %v1074_v33 = vld [vmem:[#allocation5 + $0xb78] sm:$0xff]  ;;  %v14715_v32 = vcombine.low %v1204_v60, %v1208_v23  ;;  %v14708_v59 = vcombine.high %v1196_v1, %v1200_v48  ;;  %v15647_v60 = vld [vmem:[#allocation3 + $0x8e4] ss:$16 sps:$4 sm:$0xff]  }
 0x6e6   :  { %v14584_v63 = vcombine.high %v1070_v17, %v1074_v33  ;;  %v14583_v27 = vcombine.low %v1070_v17, %v1074_v33  ;;  %v1141_v23 = vld [vmem:[#allocation5 + $0xd90] sm:$0xff] }
 0x6e7   :  { %v14653_v17 = vcombine.low %v1141_v23, %v1145_v29 }
 0x6e8   :  { %9950 = vmatpush1.bf16.msra.mxu1 %v14643_v6  ;;  %10073 = vmatpush1.bf16.msra.mxu0 %v14519_v35  ;;  %v1192_v6 = vld [vmem:[#allocation5 + $0xf28] sm:$0xff]  ;;  %v1062_v35 = vld [vmem:[#allocation5 + $0xb18] sm:$0xff] }
 0x6e9   :  { %9951 = vmatprep.subr.bf16.mxu1 %v14636_v47  ;;  %10074 = vmatprep.subr.bf16.mxu0 %v14512_v43  ;;  %v1066_v47 = vld [vmem:[#allocation5 + $0xb38] sm:$0xff]  ;;  %v14707_v43 = vcombine.low %v1196_v1, %v1200_v48  ;;  %v14700_v36 = vcombine.high %v1188_v58, %v1192_v6  ;;  %v15650_v1 = vld [vmem:[#allocation3 + $0x8c4] ss:$16 sps:$4 sm:$0xff]  }
 0x6ea   :  { %v14576_v2 = vcombine.high %v1062_v35, %v1066_v47  ;;  %v14575_v31 = vcombine.low %v1062_v35, %v1066_v47 }
 0x6ec   :  { %9952 = vmatpush1.bf16.msra.mxu1 %v14635_v38  ;;  %10075 = vmatpush1.bf16.msra.mxu0 %v14511_v39  ;;  %v1184_v38 = vld [vmem:[#allocation5 + $0xee8] sm:$0xff]  ;;  %v1054_v39 = vld [vmem:[#allocation5 + $0xad8] sm:$0xff] }
 0x6ed   :  { %9953 = vmatprep.subr.bf16.mxu1 %v14628_v8  ;;  %10076 = vmatprep.subr.bf16.mxu0 %v14504_v40  ;;  %v1058_v8 = vld [vmem:[#allocation5 + $0xaf8] sm:$0xff]  ;;  %v14699_v40 = vcombine.low %v1188_v58, %v1192_v6  ;;  %v14692_v41 = vcombine.high %v1180_v11, %v1184_v38  ;;  %v15653_v58 = vld [vmem:[#allocation3 + $0x8a4] ss:$16 sps:$4 sm:$0xff]  }
 0x6ee   :  { %v14568_v57 = vcombine.high %v1054_v39, %v1058_v8  ;;  %v14567_v49 = vcombine.low %v1054_v39, %v1058_v8  ;;  %v15654_v39 = vld [vmem:[#allocation3 + $0x880] ss:$16 sps:$4 sm:$0xff]  }
 0x6ef   :  { %v1109_v8 = vld [vmem:[#allocation5 + $0xc90] sm:$0xff] }
 0x6f0   :  { %9954 = vmatpush1.bf16.msra.mxu1 %v14627_v0  ;;  %10077 = vmatpush1.bf16.msra.mxu0 %v14503_v12  ;;  %v1176_v0 = vld [vmem:[#allocation5 + $0xea8] sm:$0xff]  ;;  %v1046_v12 = vld [vmem:[#allocation5 + $0xa98] sm:$0xff] }
 0x6f1   :  { %9955 = vmatprep.subr.bf16.mxu1 %v14620_v52  ;;  %10078 = vmatprep.subr.bf16.mxu0 %v14496_v46  ;;  %v1050_v52 = vld [vmem:[#allocation5 + $0xab8] sm:$0xff]  ;;  %v14691_v46 = vcombine.low %v1180_v11, %v1184_v38  ;;  %v14684_v53 = vcombine.high %v1172_v3, %v1176_v0 }
 0x6f2   :  { %v14560_v50 = vcombine.high %v1046_v12, %v1050_v52  ;;  %v14559_v7 = vcombine.low %v1046_v12, %v1050_v52  ;;  %v1105_v12 = vld [vmem:[#allocation5 + $0xc70] sm:$0xff] }
 0x6f3   :  { %v15662_v52 = vld [vmem:[#allocation3 + $0x844] ss:$16 sps:$4 sm:$0xff]  }
 0x6f4   :  { %9956 = vmatpush1.bf16.msra.mxu1 %v14619_v45  ;;  %10079 = vmatpush1.bf16.msra.mxu0 %v14495_v56  ;;  %v1168_v45 = vld [vmem:[#allocation5 + $0xe68] sm:$0xff]  ;;  %v1038_v56 = vld [vmem:[#allocation5 + $0xa58] sm:$0xff] }
 0x6f5   :  { %9957 = vmatprep.subr.bf16.mxu1 %v14612_v51  ;;  %10080 = vmatprep.subr.bf16.mxu0 %v14488_v62  ;;  %v1042_v51 = vld [vmem:[#allocation5 + $0xa78] sm:$0xff]  ;;  %v14683_v62 = vcombine.low %v1172_v3, %v1176_v0  ;;  %v14676_v4 = vcombine.high %v1164_v54, %v1168_v45  ;;  %v15657_v3 = vld [vmem:[#allocation3 + $0x860] ss:$16 sps:$4 sm:$0xff]  }
 0x6f6   :  { %v14552_v5 = vcombine.high %v1038_v56, %v1042_v51  ;;  %v14551_v10 = vcombine.low %v1038_v56, %v1042_v51  ;;  %v1101_v0 = vld [vmem:[#allocation5 + $0xc50] sm:$0xff] }
 0x6f7   :  { %v14613_v56 = vcombine.low %v1101_v0, %v1105_v12 }
 0x6f8   :  { %9958 = vmatpush1.bf16.msra.mxu1 %v14611_v9  ;;  %10081 = vmatpush1.bf16.msra.mxu0 %v14487_v15  ;;  %v1160_v9 = vld [vmem:[#allocation5 + $0xe28] sm:$0xff]  ;;  %v1030_v15 = vld [vmem:[#allocation5 + $0xa18] sm:$0xff] }
 0x6f9   :  { %9959 = vmatprep.subr.bf16.mxu1 %v14604_v21  ;;  %10082 = vmatprep.subr.bf16.mxu0 %v14480_v22  ;;  %v1034_v21 = vld [vmem:[#allocation5 + $0xa38] sm:$0xff]  ;;  %v14675_v22 = vcombine.low %v1164_v54, %v1168_v45  ;;  %v14668_v34 = vcombine.high %v1156_v61, %v1160_v9  ;;  %v1097_v54 = vld [vmem:[#allocation5 + $0xc30] sm:$0xff] }
 0x6fa   :  { %v14544_v24 = vcombine.high %v1030_v15, %v1034_v21  ;;  %v15665_v45 = vld [vmem:[#allocation3 + $0x824] ss:$16 sps:$4 sm:$0xff]  }
 0x6fc   :  { %9960 = vmatpush1.bf16.msra.mxu1 %v14603_v19  ;;  %10083 = vmatpush1.bf16.msra.mxu0 %v14479_v37  ;;  %v1153_v19 = vld [vmem:[#allocation5 + $0xdf0] sm:$0xff]  ;;  %v14667_v37 = vcombine.low %v1156_v61, %v1160_v9 }
 0x6fd   :  { %9961 = vmatprep.subr.bf16.mxu1 %v14724_v25  ;;  %10084 = vmatprep.subr.bf16.mxu0 %v14600_v55  ;;  %v14543_v25 = vcombine.low %v1030_v15, %v1034_v21  ;;  %v14662_v55 = vcombine.high %v1149_v20, %v1153_v19  ;;  %v14661_v13 = vcombine.low %v1149_v20, %v1153_v19  ;;  %v15666_v15 = vld [vmem:[#allocation3 + $0x800] ss:$16 sps:$4 sm:$0xff]  }
 0x6fe   :  { %v1205_v21 = vld [vmem:[#allocation5 + $0xf90] sm:$0xff] }
 0x6ff   :  { %v15669_v20 = vld [vmem:[#allocation3 + $0x9e0] ss:$16 sps:$4 sm:$0xff]  }
 0x700   :  { %9962 = vmatpush2.bf16.msra.mxu1 %v14723_v42  ;;  %10085 = vmatpush2.bf16.msra.mxu0 %v14599_v16  ;;  %v14654_v42 = vcombine.high %v1141_v23, %v1145_v29  ;;  %v15645_v16 = vld [vmem:[#allocation3 + $0x8e0] ss:$16 sps:$4 sm:$0xff]  }
 0x701   :  { %9963 = vmatprep.subr.bf16.mxu1 %v14716_v14  ;;  %10086 = vmatprep.subr.bf16.mxu0 %v14592_v26  ;;  %v1133_v14 = vld [vmem:[#allocation5 + $0xd50] sm:$0xff] }
 0x702   :  { %v1137_v26 = vld [vmem:[#allocation5 + $0xd70] sm:$0xff] }
 0x703   :  { %v14645_v35 = vcombine.low %v1133_v14, %v1137_v26  ;;  %v1197_v19 = vld [vmem:[#allocation5 + $0xf50] sm:$0xff] }
 0x704   :  { %9964 = vmatpush2.bf16.msra.mxu1 %v14715_v32  ;;  %10087 = vmatpush2.bf16.msra.mxu0 %v14591_v18  ;;  %v14646_v32 = vcombine.high %v1133_v14, %v1137_v26  ;;  %v15648_v18 = vld [vmem:[#allocation3 + $0x8c0] ss:$16 sps:$4 sm:$0xff]  }
 0x705   :  { %9965 = vmatprep.subr.bf16.mxu1 %v14708_v59  ;;  %10088 = vmatprep.subr.bf16.mxu0 %v14584_v63  ;;  %v1125_v59 = vld [vmem:[#allocation5 + $0xd10] sm:$0xff] }
 0x706   :  { %v1129_v63 = vld [vmem:[#allocation5 + $0xd30] sm:$0xff] }
 0x707   :  { %v14638_v47 = vcombine.high %v1125_v59, %v1129_v63  ;;  %v14637_v11 = vcombine.low %v1125_v59, %v1129_v63  ;;  %v15672_v23 = vld [vmem:[#allocation3 + $0x9c0] ss:$16 sps:$4 sm:$0xff]  }
 0x708   :  { %9966 = vmatpush2.bf16.msra.mxu1 %v14707_v43  ;;  %10089 = vmatpush2.bf16.msra.mxu0 %v14583_v27  ;;  %v15651_v43 = vld [vmem:[#allocation3 + $0x8a0] ss:$16 sps:$4 sm:$0xff]  }
 0x709   :  { %9967 = vmatprep.subr.bf16.mxu1 %v14700_v36  ;;  %10090 = vmatprep.subr.bf16.mxu0 %v14576_v2  ;;  %v1117_v27 = vld [vmem:[#allocation5 + $0xcd0] sm:$0xff] }
 0x70a   :  { %v1121_v36 = vld [vmem:[#allocation5 + $0xcf0] sm:$0xff] }
 0x70b   :  { %v15656_v2 = vld [vmem:[#allocation3 + $0x884] ss:$16 sps:$4 sm:$0xff]   ;;  %v14630_v38 = vcombine.high %v1117_v27, %v1121_v36  ;;  %v15675_v26 = vld [vmem:[#allocation3 + $0x9a0] ss:$16 sps:$4 sm:$0xff]  }
 0x70c   :  { %9968 = vmatpush2.bf16.msra.mxu1 %v14699_v40  ;;  %10091 = vmatpush2.bf16.msra.mxu0 %v14575_v31  ;;  %v1113_v40 = vld [vmem:[#allocation5 + $0xcb0] sm:$0xff] }
 0x70d   :  { %9969 = vmatprep.subr.bf16.mxu1 %v14692_v41  ;;  %10092 = vmatprep.subr.bf16.mxu0 %v14568_v57  ;;  %v15659_v31 = vld [vmem:[#allocation3 + $0x864] ss:$16 sps:$4 sm:$0xff]   ;;  %v14629_v41 = vcombine.low %v1117_v27, %v1121_v36  ;;  %v14622_v57 = vcombine.high %v1109_v8, %v1113_v40  ;;  %v15678_v63 = vld [vmem:[#allocation3 + $0x980] ss:$16 sps:$4 sm:$0xff]  }
 0x70e   :  { %v1189_v29 = vld [vmem:[#allocation5 + $0xf10] sm:$0xff] }
 0x70f   :  { %v1165_v27 = vld [vmem:[#allocation5 + $0xe50] sm:$0xff] }
 0x710   :  { %9970 = vmatpush2.bf16.msra.mxu1 %v14691_v46  ;;  %10093 = vmatpush2.bf16.msra.mxu0 %v14567_v49  ;;  %v14621_v46 = vcombine.low %v1109_v8, %v1113_v40  ;;  %v14614_v49 = vcombine.high %v1101_v0, %v1105_v12  ;;  %v1169_v36 = vld [vmem:[#allocation5 + $0xe70] sm:$0xff]  ;;  %v1150_v0 = vld [vmem:[#allocation5 + $0xdd8] sm:$0xff] }
 0x711   :  { %9971 = vmatprep.subr.bf16.mxu1 %v14684_v53  ;;  %10094 = vmatprep.subr.bf16.mxu0 %v14560_v50  ;;  %v15660_v53 = vld [vmem:[#allocation3 + $0x840] ss:$16 sps:$4 sm:$0xff]   ;;  %v1154_v12 = vld [vmem:[#allocation5 + $0xdf8] sm:$0xff] }
 0x712   :  { %v1093_v50 = vld [vmem:[#allocation5 + $0xc10] sm:$0xff] }
 0x713   :  { %v14606_v51 = vcombine.high %v1093_v50, %v1097_v54  ;;  %v14605_v61 = vcombine.low %v1093_v50, %v1097_v54  ;;  %v1157_v8 = vld [vmem:[#allocation5 + $0xe10] sm:$0xff]  ;;  %v1142_v50 = vld [vmem:[#allocation5 + $0xd98] sm:$0xff] }
 0x714   :  { %9972 = vmatpush2.bf16.msra.mxu1 %v14683_v62  ;;  %10095 = vmatpush2.bf16.msra.mxu0 %v14559_v7  ;;  %v15663_v62 = vld [vmem:[#allocation3 + $0x820] ss:$16 sps:$4 sm:$0xff]   ;;  %v1146_v54 = vld [vmem:[#allocation5 + $0xdb8] sm:$0xff] }
 0x715   :  { %9973 = vmatprep.subr.bf16.mxu1 %v14676_v4  ;;  %10096 = vmatprep.subr.bf16.mxu0 %v14552_v5  ;;  %v1213_v7 = vld [vmem:[#allocation5 + $0xfd0] sm:$0xff] }
 0x716   :  { %v1217_v4 = vld [vmem:[#allocation5 + $0xff0] sm:$0xff] }
 0x717   :  { %v15668_v5 = vld [vmem:[#allocation3 + $0x804] ss:$16 sps:$4 sm:$0xff]   ;;  %v14726_v9 = vcombine.high %v1213_v7, %v1217_v4 }
 0x718   :  { %9974 = vmatpush2.bf16.msra.mxu1 %v14675_v22  ;;  %10097 = vmatpush2.bf16.msra.mxu0 %v14551_v10  ;;  %v1209_v22 = vld [vmem:[#allocation5 + $0xfb0] sm:$0xff] }
 0x719   :  { %9975 = vmatprep.subr.bf16.mxu1 %v14668_v34  ;;  %10098 = vmatprep.subr.bf16.mxu0 %v14544_v24  ;;  %v15671_v10 = vld [vmem:[#allocation3 + $0x9e4] ss:$16 sps:$4 sm:$0xff]   ;;  %v14725_v34 = vcombine.low %v1213_v7, %v1217_v4  ;;  %v14718_v24 = vcombine.high %v1205_v21, %v1209_v22  ;;  %v14655_v4 = vcombine.low %v1142_v50, %v1146_v54 }
 0x71a   :  { %v1161_v40 = vld [vmem:[#allocation5 + $0xe30] sm:$0xff] }
 0x71c   :  { %9976 = vmatpush2.bf16.msra.mxu1 %v14667_v37  ;;  %10099 = vmatpush2.bf16.msra.mxu0 %v14543_v25  ;;  %v1201_v37 = vld [vmem:[#allocation5 + $0xf70] sm:$0xff] }
 0x71d   :  { %10027 = vmatprep.subr.bf16.mxu1 %v14662_v55  ;;  %11446 = vmatprep.subr.bf16.mxu0 %v15647_v60  ;;  %v15674_v25 = vld [vmem:[#allocation3 + $0x9c4] ss:$16 sps:$4 sm:$0xff]   ;;  %v14717_v55 = vcombine.low %v1205_v21, %v1209_v22  ;;  %v14710_v60 = vcombine.high %v1197_v19, %v1201_v37 }
 0x71f   :  { %9978 = vmatmul.mubr.bf16.vlgmr.msra.gmra.mxu1 %v16699_v28  ;;  %10101 = vmatmul.mubr.bf16.vlgmr.msra.gmra.mxu0 %v16639_v44  ;;  %v16711_v48 = vpop.f32.mrf.mxu0 }
 0x720   :  { %10028 = vmatpush1.bf16.msra.mxu1 %v14661_v13  ;;  %10059 = vmatprep.mubr.bf16.mxu1 %v16694_v30  ;;  %v1193_v13 = vld [vmem:[#allocation5 + $0xf30] sm:$0xff] }
 0x721   :  { %v16714_v33 = vpop.f32.mrf.mxu0  ;;  %10029 = vmatprep.subr.bf16.mxu1 %v14654_v42  ;;  %11447 = vmatpush1.bf16.msra.mxu0 %v15645_v16  ;;  %v15677_v42 = vld [vmem:[#allocation3 + $0x9a4] ss:$16 sps:$4 sm:$0xff]   ;;  %v14709_v16 = vcombine.low %v1197_v19, %v1201_v37  ;;  %v14702_v14 = vcombine.high %v1189_v29, %v1193_v13 }
 0x722   :  { %11448 = vmatprep.subr.bf16.mxu0 %v15650_v1  ;;  %v1181_v1 = vld [vmem:[#allocation5 + $0xed0] sm:$0xff] }
 0x723   :  { %v9860_v6 = vpop.f32.mrf.mxu0  ;;  %v15743_v19 = vld [vmem:[#allocation3 + $0xce4] ss:$16 sps:$4 sm:$0xff]  }
 0x724   :  { %10030 = vmatpush1.bf16.msra.mxu1 %v14653_v17  ;;  %v1185_v17 = vld [vmem:[#allocation5 + $0xef0] sm:$0xff] }
 0x725   :  { %v9861_v44 = vpop.f32.mrf.mxu0  ;;  %10031 = vmatprep.subr.bf16.mxu1 %v14646_v32  ;;  %11449 = vmatpush1.bf16.msra.mxu0 %v15648_v18  ;;  %v15680_v32 = vld [vmem:[#allocation3 + $0x984] ss:$16 sps:$4 sm:$0xff]   ;;  %v14701_v18 = vcombine.low %v1189_v29, %v1193_v13  ;;  %v14694_v59 = vcombine.high %v1181_v1, %v1185_v17  ;;  %v1102_v29 = vld [vmem:[#allocation5 + $0xc58] sm:$0xff] }
 0x726   :  { %11450 = vmatprep.subr.bf16.mxu0 %v15653_v58  ;;  %v1173_v58 = vld [vmem:[#allocation5 + $0xe90] sm:$0xff]  ;;  %v14693_v44 = vcombine.low %v1181_v1, %v1185_v17  ;;  %v1106_v13 = vld [vmem:[#allocation5 + $0xc78] sm:$0xff] }
 0x727   :  { %v1177_v6 = vld [vmem:[#allocation5 + $0xeb0] sm:$0xff]  ;;  %v14615_v1 = vcombine.low %v1102_v29, %v1106_v13 }
 0x728   :  { %10032 = vmatpush1.bf16.msra.mxu1 %v14645_v35  ;;  %v15683_v35 = vld [vmem:[#allocation3 + $0x964] ss:$16 sps:$4 sm:$0xff]  }
 0x729   :  { %10033 = vmatprep.subr.bf16.mxu1 %v14638_v47  ;;  %11451 = vmatpush1.bf16.msra.mxu0 %v15651_v43  ;;  %v14686_v47 = vcombine.high %v1173_v58, %v1177_v6  ;;  %v15681_v43 = vld [vmem:[#allocation3 + $0x960] ss:$16 sps:$4 sm:$0xff]  }
 0x72a   :  { %11452 = vmatprep.subr.bf16.mxu0 %v15656_v2  ;;  %v15686_v2 = vld [vmem:[#allocation3 + $0x944] ss:$16 sps:$4 sm:$0xff]  }
 0x72c   :  { %10034 = vmatpush1.bf16.msra.mxu1 %v14637_v11  ;;  %v14685_v11 = vcombine.low %v1173_v58, %v1177_v6  ;;  %v1206_v58 = vld [vmem:[#allocation5 + $0xf98] sm:$0xff] }
 0x72d   :  { %10035 = vmatprep.subr.bf16.mxu1 %v14630_v38  ;;  %11453 = vmatpush1.bf16.msra.mxu0 %v15654_v39  ;;  %v14678_v38 = vcombine.high %v1165_v27, %v1169_v36  ;;  %v15684_v39 = vld [vmem:[#allocation3 + $0x940] ss:$16 sps:$4 sm:$0xff]   ;;  %v1210_v6 = vld [vmem:[#allocation5 + $0xfb8] sm:$0xff] }
 0x72e   :  { %11454 = vmatprep.subr.bf16.mxu0 %v15659_v31  ;;  %v15689_v31 = vld [vmem:[#allocation3 + $0x924] ss:$16 sps:$4 sm:$0xff]  }
 0x730   :  { %10036 = vmatpush1.bf16.msra.mxu1 %v14629_v41  ;;  %v14677_v41 = vcombine.low %v1165_v27, %v1169_v36  ;;  %v14719_v27 = vcombine.low %v1206_v58, %v1210_v6 }
 0x731   :  { %10037 = vmatprep.subr.bf16.mxu1 %v14622_v57  ;;  %11455 = vmatpush1.bf16.msra.mxu0 %v15657_v3  ;;  %v14670_v57 = vcombine.high %v1157_v8, %v1161_v40  ;;  %v15687_v3 = vld [vmem:[#allocation3 + $0x920] ss:$16 sps:$4 sm:$0xff]  }
 0x732   :  { %11456 = vmatprep.subr.bf16.mxu0 %v15662_v52  ;;  %v15692_v52 = vld [vmem:[#allocation3 + $0x904] ss:$16 sps:$4 sm:$0xff]  }
 0x734   :  { %10038 = vmatpush1.bf16.msra.mxu1 %v14621_v46  ;;  %v14669_v46 = vcombine.low %v1157_v8, %v1161_v40  ;;  %v1182_v8 = vld [vmem:[#allocation5 + $0xed8] sm:$0xff] }
 0x735   :  { %10039 = vmatprep.subr.bf16.mxu1 %v14614_v49  ;;  %11457 = vmatpush1.bf16.msra.mxu0 %v15660_v53  ;;  %v14664_v49 = vcombine.high %v1150_v0, %v1154_v12  ;;  %v15690_v53 = vld [vmem:[#allocation3 + $0x900] ss:$16 sps:$4 sm:$0xff]   ;;  %v1186_v40 = vld [vmem:[#allocation5 + $0xef8] sm:$0xff] }
 0x736   :  { %11458 = vmatprep.subr.bf16.mxu0 %v15665_v45  ;;  %v14663_v45 = vcombine.low %v1150_v0, %v1154_v12  ;;  %v14695_v0 = vcombine.low %v1182_v8, %v1186_v40 }
 0x738   :  { %10040 = vmatpush1.bf16.msra.mxu1 %v14613_v56  ;;  %v14656_v56 = vcombine.high %v1142_v50, %v1146_v54  ;;  %v1158_v50 = vld [vmem:[#allocation5 + $0xe18] sm:$0xff] }
 0x739   :  { %10041 = vmatprep.subr.bf16.mxu1 %v14606_v51  ;;  %11459 = vmatpush1.bf16.msra.mxu0 %v15663_v62  ;;  %v1134_v51 = vld [vmem:[#allocation5 + $0xd58] sm:$0xff] }
 0x73a   :  { %11460 = vmatprep.subr.bf16.mxu0 %v15668_v5  ;;  %v1138_v62 = vld [vmem:[#allocation5 + $0xd78] sm:$0xff] }
 0x73b   :  { %v14647_v22 = vcombine.low %v1134_v51, %v1138_v62  ;;  %v1162_v54 = vld [vmem:[#allocation5 + $0xe38] sm:$0xff] }
 0x73c   :  { %10042 = vmatpush1.bf16.msra.mxu1 %v14605_v61  ;;  %v14648_v61 = vcombine.high %v1134_v51, %v1138_v62  ;;  %v14671_v51 = vcombine.low %v1158_v50, %v1162_v54  ;;  %v15695_v62 = vld [vmem:[#allocation3 + $0xae4] ss:$16 sps:$4 sm:$0xff]  }
 0x73d   :  { %10043 = vmatprep.subr.bf16.mxu1 %v14726_v9  ;;  %11461 = vmatpush1.bf16.msra.mxu0 %v15666_v15  ;;  %v1126_v9 = vld [vmem:[#allocation5 + $0xd18] sm:$0xff] }
 0x73e   :  { %11462 = vmatprep.subr.bf16.mxu0 %v15671_v10  ;;  %v1130_v15 = vld [vmem:[#allocation5 + $0xd38] sm:$0xff] }
 0x73f   :  { %v14639_v37 = vcombine.low %v1126_v9, %v1130_v15 }
 0x740   :  { %10044 = vmatpush2.bf16.msra.mxu1 %v14725_v34  ;;  %v14640_v34 = vcombine.high %v1126_v9, %v1130_v15 }
 0x741   :  { %10045 = vmatprep.subr.bf16.mxu1 %v14718_v24  ;;  %11463 = vmatpush2.bf16.msra.mxu0 %v15669_v20  ;;  %v1118_v24 = vld [vmem:[#allocation5 + $0xcd8] sm:$0xff] }
 0x742   :  { %11464 = vmatprep.subr.bf16.mxu0 %v15674_v25  ;;  %v1122_v20 = vld [vmem:[#allocation5 + $0xcf8] sm:$0xff] }
 0x743   :  { %v1110_v25 = vld [vmem:[#allocation5 + $0xc98] sm:$0xff] }
 0x744   :  { %10046 = vmatpush2.bf16.msra.mxu1 %v14717_v55  ;;  %v1114_v55 = vld [vmem:[#allocation5 + $0xcb8] sm:$0xff] }
 0x745   :  { %10047 = vmatprep.subr.bf16.mxu1 %v14710_v60  ;;  %11465 = vmatpush2.bf16.msra.mxu0 %v15672_v23  ;;  %v14631_v60 = vcombine.low %v1118_v24, %v1122_v20  ;;  %v14624_v23 = vcombine.high %v1110_v25, %v1114_v55 }
 0x746   :  { %11466 = vmatprep.subr.bf16.mxu0 %v15677_v42  ;;  %v14623_v42 = vcombine.low %v1110_v25, %v1114_v55  ;;  %v15699_v55 = vld [vmem:[#allocation3 + $0xaa0] ss:$16 sps:$4 sm:$0xff]  }
 0x748   :  { %10048 = vmatpush2.bf16.msra.mxu1 %v14709_v16  ;;  %v14616_v16 = vcombine.high %v1102_v29, %v1106_v13  ;;  %v15741_v29 = vld [vmem:[#allocation3 + $0xce0] ss:$16 sps:$4 sm:$0xff]  }
 0x749   :  { %10049 = vmatprep.subr.bf16.mxu1 %v14702_v14  ;;  %11467 = vmatpush2.bf16.msra.mxu0 %v15675_v26  ;;  %v1094_v14 = vld [vmem:[#allocation5 + $0xc18] sm:$0xff] }
 0x74a   :  { %11468 = vmatprep.subr.bf16.mxu0 %v15680_v32  ;;  %v1098_v26 = vld [vmem:[#allocation5 + $0xc38] sm:$0xff] }
 0x74b   :  { %v14608_v17 = vcombine.high %v1094_v14, %v1098_v26  ;;  %v1214_v32 = vld [vmem:[#allocation5 + $0xfd8] sm:$0xff] }
 0x74c   :  { %10050 = vmatpush2.bf16.msra.mxu1 %v14701_v18  ;;  %v1218_v18 = vld [vmem:[#allocation5 + $0xff8] sm:$0xff] }
 0x74d   :  { %10051 = vmatprep.subr.bf16.mxu1 %v14694_v59  ;;  %11469 = vmatpush2.bf16.msra.mxu0 %v15678_v63  ;;  %v14607_v59 = vcombine.low %v1094_v14, %v1098_v26  ;;  %v14728_v63 = vcombine.high %v1214_v32, %v1218_v18  ;;  %v15744_v14 = vld [vmem:[#allocation3 + $0xcc0] ss:$16 sps:$4 sm:$0xff]   ;;  %v15749_v26 = vld [vmem:[#allocation3 + $0xca4] ss:$16 sps:$4 sm:$0xff]  }
 0x74e   :  { %11470 = vmatprep.subr.bf16.mxu0 %v15683_v35  ;;  %v14727_v35 = vcombine.low %v1214_v32, %v1218_v18  ;;  %v15747_v32 = vld [vmem:[#allocation3 + $0xca0] ss:$16 sps:$4 sm:$0xff]   ;;  %v15752_v18 = vld [vmem:[#allocation3 + $0xc84] ss:$16 sps:$4 sm:$0xff]  }
 0x750   :  { %10052 = vmatpush2.bf16.msra.mxu1 %v14693_v44  ;;  %v14720_v44 = vcombine.high %v1206_v58, %v1210_v6  ;;  %v15750_v58 = vld [vmem:[#allocation3 + $0xc80] ss:$16 sps:$4 sm:$0xff]   ;;  %v15755_v6 = vld [vmem:[#allocation3 + $0xc64] ss:$16 sps:$4 sm:$0xff]  }
 0x751   :  { %10053 = vmatprep.subr.bf16.mxu1 %v14686_v47  ;;  %11471 = vmatpush2.bf16.msra.mxu0 %v15681_v43  ;;  %v1198_v47 = vld [vmem:[#allocation5 + $0xf58] sm:$0xff] }
 0x752   :  { %11472 = vmatprep.subr.bf16.mxu0 %v15686_v2  ;;  %v1202_v43 = vld [vmem:[#allocation5 + $0xf78] sm:$0xff] }
 0x753   :  { %v14712_v36 = vcombine.high %v1198_v47, %v1202_v43  ;;  %v1190_v2 = vld [vmem:[#allocation5 + $0xf18] sm:$0xff] }
 0x754   :  { %10054 = vmatpush2.bf16.msra.mxu1 %v14685_v11  ;;  %v1194_v11 = vld [vmem:[#allocation5 + $0xf38] sm:$0xff] }
 0x755   :  { %10055 = vmatprep.subr.bf16.mxu1 %v14678_v38  ;;  %11473 = vmatpush2.bf16.msra.mxu0 %v15684_v39  ;;  %v14711_v38 = vcombine.low %v1198_v47, %v1202_v43  ;;  %v14704_v39 = vcombine.high %v1190_v2, %v1194_v11  ;;  %v15753_v47 = vld [vmem:[#allocation3 + $0xc60] ss:$16 sps:$4 sm:$0xff]   ;;  %v15758_v43 = vld [vmem:[#allocation3 + $0xc44] ss:$16 sps:$4 sm:$0xff]  }
 0x756   :  { %11474 = vmatprep.subr.bf16.mxu0 %v15689_v31  ;;  %v14703_v31 = vcombine.low %v1190_v2, %v1194_v11  ;;  %v15756_v2 = vld [vmem:[#allocation3 + $0xc40] ss:$16 sps:$4 sm:$0xff]   ;;  %v15761_v11 = vld [vmem:[#allocation3 + $0xc24] ss:$16 sps:$4 sm:$0xff]  }
 0x758   :  { %10056 = vmatpush2.bf16.msra.mxu1 %v14677_v41  ;;  %v14696_v41 = vcombine.high %v1182_v8, %v1186_v40  ;;  %v15759_v8 = vld [vmem:[#allocation3 + $0xc20] ss:$16 sps:$4 sm:$0xff]   ;;  %v15764_v40 = vld [vmem:[#allocation3 + $0xc04] ss:$16 sps:$4 sm:$0xff]  }
 0x759   :  { %10057 = vmatprep.subr.bf16.mxu1 %v14670_v57  ;;  %11475 = vmatpush2.bf16.msra.mxu0 %v15687_v3  ;;  %v1174_v57 = vld [vmem:[#allocation5 + $0xe98] sm:$0xff] }
 0x75a   :  { %11476 = vmatprep.subr.bf16.mxu0 %v15692_v52  ;;  %v1178_v3 = vld [vmem:[#allocation5 + $0xeb8] sm:$0xff] }
 0x75b   :  { %v14688_v12 = vcombine.high %v1174_v57, %v1178_v3  ;;  %v1166_v52 = vld [vmem:[#allocation5 + $0xe58] sm:$0xff] }
 0x75c   :  { %10058 = vmatpush2.bf16.msra.mxu1 %v14669_v46  ;;  %v1170_v46 = vld [vmem:[#allocation5 + $0xe78] sm:$0xff] }
 0x75d   :  { %10109 = vmatprep.subr.bf16.mxu1 %v14664_v49  ;;  %11477 = vmatpush2.bf16.msra.mxu0 %v15690_v53  ;;  %v14687_v49 = vcombine.low %v1174_v57, %v1178_v3  ;;  %v14680_v53 = vcombine.high %v1166_v52, %v1170_v46  ;;  %v15762_v57 = vld [vmem:[#allocation3 + $0xc00] ss:$16 sps:$4 sm:$0xff]   ;;  %v15767_v3 = vld [vmem:[#allocation3 + $0xde4] ss:$16 sps:$4 sm:$0xff]  }
 0x75e   :  { %11528 = vmatprep.subr.bf16.mxu0 %v15743_v19 }
 0x75f   :  { %v16716_v7 = vpop.f32.mrf.mxu0  ;;  %10060 = vmatmul.mubr.bf16.vlgmr.msra.gmra.mxu1 %v16699_v28 }
 0x760   :  { %10110 = vmatpush1.bf16.msra.mxu1 %v14663_v45  ;;  %10141 = vmatprep.mubr.bf16.mxu1 %v16694_v30  ;;  %v14632_v30 = vcombine.high %v1118_v24, %v1122_v20  ;;  %v14679_v45 = vcombine.low %v1166_v52, %v1170_v46  ;;  %v15701_v24 = vld [vmem:[#allocation3 + $0xaa4] ss:$16 sps:$4 sm:$0xff]   ;;  %v15765_v52 = vld [vmem:[#allocation3 + $0xde0] ss:$16 sps:$4 sm:$0xff]  }
 0x761   :  { %v16720_v5 = vpop.f32.mrf.mxu0  ;;  %10111 = vmatprep.subr.bf16.mxu1 %v14656_v56  ;;  %v14672_v56 = vcombine.high %v1158_v50, %v1162_v54  ;;  %v15770_v46 = vld [vmem:[#allocation3 + $0xdc4] ss:$16 sps:$4 sm:$0xff]   ;;  %v15768_v50 = vld [vmem:[#allocation3 + $0xdc0] ss:$16 sps:$4 sm:$0xff]  }
 0x762   :  { %v15773_v54 = vld [vmem:[#allocation3 + $0xda4] ss:$16 sps:$4 sm:$0xff]  }
 0x763   :  { %v9942_v21 = vpop.f32.mrf.mxu0 }
 0x764   :  { %10112 = vmatpush1.bf16.msra.mxu1 %v14655_v4  ;;  %v15693_v4 = vld [vmem:[#allocation3 + $0xae0] ss:$16 sps:$4 sm:$0xff]  }
 0x765   :  { %v9943_v10 = vpop.f32.mrf.mxu0  ;;  %10113 = vmatprep.subr.bf16.mxu1 %v14648_v61  ;;  %v15698_v61 = vld [vmem:[#allocation3 + $0xac4] ss:$16 sps:$4 sm:$0xff]  }
 0x768   :  { %10114 = vmatpush1.bf16.msra.mxu1 %v14647_v22  ;;  %v15696_v22 = vld [vmem:[#allocation3 + $0xac0] ss:$16 sps:$4 sm:$0xff]  }
 0x769   :  { %10115 = vmatprep.subr.bf16.mxu1 %v14640_v34 }
 0x76c   :  { %10116 = vmatpush1.bf16.msra.mxu1 %v14639_v37 }
 0x76d   :  { %10117 = vmatprep.subr.bf16.mxu1 %v14632_v30 }
 0x770   :  { %10118 = vmatpush1.bf16.msra.mxu1 %v14631_v60 }
 0x771   :  { %10119 = vmatprep.subr.bf16.mxu1 %v14624_v23  ;;  %v15704_v23 = vld [vmem:[#allocation3 + $0xa84] ss:$16 sps:$4 sm:$0xff]  }
 0x774   :  { %10120 = vmatpush1.bf16.msra.mxu1 %v14623_v42  ;;  %v15746_v42 = vld [vmem:[#allocation3 + $0xcc4] ss:$16 sps:$4 sm:$0xff]  }
 0x775   :  { %10121 = vmatprep.subr.bf16.mxu1 %v14616_v16  ;;  %v15707_v16 = vld [vmem:[#allocation3 + $0xa64] ss:$16 sps:$4 sm:$0xff]  }
 0x778   :  { %10122 = vmatpush1.bf16.msra.mxu1 %v14615_v1  ;;  %v15705_v1 = vld [vmem:[#allocation3 + $0xa60] ss:$16 sps:$4 sm:$0xff]  }
 0x779   :  { %10123 = vmatprep.subr.bf16.mxu1 %v14608_v17  ;;  %v15710_v17 = vld [vmem:[#allocation3 + $0xa44] ss:$16 sps:$4 sm:$0xff]  }
 0x77c   :  { %10124 = vmatpush1.bf16.msra.mxu1 %v14607_v59  ;;  %v15708_v59 = vld [vmem:[#allocation3 + $0xa40] ss:$16 sps:$4 sm:$0xff]  }
 0x77d   :  { %10125 = vmatprep.subr.bf16.mxu1 %v14728_v63  ;;  %v15713_v63 = vld [vmem:[#allocation3 + $0xa24] ss:$16 sps:$4 sm:$0xff]  }
 0x780   :  { %10126 = vmatpush2.bf16.msra.mxu1 %v14727_v35  ;;  %v15711_v35 = vld [vmem:[#allocation3 + $0xa20] ss:$16 sps:$4 sm:$0xff]  }
 0x781   :  { %10127 = vmatprep.subr.bf16.mxu1 %v14720_v44  ;;  %v15716_v44 = vld [vmem:[#allocation3 + $0xa04] ss:$16 sps:$4 sm:$0xff]  }
 0x784   :  { %10128 = vmatpush2.bf16.msra.mxu1 %v14719_v27  ;;  %v15714_v27 = vld [vmem:[#allocation3 + $0xa00] ss:$16 sps:$4 sm:$0xff]  }
 0x785   :  { %10129 = vmatprep.subr.bf16.mxu1 %v14712_v36  ;;  %v15719_v36 = vld [vmem:[#allocation3 + $0xbe4] ss:$16 sps:$4 sm:$0xff]  }
 0x788   :  { %10130 = vmatpush2.bf16.msra.mxu1 %v14711_v38  ;;  %v15717_v38 = vld [vmem:[#allocation3 + $0xbe0] ss:$16 sps:$4 sm:$0xff]  }
 0x789   :  { %10131 = vmatprep.subr.bf16.mxu1 %v14704_v39  ;;  %v15722_v39 = vld [vmem:[#allocation3 + $0xbc4] ss:$16 sps:$4 sm:$0xff]  }
 0x78c   :  { %10132 = vmatpush2.bf16.msra.mxu1 %v14703_v31  ;;  %v15720_v31 = vld [vmem:[#allocation3 + $0xbc0] ss:$16 sps:$4 sm:$0xff]  }
 0x78d   :  { %10133 = vmatprep.subr.bf16.mxu1 %v14696_v41  ;;  %v15725_v41 = vld [vmem:[#allocation3 + $0xba4] ss:$16 sps:$4 sm:$0xff]  }
 0x790   :  { %10134 = vmatpush2.bf16.msra.mxu1 %v14695_v0  ;;  %v15723_v0 = vld [vmem:[#allocation3 + $0xba0] ss:$16 sps:$4 sm:$0xff]  }
 0x791   :  { %10135 = vmatprep.subr.bf16.mxu1 %v14688_v12  ;;  %v15728_v12 = vld [vmem:[#allocation3 + $0xb84] ss:$16 sps:$4 sm:$0xff]  }
 0x794   :  { %10136 = vmatpush2.bf16.msra.mxu1 %v14687_v49  ;;  %v15726_v49 = vld [vmem:[#allocation3 + $0xb80] ss:$16 sps:$4 sm:$0xff]  }
 0x795   :  { %10137 = vmatprep.subr.bf16.mxu1 %v14680_v53  ;;  %v15731_v53 = vld [vmem:[#allocation3 + $0xb64] ss:$16 sps:$4 sm:$0xff]  }
 0x798   :  { %10138 = vmatpush2.bf16.msra.mxu1 %v14679_v45  ;;  %v15729_v45 = vld [vmem:[#allocation3 + $0xb60] ss:$16 sps:$4 sm:$0xff]  }
 0x799   :  { %10139 = vmatprep.subr.bf16.mxu1 %v14672_v56  ;;  %v15734_v56 = vld [vmem:[#allocation3 + $0xb44] ss:$16 sps:$4 sm:$0xff]  }
 0x79c   :  { %10140 = vmatpush2.bf16.msra.mxu1 %v14671_v51  ;;  %v15771_v51 = vld [vmem:[#allocation3 + $0xda0] ss:$16 sps:$4 sm:$0xff]  }
 0x79d   :  { %11487 = vmatprep.subr.bf16.mxu1 %v15695_v62  ;;  %v15776_v62 = vld [vmem:[#allocation3 + $0xd84] ss:$16 sps:$4 sm:$0xff]  }
 0x79f   :  { %v16722_v9 = vpop.f32.mrf.mxu0  ;;  %10142 = vmatmul.mubr.bf16.vlgmr.msra.gmra.mxu1 %v16699_v28  ;;  %v9897_v15 = vpop.f32.mrf.mxu1 }
 0x7a0   :  { %v9898_v21 = vadd.f32 %v9897_v15, %v16711_v48  ;;  %11488 = vmatpush1.bf16.msra.mxu1 %v15693_v4  ;;  %v15732_v4 = vld [vmem:[#allocation3 + $0xb40] ss:$16 sps:$4 sm:$0xff]  }
 0x7a1   :  { %v16726_v10 = vpop.f32.mrf.mxu0  ;;  %v9899_v34 = vpop.f32.mrf.mxu1  ;;  %11489 = vmatprep.subr.bf16.mxu1 %v15698_v61  ;;  %v15737_v61 = vld [vmem:[#allocation3 + $0xb24] ss:$16 sps:$4 sm:$0xff]   ;;  %v15774_v15 = vld [vmem:[#allocation3 + $0xd80] ss:$16 sps:$4 sm:$0xff]  }
 0x7a2   :  { %v9900_v20 = vadd.f32 %v9899_v34, %v16714_v33  ;;  %v10150_v19 = vmax.f32 %v9898_v21, 0.0  ;;  %v15702_v33 = vld [vmem:[#allocation3 + $0xa80] ss:$16 sps:$4 sm:$0xff]   ;;  %v15779_v21 = vld [vmem:[#allocation3 + $0xd64] ss:$16 sps:$4 sm:$0xff]  }
 0x7a3   :  { %v10024_v37 = vpop.f32.mrf.mxu0  ;;  %v9901_v30 = vpop.f32.mrf.mxu1  ;;  %v15740_v34 = vld [vmem:[#allocation3 + $0xb04] ss:$16 sps:$4 sm:$0xff]  }
 0x7a4   :  { %v10151_v25 = vmax.f32 %v9900_v20, 0.0  ;;  %11490 = vmatpush1.bf16.msra.mxu1 %v15696_v22  ;;  %v16731_v13 = vpack.c.bf16 %v10150_v19, %v10150_v19  ;;  %v15735_v22 = vld [vmem:[#allocation3 + $0xb20] ss:$16 sps:$4 sm:$0xff]   ;;  %v15782_v20 = vld [vmem:[#allocation3 + $0xd44] ss:$16 sps:$4 sm:$0xff]  }
 0x7a5   :  { %v10025_v60 = vpop.f32.mrf.mxu0  ;;  %v9902_v28 = vpop.f32.mrf.mxu1  ;;  %11491 = vmatprep.subr.bf16.mxu1 %v15701_v24  ;;  %v15777_v24 = vld [vmem:[#allocation3 + $0xd60] ss:$16 sps:$4 sm:$0xff]   ;;  %v15791_v37 = vld [vmem:[#allocation3 + $0xee4] ss:$16 sps:$4 sm:$0xff]  }
 0x7a6   :  { %v16729_v48 = vpack.c.bf16 %v10151_v25, %v10151_v25  ;;  %v15738_v19 = vld [vmem:[#allocation3 + $0xb00] ss:$16 sps:$4 sm:$0xff]   ;;  %v15785_v25 = vld [vmem:[#allocation3 + $0xd24] ss:$16 sps:$4 sm:$0xff]  }
 0x7a7   :  { %v15780_v30 = vld [vmem:[#allocation3 + $0xd40] ss:$16 sps:$4 sm:$0xff]  }
 0x7a8   :  { %11478 = vmatprep.mubr.bf16.mxu0 %v16729_v48  ;;  %11492 = vmatpush1.bf16.msra.mxu1 %v15699_v55  ;;  %v15783_v55 = vld [vmem:[#allocation3 + $0xd20] ss:$16 sps:$4 sm:$0xff]  }
 0x7a9   :  { %11479 = vmatmul.mubr.bf16.vlgmr.msra.gmra.mxu0 %v16731_v13  ;;  %11493 = vmatprep.subr.bf16.mxu1 %v15704_v23  ;;  %v15788_v23 = vld [vmem:[#allocation3 + $0xd04] ss:$16 sps:$4 sm:$0xff]  }
 0x7aa   :  { %11529 = vmatpush1.bf16.msra.mxu0 %v15741_v29 }
 0x7ab   :  { %11530 = vmatprep.subr.bf16.mxu0 %v15746_v42 }
 0x7ac   :  { %11494 = vmatpush1.bf16.msra.mxu1 %v15702_v33 }
 0x7ad   :  { %11495 = vmatprep.subr.bf16.mxu1 %v15707_v16 }
 0x7ae   :  { %11531 = vmatpush1.bf16.msra.mxu0 %v15744_v14  ;;  %v15786_v14 = vld [vmem:[#allocation3 + $0xd00] ss:$16 sps:$4 sm:$0xff]  }
 0x7af   :  { %11532 = vmatprep.subr.bf16.mxu0 %v15749_v26 }
 0x7b0   :  { %11496 = vmatpush1.bf16.msra.mxu1 %v15705_v1 }
 0x7b1   :  { %11497 = vmatprep.subr.bf16.mxu1 %v15710_v17 }
 0x7b2   :  { %11533 = vmatpush1.bf16.msra.mxu0 %v15747_v32  ;;  %v15794_v32 = vld [vmem:[#allocation3 + $0x8ec] ss:$16 sps:$4 sm:$0xff]  }
 0x7b3   :  { %11534 = vmatprep.subr.bf16.mxu0 %v15752_v18 }
 0x7b4   :  { %11498 = vmatpush1.bf16.msra.mxu1 %v15708_v59 }
 0x7b5   :  { %11499 = vmatprep.subr.bf16.mxu1 %v15713_v63 }
 0x7b6   :  { %11535 = vmatpush1.bf16.msra.mxu0 %v15750_v58 }
 0x7b7   :  { %11536 = vmatprep.subr.bf16.mxu0 %v15755_v6  ;;  %v15789_v6 = vld [vmem:[#allocation3 + $0xee0] ss:$16 sps:$4 sm:$0xff]  }
 0x7b8   :  { %11500 = vmatpush1.bf16.msra.mxu1 %v15711_v35  ;;  %v15797_v35 = vld [vmem:[#allocation3 + $0xec4] ss:$16 sps:$4 sm:$0xff]  }
 0x7b9   :  { %11501 = vmatprep.subr.bf16.mxu1 %v15716_v44  ;;  %v15803_v44 = vld [vmem:[#allocation3 + $0xea4] ss:$16 sps:$4 sm:$0xff]  }
 0x7ba   :  { %11537 = vmatpush1.bf16.msra.mxu0 %v15753_v47  ;;  %v15801_v47 = vld [vmem:[#allocation3 + $0xea0] ss:$16 sps:$4 sm:$0xff]  }
 0x7bb   :  { %11538 = vmatprep.subr.bf16.mxu0 %v15758_v43  ;;  %v15809_v43 = vld [vmem:[#allocation3 + $0xe84] ss:$16 sps:$4 sm:$0xff]  }
 0x7bc   :  { %11502 = vmatpush1.bf16.msra.mxu1 %v15714_v27  ;;  %v15807_v27 = vld [vmem:[#allocation3 + $0xe80] ss:$16 sps:$4 sm:$0xff]  }
 0x7bd   :  { %11503 = vmatprep.subr.bf16.mxu1 %v15719_v36  ;;  %v15815_v36 = vld [vmem:[#allocation3 + $0xe64] ss:$16 sps:$4 sm:$0xff]  }
 0x7be   :  { %11539 = vmatpush1.bf16.msra.mxu0 %v15756_v2  ;;  %v15813_v2 = vld [vmem:[#allocation3 + $0xe60] ss:$16 sps:$4 sm:$0xff]  }
 0x7bf   :  { %11540 = vmatprep.subr.bf16.mxu0 %v15761_v11  ;;  %v15821_v11 = vld [vmem:[#allocation3 + $0xe44] ss:$16 sps:$4 sm:$0xff]  }
 0x7c0   :  { %11504 = vmatpush2.bf16.msra.mxu1 %v15717_v38  ;;  %v15819_v38 = vld [vmem:[#allocation3 + $0xe40] ss:$16 sps:$4 sm:$0xff]  }
 0x7c1   :  { %11505 = vmatprep.subr.bf16.mxu1 %v15722_v39  ;;  %v15827_v39 = vld [vmem:[#allocation3 + $0xe24] ss:$16 sps:$4 sm:$0xff]  }
 0x7c2   :  { %11541 = vmatpush1.bf16.msra.mxu0 %v15759_v8  ;;  %v15825_v8 = vld [vmem:[#allocation3 + $0xe20] ss:$16 sps:$4 sm:$0xff]  }
 0x7c3   :  { %11542 = vmatprep.subr.bf16.mxu0 %v15764_v40  ;;  %v15833_v40 = vld [vmem:[#allocation3 + $0xe04] ss:$16 sps:$4 sm:$0xff]  }
 0x7c4   :  { %11506 = vmatpush2.bf16.msra.mxu1 %v15720_v31  ;;  %v15831_v31 = vld [vmem:[#allocation3 + $0xe00] ss:$16 sps:$4 sm:$0xff]  }
 0x7c5   :  { %11507 = vmatprep.subr.bf16.mxu1 %v15725_v41  ;;  %v15839_v41 = vld [vmem:[#allocation3 + $0xfe4] ss:$16 sps:$4 sm:$0xff]  }
 0x7c6   :  { %11543 = vmatpush1.bf16.msra.mxu0 %v15762_v57  ;;  %v15837_v57 = vld [vmem:[#allocation3 + $0xfe0] ss:$16 sps:$4 sm:$0xff]  }
 0x7c7   :  { %11544 = vmatprep.subr.bf16.mxu0 %v15767_v3  ;;  %v15845_v3 = vld [vmem:[#allocation3 + $0xfc4] ss:$16 sps:$4 sm:$0xff]  }
 0x7c8   :  { %11508 = vmatpush2.bf16.msra.mxu1 %v15723_v0  ;;  %v15843_v0 = vld [vmem:[#allocation3 + $0xfc0] ss:$16 sps:$4 sm:$0xff]  }
 0x7c9   :  { %11509 = vmatprep.subr.bf16.mxu1 %v15728_v12  ;;  %v15851_v12 = vld [vmem:[#allocation3 + $0xfa4] ss:$16 sps:$4 sm:$0xff]  }
 0x7ca   :  { %11545 = vmatpush2.bf16.msra.mxu0 %v15765_v52  ;;  %v15849_v52 = vld [vmem:[#allocation3 + $0xfa0] ss:$16 sps:$4 sm:$0xff]  }
 0x7cb   :  { %11546 = vmatprep.subr.bf16.mxu0 %v15770_v46  ;;  %v15857_v46 = vld [vmem:[#allocation3 + $0xf84] ss:$16 sps:$4 sm:$0xff]  }
 0x7cc   :  { %11510 = vmatpush2.bf16.msra.mxu1 %v15726_v49  ;;  %v15855_v49 = vld [vmem:[#allocation3 + $0xf80] ss:$16 sps:$4 sm:$0xff]  }
 0x7cd   :  { %11511 = vmatprep.subr.bf16.mxu1 %v15731_v53  ;;  %v15863_v53 = vld [vmem:[#allocation3 + $0xf64] ss:$16 sps:$4 sm:$0xff]  }
 0x7ce   :  { %11547 = vmatpush2.bf16.msra.mxu0 %v15768_v50  ;;  %v15861_v50 = vld [vmem:[#allocation3 + $0xf60] ss:$16 sps:$4 sm:$0xff]  }
 0x7cf   :  { %11548 = vmatprep.subr.bf16.mxu0 %v15773_v54  ;;  %v15869_v54 = vld [vmem:[#allocation3 + $0xf44] ss:$16 sps:$4 sm:$0xff]  }
 0x7d0   :  { %11512 = vmatpush2.bf16.msra.mxu1 %v15729_v45  ;;  %v15867_v45 = vld [vmem:[#allocation3 + $0xf40] ss:$16 sps:$4 sm:$0xff]  }
 0x7d1   :  { %11513 = vmatprep.subr.bf16.mxu1 %v15734_v56  ;;  %v15875_v56 = vld [vmem:[#allocation3 + $0xf24] ss:$16 sps:$4 sm:$0xff]  }
 0x7d2   :  { %11549 = vmatpush2.bf16.msra.mxu0 %v15771_v51  ;;  %v15873_v51 = vld [vmem:[#allocation3 + $0xf20] ss:$16 sps:$4 sm:$0xff]  }
 0x7d3   :  { %11550 = vmatprep.subr.bf16.mxu0 %v15776_v62 }
 0x7d4   :  { %11514 = vmatpush2.bf16.msra.mxu1 %v15732_v4  ;;  %v15881_v4 = vld [vmem:[#allocation3 + $0xf04] ss:$16 sps:$4 sm:$0xff]  }
 0x7d5   :  { %11515 = vmatprep.subr.bf16.mxu1 %v15737_v61 }
 0x7d6   :  { %11551 = vmatpush2.bf16.msra.mxu0 %v15774_v15 }
 0x7d7   :  { %11552 = vmatprep.subr.bf16.mxu0 %v15779_v21 }
 0x7d8   :  { %11516 = vmatpush2.bf16.msra.mxu1 %v15735_v22  ;;  %v15879_v22 = vld [vmem:[#allocation3 + $0xf00] ss:$16 sps:$4 sm:$0xff]  }
 0x7d9   :  { %11517 = vmatprep.subr.bf16.mxu1 %v15740_v34 }
 0x7da   :  { %11553 = vmatpush2.bf16.msra.mxu0 %v15777_v24 }
 0x7db   :  { %11554 = vmatprep.subr.bf16.mxu0 %v15782_v20  ;;  %v15887_v20 = vld [vmem:[#allocation3 + $0xaec] ss:$16 sps:$4 sm:$0xff]  }
 0x7dc   :  { %11518 = vmatpush2.bf16.msra.mxu1 %v15738_v19 }
 0x7dd   :  { %11569 = vmatprep.subr.bf16.mxu1 %v15791_v37 }
 0x7de   :  { %11555 = vmatpush2.bf16.msra.mxu0 %v15780_v30 }
 0x7df   :  { %v9979_v60 = vpop.f32.mrf.mxu1  ;;  %v16735_v28 = vpop.f32.mrf.mxu0  ;;  %11556 = vmatprep.subr.bf16.mxu0 %v15785_v25  ;;  %v15792_v25 = vld [vmem:[#allocation3 + $0x8e8] ss:$16 sps:$4 sm:$0xff]  }
 0x7e0   :  { %v9980_v29 = vadd.f32 %v9979_v60, %v16716_v7  ;;  %v15800_v60 = vld [vmem:[#allocation3 + $0x8cc] ss:$16 sps:$4 sm:$0xff]  }
 0x7e1   :  { %v9981_v42 = vpop.f32.mrf.mxu1  ;;  %v16738_v33 = vpop.f32.mrf.mxu0 }
 0x7e2   :  { %v9982_v16 = vadd.f32 %v9981_v42, %v16720_v5  ;;  %11557 = vmatpush2.bf16.msra.mxu0 %v15783_v55  ;;  %v10152_v26 = vmax.f32 %v9980_v29, 0.0  ;;  %v15795_v5 = vld [vmem:[#allocation3 + $0xec0] ss:$16 sps:$4 sm:$0xff]   ;;  %v15812_v29 = vld [vmem:[#allocation3 + $0x88c] ss:$16 sps:$4 sm:$0xff]  }
 0x7e3   :  { %v9983_v1 = vpop.f32.mrf.mxu1  ;;  %v10106_v17 = vpop.f32.mrf.mxu0  ;;  %11558 = vmatprep.subr.bf16.mxu0 %v15788_v23  ;;  %v15804_v23 = vld [vmem:[#allocation3 + $0x8a8] ss:$16 sps:$4 sm:$0xff]  }
 0x7e4   :  { %v10153_v18 = vmax.f32 %v9982_v16, 0.0  ;;  %v16743_v7 = vpack.c.bf16 %v10152_v26, %v10152_v26  ;;  %v15810_v42 = vld [vmem:[#allocation3 + $0x888] ss:$16 sps:$4 sm:$0xff]   ;;  %v15818_v16 = vld [vmem:[#allocation3 + $0x86c] ss:$16 sps:$4 sm:$0xff]  }
 0x7e5   :  { %v9984_v59 = vpop.f32.mrf.mxu1  ;;  %v10107_v63 = vpop.f32.mrf.mxu0  ;;  %v15824_v26 = vld [vmem:[#allocation3 + $0x84c] ss:$16 sps:$4 sm:$0xff]   ;;  %v15822_v1 = vld [vmem:[#allocation3 + $0x848] ss:$16 sps:$4 sm:$0xff]  }
 0x7e6   :  { %v16741_v58 = vpack.c.bf16 %v10153_v18, %v10153_v18  ;;  %11559 = vmatpush2.bf16.msra.mxu0 %v15786_v14  ;;  %v15816_v14 = vld [vmem:[#allocation3 + $0x868] ss:$16 sps:$4 sm:$0xff]   ;;  %v15830_v17 = vld [vmem:[#allocation3 + $0x82c] ss:$16 sps:$4 sm:$0xff]  }
 0x7e7   :  { %11610 = vmatprep.subr.bf16.mxu0 %v15794_v32  ;;  %v15836_v32 = vld [vmem:[#allocation3 + $0x80c] ss:$16 sps:$4 sm:$0xff]   ;;  %v15834_v18 = vld [vmem:[#allocation3 + $0x808] ss:$16 sps:$4 sm:$0xff]  }
 0x7e8   :  { %11519 = vmatprep.mubr.bf16.mxu1 %v16741_v58  ;;  %v15842_v59 = vld [vmem:[#allocation3 + $0x9ec] ss:$16 sps:$4 sm:$0xff]   ;;  %v15840_v63 = vld [vmem:[#allocation3 + $0x9e8] ss:$16 sps:$4 sm:$0xff]  }
 0x7e9   :  { %11520 = vmatmul.mubr.bf16.vlgmr.msra.gmra.mxu1 %v16743_v7 }
 0x7ea   :  { %11570 = vmatpush1.bf16.msra.mxu1 %v15789_v6  ;;  %v15848_v6 = vld [vmem:[#allocation3 + $0x9cc] ss:$16 sps:$4 sm:$0xff]  }
 0x7eb   :  { %11571 = vmatprep.subr.bf16.mxu1 %v15797_v35  ;;  %v15846_v35 = vld [vmem:[#allocation3 + $0x9c8] ss:$16 sps:$4 sm:$0xff]  }
 0x7ee   :  { %11572 = vmatpush1.bf16.msra.mxu1 %v15795_v5  ;;  %v15854_v5 = vld [vmem:[#allocation3 + $0x9ac] ss:$16 sps:$4 sm:$0xff]  }
 0x7ef   :  { %11573 = vmatprep.subr.bf16.mxu1 %v15803_v44  ;;  %v15852_v44 = vld [vmem:[#allocation3 + $0x9a8] ss:$16 sps:$4 sm:$0xff]  }
 0x7f2   :  { %11574 = vmatpush1.bf16.msra.mxu1 %v15801_v47  ;;  %v15860_v47 = vld [vmem:[#allocation3 + $0x98c] ss:$16 sps:$4 sm:$0xff]  }
 0x7f3   :  { %11575 = vmatprep.subr.bf16.mxu1 %v15809_v43  ;;  %v15858_v43 = vld [vmem:[#allocation3 + $0x988] ss:$16 sps:$4 sm:$0xff]  }
 0x7f6   :  { %11576 = vmatpush1.bf16.msra.mxu1 %v15807_v27  ;;  %v15866_v27 = vld [vmem:[#allocation3 + $0x96c] ss:$16 sps:$4 sm:$0xff]  }
 0x7f7   :  { %11577 = vmatprep.subr.bf16.mxu1 %v15815_v36  ;;  %v15864_v36 = vld [vmem:[#allocation3 + $0x968] ss:$16 sps:$4 sm:$0xff]  }
 0x7fa   :  { %11578 = vmatpush1.bf16.msra.mxu1 %v15813_v2  ;;  %v15872_v2 = vld [vmem:[#allocation3 + $0x94c] ss:$16 sps:$4 sm:$0xff]  }
 0x7fb   :  { %11579 = vmatprep.subr.bf16.mxu1 %v15821_v11  ;;  %v15870_v11 = vld [vmem:[#allocation3 + $0x948] ss:$16 sps:$4 sm:$0xff]  }
 0x7fe   :  { %11580 = vmatpush1.bf16.msra.mxu1 %v15819_v38  ;;  %v15878_v38 = vld [vmem:[#allocation3 + $0x92c] ss:$16 sps:$4 sm:$0xff]  }
 0x7ff   :  { %11581 = vmatprep.subr.bf16.mxu1 %v15827_v39  ;;  %v15876_v39 = vld [vmem:[#allocation3 + $0x928] ss:$16 sps:$4 sm:$0xff]  }
 0x802   :  { %11582 = vmatpush1.bf16.msra.mxu1 %v15825_v8 }
 0x803   :  { %11583 = vmatprep.subr.bf16.mxu1 %v15833_v40  ;;  %v15884_v40 = vld [vmem:[#allocation3 + $0x90c] ss:$16 sps:$4 sm:$0xff]  }
 0x806   :  { %11584 = vmatpush1.bf16.msra.mxu1 %v15831_v31 }
 0x807   :  { %11585 = vmatprep.subr.bf16.mxu1 %v15839_v41 }
 0x80a   :  { %11586 = vmatpush2.bf16.msra.mxu1 %v15837_v57 }
 0x80b   :  { %11587 = vmatprep.subr.bf16.mxu1 %v15845_v3  ;;  %v15882_v3 = vld [vmem:[#allocation3 + $0x908] ss:$16 sps:$4 sm:$0xff]  }
 0x80e   :  { %11588 = vmatpush2.bf16.msra.mxu1 %v15843_v0 }
 0x80f   :  { %11589 = vmatprep.subr.bf16.mxu1 %v15851_v12 }
 0x812   :  { %11590 = vmatpush2.bf16.msra.mxu1 %v15849_v52  ;;  %v15890_v52 = vld [vmem:[#allocation3 + $0xcec] ss:$16 sps:$4 sm:$0xff]  }
 0x813   :  { %11591 = vmatprep.subr.bf16.mxu1 %v15857_v46 }
 0x816   :  { %11592 = vmatpush2.bf16.msra.mxu1 %v15855_v49 }
 0x817   :  { %11593 = vmatprep.subr.bf16.mxu1 %v15863_v53 }
 0x81a   :  { %11594 = vmatpush2.bf16.msra.mxu1 %v15861_v50  ;;  %v15885_v50 = vld [vmem:[#allocation3 + $0xae8] ss:$16 sps:$4 sm:$0xff]  }
 0x81b   :  { %11595 = vmatprep.subr.bf16.mxu1 %v15869_v54  ;;  %v15888_v54 = vld [vmem:[#allocation3 + $0xce8] ss:$16 sps:$4 sm:$0xff]  }
 0x81e   :  { %11596 = vmatpush2.bf16.msra.mxu1 %v15867_v45 }
 0x81f   :  { %v10061_v62 = vpop.f32.mrf.mxu1  ;;  %11597 = vmatprep.subr.bf16.mxu1 %v15875_v56 }
 0x820   :  { %v10062_v61 = vadd.f32 %v10061_v62, %v16722_v9  ;;  %v15798_v9 = vld [vmem:[#allocation3 + $0x8c8] ss:$16 sps:$4 sm:$0xff]  }
 0x821   :  { %v10063_v15 = vpop.f32.mrf.mxu1  ;;  %v15894_v62 = vld [vmem:[#allocation3 + $0xcc8] ss:$16 sps:$4 sm:$0xff]  }
 0x822   :  { %v10064_v21 = vadd.f32 %v10063_v15, %v16726_v10  ;;  %11598 = vmatpush2.bf16.msra.mxu1 %v15873_v51  ;;  %v10154_v34 = vmax.f32 %v10062_v61, 0.0  ;;  %v15806_v10 = vld [vmem:[#allocation3 + $0x8ac] ss:$16 sps:$4 sm:$0xff]   ;;  %v15891_v51 = vld [vmem:[#allocation3 + $0xac8] ss:$16 sps:$4 sm:$0xff]  }
 0x823   :  { %v10065_v24 = vpop.f32.mrf.mxu1  ;;  %11599 = vmatprep.subr.bf16.mxu1 %v15881_v4  ;;  %v15899_v61 = vld [vmem:[#allocation3 + $0xaac] ss:$16 sps:$4 sm:$0xff]  }
 0x824   :  { %v10155_v19 = vmax.f32 %v10064_v21, 0.0  ;;  %v16751_v55 = vpack.c.bf16 %v10154_v34, %v10154_v34  ;;  %v15902_v15 = vld [vmem:[#allocation3 + $0xcac] ss:$16 sps:$4 sm:$0xff]  }
 0x825   :  { %v10066_v37 = vpop.f32.mrf.mxu1  ;;  %v15905_v24 = vld [vmem:[#allocation3 + $0xa8c] ss:$16 sps:$4 sm:$0xff]  }
 0x826   :  { %v16749_v30 = vpack.c.bf16 %v10155_v19, %v10155_v19  ;;  %11600 = vmatpush2.bf16.msra.mxu1 %v15879_v22  ;;  %v15900_v22 = vld [vmem:[#allocation3 + $0xca8] ss:$16 sps:$4 sm:$0xff]   ;;  %v15911_v37 = vld [vmem:[#allocation3 + $0xa6c] ss:$16 sps:$4 sm:$0xff]  }
 0x827   :  { %11651 = vmatprep.subr.bf16.mxu1 %v15887_v20  ;;  %v15908_v20 = vld [vmem:[#allocation3 + $0xc8c] ss:$16 sps:$4 sm:$0xff]   ;;  %v15903_v19 = vld [vmem:[#allocation3 + $0xa88] ss:$16 sps:$4 sm:$0xff]  }
 0x828   :  { %11560 = vmatprep.mubr.bf16.mxu0 %v16749_v30 }
 0x829   :  { %11561 = vmatmul.mubr.bf16.vlgmr.msra.gmra.mxu0 %v16751_v55 }
 0x82a   :  { %11611 = vmatpush1.bf16.msra.mxu0 %v15792_v25  ;;  %11642 = vmatprep.mubr.bf16.mxu0 %v16729_v48  ;;  %v15828_v48 = vld [vmem:[#allocation3 + $0x828] ss:$16 sps:$4 sm:$0xff]  }
 0x82b   :  { %11612 = vmatprep.subr.bf16.mxu0 %v15800_v60  ;;  %v15909_v25 = vld [vmem:[#allocation3 + $0xa68] ss:$16 sps:$4 sm:$0xff]  }
 0x82c   :  { %v15912_v60 = vld [vmem:[#allocation3 + $0xc68] ss:$16 sps:$4 sm:$0xff]  }
 0x82e   :  { %11613 = vmatpush1.bf16.msra.mxu0 %v15798_v9  ;;  %v15917_v9 = vld [vmem:[#allocation3 + $0xa4c] ss:$16 sps:$4 sm:$0xff]  }
 0x82f   :  { %11614 = vmatprep.subr.bf16.mxu0 %v15806_v10  ;;  %v15920_v10 = vld [vmem:[#allocation3 + $0xc4c] ss:$16 sps:$4 sm:$0xff]  }
 0x832   :  { %11615 = vmatpush1.bf16.msra.mxu0 %v15804_v23  ;;  %v15915_v23 = vld [vmem:[#allocation3 + $0xa48] ss:$16 sps:$4 sm:$0xff]  }
 0x833   :  { %11616 = vmatprep.subr.bf16.mxu0 %v15812_v29  ;;  %v15918_v29 = vld [vmem:[#allocation3 + $0xc48] ss:$16 sps:$4 sm:$0xff]  }
 0x836   :  { %11617 = vmatpush1.bf16.msra.mxu0 %v15810_v42  ;;  %v15923_v42 = vld [vmem:[#allocation3 + $0xa2c] ss:$16 sps:$4 sm:$0xff]  }
 0x837   :  { %11618 = vmatprep.subr.bf16.mxu0 %v15818_v16  ;;  %v15926_v16 = vld [vmem:[#allocation3 + $0xc2c] ss:$16 sps:$4 sm:$0xff]  }
 0x83a   :  { %11619 = vmatpush1.bf16.msra.mxu0 %v15816_v14  ;;  %v15921_v14 = vld [vmem:[#allocation3 + $0xa28] ss:$16 sps:$4 sm:$0xff]  }
 0x83b   :  { %11620 = vmatprep.subr.bf16.mxu0 %v15824_v26  ;;  %v15924_v26 = vld [vmem:[#allocation3 + $0xc28] ss:$16 sps:$4 sm:$0xff]  }
 0x83e   :  { %11621 = vmatpush1.bf16.msra.mxu0 %v15822_v1  ;;  %v15929_v1 = vld [vmem:[#allocation3 + $0xa0c] ss:$16 sps:$4 sm:$0xff]  }
 0x83f   :  { %11622 = vmatprep.subr.bf16.mxu0 %v15830_v17  ;;  %v15932_v17 = vld [vmem:[#allocation3 + $0xc0c] ss:$16 sps:$4 sm:$0xff]  }
 0x842   :  { %11623 = vmatpush1.bf16.msra.mxu0 %v15828_v48  ;;  %v15927_v48 = vld [vmem:[#allocation3 + $0xa08] ss:$16 sps:$4 sm:$0xff]  }
 0x843   :  { %11624 = vmatprep.subr.bf16.mxu0 %v15836_v32  ;;  %v15930_v32 = vld [vmem:[#allocation3 + $0xc08] ss:$16 sps:$4 sm:$0xff]  }
 0x846   :  { %11625 = vmatpush1.bf16.msra.mxu0 %v15834_v18  ;;  %v15935_v18 = vld [vmem:[#allocation3 + $0xbec] ss:$16 sps:$4 sm:$0xff]  }
 0x847   :  { %11626 = vmatprep.subr.bf16.mxu0 %v15842_v59  ;;  %v15938_v59 = vld [vmem:[#allocation3 + $0xdec] ss:$16 sps:$4 sm:$0xff]  }
 0x84a   :  { %11627 = vmatpush2.bf16.msra.mxu0 %v15840_v63  ;;  %v15933_v63 = vld [vmem:[#allocation3 + $0xbe8] ss:$16 sps:$4 sm:$0xff]  }
 0x84b   :  { %11628 = vmatprep.subr.bf16.mxu0 %v15848_v6  ;;  %v15936_v6 = vld [vmem:[#allocation3 + $0xde8] ss:$16 sps:$4 sm:$0xff]  }
 0x84e   :  { %11629 = vmatpush2.bf16.msra.mxu0 %v15846_v35  ;;  %v15941_v35 = vld [vmem:[#allocation3 + $0xbcc] ss:$16 sps:$4 sm:$0xff]  }
 0x84f   :  { %11630 = vmatprep.subr.bf16.mxu0 %v15854_v5  ;;  %v15944_v5 = vld [vmem:[#allocation3 + $0xdcc] ss:$16 sps:$4 sm:$0xff]  }
 0x852   :  { %11631 = vmatpush2.bf16.msra.mxu0 %v15852_v44  ;;  %v15939_v44 = vld [vmem:[#allocation3 + $0xbc8] ss:$16 sps:$4 sm:$0xff]  }
 0x853   :  { %11632 = vmatprep.subr.bf16.mxu0 %v15860_v47  ;;  %v15942_v47 = vld [vmem:[#allocation3 + $0xdc8] ss:$16 sps:$4 sm:$0xff]  }
 0x856   :  { %11633 = vmatpush2.bf16.msra.mxu0 %v15858_v43  ;;  %v15947_v43 = vld [vmem:[#allocation3 + $0xbac] ss:$16 sps:$4 sm:$0xff]  }
 0x857   :  { %11634 = vmatprep.subr.bf16.mxu0 %v15866_v27  ;;  %v15950_v27 = vld [vmem:[#allocation3 + $0xdac] ss:$16 sps:$4 sm:$0xff]  }
 0x85a   :  { %11635 = vmatpush2.bf16.msra.mxu0 %v15864_v36  ;;  %v15945_v36 = vld [vmem:[#allocation3 + $0xba8] ss:$16 sps:$4 sm:$0xff]  }
 0x85b   :  { %11636 = vmatprep.subr.bf16.mxu0 %v15872_v2  ;;  %v15948_v2 = vld [vmem:[#allocation3 + $0xda8] ss:$16 sps:$4 sm:$0xff]  }
 0x85e   :  { %11637 = vmatpush2.bf16.msra.mxu0 %v15870_v11  ;;  %v15953_v11 = vld [vmem:[#allocation3 + $0xb8c] ss:$16 sps:$4 sm:$0xff]  }
 0x85f   :  { %v10143_v8 = vpop.f32.mrf.mxu1  ;;  %11638 = vmatprep.subr.bf16.mxu0 %v15878_v38  ;;  %v15956_v38 = vld [vmem:[#allocation3 + $0xd8c] ss:$16 sps:$4 sm:$0xff]  }
 0x860   :  { %v10144_v31 = vadd.f32 %v10143_v8, %v16735_v28  ;;  %v15893_v28 = vld [vmem:[#allocation3 + $0xacc] ss:$16 sps:$4 sm:$0xff]   ;;  %v15954_v8 = vld [vmem:[#allocation3 + $0xd88] ss:$16 sps:$4 sm:$0xff]  }
 0x861   :  { %v10145_v41 = vpop.f32.mrf.mxu1 }
 0x862   :  { %v10146_v57 = vadd.f32 %v10145_v41, %v16738_v33  ;;  %11639 = vmatpush2.bf16.msra.mxu0 %v15876_v39  ;;  %v10156_v0 = vmax.f32 %v10144_v31, 0.0  ;;  %v15896_v33 = vld [vmem:[#allocation3 + $0xccc] ss:$16 sps:$4 sm:$0xff]   ;;  %v15951_v39 = vld [vmem:[#allocation3 + $0xb88] ss:$16 sps:$4 sm:$0xff]  }
 0x863   :  { %v10147_v12 = vpop.f32.mrf.mxu1  ;;  %11640 = vmatprep.subr.bf16.mxu0 %v15884_v40  ;;  %v15959_v40 = vld [vmem:[#allocation3 + $0xb6c] ss:$16 sps:$4 sm:$0xff]   ;;  %v15957_v41 = vld [vmem:[#allocation3 + $0xb68] ss:$16 sps:$4 sm:$0xff]  }
 0x864   :  { %v10157_v46 = vmax.f32 %v10146_v57, 0.0  ;;  %v16760_v45 = vpack.c.bf16 %v10156_v0, %v10156_v0  ;;  %v15962_v31 = vld [vmem:[#allocation3 + $0xd6c] ss:$16 sps:$4 sm:$0xff]   ;;  %v15960_v57 = vld [vmem:[#allocation3 + $0xd68] ss:$16 sps:$4 sm:$0xff]  }
 0x865   :  { %v10148_v49 = vpop.f32.mrf.mxu1  ;;  %v15968_v0 = vld [vmem:[#allocation3 + $0xd4c] ss:$16 sps:$4 sm:$0xff]   ;;  %v15963_v12 = vld [vmem:[#allocation3 + $0xb48] ss:$16 sps:$4 sm:$0xff]  }
 0x866   :  { %v16758_v53 = vpack.c.bf16 %v10157_v46, %v10157_v46  ;;  %11641 = vmatpush2.bf16.msra.mxu0 %v15882_v3  ;;  %v15965_v3 = vld [vmem:[#allocation3 + $0xb4c] ss:$16 sps:$4 sm:$0xff]  }
 0x867   :  { %11692 = vmatprep.subr.bf16.mxu0 %v15890_v52  ;;  %v15966_v52 = vld [vmem:[#allocation3 + $0xd48] ss:$16 sps:$4 sm:$0xff]   ;;  %v15971_v46 = vld [vmem:[#allocation3 + $0xb2c] ss:$16 sps:$4 sm:$0xff]  }
 0x868   :  { %11601 = vmatprep.mubr.bf16.mxu1 %v16758_v53  ;;  %v15974_v49 = vld [vmem:[#allocation3 + $0xd2c] ss:$16 sps:$4 sm:$0xff]  }
 0x869   :  { %11643 = vmatmul.mubr.bf16.vlgmr.msra.gmra.mxu0 %v16731_v13  ;;  %11602 = vmatmul.mubr.bf16.vlgmr.msra.gmra.mxu1 %v16760_v45  ;;  %v16765_v56 = vpop.f32.mrf.mxu0  ;;  %v15897_v13 = vld [vmem:[#allocation3 + $0xaa8] ss:$16 sps:$4 sm:$0xff]  }
 0x86a   :  { %11652 = vmatpush1.bf16.msra.mxu1 %v15885_v50  ;;  %11693 = vmatpush1.bf16.msra.mxu0 %v15888_v54  ;;  %v15969_v50 = vld [vmem:[#allocation3 + $0xb28] ss:$16 sps:$4 sm:$0xff]  }
 0x86b   :  { %11724 = vmatprep.mubr.bf16.mxu0 %v16749_v30  ;;  %11683 = vmatprep.mubr.bf16.mxu1 %v16741_v58  ;;  %v16769_v4 = vpop.f32.mrf.mxu0  ;;  %v15906_v58 = vld [vmem:[#allocation3 + $0xc88] ss:$16 sps:$4 sm:$0xff]   ;;  %v15914_v30 = vld [vmem:[#allocation3 + $0xc6c] ss:$16 sps:$4 sm:$0xff]  }
 0x86c   :  { %11653 = vmatprep.subr.bf16.mxu1 %v15893_v28  ;;  %11694 = vmatprep.subr.bf16.mxu0 %v15896_v33  ;;  %v15972_v54 = vld [vmem:[#allocation3 + $0xd28] ss:$16 sps:$4 sm:$0xff]   ;;  %v15977_v28 = vld [vmem:[#allocation3 + $0xb0c] ss:$16 sps:$4 sm:$0xff]  }
 0x86d   :  { %v11484_v21 = vpop.f32.mrf.mxu0  ;;  %v15980_v33 = vld [vmem:[#allocation3 + $0xd0c] ss:$16 sps:$4 sm:$0xff]  }
 0x86e   :  { %11654 = vmatpush1.bf16.msra.mxu1 %v15891_v51  ;;  %11695 = vmatpush1.bf16.msra.mxu0 %v15894_v62  ;;  %v1276_v51 = vld [vmem:[#allocation5 + $0x11c0] sm:$0xff]  ;;  %v15983_v21 = vld [vmem:[#allocation3 + $0xeec] ss:$16 sps:$4 sm:$0xff]  }
 0x86f   :  { %v11485_v34 = vpop.f32.mrf.mxu0  ;;  %11655 = vmatprep.subr.bf16.mxu1 %v15899_v61  ;;  %11696 = vmatprep.subr.bf16.mxu0 %v15902_v15  ;;  %v1280_v62 = vld [vmem:[#allocation5 + $0x11e0] sm:$0xff]  ;;  %v15975_v61 = vld [vmem:[#allocation3 + $0xb08] ss:$16 sps:$4 sm:$0xff]  }
 0x870   :  { %v15978_v15 = vld [vmem:[#allocation3 + $0xd08] ss:$16 sps:$4 sm:$0xff]   ;;  %v1272_v34 = vld [vmem:[#allocation5 + $0x11a0] sm:$0xff] }
 0x872   :  { %11656 = vmatpush1.bf16.msra.mxu1 %v15897_v13  ;;  %11697 = vmatpush1.bf16.msra.mxu0 %v15900_v22  ;;  %v15042_v13 = vcombine.high %v1276_v51, %v1280_v62  ;;  %v1268_v22 = vld [vmem:[#allocation5 + $0x1180] sm:$0xff] }
 0x873   :  { %11657 = vmatprep.subr.bf16.mxu1 %v15905_v24  ;;  %11698 = vmatprep.subr.bf16.mxu0 %v15908_v20  ;;  %v15981_v24 = vld [vmem:[#allocation3 + $0xee8] ss:$16 sps:$4 sm:$0xff]   ;;  %v15986_v20 = vld [vmem:[#allocation3 + $0xecc] ss:$16 sps:$4 sm:$0xff]  }
 0x876   :  { %11658 = vmatpush1.bf16.msra.mxu1 %v15903_v19  ;;  %11699 = vmatpush1.bf16.msra.mxu0 %v15906_v58  ;;  %v15041_v19 = vcombine.low %v1276_v51, %v1280_v62  ;;  %v15034_v58 = vcombine.high %v1268_v22, %v1272_v34  ;;  %v1332_v51 = vld [vmem:[#allocation5 + $0x1380] sm:$0xff] }
 0x877   :  { %11659 = vmatprep.subr.bf16.mxu1 %v15911_v37  ;;  %11700 = vmatprep.subr.bf16.mxu0 %v15914_v30  ;;  %v1260_v30 = vld [vmem:[#allocation5 + $0x1140] sm:$0xff] }
 0x878   :  { %v1336_v62 = vld [vmem:[#allocation5 + $0x13a0] sm:$0xff] }
 0x87a   :  { %11660 = vmatpush1.bf16.msra.mxu1 %v15909_v25  ;;  %11701 = vmatpush1.bf16.msra.mxu0 %v15912_v60  ;;  %v1264_v25 = vld [vmem:[#allocation5 + $0x1160] sm:$0xff] }
 0x87b   :  { %11661 = vmatprep.subr.bf16.mxu1 %v15917_v9  ;;  %11702 = vmatprep.subr.bf16.mxu0 %v15920_v10  ;;  %v15984_v9 = vld [vmem:[#allocation3 + $0xec8] ss:$16 sps:$4 sm:$0xff]  }
 0x87e   :  { %11662 = vmatpush1.bf16.msra.mxu1 %v15915_v23  ;;  %11703 = vmatpush1.bf16.msra.mxu0 %v15918_v29  ;;  %v15989_v23 = vld [vmem:[#allocation3 + $0xeac] ss:$16 sps:$4 sm:$0xff]   ;;  %v15033_v29 = vcombine.low %v1268_v22, %v1272_v34  ;;  %v1324_v22 = vld [vmem:[#allocation5 + $0x1340] sm:$0xff] }
 0x87f   :  { %11663 = vmatprep.subr.bf16.mxu1 %v15923_v42  ;;  %11704 = vmatprep.subr.bf16.mxu0 %v15926_v16  ;;  %v1252_v16 = vld [vmem:[#allocation5 + $0x1100] sm:$0xff] }
 0x880   :  { %v1328_v34 = vld [vmem:[#allocation5 + $0x1360] sm:$0xff] }
 0x882   :  { %11664 = vmatpush1.bf16.msra.mxu1 %v15921_v14  ;;  %11705 = vmatpush1.bf16.msra.mxu0 %v15924_v26  ;;  %v1256_v14 = vld [vmem:[#allocation5 + $0x1120] sm:$0xff] }
 0x883   :  { %11665 = vmatprep.subr.bf16.mxu1 %v15929_v1  ;;  %11706 = vmatprep.subr.bf16.mxu0 %v15932_v17  ;;  %v15992_v1 = vld [vmem:[#allocation3 + $0xe8c] ss:$16 sps:$4 sm:$0xff]   ;;  %v15018_v17 = vcombine.high %v1252_v16, %v1256_v14 }
 0x886   :  { %11666 = vmatpush1.bf16.msra.mxu1 %v15927_v48  ;;  %11707 = vmatpush1.bf16.msra.mxu0 %v15930_v32  ;;  %v1244_v48 = vld [vmem:[#allocation5 + $0x10c0] sm:$0xff] }
 0x887   :  { %11667 = vmatprep.subr.bf16.mxu1 %v15935_v18  ;;  %11708 = vmatprep.subr.bf16.mxu0 %v15938_v59  ;;  %v1248_v32 = vld [vmem:[#allocation5 + $0x10e0] sm:$0xff]  ;;  %v16780_v18 = vld [vmem:[#allocation5 + $0x11c8] sm:$0xff] }
 0x888   :  { %v15990_v59 = vld [vmem:[#allocation3 + $0xe88] ss:$16 sps:$4 sm:$0xff]  }
 0x88a   :  { %11668 = vmatpush2.bf16.msra.mxu1 %v15933_v63  ;;  %11709 = vmatpush2.bf16.msra.mxu0 %v15936_v6  ;;  %v15995_v6 = vld [vmem:[#allocation3 + $0xe6c] ss:$16 sps:$4 sm:$0xff]  }
 0x88b   :  { %11669 = vmatprep.subr.bf16.mxu1 %v15941_v35  ;;  %11710 = vmatprep.subr.bf16.mxu0 %v15944_v5  ;;  %v15017_v35 = vcombine.low %v1252_v16, %v1256_v14  ;;  %v15010_v5 = vcombine.high %v1244_v48, %v1248_v32  ;;  %v16019_v16 = vld [vmem:[#allocation3 + $0xf6c] ss:$16 sps:$4 sm:$0xff]  }
 0x88e   :  { %11670 = vmatpush2.bf16.msra.mxu1 %v15939_v44  ;;  %11711 = vmatpush2.bf16.msra.mxu0 %v15942_v47  ;;  %v1236_v44 = vld [vmem:[#allocation5 + $0x1080] sm:$0xff] }
 0x88f   :  { %11671 = vmatprep.subr.bf16.mxu1 %v15947_v43  ;;  %11712 = vmatprep.subr.bf16.mxu0 %v15950_v27  ;;  %v1240_v47 = vld [vmem:[#allocation5 + $0x10a0] sm:$0xff]  ;;  %v15993_v43 = vld [vmem:[#allocation3 + $0xe68] ss:$16 sps:$4 sm:$0xff]   ;;  %v15998_v27 = vld [vmem:[#allocation3 + $0xe4c] ss:$16 sps:$4 sm:$0xff]  }
 0x892   :  { %11672 = vmatpush2.bf16.msra.mxu1 %v15945_v36  ;;  %11713 = vmatpush2.bf16.msra.mxu0 %v15948_v2  ;;  %v15009_v36 = vcombine.low %v1244_v48, %v1248_v32  ;;  %v15002_v2 = vcombine.high %v1236_v44, %v1240_v47 }
 0x893   :  { %11673 = vmatprep.subr.bf16.mxu1 %v15953_v11  ;;  %11714 = vmatprep.subr.bf16.mxu0 %v15956_v38  ;;  %v1228_v11 = vld [vmem:[#allocation5 + $0x1040] sm:$0xff] }
 0x894   :  { %v1232_v38 = vld [vmem:[#allocation5 + $0x1060] sm:$0xff] }
 0x896   :  { %11674 = vmatpush2.bf16.msra.mxu1 %v15951_v39  ;;  %11715 = vmatpush2.bf16.msra.mxu0 %v15954_v8  ;;  %v15996_v39 = vld [vmem:[#allocation3 + $0xe48] ss:$16 sps:$4 sm:$0xff]   ;;  %v16001_v8 = vld [vmem:[#allocation3 + $0xe2c] ss:$16 sps:$4 sm:$0xff]  }
 0x897   :  { %11675 = vmatprep.subr.bf16.mxu1 %v15959_v40  ;;  %11716 = vmatprep.subr.bf16.mxu0 %v15962_v31  ;;  %v15001_v40 = vcombine.low %v1236_v44, %v1240_v47  ;;  %v14994_v31 = vcombine.high %v1228_v11, %v1232_v38 }
 0x89a   :  { %11676 = vmatpush2.bf16.msra.mxu1 %v15957_v41  ;;  %11717 = vmatpush2.bf16.msra.mxu0 %v15960_v57  ;;  %v1220_v41 = vld [vmem:[#allocation5 + $0x1000] sm:$0xff] }
 0x89b   :  { %11677 = vmatprep.subr.bf16.mxu1 %v15965_v3  ;;  %11718 = vmatprep.subr.bf16.mxu0 %v15968_v0  ;;  %v1224_v57 = vld [vmem:[#allocation5 + $0x1020] sm:$0xff]  ;;  %v15999_v3 = vld [vmem:[#allocation3 + $0xe28] ss:$16 sps:$4 sm:$0xff]   ;;  %v16004_v0 = vld [vmem:[#allocation3 + $0xe0c] ss:$16 sps:$4 sm:$0xff]  }
 0x89e   :  { %11678 = vmatpush2.bf16.msra.mxu1 %v15963_v12  ;;  %11719 = vmatpush2.bf16.msra.mxu0 %v15966_v52  ;;  %v14993_v12 = vcombine.low %v1228_v11, %v1232_v38  ;;  %v14986_v52 = vcombine.high %v1220_v41, %v1224_v57 }
 0x89f   :  { %11679 = vmatprep.subr.bf16.mxu1 %v15971_v46  ;;  %11720 = vmatprep.subr.bf16.mxu0 %v15974_v49  ;;  %v1340_v46 = vld [vmem:[#allocation5 + $0x13c0] sm:$0xff] }
 0x8a0   :  { %v1344_v49 = vld [vmem:[#allocation5 + $0x13e0] sm:$0xff] }
 0x8a2   :  { %11680 = vmatpush2.bf16.msra.mxu1 %v15969_v50  ;;  %11721 = vmatpush2.bf16.msra.mxu0 %v15972_v54  ;;  %v16002_v50 = vld [vmem:[#allocation3 + $0xe08] ss:$16 sps:$4 sm:$0xff]   ;;  %v16007_v54 = vld [vmem:[#allocation3 + $0xfec] ss:$16 sps:$4 sm:$0xff]  }
 0x8a3   :  { %11681 = vmatprep.subr.bf16.mxu1 %v15977_v28  ;;  %11722 = vmatprep.subr.bf16.mxu0 %v15980_v33  ;;  %v14985_v28 = vcombine.low %v1220_v41, %v1224_v57  ;;  %v15106_v33 = vcombine.high %v1340_v46, %v1344_v49 }
 0x8a6   :  { %11682 = vmatpush2.bf16.msra.mxu1 %v15975_v61  ;;  %11723 = vmatpush2.bf16.msra.mxu0 %v15978_v15  ;;  %v16005_v61 = vld [vmem:[#allocation3 + $0xfe8] ss:$16 sps:$4 sm:$0xff]   ;;  %v16010_v15 = vld [vmem:[#allocation3 + $0xfcc] ss:$16 sps:$4 sm:$0xff]  }
 0x8a7   :  { %11733 = vmatprep.subr.bf16.mxu1 %v15983_v21  ;;  %13062 = vmatprep.subr.bf16.mxu0 %v15042_v13  ;;  %v15105_v21 = vcombine.low %v1340_v46, %v1344_v49  ;;  %v15098_v13 = vcombine.high %v1332_v51, %v1336_v62 }
 0x8a9   :  { %11684 = vmatmul.mubr.bf16.vlgmr.msra.gmra.mxu1 %v16743_v7  ;;  %11725 = vmatmul.mubr.bf16.vlgmr.msra.gmra.mxu0 %v16751_v55  ;;  %v11521_v37 = vpop.f32.mrf.mxu1  ;;  %v15026_v7 = vcombine.high %v1260_v30, %v1264_v25 }
 0x8aa   :  { %v16774_v60 = vadd.f32 %v11521_v37, %v16765_v56  ;;  %11734 = vmatpush1.bf16.msra.mxu1 %v15981_v24  ;;  %11765 = vmatprep.mubr.bf16.mxu1 %v16758_v53  ;;  %v15987_v56 = vld [vmem:[#allocation3 + $0xea8] ss:$16 sps:$4 sm:$0xff]   ;;  %v15025_v53 = vcombine.low %v1260_v30, %v1264_v25  ;;  %v1316_v37 = vld [vmem:[#allocation5 + $0x1300] sm:$0xff] }
 0x8ab   :  { %v11523_v10 = vpop.f32.mrf.mxu1  ;;  %11735 = vmatprep.subr.bf16.mxu1 %v15986_v20  ;;  %13063 = vmatpush1.bf16.msra.mxu0 %v15041_v19  ;;  %v16008_v24 = vld [vmem:[#allocation3 + $0xfc8] ss:$16 sps:$4 sm:$0xff]   ;;  %v16013_v20 = vld [vmem:[#allocation3 + $0xfac] ss:$16 sps:$4 sm:$0xff]   ;;  %v15097_v19 = vcombine.low %v1332_v51, %v1336_v62  ;;  %v1320_v30 = vld [vmem:[#allocation5 + $0x1320] sm:$0xff] }
 0x8ac   :  { %v16778_v42 = vadd.f32 %v11523_v10, %v16769_v4  ;;  %13064 = vmatprep.subr.bf16.mxu0 %v15034_v58  ;;  %v16782_v4 = vld [vmem:[#allocation5 + $0x11e8] sm:$0xff]  ;;  %v15090_v58 = vcombine.high %v1324_v22, %v1328_v34  ;;  %v15089_v10 = vcombine.low %v1324_v22, %v1328_v34  ;;  %v15081_v14 = vcombine.low %v1316_v37, %v1320_v30  ;;  %v1392_v51 = vld [vmem:[#allocation5 + $0x1560] sm:$0xff] }
 0x8ad   :  { %v11525_v55 = vpop.f32.mrf.mxu1  ;;  %v15043_v63 = vcombine.low %v16780_v18, %v16782_v4  ;;  %v16011_v25 = vld [vmem:[#allocation3 + $0xfa8] ss:$16 sps:$4 sm:$0xff]   ;;  %v1372_v22 = vld [vmem:[#allocation5 + $0x14c0] sm:$0xff] }
 0x8ae   :  { %11736 = vmatpush1.bf16.msra.mxu1 %v15984_v9  ;;  %v16016_v9 = vld [vmem:[#allocation3 + $0xf8c] ss:$16 sps:$4 sm:$0xff]   ;;  %v16014_v55 = vld [vmem:[#allocation3 + $0xf88] ss:$16 sps:$4 sm:$0xff]   ;;  %v1376_v34 = vld [vmem:[#allocation5 + $0x14e0] sm:$0xff] }
 0x8af   :  { %v11526_v26 = vpop.f32.mrf.mxu1  ;;  %11737 = vmatprep.subr.bf16.mxu1 %v15989_v23  ;;  %13065 = vmatpush1.bf16.msra.mxu0 %v15033_v29  ;;  %v15082_v23 = vcombine.high %v1316_v37, %v1320_v30  ;;  %v1308_v29 = vld [vmem:[#allocation5 + $0x12c0] sm:$0xff] }
 0x8b0   :  { %13066 = vmatprep.subr.bf16.mxu0 %v15026_v7  ;;  %v1312_v7 = vld [vmem:[#allocation5 + $0x12e0] sm:$0xff] }
 0x8b1   :  { %v1300_v26 = vld [vmem:[#allocation5 + $0x1280] sm:$0xff]  ;;  %v15073_v48 = vcombine.low %v1308_v29, %v1312_v7 }
 0x8b2   :  { %11738 = vmatpush1.bf16.msra.mxu1 %v15987_v56  ;;  %v15074_v56 = vcombine.high %v1308_v29, %v1312_v7  ;;  %v1348_v29 = vld [vmem:[#allocation5 + $0x1400] sm:$0xff] }
 0x8b3   :  { %11739 = vmatprep.subr.bf16.mxu1 %v15992_v1  ;;  %13067 = vmatpush1.bf16.msra.mxu0 %v15025_v53  ;;  %v1304_v1 = vld [vmem:[#allocation5 + $0x12a0] sm:$0xff]  ;;  %v16017_v53 = vld [vmem:[#allocation3 + $0xf68] ss:$16 sps:$4 sm:$0xff]  }
 0x8b4   :  { %13068 = vmatprep.subr.bf16.mxu0 %v15018_v17  ;;  %v16022_v17 = vld [vmem:[#allocation3 + $0xf4c] ss:$16 sps:$4 sm:$0xff]   ;;  %v15066_v32 = vcombine.high %v1300_v26, %v1304_v1  ;;  %v15065_v44 = vcombine.low %v1300_v26, %v1304_v1  ;;  %v1352_v7 = vld [vmem:[#allocation5 + $0x1420] sm:$0xff] }
 0x8b6   :  { %11740 = vmatpush1.bf16.msra.mxu1 %v15990_v59  ;;  %v1292_v59 = vld [vmem:[#allocation5 + $0x1240] sm:$0xff] }
 0x8b7   :  { %11741 = vmatprep.subr.bf16.mxu1 %v15995_v6  ;;  %13069 = vmatpush1.bf16.msra.mxu0 %v15017_v35  ;;  %v1296_v6 = vld [vmem:[#allocation5 + $0x1260] sm:$0xff]  ;;  %v16020_v35 = vld [vmem:[#allocation3 + $0xf48] ss:$16 sps:$4 sm:$0xff]  }
 0x8b8   :  { %13070 = vmatprep.subr.bf16.mxu0 %v15010_v5  ;;  %v16025_v5 = vld [vmem:[#allocation3 + $0xf2c] ss:$16 sps:$4 sm:$0xff]   ;;  %v15058_v47 = vcombine.high %v1292_v59, %v1296_v6  ;;  %v15057_v11 = vcombine.low %v1292_v59, %v1296_v6  ;;  %v1452_v59 = vld [vmem:[#allocation5 + $0x1740] sm:$0xff] }
 0x8b9   :  { %v1456_v6 = vld [vmem:[#allocation5 + $0x1760] sm:$0xff] }
 0x8ba   :  { %11742 = vmatpush1.bf16.msra.mxu1 %v15993_v43  ;;  %v1284_v43 = vld [vmem:[#allocation5 + $0x1200] sm:$0xff] }
 0x8bb   :  { %11743 = vmatprep.subr.bf16.mxu1 %v15998_v27  ;;  %13071 = vmatpush1.bf16.msra.mxu0 %v15009_v36  ;;  %v1288_v27 = vld [vmem:[#allocation5 + $0x1220] sm:$0xff]  ;;  %v16023_v36 = vld [vmem:[#allocation3 + $0xf28] ss:$16 sps:$4 sm:$0xff]  }
 0x8bc   :  { %13072 = vmatprep.subr.bf16.mxu0 %v15002_v2  ;;  %v16028_v2 = vld [vmem:[#allocation3 + $0xf0c] ss:$16 sps:$4 sm:$0xff]   ;;  %v15050_v38 = vcombine.high %v1284_v43, %v1288_v27 }
 0x8be   :  { %11744 = vmatpush1.bf16.msra.mxu1 %v15996_v39  ;;  %v16026_v39 = vld [vmem:[#allocation3 + $0xf08] ss:$16 sps:$4 sm:$0xff]  }
 0x8bf   :  { %11745 = vmatprep.subr.bf16.mxu1 %v16001_v8  ;;  %13073 = vmatpush1.bf16.msra.mxu0 %v15001_v40  ;;  %v15049_v8 = vcombine.low %v1284_v43, %v1288_v27  ;;  %v15044_v40 = vcombine.high %v16780_v18, %v16782_v4  ;;  %v1241_v18 = vld [vmem:[#allocation5 + $0x10a8] sm:$0xff] }
 0x8c0   :  { %13074 = vmatprep.subr.bf16.mxu0 %v14994_v31 }
 0x8c2   :  { %11746 = vmatpush1.bf16.msra.mxu1 %v15999_v3 }
 0x8c3   :  { %11747 = vmatprep.subr.bf16.mxu1 %v16004_v0  ;;  %13075 = vmatpush1.bf16.msra.mxu0 %v14993_v12  ;;  %v1404_v12 = vld [vmem:[#allocation5 + $0x15c0] sm:$0xff] }
 0x8c4   :  { %13076 = vmatprep.subr.bf16.mxu0 %v14986_v52  ;;  %v1408_v52 = vld [vmem:[#allocation5 + $0x15e0] sm:$0xff] }
 0x8c5   :  { %v15169_v46 = vcombine.low %v1404_v12, %v1408_v52  ;;  %v15170_v49 = vcombine.high %v1404_v12, %v1408_v52 }
 0x8c6   :  { %11748 = vmatpush1.bf16.msra.mxu1 %v16002_v50  ;;  %v1396_v50 = vld [vmem:[#allocation5 + $0x1580] sm:$0xff] }
 0x8c7   :  { %11749 = vmatprep.subr.bf16.mxu1 %v16007_v54  ;;  %13077 = vmatpush1.bf16.msra.mxu0 %v14985_v28  ;;  %v1400_v54 = vld [vmem:[#allocation5 + $0x15a0] sm:$0xff] }
 0x8c8   :  { %13078 = vmatprep.subr.bf16.mxu0 %v15106_v33  ;;  %v15161_v28 = vcombine.low %v1396_v50, %v1400_v54  ;;  %v15162_v33 = vcombine.high %v1396_v50, %v1400_v54 }
 0x8ca   :  { %11750 = vmatpush2.bf16.msra.mxu1 %v16005_v61  ;;  %v1380_v61 = vld [vmem:[#allocation5 + $0x1500] sm:$0xff] }
 0x8cb   :  { %11751 = vmatprep.subr.bf16.mxu1 %v16010_v15  ;;  %13079 = vmatpush2.bf16.msra.mxu0 %v15105_v21  ;;  %v1384_v15 = vld [vmem:[#allocation5 + $0x1520] sm:$0xff] }
 0x8cc   :  { %13080 = vmatprep.subr.bf16.mxu0 %v15098_v13  ;;  %v15145_v21 = vcombine.low %v1380_v61, %v1384_v15  ;;  %v15146_v13 = vcombine.high %v1380_v61, %v1384_v15 }
 0x8ce   :  { %11752 = vmatpush2.bf16.msra.mxu1 %v16008_v24  ;;  %v15137_v24 = vcombine.low %v1372_v22, %v1376_v34 }
 0x8cf   :  { %11753 = vmatprep.subr.bf16.mxu1 %v16013_v20  ;;  %13081 = vmatpush2.bf16.msra.mxu0 %v15097_v19  ;;  %v15138_v20 = vcombine.high %v1372_v22, %v1376_v34  ;;  %v1364_v19 = vld [vmem:[#allocation5 + $0x1480] sm:$0xff]  ;;  %v1269_v22 = vld [vmem:[#allocation5 + $0x1188] sm:$0xff] }
 0x8d0   :  { %13082 = vmatprep.subr.bf16.mxu0 %v15090_v58  ;;  %v1368_v58 = vld [vmem:[#allocation5 + $0x14a0] sm:$0xff]  ;;  %v1273_v34 = vld [vmem:[#allocation5 + $0x11a8] sm:$0xff] }
 0x8d1   :  { %v15129_v37 = vcombine.low %v1364_v19, %v1368_v58  ;;  %v15130_v30 = vcombine.high %v1364_v19, %v1368_v58  ;;  %v16805_v19 = vld [vmem:[#allocation5 + $0x15e8] sm:$0xff] }
 0x8d2   :  { %11754 = vmatpush2.bf16.msra.mxu1 %v16011_v25  ;;  %v1356_v25 = vld [vmem:[#allocation5 + $0x1440] sm:$0xff] }
 0x8d3   :  { %11755 = vmatprep.subr.bf16.mxu1 %v16016_v9  ;;  %13083 = vmatpush2.bf16.msra.mxu0 %v15089_v10  ;;  %v1360_v9 = vld [vmem:[#allocation5 + $0x1460] sm:$0xff] }
 0x8d4   :  { %13084 = vmatprep.subr.bf16.mxu0 %v15082_v23  ;;  %v15121_v10 = vcombine.low %v1356_v25, %v1360_v9  ;;  %v15122_v23 = vcombine.high %v1356_v25, %v1360_v9  ;;  %v1261_v25 = vld [vmem:[#allocation5 + $0x1148] sm:$0xff] }
 0x8d5   :  { %v1265_v9 = vld [vmem:[#allocation5 + $0x1168] sm:$0xff] }
 0x8d6   :  { %11756 = vmatpush2.bf16.msra.mxu1 %v16014_v55  ;;  %v15113_v55 = vcombine.low %v1348_v29, %v1352_v7 }
 0x8d7   :  { %11757 = vmatprep.subr.bf16.mxu1 %v16019_v16  ;;  %13085 = vmatpush2.bf16.msra.mxu0 %v15081_v14  ;;  %v15114_v16 = vcombine.high %v1348_v29, %v1352_v7  ;;  %v1468_v14 = vld [vmem:[#allocation5 + $0x17c0] sm:$0xff]  ;;  %v15028_v29 = vcombine.high %v1261_v25, %v1265_v9  ;;  %v1253_v7 = vld [vmem:[#allocation5 + $0x1108] sm:$0xff] }
 0x8d8   :  { %13086 = vmatprep.subr.bf16.mxu0 %v15074_v56  ;;  %v1472_v56 = vld [vmem:[#allocation5 + $0x17e0] sm:$0xff] }
 0x8d9   :  { %v15233_v26 = vcombine.low %v1468_v14, %v1472_v56  ;;  %v15234_v1 = vcombine.high %v1468_v14, %v1472_v56  ;;  %v1245_v56 = vld [vmem:[#allocation5 + $0x10c8] sm:$0xff] }
 0x8da   :  { %11758 = vmatpush2.bf16.msra.mxu1 %v16017_v53  ;;  %v1460_v53 = vld [vmem:[#allocation5 + $0x1780] sm:$0xff] }
 0x8db   :  { %11759 = vmatprep.subr.bf16.mxu1 %v16022_v17  ;;  %13087 = vmatpush2.bf16.msra.mxu0 %v15073_v48  ;;  %v1464_v17 = vld [vmem:[#allocation5 + $0x17a0] sm:$0xff] }
 0x8dc   :  { %13088 = vmatprep.subr.bf16.mxu0 %v15066_v32  ;;  %v15225_v48 = vcombine.low %v1460_v53, %v1464_v17  ;;  %v15226_v32 = vcombine.high %v1460_v53, %v1464_v17  ;;  %v1237_v17 = vld [vmem:[#allocation5 + $0x1088] sm:$0xff] }
 0x8de   :  { %11760 = vmatpush2.bf16.msra.mxu1 %v16020_v35  ;;  %v15217_v35 = vcombine.low %v1452_v59, %v1456_v6 }
 0x8df   :  { %11761 = vmatprep.subr.bf16.mxu1 %v16025_v5  ;;  %13089 = vmatpush2.bf16.msra.mxu0 %v15065_v44  ;;  %v15218_v5 = vcombine.high %v1452_v59, %v1456_v6  ;;  %v1444_v44 = vld [vmem:[#allocation5 + $0x1700] sm:$0xff]  ;;  %v15003_v59 = vcombine.low %v1237_v17, %v1241_v18 }
 0x8e0   :  { %13090 = vmatprep.subr.bf16.mxu0 %v15058_v47  ;;  %v1448_v47 = vld [vmem:[#allocation5 + $0x1720] sm:$0xff] }
 0x8e1   :  { %v15209_v43 = vcombine.low %v1444_v44, %v1448_v47  ;;  %v15210_v27 = vcombine.high %v1444_v44, %v1448_v47 }
 0x8e2   :  { %11762 = vmatpush2.bf16.msra.mxu1 %v16023_v36  ;;  %v1436_v36 = vld [vmem:[#allocation5 + $0x16c0] sm:$0xff] }
 0x8e3   :  { %11763 = vmatprep.subr.bf16.mxu1 %v16028_v2  ;;  %13091 = vmatpush2.bf16.msra.mxu0 %v15057_v11  ;;  %v1440_v2 = vld [vmem:[#allocation5 + $0x16e0] sm:$0xff] }
 0x8e4   :  { %13092 = vmatprep.subr.bf16.mxu0 %v15050_v38  ;;  %v15201_v11 = vcombine.low %v1436_v36, %v1440_v2  ;;  %v15202_v38 = vcombine.high %v1436_v36, %v1440_v2 }
 0x8e6   :  { %11764 = vmatpush2.bf16.msra.mxu1 %v16026_v39  ;;  %v1428_v39 = vld [vmem:[#allocation5 + $0x1680] sm:$0xff] }
 0x8e7   :  { %13093 = vmatpush2.bf16.msra.mxu0 %v15049_v8  ;;  %13103 = vmatprep.subr.bf16.mxu1 %v15170_v49  ;;  %v1432_v8 = vld [vmem:[#allocation5 + $0x16a0] sm:$0xff] }
 0x8e8   :  { %13144 = vmatprep.subr.bf16.mxu0 %v15044_v40  ;;  %v15193_v40 = vcombine.low %v1428_v39, %v1432_v8 }
 0x8e9   :  { %11766 = vmatmul.mubr.bf16.vlgmr.msra.gmra.mxu1 %v16760_v45  ;;  %v11562_v31 = vpop.f32.mrf.mxu0  ;;  %v1388_v45 = vld [vmem:[#allocation5 + $0x1540] sm:$0xff] }
 0x8ea   :  { %v16790_v41 = vadd.f32 %v11562_v31, %v16774_v60  ;;  %13104 = vmatpush1.bf16.msra.mxu1 %v15169_v46  ;;  %v15153_v60 = vcombine.low %v1388_v45, %v1392_v51  ;;  %v15154_v62 = vcombine.high %v1388_v45, %v1392_v51  ;;  %v15194_v31 = vcombine.high %v1428_v39, %v1432_v8  ;;  %v1412_v51 = vld [vmem:[#allocation5 + $0x1600] sm:$0xff] }
 0x8eb   :  { %v16792_v57 = vpop.f32.mrf.mxu0  ;;  %13105 = vmatprep.subr.bf16.mxu1 %v15162_v33 }
 0x8ec   :  { %v11565_v49 = vadd.f32 %v16792_v57, %v16778_v42 }
 0x8ed   :  { %v11566_v3 = vpop.f32.mrf.mxu0 }
 0x8ee   :  { %13106 = vmatpush1.bf16.msra.mxu1 %v15161_v28  ;;  %v1420_v3 = vld [vmem:[#allocation5 + $0x1640] sm:$0xff] }
 0x8ef   :  { %v11567_v0 = vpop.f32.mrf.mxu0  ;;  %13107 = vmatprep.subr.bf16.mxu1 %v15154_v62 }
 0x8f0   :  { %v1424_v0 = vld [vmem:[#allocation5 + $0x1660] sm:$0xff] }
 0x8f1   :  { %v15186_v46 = vcombine.high %v1420_v3, %v1424_v0  ;;  %v15185_v54 = vcombine.low %v1420_v3, %v1424_v0 }
 0x8f2   :  { %13108 = vmatpush1.bf16.msra.mxu1 %v15153_v60  ;;  %v1416_v60 = vld [vmem:[#allocation5 + $0x1620] sm:$0xff] }
 0x8f3   :  { %13109 = vmatprep.subr.bf16.mxu1 %v15146_v13 }
 0x8f6   :  { %13110 = vmatpush1.bf16.msra.mxu1 %v15145_v21  ;;  %v15178_v21 = vcombine.high %v1412_v51, %v1416_v60 }
 0x8f7   :  { %13111 = vmatprep.subr.bf16.mxu1 %v15138_v20  ;;  %v16803_v20 = vld [vmem:[#allocation5 + $0x15c8] sm:$0xff] }
 0x8fa   :  { %13112 = vmatpush1.bf16.msra.mxu1 %v15137_v24  ;;  %v15177_v24 = vcombine.low %v1412_v51, %v1416_v60  ;;  %v1301_v60 = vld [vmem:[#allocation5 + $0x1288] sm:$0xff] }
 0x8fb   :  { %13113 = vmatprep.subr.bf16.mxu1 %v15130_v30  ;;  %v15172_v30 = vcombine.high %v16803_v20, %v16805_v19 }
 0x8fe   :  { %13114 = vmatpush1.bf16.msra.mxu1 %v15129_v37  ;;  %v15036_v37 = vcombine.high %v1269_v22, %v1273_v34 }
 0x8ff   :  { %13115 = vmatprep.subr.bf16.mxu1 %v15122_v23  ;;  %v15035_v23 = vcombine.low %v1269_v22, %v1273_v34 }
 0x902   :  { %13116 = vmatpush1.bf16.msra.mxu1 %v15121_v10  ;;  %v15171_v10 = vcombine.low %v16803_v20, %v16805_v19 }
 0x903   :  { %13117 = vmatprep.subr.bf16.mxu1 %v15114_v16  ;;  %v15027_v16 = vcombine.low %v1261_v25, %v1265_v9 }
 0x906   :  { %13118 = vmatpush1.bf16.msra.mxu1 %v15113_v55  ;;  %v1257_v55 = vld [vmem:[#allocation5 + $0x1128] sm:$0xff] }
 0x907   :  { %13119 = vmatprep.subr.bf16.mxu1 %v15234_v1  ;;  %v15020_v14 = vcombine.high %v1253_v7, %v1257_v55  ;;  %v15019_v1 = vcombine.low %v1253_v7, %v1257_v55 }
 0x90a   :  { %13120 = vmatpush2.bf16.msra.mxu1 %v15233_v26  ;;  %v1249_v26 = vld [vmem:[#allocation5 + $0x10e8] sm:$0xff] }
 0x90b   :  { %13121 = vmatprep.subr.bf16.mxu1 %v15226_v32  ;;  %v15012_v53 = vcombine.high %v1245_v56, %v1249_v26  ;;  %v15011_v4 = vcombine.low %v1245_v56, %v1249_v26  ;;  %v1233_v32 = vld [vmem:[#allocation5 + $0x1068] sm:$0xff] }
 0x90e   :  { %13122 = vmatpush2.bf16.msra.mxu1 %v15225_v48  ;;  %v1229_v48 = vld [vmem:[#allocation5 + $0x1048] sm:$0xff] }
 0x90f   :  { %13123 = vmatprep.subr.bf16.mxu1 %v15218_v5  ;;  %v14996_v6 = vcombine.high %v1229_v48, %v1233_v32  ;;  %v1225_v5 = vld [vmem:[#allocation5 + $0x1028] sm:$0xff]  ;;  %v14995_v44 = vcombine.low %v1229_v48, %v1233_v32  ;;  %v1262_v48 = vld [vmem:[#allocation5 + $0x1150] sm:$0xff] }
 0x910   :  { %v1266_v32 = vld [vmem:[#allocation5 + $0x1170] sm:$0xff] }
 0x912   :  { %13124 = vmatpush2.bf16.msra.mxu1 %v15217_v35  ;;  %v1221_v35 = vld [vmem:[#allocation5 + $0x1008] sm:$0xff] }
 0x913   :  { %13125 = vmatprep.subr.bf16.mxu1 %v15210_v27  ;;  %v14988_v47 = vcombine.high %v1221_v35, %v1225_v5  ;;  %v1345_v27 = vld [vmem:[#allocation5 + $0x13e8] sm:$0xff]  ;;  %v14987_v36 = vcombine.low %v1221_v35, %v1225_v5  ;;  %v1254_v35 = vld [vmem:[#allocation5 + $0x1110] sm:$0xff] }
 0x914   :  { %v1258_v5 = vld [vmem:[#allocation5 + $0x1130] sm:$0xff] }
 0x916   :  { %13126 = vmatpush2.bf16.msra.mxu1 %v15209_v43  ;;  %v1341_v43 = vld [vmem:[#allocation5 + $0x13c8] sm:$0xff] }
 0x917   :  { %13127 = vmatprep.subr.bf16.mxu1 %v15202_v38  ;;  %v15108_v2 = vcombine.high %v1341_v43, %v1345_v27  ;;  %v1337_v38 = vld [vmem:[#allocation5 + $0x13a8] sm:$0xff]  ;;  %v15107_v39 = vcombine.low %v1341_v43, %v1345_v27  ;;  %v1246_v43 = vld [vmem:[#allocation5 + $0x10d0] sm:$0xff] }
 0x918   :  { %v1250_v27 = vld [vmem:[#allocation5 + $0x10f0] sm:$0xff] }
 0x91a   :  { %13128 = vmatpush2.bf16.msra.mxu1 %v15201_v11  ;;  %v1333_v11 = vld [vmem:[#allocation5 + $0x1388] sm:$0xff] }
 0x91b   :  { %13129 = vmatprep.subr.bf16.mxu1 %v15194_v31  ;;  %v15100_v8 = vcombine.high %v1333_v11, %v1337_v38  ;;  %v1329_v31 = vld [vmem:[#allocation5 + $0x1368] sm:$0xff]  ;;  %v15099_v3 = vcombine.low %v1333_v11, %v1337_v38  ;;  %v1238_v11 = vld [vmem:[#allocation5 + $0x1090] sm:$0xff] }
 0x91c   :  { %v1242_v38 = vld [vmem:[#allocation5 + $0x10b0] sm:$0xff] }
 0x91e   :  { %13130 = vmatpush2.bf16.msra.mxu1 %v15193_v40  ;;  %v1325_v40 = vld [vmem:[#allocation5 + $0x1348] sm:$0xff] }
 0x91f   :  { %13131 = vmatprep.subr.bf16.mxu1 %v15186_v46  ;;  %v15092_v0 = vcombine.high %v1325_v40, %v1329_v31  ;;  %v1321_v46 = vld [vmem:[#allocation5 + $0x1328] sm:$0xff] }
 0x922   :  { %13132 = vmatpush2.bf16.msra.mxu1 %v15185_v54  ;;  %v1309_v54 = vld [vmem:[#allocation5 + $0x12c8] sm:$0xff] }
 0x923   :  { %13133 = vmatprep.subr.bf16.mxu1 %v15178_v21  ;;  %v1293_v21 = vld [vmem:[#allocation5 + $0x1248] sm:$0xff] }
 0x926   :  { %13134 = vmatpush2.bf16.msra.mxu1 %v15177_v24  ;;  %v1285_v24 = vld [vmem:[#allocation5 + $0x1208] sm:$0xff] }
 0x927   :  { %13185 = vmatprep.subr.bf16.mxu1 %v15172_v30 }
 0x929   :  { %v16794_v12 = vpop.f32.mrf.mxu0  ;;  %v11603_v52 = vpop.f32.mrf.mxu1 }
 0x92a   :  { %v11604_v50 = vadd.f32 %v11603_v52, %v16790_v41  ;;  %v1317_v52 = vld [vmem:[#allocation5 + $0x1308] sm:$0xff] }
 0x92b   :  { %v16799_v28 = vpop.f32.mrf.mxu0  ;;  %v11605_v33 = vpop.f32.mrf.mxu1 }
 0x92c   :  { %v11606_v45 = vadd.f32 %v11605_v33, %v11565_v49  ;;  %v11774_v62 = vmax.f32 %v11604_v50, 0.0  ;;  %v15091_v49 = vcombine.low %v1325_v40, %v1329_v31  ;;  %v15084_v50 = vcombine.high %v1317_v52, %v1321_v46  ;;  %v1313_v33 = vld [vmem:[#allocation5 + $0x12e8] sm:$0xff]  ;;  %v1230_v40 = vld [vmem:[#allocation5 + $0x1050] sm:$0xff] }
 0x92d   :  { %v11648_v61 = vpop.f32.mrf.mxu0  ;;  %v11607_v15 = vpop.f32.mrf.mxu1  ;;  %v15076_v51 = vcombine.high %v1309_v54, %v1313_v33  ;;  %v1234_v31 = vld [vmem:[#allocation5 + $0x1070] sm:$0xff] }
 0x92e   :  { %v11775_v13 = vmax.f32 %v11606_v45, 0.0  ;;  %v16807_v58 = vpack.c.bf16 %v11774_v62, %v11774_v62  ;;  %v15083_v45 = vcombine.low %v1317_v52, %v1321_v46  ;;  %v1305_v62 = vld [vmem:[#allocation5 + $0x12a8] sm:$0xff]  ;;  %v15075_v61 = vcombine.low %v1309_v54, %v1313_v33  ;;  %v1222_v52 = vld [vmem:[#allocation5 + $0x1010] sm:$0xff] }
 0x92f   :  { %v11649_v42 = vpop.f32.mrf.mxu0  ;;  %v11608_v57 = vpop.f32.mrf.mxu1  ;;  %v15068_v15 = vcombine.high %v1301_v60, %v1305_v62  ;;  %v15067_v22 = vcombine.low %v1301_v60, %v1305_v62  ;;  %v1226_v46 = vld [vmem:[#allocation5 + $0x1030] sm:$0xff] }
 0x930   :  { %v16801_v41 = vpack.c.bf16 %v11775_v13, %v11775_v13  ;;  %v1297_v13 = vld [vmem:[#allocation5 + $0x1268] sm:$0xff]  ;;  %v1342_v54 = vld [vmem:[#allocation5 + $0x13d0] sm:$0xff] }
 0x931   :  { %v15060_v34 = vcombine.high %v1293_v21, %v1297_v13  ;;  %v1289_v42 = vld [vmem:[#allocation5 + $0x1228] sm:$0xff]  ;;  %v15059_v57 = vcombine.low %v1293_v21, %v1297_v13  ;;  %v1346_v33 = vld [vmem:[#allocation5 + $0x13f0] sm:$0xff] }
 0x932   :  { %13094 = vmatprep.mubr.bf16.mxu0 %v16801_v41  ;;  %v15052_v25 = vcombine.high %v1285_v24, %v1289_v42  ;;  %v1334_v60 = vld [vmem:[#allocation5 + $0x1390] sm:$0xff] }
 0x933   :  { %13095 = vmatmul.mubr.bf16.vlgmr.msra.gmra.mxu0 %v16807_v58  ;;  %v1338_v62 = vld [vmem:[#allocation5 + $0x13b0] sm:$0xff] }
 0x934   :  { %13145 = vmatpush1.bf16.msra.mxu0 %v15043_v63  ;;  %13176 = vmatprep.mubr.bf16.mxu0 %v16801_v41  ;;  %v15004_v63 = vcombine.high %v1237_v17, %v1241_v18  ;;  %v1274_v17 = vld [vmem:[#allocation5 + $0x11b0] sm:$0xff] }
 0x935   :  { %13146 = vmatprep.subr.bf16.mxu0 %v15036_v37  ;;  %v1326_v21 = vld [vmem:[#allocation5 + $0x1350] sm:$0xff] }
 0x936   :  { %v1330_v13 = vld [vmem:[#allocation5 + $0x1370] sm:$0xff] }
 0x938   :  { %13147 = vmatpush1.bf16.msra.mxu0 %v15035_v23  ;;  %v1278_v23 = vld [vmem:[#allocation5 + $0x11d0] sm:$0xff] }
 0x939   :  { %13148 = vmatprep.subr.bf16.mxu0 %v15028_v29  ;;  %v1282_v29 = vld [vmem:[#allocation5 + $0x11f0] sm:$0xff] }
 0x93c   :  { %13149 = vmatpush1.bf16.msra.mxu0 %v15027_v16 }
 0x93d   :  { %13150 = vmatprep.subr.bf16.mxu0 %v15020_v14  ;;  %v15051_v14 = vcombine.low %v1285_v24, %v1289_v42  ;;  %v1318_v24 = vld [vmem:[#allocation5 + $0x1310] sm:$0xff] }
 0x93e   :  { %v1322_v42 = vld [vmem:[#allocation5 + $0x1330] sm:$0xff] }
 0x940   :  { %13151 = vmatpush1.bf16.msra.mxu0 %v15019_v1  ;;  %v15046_v1 = vcombine.high %v1278_v23, %v1282_v29 }
 0x941   :  { %13152 = vmatprep.subr.bf16.mxu0 %v15012_v53  ;;  %v1270_v53 = vld [vmem:[#allocation5 + $0x1190] sm:$0xff] }
 0x944   :  { %13153 = vmatpush1.bf16.msra.mxu0 %v15011_v4 }
 0x945   :  { %13154 = vmatprep.subr.bf16.mxu0 %v15004_v63  ;;  %v15038_v63 = vcombine.high %v1270_v53, %v1274_v17 }
 0x948   :  { %13155 = vmatpush1.bf16.msra.mxu0 %v15003_v59  ;;  %v15037_v59 = vcombine.low %v1270_v53, %v1274_v17  ;;  %v1298_v53 = vld [vmem:[#allocation5 + $0x1270] sm:$0xff] }
 0x949   :  { %13156 = vmatprep.subr.bf16.mxu0 %v14996_v6  ;;  %v15030_v6 = vcombine.high %v1262_v48, %v1266_v32 }
 0x94c   :  { %13157 = vmatpush1.bf16.msra.mxu0 %v14995_v44  ;;  %v15029_v44 = vcombine.low %v1262_v48, %v1266_v32 }
 0x94d   :  { %13158 = vmatprep.subr.bf16.mxu0 %v14988_v47  ;;  %v15022_v47 = vcombine.high %v1254_v35, %v1258_v5 }
 0x950   :  { %13159 = vmatpush1.bf16.msra.mxu0 %v14987_v36  ;;  %v15021_v36 = vcombine.low %v1254_v35, %v1258_v5  ;;  %v1279_v5 = vld [vmem:[#allocation5 + $0x11d8] sm:$0xff] }
 0x951   :  { %13160 = vmatprep.subr.bf16.mxu0 %v15108_v2  ;;  %v15014_v2 = vcombine.high %v1246_v43, %v1250_v27 }
 0x954   :  { %13161 = vmatpush2.bf16.msra.mxu0 %v15107_v39  ;;  %v15013_v39 = vcombine.low %v1246_v43, %v1250_v27 }
 0x955   :  { %13162 = vmatprep.subr.bf16.mxu0 %v15100_v8  ;;  %v15006_v8 = vcombine.high %v1238_v11, %v1242_v38 }
 0x958   :  { %13163 = vmatpush2.bf16.msra.mxu0 %v15099_v3  ;;  %v15005_v3 = vcombine.low %v1238_v11, %v1242_v38  ;;  %v1397_v11 = vld [vmem:[#allocation5 + $0x1588] sm:$0xff] }
 0x959   :  { %13164 = vmatprep.subr.bf16.mxu0 %v15092_v0  ;;  %v14998_v0 = vcombine.high %v1230_v40, %v1234_v31 }
 0x95c   :  { %13165 = vmatpush2.bf16.msra.mxu0 %v15091_v49  ;;  %v14997_v49 = vcombine.low %v1230_v40, %v1234_v31  ;;  %v1275_v40 = vld [vmem:[#allocation5 + $0x11b8] sm:$0xff] }
 0x95d   :  { %13166 = vmatprep.subr.bf16.mxu0 %v15084_v50  ;;  %v14990_v50 = vcombine.high %v1222_v52, %v1226_v46 }
 0x960   :  { %13167 = vmatpush2.bf16.msra.mxu0 %v15083_v45  ;;  %v14989_v45 = vcombine.low %v1222_v52, %v1226_v46  ;;  %v1389_v52 = vld [vmem:[#allocation5 + $0x1548] sm:$0xff] }
 0x961   :  { %13168 = vmatprep.subr.bf16.mxu0 %v15076_v51  ;;  %v15110_v51 = vcombine.high %v1342_v54, %v1346_v33  ;;  %v1393_v46 = vld [vmem:[#allocation5 + $0x1568] sm:$0xff] }
 0x964   :  { %13169 = vmatpush2.bf16.msra.mxu0 %v15075_v61  ;;  %v15109_v61 = vcombine.low %v1342_v54, %v1346_v33 }
 0x965   :  { %13170 = vmatprep.subr.bf16.mxu0 %v15068_v15  ;;  %v15102_v15 = vcombine.high %v1334_v60, %v1338_v62 }
 0x968   :  { %13171 = vmatpush2.bf16.msra.mxu0 %v15067_v22  ;;  %v15101_v22 = vcombine.low %v1334_v60, %v1338_v62  ;;  %v1381_v60 = vld [vmem:[#allocation5 + $0x1508] sm:$0xff] }
 0x969   :  { %v11685_v37 = vpop.f32.mrf.mxu1  ;;  %v11726_v30 = vpop.f32.mrf.mxu0  ;;  %13172 = vmatprep.subr.bf16.mxu0 %v15060_v34  ;;  %v15094_v34 = vcombine.high %v1326_v21, %v1330_v13  ;;  %v1385_v62 = vld [vmem:[#allocation5 + $0x1528] sm:$0xff] }
 0x96a   :  { %v11686_v9 = vadd.f32 %v11685_v37, %v16794_v12  ;;  %v15045_v12 = vcombine.low %v1278_v23, %v1282_v29  ;;  %v15086_v37 = vcombine.high %v1318_v24, %v1322_v42  ;;  %v1302_v29 = vld [vmem:[#allocation5 + $0x1290] sm:$0xff]  ;;  %v15148_v19 = vcombine.high %v1381_v60, %v1385_v62 }
 0x96b   :  { %v16820_v7 = vpop.f32.mrf.mxu1  ;;  %v16822_v55 = vpop.f32.mrf.mxu0 }
 0x96c   :  { %v16824_v16 = vadd.f32 %v11726_v30, %v11686_v9  ;;  %13173 = vmatpush2.bf16.msra.mxu0 %v15059_v57  ;;  %v15093_v57 = vcombine.low %v1326_v21, %v1330_v13  ;;  %v1310_v30 = vld [vmem:[#allocation5 + $0x12d0] sm:$0xff]  ;;  %v15085_v9 = vcombine.low %v1318_v24, %v1322_v42  ;;  %v15155_v21 = vcombine.low %v1389_v52, %v1393_v46  ;;  %v1373_v13 = vld [vmem:[#allocation5 + $0x14c8] sm:$0xff] }
 0x96d   :  { %v11689_v56 = vpop.f32.mrf.mxu1  ;;  %v11730_v26 = vpop.f32.mrf.mxu0  ;;  %13174 = vmatprep.subr.bf16.mxu0 %v15052_v25  ;;  %v1314_v25 = vld [vmem:[#allocation5 + $0x12f0] sm:$0xff]  ;;  %v15147_v24 = vcombine.low %v1381_v60, %v1385_v62 }
 0x96e   :  { %v15078_v23 = vcombine.high %v1310_v30, %v1314_v25  ;;  %v15077_v56 = vcombine.low %v1310_v30, %v1314_v25  ;;  %v1365_v30 = vld [vmem:[#allocation5 + $0x1488] sm:$0xff] }
 0x96f   :  { %v11690_v18 = vpop.f32.mrf.mxu1  ;;  %v11731_v4 = vpop.f32.mrf.mxu0  ;;  %v1369_v25 = vld [vmem:[#allocation5 + $0x14a8] sm:$0xff] }
 0x970   :  { %13175 = vmatpush2.bf16.msra.mxu0 %v15051_v14  ;;  %v1306_v14 = vld [vmem:[#allocation5 + $0x12b0] sm:$0xff]  ;;  %v11688_v4 = vadd.f32 %v16820_v7, %v16799_v28 }
 0x971   :  { %13226 = vmatprep.subr.bf16.mxu0 %v15046_v1  ;;  %v15070_v26 = vcombine.high %v1302_v29, %v1306_v14  ;;  %v1294_v1 = vld [vmem:[#allocation5 + $0x1250] sm:$0xff]  ;;  %v15069_v17 = vcombine.low %v1302_v29, %v1306_v14 }
 0x972   :  { %v15062_v18 = vcombine.high %v1294_v1, %v1298_v53  ;;  %v15061_v48 = vcombine.low %v1294_v1, %v1298_v53  ;;  %v1357_v1 = vld [vmem:[#allocation5 + $0x1448] sm:$0xff] }
 0x973   :  { %13177 = vmatmul.mubr.bf16.vlgmr.msra.gmra.mxu0 %v16807_v58  ;;  %v1361_v53 = vld [vmem:[#allocation5 + $0x1468] sm:$0xff] }
 0x974   :  { %13227 = vmatpush1.bf16.msra.mxu0 %v15045_v12  ;;  %13258 = vmatprep.mubr.bf16.mxu0 %v16801_v41  ;;  %v1286_v12 = vld [vmem:[#allocation5 + $0x1210] sm:$0xff] }
 0x975   :  { %13228 = vmatprep.subr.bf16.mxu0 %v15038_v63  ;;  %v1290_v63 = vld [vmem:[#allocation5 + $0x1230] sm:$0xff] }
 0x976   :  { %v15053_v27 = vcombine.low %v1286_v12, %v1290_v63 }
 0x978   :  { %13229 = vmatpush1.bf16.msra.mxu0 %v15037_v59  ;;  %v15054_v59 = vcombine.high %v1286_v12, %v1290_v63  ;;  %v15124_v63 = vcombine.high %v1357_v1, %v1361_v53 }
 0x979   :  { %13230 = vmatprep.subr.bf16.mxu0 %v15030_v6  ;;  %v11729_v6 = vadd.f32 %v16822_v55, %v11688_v4  ;;  %v15131_v4 = vcombine.low %v1365_v30, %v1369_v25 }
 0x97c   :  { %13231 = vmatpush1.bf16.msra.mxu0 %v15029_v44  ;;  %v1283_v44 = vld [vmem:[#allocation5 + $0x11f8] sm:$0xff] }
 0x97d   :  { %13232 = vmatprep.subr.bf16.mxu0 %v15022_v47  ;;  %v15048_v28 = vcombine.high %v1279_v5, %v1283_v44 }
 0x980   :  { %13233 = vmatpush1.bf16.msra.mxu0 %v15021_v36 }
 0x981   :  { %13234 = vmatprep.subr.bf16.mxu0 %v15014_v2 }
 0x984   :  { %13235 = vmatpush1.bf16.msra.mxu0 %v15013_v39  ;;  %v1401_v39 = vld [vmem:[#allocation5 + $0x15a8] sm:$0xff] }
 0x985   :  { %13236 = vmatprep.subr.bf16.mxu0 %v15006_v8  ;;  %v1271_v8 = vld [vmem:[#allocation5 + $0x1198] sm:$0xff]  ;;  %v15163_v54 = vcombine.low %v1397_v11, %v1401_v39 }
 0x986   :  { %v15039_v33 = vcombine.low %v1271_v8, %v1275_v40 }
 0x988   :  { %13237 = vmatpush1.bf16.msra.mxu0 %v15005_v3  ;;  %v15164_v3 = vcombine.high %v1397_v11, %v1401_v39 }
 0x989   :  { %13238 = vmatprep.subr.bf16.mxu0 %v14998_v0  ;;  %v15040_v0 = vcombine.high %v1271_v8, %v1275_v40  ;;  %v1461_v8 = vld [vmem:[#allocation5 + $0x1788] sm:$0xff] }
 0x98a   :  { %v1465_v40 = vld [vmem:[#allocation5 + $0x17a8] sm:$0xff] }
 0x98c   :  { %13239 = vmatpush1.bf16.msra.mxu0 %v14997_v49  ;;  %v1263_v49 = vld [vmem:[#allocation5 + $0x1158] sm:$0xff] }
 0x98d   :  { %13240 = vmatprep.subr.bf16.mxu0 %v14990_v50  ;;  %v1267_v50 = vld [vmem:[#allocation5 + $0x1178] sm:$0xff] }
 0x98e   :  { %v15031_v20 = vcombine.low %v1263_v49, %v1267_v50 }
 0x990   :  { %13241 = vmatpush1.bf16.msra.mxu0 %v14989_v45  ;;  %v15156_v45 = vcombine.high %v1389_v52, %v1393_v46  ;;  %v15228_v46 = vcombine.high %v1461_v8, %v1465_v40 }
 0x991   :  { %13242 = vmatprep.subr.bf16.mxu0 %v15110_v51  ;;  %v15032_v51 = vcombine.high %v1263_v49, %v1267_v50  ;;  %v1453_v50 = vld [vmem:[#allocation5 + $0x1748] sm:$0xff] }
 0x994   :  { %13243 = vmatpush2.bf16.msra.mxu0 %v15109_v61  ;;  %v1255_v61 = vld [vmem:[#allocation5 + $0x1118] sm:$0xff] }
 0x995   :  { %13244 = vmatprep.subr.bf16.mxu0 %v15102_v15  ;;  %v1259_v15 = vld [vmem:[#allocation5 + $0x1138] sm:$0xff] }
 0x996   :  { %v15023_v42 = vcombine.low %v1255_v61, %v1259_v15 }
 0x998   :  { %13245 = vmatpush2.bf16.msra.mxu0 %v15101_v22  ;;  %v1377_v22 = vld [vmem:[#allocation5 + $0x14e8] sm:$0xff] }
 0x999   :  { %13246 = vmatprep.subr.bf16.mxu0 %v15094_v34  ;;  %v1251_v34 = vld [vmem:[#allocation5 + $0x10f8] sm:$0xff]  ;;  %v15139_v29 = vcombine.low %v1373_v13, %v1377_v22 }
 0x99c   :  { %13247 = vmatpush2.bf16.msra.mxu0 %v15093_v57  ;;  %v15140_v57 = vcombine.high %v1373_v13, %v1377_v22 }
 0x99d   :  { %13248 = vmatprep.subr.bf16.mxu0 %v15086_v37 }
 0x9a0   :  { %13249 = vmatpush2.bf16.msra.mxu0 %v15085_v9  ;;  %v1239_v9 = vld [vmem:[#allocation5 + $0x1098] sm:$0xff] }
 0x9a1   :  { %13250 = vmatprep.subr.bf16.mxu0 %v15078_v23  ;;  %v1243_v23 = vld [vmem:[#allocation5 + $0x10b8] sm:$0xff] }
 0x9a2   :  { %v15007_v12 = vcombine.low %v1239_v9, %v1243_v23 }
 0x9a4   :  { %13251 = vmatpush2.bf16.msra.mxu0 %v15077_v56  ;;  %v15132_v56 = vcombine.high %v1365_v30, %v1369_v25 }
 0x9a5   :  { %13252 = vmatprep.subr.bf16.mxu0 %v15070_v26  ;;  %v15008_v26 = vcombine.high %v1239_v9, %v1243_v23  ;;  %v1429_v23 = vld [vmem:[#allocation5 + $0x1688] sm:$0xff] }
 0x9a8   :  { %13253 = vmatpush2.bf16.msra.mxu0 %v15069_v17  ;;  %v1231_v17 = vld [vmem:[#allocation5 + $0x1058] sm:$0xff] }
 0x9a9   :  { %v11767_v32 = vpop.f32.mrf.mxu1  ;;  %13254 = vmatprep.subr.bf16.mxu0 %v15062_v18  ;;  %v1235_v18 = vld [vmem:[#allocation5 + $0x1078] sm:$0xff] }
 0x9aa   :  { %v11768_v35 = vadd.f32 %v11767_v32, %v16824_v16  ;;  %v15047_v16 = vcombine.low %v1279_v5, %v1283_v44  ;;  %v1349_v32 = vld [vmem:[#allocation5 + $0x1408] sm:$0xff]  ;;  %v15123_v5 = vcombine.low %v1357_v1, %v1361_v53  ;;  %v14999_v44 = vcombine.low %v1231_v17, %v1235_v18 }
 0x9ab   :  { %v11769_v47 = vpop.f32.mrf.mxu1 }
 0x9ac   :  { %v11770_v43 = vadd.f32 %v11769_v47, %v11729_v6  ;;  %13255 = vmatpush2.bf16.msra.mxu0 %v15061_v48  ;;  %v11776_v36 = vmax.f32 %v11768_v35, 0.0  ;;  %v15000_v48 = vcombine.high %v1231_v17, %v1235_v18  ;;  %v1223_v6 = vld [vmem:[#allocation5 + $0x1018] sm:$0xff]  ;;  %v1421_v18 = vld [vmem:[#allocation5 + $0x1648] sm:$0xff] }
 0x9ad   :  { %v11771_v2 = vpop.f32.mrf.mxu1  ;;  %13256 = vmatprep.subr.bf16.mxu0 %v15054_v59  ;;  %v1353_v59 = vld [vmem:[#allocation5 + $0x1428] sm:$0xff]  ;;  %v1227_v35 = vld [vmem:[#allocation5 + $0x1038] sm:$0xff] }
 0x9ae   :  { %v11777_v7 = vmax.f32 %v11770_v43, 0.0  ;;  %v16834_v55 = vpack.c.bf16 %v11776_v36, %v11776_v36  ;;  %v15116_v47 = vcombine.high %v1349_v32, %v1353_v59  ;;  %v14992_v43 = vcombine.high %v1223_v6, %v1227_v35  ;;  %v1473_v36 = vld [vmem:[#allocation5 + $0x17e8] sm:$0xff]  ;;  %v1343_v2 = vld [vmem:[#allocation5 + $0x13d8] sm:$0xff] }
 0x9af   :  { %v11772_v38 = vpop.f32.mrf.mxu1  ;;  %v14991_v11 = vcombine.low %v1223_v6, %v1227_v35  ;;  %v1413_v35 = vld [vmem:[#allocation5 + $0x1608] sm:$0xff] }
 0x9b0   :  { %v16832_v31 = vpack.c.bf16 %v11777_v7, %v11777_v7  ;;  %13257 = vmatpush2.bf16.msra.mxu0 %v15053_v27  ;;  %v1469_v27 = vld [vmem:[#allocation5 + $0x17c8] sm:$0xff]  ;;  %v15115_v7 = vcombine.low %v1349_v32, %v1353_v59 }
 0x9b1   :  { %13308 = vmatprep.subr.bf16.mxu0 %v15048_v28  ;;  %v1347_v28 = vld [vmem:[#allocation5 + $0x13f8] sm:$0xff]  ;;  %v15236_v38 = vcombine.high %v1469_v27, %v1473_v36 }
 0x9b2   :  { %13135 = vmatprep.mubr.bf16.mxu1 %v16832_v31  ;;  %v15112_v39 = vcombine.high %v1343_v2, %v1347_v28  ;;  %v15111_v52 = vcombine.low %v1343_v2, %v1347_v28  ;;  %v1406_v28 = vld [vmem:[#allocation5 + $0x15d0] sm:$0xff] }
 0x9b3   :  { %13136 = vmatmul.mubr.bf16.vlgmr.msra.gmra.mxu1 %v16834_v55  ;;  %13259 = vmatmul.mubr.bf16.vlgmr.msra.gmra.mxu0 %v16807_v58 }
 0x9b4   :  { %13186 = vmatpush1.bf16.msra.mxu1 %v15171_v10  ;;  %13217 = vmatprep.mubr.bf16.mxu1 %v16832_v31  ;;  %v15024_v10 = vcombine.high %v1255_v61, %v1259_v15  ;;  %v1445_v15 = vld [vmem:[#allocation5 + $0x1708] sm:$0xff] }
 0x9b5   :  { %13309 = vmatpush1.bf16.msra.mxu0 %v15047_v16  ;;  %13340 = vmatprep.mubr.bf16.mxu0 %v16801_v41  ;;  %v1247_v41 = vld [vmem:[#allocation5 + $0x10d8] sm:$0xff] }
 0x9b6   :  { %13187 = vmatprep.subr.bf16.mxu1 %v15164_v3  ;;  %13310 = vmatprep.subr.bf16.mxu0 %v15040_v0  ;;  %v15016_v37 = vcombine.high %v1247_v41, %v1251_v34  ;;  %v15015_v14 = vcombine.low %v1247_v41, %v1251_v34  ;;  %v1335_v16 = vld [vmem:[#allocation5 + $0x1398] sm:$0xff]  ;;  %v15235_v0 = vcombine.low %v1469_v27, %v1473_v36  ;;  %v1437_v34 = vld [vmem:[#allocation5 + $0x16c8] sm:$0xff] }
 0x9b7   :  { %v1339_v3 = vld [vmem:[#allocation5 + $0x13b8] sm:$0xff] }
 0x9b8   :  { %13188 = vmatpush1.bf16.msra.mxu1 %v15163_v54  ;;  %v15104_v49 = vcombine.high %v1335_v16, %v1339_v3  ;;  %v1457_v54 = vld [vmem:[#allocation5 + $0x1768] sm:$0xff]  ;;  %v15103_v60 = vcombine.low %v1335_v16, %v1339_v3 }
 0x9b9   :  { %13311 = vmatpush1.bf16.msra.mxu0 %v15039_v33  ;;  %13189 = vmatprep.subr.bf16.mxu1 %v15156_v45  ;;  %v1327_v33 = vld [vmem:[#allocation5 + $0x1358] sm:$0xff]  ;;  %v15220_v62 = vcombine.high %v1453_v50, %v1457_v54 }
 0x9ba   :  { %13312 = vmatprep.subr.bf16.mxu0 %v15032_v51  ;;  %v1331_v45 = vld [vmem:[#allocation5 + $0x1378] sm:$0xff]  ;;  %v15227_v51 = vcombine.low %v1461_v8, %v1465_v40  ;;  %v1398_v8 = vld [vmem:[#allocation5 + $0x1590] sm:$0xff] }
 0x9bb   :  { %v15096_v61 = vcombine.high %v1327_v33, %v1331_v45  ;;  %v15095_v13 = vcombine.low %v1327_v33, %v1331_v45  ;;  %v1402_v40 = vld [vmem:[#allocation5 + $0x15b0] sm:$0xff] }
 0x9bc   :  { %13190 = vmatpush1.bf16.msra.mxu1 %v15155_v21  ;;  %v1449_v21 = vld [vmem:[#allocation5 + $0x1728] sm:$0xff]  ;;  %v15166_v3 = vcombine.high %v1398_v8, %v1402_v40  ;;  %v1382_v33 = vld [vmem:[#allocation5 + $0x1510] sm:$0xff] }
 0x9bd   :  { %13313 = vmatpush1.bf16.msra.mxu0 %v15031_v20  ;;  %13191 = vmatprep.subr.bf16.mxu1 %v15148_v19  ;;  %v1319_v20 = vld [vmem:[#allocation5 + $0x1318] sm:$0xff]  ;;  %v15212_v22 = vcombine.high %v1445_v15, %v1449_v21  ;;  %v1386_v45 = vld [vmem:[#allocation5 + $0x1530] sm:$0xff] }
 0x9be   :  { %13314 = vmatprep.subr.bf16.mxu0 %v15024_v10  ;;  %v1323_v19 = vld [vmem:[#allocation5 + $0x1338] sm:$0xff]  ;;  %v15219_v10 = vcombine.low %v1453_v50, %v1457_v54 }
 0x9bf   :  { %v15088_v41 = vcombine.high %v1319_v20, %v1323_v19  ;;  %v15087_v30 = vcombine.low %v1319_v20, %v1323_v19  ;;  %v15149_v20 = vcombine.low %v1382_v33, %v1386_v45 }
 0x9c0   :  { %13192 = vmatpush1.bf16.msra.mxu1 %v15147_v24  ;;  %v1441_v24 = vld [vmem:[#allocation5 + $0x16e8] sm:$0xff] }
 0x9c1   :  { %13315 = vmatpush1.bf16.msra.mxu0 %v15023_v42  ;;  %13193 = vmatprep.subr.bf16.mxu1 %v15140_v57  ;;  %v1311_v42 = vld [vmem:[#allocation5 + $0x12d8] sm:$0xff]  ;;  %v15204_v25 = vcombine.high %v1437_v34, %v1441_v24 }
 0x9c2   :  { %13316 = vmatprep.subr.bf16.mxu0 %v15016_v37  ;;  %v1315_v57 = vld [vmem:[#allocation5 + $0x12f8] sm:$0xff]  ;;  %v15211_v37 = vcombine.low %v1445_v15, %v1449_v21  ;;  %v1374_v15 = vld [vmem:[#allocation5 + $0x14d0] sm:$0xff] }
 0x9c3   :  { %v15080_v9 = vcombine.high %v1311_v42, %v1315_v57  ;;  %v15079_v1 = vcombine.low %v1311_v42, %v1315_v57  ;;  %v1378_v21 = vld [vmem:[#allocation5 + $0x14f0] sm:$0xff] }
 0x9c4   :  { %13194 = vmatpush1.bf16.msra.mxu1 %v15139_v29  ;;  %v1433_v29 = vld [vmem:[#allocation5 + $0x16a8] sm:$0xff]  ;;  %v15142_v19 = vcombine.high %v1374_v15, %v1378_v21  ;;  %v1350_v57 = vld [vmem:[#allocation5 + $0x1410] sm:$0xff] }
 0x9c5   :  { %13317 = vmatpush1.bf16.msra.mxu0 %v15015_v14  ;;  %13195 = vmatprep.subr.bf16.mxu1 %v15132_v56  ;;  %v1303_v14 = vld [vmem:[#allocation5 + $0x1298] sm:$0xff]  ;;  %v15196_v53 = vcombine.high %v1429_v23, %v1433_v29 }
 0x9c6   :  { %13318 = vmatprep.subr.bf16.mxu0 %v15008_v26  ;;  %v1307_v56 = vld [vmem:[#allocation5 + $0x12b8] sm:$0xff]  ;;  %v15203_v26 = vcombine.low %v1437_v34, %v1441_v24  ;;  %v1362_v34 = vld [vmem:[#allocation5 + $0x1470] sm:$0xff] }
 0x9c7   :  { %v15072_v17 = vcombine.high %v1303_v14, %v1307_v56  ;;  %v15071_v32 = vcombine.low %v1303_v14, %v1307_v56  ;;  %v1462_v56 = vld [vmem:[#allocation5 + $0x1790] sm:$0xff] }
 0x9c8   :  { %13196 = vmatpush1.bf16.msra.mxu1 %v15131_v4  ;;  %v1425_v4 = vld [vmem:[#allocation5 + $0x1668] sm:$0xff] }
 0x9c9   :  { %13319 = vmatpush1.bf16.msra.mxu0 %v15007_v12  ;;  %13197 = vmatprep.subr.bf16.mxu1 %v15124_v63  ;;  %v1295_v12 = vld [vmem:[#allocation5 + $0x1258] sm:$0xff]  ;;  %v15188_v59 = vcombine.high %v1421_v18, %v1425_v4 }
 0x9ca   :  { %13320 = vmatprep.subr.bf16.mxu0 %v15000_v48  ;;  %v1299_v63 = vld [vmem:[#allocation5 + $0x1278] sm:$0xff]  ;;  %v15195_v48 = vcombine.low %v1429_v23, %v1433_v29  ;;  %v1474_v23 = vld [vmem:[#allocation5 + $0x17f0] sm:$0xff] }
 0x9cb   :  { %v15064_v6 = vcombine.high %v1295_v12, %v1299_v63  ;;  %v15063_v27 = vcombine.low %v1295_v12, %v1299_v63  ;;  %v1446_v63 = vld [vmem:[#allocation5 + $0x1710] sm:$0xff] }
 0x9cc   :  { %13198 = vmatpush1.bf16.msra.mxu1 %v15123_v5  ;;  %v1417_v5 = vld [vmem:[#allocation5 + $0x1628] sm:$0xff] }
 0x9cd   :  { %13321 = vmatpush1.bf16.msra.mxu0 %v14999_v44  ;;  %13199 = vmatprep.subr.bf16.mxu1 %v15116_v47  ;;  %v1287_v44 = vld [vmem:[#allocation5 + $0x1218] sm:$0xff]  ;;  %v15180_v36 = vcombine.high %v1413_v35, %v1417_v5 }
 0x9ce   :  { %13322 = vmatprep.subr.bf16.mxu0 %v14992_v43  ;;  %v1291_v47 = vld [vmem:[#allocation5 + $0x1238] sm:$0xff]  ;;  %v15187_v43 = vcombine.low %v1421_v18, %v1425_v4  ;;  %v1458_v18 = vld [vmem:[#allocation5 + $0x1770] sm:$0xff] }
 0x9cf   :  { %v15056_v2 = vcombine.high %v1287_v44, %v1291_v47 }
 0x9d0   :  { %13200 = vmatpush1.bf16.msra.mxu1 %v15115_v7  ;;  %v1410_v7 = vld [vmem:[#allocation5 + $0x15f0] sm:$0xff] }
 0x9d1   :  { %13323 = vmatpush1.bf16.msra.mxu0 %v14991_v11  ;;  %13201 = vmatprep.subr.bf16.mxu1 %v15236_v38  ;;  %v15179_v11 = vcombine.low %v1413_v35, %v1417_v5  ;;  %v15055_v38 = vcombine.low %v1287_v44, %v1291_v47  ;;  %v15173_v16 = vcombine.low %v1406_v28, %v1410_v7  ;;  %v1442_v35 = vld [vmem:[#allocation5 + $0x16f0] sm:$0xff] }
 0x9d2   :  { %13324 = vmatprep.subr.bf16.mxu0 %v15112_v39  ;;  %v15174_v39 = vcombine.high %v1406_v28, %v1410_v7  ;;  %v1430_v47 = vld [vmem:[#allocation5 + $0x1690] sm:$0xff] }
 0x9d3   :  { %v1426_v28 = vld [vmem:[#allocation5 + $0x1670] sm:$0xff] }
 0x9d4   :  { %13202 = vmatpush2.bf16.msra.mxu1 %v15235_v0  ;;  %v1390_v0 = vld [vmem:[#allocation5 + $0x1550] sm:$0xff] }
 0x9d5   :  { %13325 = vmatpush2.bf16.msra.mxu0 %v15111_v52  ;;  %13203 = vmatprep.subr.bf16.mxu1 %v15228_v46  ;;  %v1394_v52 = vld [vmem:[#allocation5 + $0x1570] sm:$0xff] }
 0x9d6   :  { %13326 = vmatprep.subr.bf16.mxu0 %v15104_v49  ;;  %v15165_v49 = vcombine.low %v1398_v8, %v1402_v40  ;;  %v15158_v54 = vcombine.high %v1390_v0, %v1394_v52 }
 0x9d8   :  { %13204 = vmatpush2.bf16.msra.mxu1 %v15227_v51 }
 0x9d9   :  { %13327 = vmatpush2.bf16.msra.mxu0 %v15103_v60  ;;  %13205 = vmatprep.subr.bf16.mxu1 %v15220_v62  ;;  %v15157_v60 = vcombine.low %v1390_v0, %v1394_v52 }
 0x9da   :  { %13328 = vmatprep.subr.bf16.mxu0 %v15096_v61  ;;  %v15150_v61 = vcombine.high %v1382_v33, %v1386_v45 }
 0x9dc   :  { %13206 = vmatpush2.bf16.msra.mxu1 %v15219_v10  ;;  %v1366_v10 = vld [vmem:[#allocation5 + $0x1490] sm:$0xff] }
 0x9dd   :  { %13329 = vmatpush2.bf16.msra.mxu0 %v15095_v13  ;;  %13207 = vmatprep.subr.bf16.mxu1 %v15212_v22  ;;  %v15141_v13 = vcombine.low %v1374_v15, %v1378_v21 }
 0x9de   :  { %13330 = vmatprep.subr.bf16.mxu0 %v15088_v41  ;;  %v1358_v41 = vld [vmem:[#allocation5 + $0x1450] sm:$0xff] }
 0x9df   :  { %v15126_v42 = vcombine.high %v1358_v41, %v1362_v34 }
 0x9e0   :  { %13208 = vmatpush2.bf16.msra.mxu1 %v15211_v37  ;;  %v1354_v37 = vld [vmem:[#allocation5 + $0x1430] sm:$0xff] }
 0x9e1   :  { %13331 = vmatpush2.bf16.msra.mxu0 %v15087_v30  ;;  %13209 = vmatprep.subr.bf16.mxu1 %v15204_v25  ;;  %v15125_v30 = vcombine.low %v1358_v41, %v1362_v34  ;;  %v15118_v25 = vcombine.high %v1350_v57, %v1354_v37  ;;  %v15117_v29 = vcombine.low %v1350_v57, %v1354_v37  ;;  %v1375_v41 = vld [vmem:[#allocation5 + $0x14d8] sm:$0xff] }
 0x9e2   :  { %13332 = vmatprep.subr.bf16.mxu0 %v15080_v9  ;;  %v1470_v9 = vld [vmem:[#allocation5 + $0x17d0] sm:$0xff]  ;;  %v1379_v34 = vld [vmem:[#allocation5 + $0x14f8] sm:$0xff] }
 0x9e3   :  { %v15238_v14 = vcombine.high %v1470_v9, %v1474_v23  ;;  %v1371_v57 = vld [vmem:[#allocation5 + $0x14b8] sm:$0xff]  ;;  %v15143_v37 = vcombine.low %v1375_v41, %v1379_v34 }
 0x9e4   :  { %13210 = vmatpush2.bf16.msra.mxu1 %v15203_v26  ;;  %v1466_v26 = vld [vmem:[#allocation5 + $0x17b0] sm:$0xff] }
 0x9e5   :  { %13333 = vmatpush2.bf16.msra.mxu0 %v15079_v1  ;;  %13211 = vmatprep.subr.bf16.mxu1 %v15196_v53  ;;  %v15237_v1 = vcombine.low %v1470_v9, %v1474_v23  ;;  %v15230_v53 = vcombine.high %v1462_v56, %v1466_v26  ;;  %v15229_v4 = vcombine.low %v1462_v56, %v1466_v26  ;;  %v1363_v9 = vld [vmem:[#allocation5 + $0x1478] sm:$0xff] }
 0x9e6   :  { %13334 = vmatprep.subr.bf16.mxu0 %v15072_v17  ;;  %v1454_v17 = vld [vmem:[#allocation5 + $0x1750] sm:$0xff]  ;;  %v1355_v56 = vld [vmem:[#allocation5 + $0x1438] sm:$0xff] }
 0x9e7   :  { %v15222_v12 = vcombine.high %v1454_v17, %v1458_v18 }
 0x9e8   :  { %13212 = vmatpush2.bf16.msra.mxu1 %v15195_v48  ;;  %v1450_v48 = vld [vmem:[#allocation5 + $0x1730] sm:$0xff] }
 0x9e9   :  { %13335 = vmatpush2.bf16.msra.mxu0 %v15071_v32  ;;  %13213 = vmatprep.subr.bf16.mxu1 %v15188_v59  ;;  %v15221_v32 = vcombine.low %v1454_v17, %v1458_v18  ;;  %v15214_v59 = vcombine.high %v1446_v63, %v1450_v48  ;;  %v15213_v5 = vcombine.low %v1446_v63, %v1450_v48  ;;  %v1475_v17 = vld [vmem:[#allocation5 + $0x17f8] sm:$0xff] }
 0x9ea   :  { %13336 = vmatprep.subr.bf16.mxu0 %v15064_v6  ;;  %v1438_v6 = vld [vmem:[#allocation5 + $0x16d0] sm:$0xff]  ;;  %v1467_v63 = vld [vmem:[#allocation5 + $0x17b8] sm:$0xff] }
 0x9eb   :  { %v15206_v44 = vcombine.high %v1438_v6, %v1442_v35 }
 0x9ec   :  { %13214 = vmatpush2.bf16.msra.mxu1 %v15187_v43  ;;  %v1434_v43 = vld [vmem:[#allocation5 + $0x16b0] sm:$0xff] }
 0x9ed   :  { %13337 = vmatpush2.bf16.msra.mxu0 %v15063_v27  ;;  %13215 = vmatprep.subr.bf16.mxu1 %v15180_v36  ;;  %v15205_v27 = vcombine.low %v1438_v6, %v1442_v35  ;;  %v15198_v36 = vcombine.high %v1430_v47, %v1434_v43  ;;  %v15197_v7 = vcombine.low %v1430_v47, %v1434_v43  ;;  %v1459_v6 = vld [vmem:[#allocation5 + $0x1778] sm:$0xff] }
 0x9ee   :  { %13338 = vmatprep.subr.bf16.mxu0 %v15056_v2  ;;  %v1422_v2 = vld [vmem:[#allocation5 + $0x1650] sm:$0xff]  ;;  %v1451_v47 = vld [vmem:[#allocation5 + $0x1738] sm:$0xff] }
 0x9ef   :  { %v15189_v8 = vcombine.low %v1422_v2, %v1426_v28 }
 0x9f0   :  { %13216 = vmatpush2.bf16.msra.mxu1 %v15179_v11  ;;  %v15190_v11 = vcombine.high %v1422_v2, %v1426_v28  ;;  %v1443_v2 = vld [vmem:[#allocation5 + $0x16f8] sm:$0xff] }
 0x9f1   :  { %13339 = vmatpush2.bf16.msra.mxu0 %v15055_v38  ;;  %13267 = vmatprep.subr.bf16.mxu1 %v15174_v39  ;;  %v1414_v38 = vld [vmem:[#allocation5 + $0x1610] sm:$0xff] }
 0x9f2   :  { %v1418_v39 = vld [vmem:[#allocation5 + $0x1630] sm:$0xff] }
 0x9f3   :  { %13218 = vmatmul.mubr.bf16.vlgmr.msra.gmra.mxu1 %v16834_v55  ;;  %v16845_v46 = vpop.f32.mrf.mxu0  ;;  %v15182_v40 = vcombine.high %v1414_v38, %v1418_v39  ;;  %v15181_v0 = vcombine.low %v1414_v38, %v1418_v39  ;;  %v1435_v38 = vld [vmem:[#allocation5 + $0x16b8] sm:$0xff] }
 0x9f4   :  { %13268 = vmatpush1.bf16.msra.mxu1 %v15173_v16  ;;  %13299 = vmatprep.mubr.bf16.mxu1 %v16832_v31  ;;  %v1407_v16 = vld [vmem:[#allocation5 + $0x15d8] sm:$0xff] }
 0x9f5   :  { %13341 = vmatmul.mubr.bf16.vlgmr.msra.gmra.mxu0 %v16807_v58  ;;  %v16849_v50 = vpop.f32.mrf.mxu0  ;;  %13269 = vmatprep.subr.bf16.mxu1 %v15166_v3  ;;  %v1370_v58 = vld [vmem:[#allocation5 + $0x14b0] sm:$0xff]  ;;  %v1411_v3 = vld [vmem:[#allocation5 + $0x15f8] sm:$0xff] }
 0x9f6   :  { %v15134_v22 = vcombine.high %v1366_v10, %v1370_v58  ;;  %v15133_v24 = vcombine.low %v1366_v10, %v1370_v58  ;;  %v15176_v52 = vcombine.high %v1407_v16, %v1411_v3  ;;  %v15175_v33 = vcombine.low %v1407_v16, %v1411_v3  ;;  %v1427_v16 = vld [vmem:[#allocation5 + $0x1678] sm:$0xff] }
 0x9f7   :  { %v13100_v51 = vpop.f32.mrf.mxu0 }
 0x9f8   :  { %13270 = vmatpush1.bf16.msra.mxu1 %v15165_v49  ;;  %v1399_v49 = vld [vmem:[#allocation5 + $0x1598] sm:$0xff] }
 0x9f9   :  { %v13101_v62 = vpop.f32.mrf.mxu0  ;;  %13271 = vmatprep.subr.bf16.mxu1 %v15158_v54  ;;  %v1403_v54 = vld [vmem:[#allocation5 + $0x15b8] sm:$0xff] }
 0x9fa   :  { %v15168_v45 = vcombine.high %v1399_v49, %v1403_v54  ;;  %v1391_v51 = vld [vmem:[#allocation5 + $0x1558] sm:$0xff] }
 0x9fc   :  { %13272 = vmatpush1.bf16.msra.mxu1 %v15157_v60  ;;  %v1395_v60 = vld [vmem:[#allocation5 + $0x1578] sm:$0xff] }
 0x9fd   :  { %13273 = vmatprep.subr.bf16.mxu1 %v15150_v61  ;;  %v15167_v61 = vcombine.low %v1399_v49, %v1403_v54  ;;  %v15160_v21 = vcombine.high %v1391_v51, %v1395_v60  ;;  %v15159_v58 = vcombine.low %v1391_v51, %v1395_v60  ;;  %v1419_v49 = vld [vmem:[#allocation5 + $0x1638] sm:$0xff] }
 0xa00   :  { %13274 = vmatpush1.bf16.msra.mxu1 %v15149_v20  ;;  %v1383_v20 = vld [vmem:[#allocation5 + $0x1518] sm:$0xff] }
 0xa01   :  { %13275 = vmatprep.subr.bf16.mxu1 %v15142_v19  ;;  %v1387_v19 = vld [vmem:[#allocation5 + $0x1538] sm:$0xff] }
 0xa04   :  { %13276 = vmatpush1.bf16.msra.mxu1 %v15141_v13 }
 0xa05   :  { %13277 = vmatprep.subr.bf16.mxu1 %v15134_v22  ;;  %v15152_v22 = vcombine.high %v1383_v20, %v1387_v19 }
 0xa08   :  { %13278 = vmatpush1.bf16.msra.mxu1 %v15133_v24  ;;  %v15151_v24 = vcombine.low %v1383_v20, %v1387_v19 }
 0xa09   :  { %13279 = vmatprep.subr.bf16.mxu1 %v15126_v42  ;;  %v15144_v42 = vcombine.high %v1375_v41, %v1379_v34 }
 0xa0c   :  { %13280 = vmatpush1.bf16.msra.mxu1 %v15125_v30 }
 0xa0d   :  { %13281 = vmatprep.subr.bf16.mxu1 %v15118_v25  ;;  %v1359_v25 = vld [vmem:[#allocation5 + $0x1458] sm:$0xff] }
 0xa0e   :  { %v15127_v26 = vcombine.low %v1359_v25, %v1363_v9 }
 0xa10   :  { %13282 = vmatpush1.bf16.msra.mxu1 %v15117_v29  ;;  %v15128_v29 = vcombine.high %v1359_v25, %v1363_v9 }
 0xa11   :  { %13283 = vmatprep.subr.bf16.mxu1 %v15238_v14  ;;  %v1351_v14 = vld [vmem:[#allocation5 + $0x1418] sm:$0xff] }
 0xa12   :  { %v15119_v18 = vcombine.low %v1351_v14, %v1355_v56 }
 0xa14   :  { %13284 = vmatpush2.bf16.msra.mxu1 %v15237_v1  ;;  %v15120_v1 = vcombine.high %v1351_v14, %v1355_v56 }
 0xa15   :  { %13285 = vmatprep.subr.bf16.mxu1 %v15230_v53  ;;  %v1471_v53 = vld [vmem:[#allocation5 + $0x17d8] sm:$0xff] }
 0xa16   :  { %v15239_v48 = vcombine.low %v1471_v53, %v1475_v17 }
 0xa18   :  { %13286 = vmatpush2.bf16.msra.mxu1 %v15229_v4  ;;  %v15240_v4 = vcombine.high %v1471_v53, %v1475_v17 }
 0xa19   :  { %13287 = vmatprep.subr.bf16.mxu1 %v15222_v12  ;;  %v1463_v12 = vld [vmem:[#allocation5 + $0x1798] sm:$0xff] }
 0xa1a   :  { %v15231_v35 = vcombine.low %v1463_v12, %v1467_v63 }
 0xa1c   :  { %13288 = vmatpush2.bf16.msra.mxu1 %v15221_v32  ;;  %v15232_v32 = vcombine.high %v1463_v12, %v1467_v63 }
 0xa1d   :  { %13289 = vmatprep.subr.bf16.mxu1 %v15214_v59  ;;  %v1455_v59 = vld [vmem:[#allocation5 + $0x1758] sm:$0xff] }
 0xa1e   :  { %v15223_v43 = vcombine.low %v1455_v59, %v1459_v6 }
 0xa20   :  { %13290 = vmatpush2.bf16.msra.mxu1 %v15213_v5  ;;  %v15224_v5 = vcombine.high %v1455_v59, %v1459_v6 }
 0xa21   :  { %13291 = vmatprep.subr.bf16.mxu1 %v15206_v44  ;;  %v1447_v44 = vld [vmem:[#allocation5 + $0x1718] sm:$0xff] }
 0xa22   :  { %v15215_v28 = vcombine.low %v1447_v44, %v1451_v47 }
 0xa24   :  { %13292 = vmatpush2.bf16.msra.mxu1 %v15205_v27  ;;  %v15216_v27 = vcombine.high %v1447_v44, %v1451_v47 }
 0xa25   :  { %13293 = vmatprep.subr.bf16.mxu1 %v15198_v36  ;;  %v1439_v36 = vld [vmem:[#allocation5 + $0x16d8] sm:$0xff] }
 0xa26   :  { %v15207_v39 = vcombine.low %v1439_v36, %v1443_v2 }
 0xa28   :  { %13294 = vmatpush2.bf16.msra.mxu1 %v15197_v7  ;;  %v15208_v7 = vcombine.high %v1439_v36, %v1443_v2 }
 0xa29   :  { %13295 = vmatprep.subr.bf16.mxu1 %v15190_v11  ;;  %v1431_v11 = vld [vmem:[#allocation5 + $0x1698] sm:$0xff] }
 0xa2a   :  { %v15199_v3 = vcombine.low %v1431_v11, %v1435_v38 }
 0xa2c   :  { %13296 = vmatpush2.bf16.msra.mxu1 %v15189_v8  ;;  %v15200_v8 = vcombine.high %v1431_v11, %v1435_v38 }
 0xa2d   :  { %13297 = vmatprep.subr.bf16.mxu1 %v15182_v40  ;;  %v1423_v40 = vld [vmem:[#allocation5 + $0x1658] sm:$0xff] }
 0xa2e   :  { %v15191_v54 = vcombine.low %v1423_v40, %v1427_v16 }
 0xa30   :  { %13298 = vmatpush2.bf16.msra.mxu1 %v15181_v0  ;;  %v15192_v0 = vcombine.high %v1423_v40, %v1427_v16 }
 0xa31   :  { %13349 = vmatprep.subr.bf16.mxu1 %v15176_v52  ;;  %v1415_v52 = vld [vmem:[#allocation5 + $0x1618] sm:$0xff] }
 0xa33   :  { %13300 = vmatmul.mubr.bf16.vlgmr.msra.gmra.mxu1 %v16834_v55  ;;  %v16852_v62 = vpop.f32.mrf.mxu0 }
 0xa34   :  { %13350 = vmatpush1.bf16.msra.mxu1 %v15175_v33  ;;  %13381 = vmatprep.mubr.bf16.mxu1 %v16832_v31  ;;  %v1367_v31 = vld [vmem:[#allocation5 + $0x1498] sm:$0xff]  ;;  %v15184_v33 = vcombine.high %v1415_v52, %v1419_v49 }
 0xa35   :  { %v16855_v15 = vpop.f32.mrf.mxu0  ;;  %13351 = vmatprep.subr.bf16.mxu1 %v15168_v45  ;;  %v15136_v30 = vcombine.high %v1367_v31, %v1371_v57  ;;  %v15135_v23 = vcombine.low %v1367_v31, %v1371_v57  ;;  %v15183_v45 = vcombine.low %v1415_v52, %v1419_v49 }
 0xa37   :  { %v13182_v10 = vpop.f32.mrf.mxu0 }
 0xa38   :  { %13352 = vmatpush1.bf16.msra.mxu1 %v15167_v61 }
 0xa39   :  { %v13183_v13 = vpop.f32.mrf.mxu0  ;;  %13353 = vmatprep.subr.bf16.mxu1 %v15160_v21 }
 0xa3c   :  { %13354 = vmatpush1.bf16.msra.mxu1 %v15159_v58 }
 0xa3d   :  { %13355 = vmatprep.subr.bf16.mxu1 %v15152_v22 }
 0xa40   :  { %13356 = vmatpush1.bf16.msra.mxu1 %v15151_v24 }
 0xa41   :  { %13357 = vmatprep.subr.bf16.mxu1 %v15144_v42 }
 0xa44   :  { %13358 = vmatpush1.bf16.msra.mxu1 %v15143_v37 }
 0xa45   :  { %13359 = vmatprep.subr.bf16.mxu1 %v15136_v30 }
 0xa48   :  { %13360 = vmatpush1.bf16.msra.mxu1 %v15135_v23 }
 0xa49   :  { %13361 = vmatprep.subr.bf16.mxu1 %v15128_v29 }
 0xa4c   :  { %13362 = vmatpush1.bf16.msra.mxu1 %v15127_v26 }
 0xa4d   :  { %13363 = vmatprep.subr.bf16.mxu1 %v15120_v1 }
 0xa50   :  { %13364 = vmatpush1.bf16.msra.mxu1 %v15119_v18 }
 0xa51   :  { %13365 = vmatprep.subr.bf16.mxu1 %v15240_v4 }
 0xa54   :  { %13366 = vmatpush2.bf16.msra.mxu1 %v15239_v48 }
 0xa55   :  { %13367 = vmatprep.subr.bf16.mxu1 %v15232_v32 }
 0xa58   :  { %13368 = vmatpush2.bf16.msra.mxu1 %v15231_v35 }
 0xa59   :  { %13369 = vmatprep.subr.bf16.mxu1 %v15224_v5 }
 0xa5c   :  { %13370 = vmatpush2.bf16.msra.mxu1 %v15223_v43 }
 0xa5d   :  { %13371 = vmatprep.subr.bf16.mxu1 %v15216_v27 }
 0xa60   :  { %13372 = vmatpush2.bf16.msra.mxu1 %v15215_v28 }
 0xa61   :  { %13373 = vmatprep.subr.bf16.mxu1 %v15208_v7 }
 0xa64   :  { %13374 = vmatpush2.bf16.msra.mxu1 %v15207_v39 }
 0xa65   :  { %13375 = vmatprep.subr.bf16.mxu1 %v15200_v8 }
 0xa68   :  { %13376 = vmatpush2.bf16.msra.mxu1 %v15199_v3 }
 0xa69   :  { %13377 = vmatprep.subr.bf16.mxu1 %v15192_v0 }
 0xa6c   :  { %13378 = vmatpush2.bf16.msra.mxu1 %v15191_v54 }
 0xa6d   :  { %13379 = vmatprep.subr.bf16.mxu1 %v15184_v33 }
 0xa70   :  { %13380 = vmatpush2.bf16.msra.mxu1 %v15183_v45 }
 0xa73   :  { %13382 = vmatmul.mubr.bf16.vlgmr.msra.gmra.mxu1 %v16834_v55  ;;  %v13137_v51 = vpop.f32.mrf.mxu1  ;;  %v13260_v60 = vpop.f32.mrf.mxu0 }
 0xa74   :  { %v13138_v61 = vadd.f32 %v13137_v51, %v16845_v46 }
 0xa75   :  { %v13139_v21 = vpop.f32.mrf.mxu1  ;;  %v13262_v20 = vpop.f32.mrf.mxu0 }
 0xa76   :  { %v13390_v19 = vmax.f32 %v13138_v61, 0.0  ;;  %v13140_v10 = vadd.f32 %v13139_v21, %v16849_v50 }
 0xa77   :  { %v13141_v58 = vpop.f32.mrf.mxu1  ;;  %v13264_v13 = vpop.f32.mrf.mxu0 }
 0xa78   :  { %13410 = vst [vmem:[%s16895_s9] sm:$0xff] %v13390_v19  ;;  %v13391_v22 = vmax.f32 %v13140_v10, 0.0 }
 0xa79   :  { %v13142_v41 = vpop.f32.mrf.mxu1  ;;  %v13265_v34 = vpop.f32.mrf.mxu0 }
 0xa7a   :  { %13411 = vst [vmem:[%s16895_s9 + $0x8] sm:$0xff] %v13391_v22 }
 0xab3   :  { %v13219_v55 = vpop.f32.mrf.mxu1 }
 0xab4   :  { %v13220_v46 = vadd.f32 %v13219_v55, %v16852_v62 }
 0xab5   :  { %v13342_v24 = vpop.f32.mrf.mxu0  ;;  %v13221_v42 = vpop.f32.mrf.mxu1 }
 0xab6   :  { %v13392_v31 = vmax.f32 %v13220_v46, 0.0  ;;  %v13222_v50 = vadd.f32 %v13221_v42, %v16855_v15 }
 0xab7   :  { %v13344_v57 = vpop.f32.mrf.mxu0  ;;  %v13223_v37 = vpop.f32.mrf.mxu1 }
 0xab8   :  { %13412 = vst [vmem:[%s16895_s9 + $0x10] sm:$0xff] %v13392_v31  ;;  %v13393_v30 = vmax.f32 %v13222_v50, 0.0 }
 0xab9   :  { %v13346_v25 = vpop.f32.mrf.mxu0  ;;  %v13224_v9 = vpop.f32.mrf.mxu1 }
 0xaba   :  { %13413 = vst [vmem:[%s16895_s9 + $0x18] sm:$0xff] %v13393_v30 }
 0xabb   :  { %v13347_v23 = vpop.f32.mrf.mxu0 }
 0xaf3   :  { %v13301_v62 = vpop.f32.mrf.mxu1 }
 0xaf4   :  { %v13302_v29 = vadd.f32 %v13301_v62, %v13260_v60 }
 0xaf5   :  { %v13303_v14 = vpop.f32.mrf.mxu1 }
 0xaf6   :  { %v13394_v56 = vmax.f32 %v13302_v29, 0.0  ;;  %v13304_v26 = vadd.f32 %v13303_v14, %v13262_v20 }
 0xaf7   :  { %v13305_v15 = vpop.f32.mrf.mxu1 }
 0xaf8   :  { %13414 = vst [vmem:[%s16895_s9 + $0x20] sm:$0xff] %v13394_v56  ;;  %v13395_v1 = vmax.f32 %v13304_v26, 0.0 }
 0xaf9   :  { %v13306_v53 = vpop.f32.mrf.mxu1 }
 0xafa   :  { %13415 = vst [vmem:[%s16895_s9 + $0x28] sm:$0xff] %v13395_v1 }
 0xb33   :  { %v13383_v17 = vpop.f32.mrf.mxu1 }
 0xb34   :  { %v13384_v18 = vadd.f32 %v13383_v17, %v13342_v24 }
 0xb35   :  { %v13385_v4 = vpop.f32.mrf.mxu1 }
 0xb36   :  { %v13396_v12 = vmax.f32 %v13384_v18, 0.0  ;;  %v13386_v63 = vadd.f32 %v13385_v4, %v13344_v57 }
 0xb37   :  { %v13387_v48 = vpop.f32.mrf.mxu1 }
 0xb38   :  { %13416 = vst [vmem:[%s16895_s9 + $0x30] sm:$0xff] %v13396_v12  ;;  %v13397_v32 = vmax.f32 %v13386_v63, 0.0 }
 0xb39   :  { %v13388_v59 = vpop.f32.mrf.mxu1 }
 0xb3a   :  { %13417 = vst [vmem:[%s16895_s9 + $0x38] sm:$0xff] %v13397_v32 }
 0xb3b   :  { %13434 = vsyncpa [#allocation4], 1 }
 0xb3c   :  { %13435 = vsyncpa [#allocation6], 1 }
 0xb3d   :  { %13436 = vsyncpa [#allocation9], 1 }

</bundles_post_ra>
